<compile_context>
chip_gen: v7x
topology: tpu7x:2x2x1
jax: 0.10.0
libtpu: 0.0.40
codegen_flags: <defaults>
</compile_context>

<pallas_src>
import jax
import jax.numpy as jnp
from jax.experimental import pallas as pl
from jax.experimental.pallas import tpu as pltpu


# --------------------------------------------------------------------------
# Fused kernel
# --------------------------------------------------------------------------
def _disc_kernel(x_ref, cw0_ref, cb0_ref, cw1_ref, cw2_ref,
                 fw1_ref, fb1_ref, fw2_ref, fb2_ref, o_ref):
    f32 = jnp.float32
    B = x_ref.shape[0]
    C = cw0_ref.shape[1]          # filter_num (= 10)

    def decim_matrix(wf, l):
        # sel[j, t] = 1.0 where j == 2*t  (keep even positions -> stride 2)
        rows = jax.lax.broadcasted_iota(jnp.int32, (wf, l), 0)
        cols = jax.lax.broadcasted_iota(jnp.int32, (wf, l), 1)
        return (rows == 2 * cols).astype(f32)

    def conv_s2(xv, w_ref, sel):
        # xv: (C_in, W) value, w_ref: (K, C_out, C_in) ref, sel: (Wf, L)
        # stride-1 cross-correlation as a sum of per-tap MXU dots on
        # unit-stride lane slices, then MXU decimation to stride 2.
        k_taps = w_ref.shape[0]
        wf = sel.shape[0]
        acc = jnp.dot(w_ref[0], xv[:, 0:wf], preferred_element_type=f32)
        for k in range(1, k_taps):
            acc = acc + jnp.dot(w_ref[k], xv[:, k:k + wf],
                                preferred_element_type=f32)
        return jnp.dot(acc, sel, preferred_element_type=f32)   # (C_out, L)

    def bn_relu(zs):
        # BatchNorm1d, training-mode batch stats over (batch, length),
        # gamma=1, beta=0, eps=1e-5; single-pass stats, rsqrt on the EUP.
        n = float(len(zs) * zs[0].shape[1])
        s1 = zs[0].sum(axis=1, keepdims=True)
        s2 = (zs[0] * zs[0]).sum(axis=1, keepdims=True)
        for z in zs[1:]:
            s1 = s1 + z.sum(axis=1, keepdims=True)
            s2 = s2 + (z * z).sum(axis=1, keepdims=True)
        mean = s1 * (1.0 / n)
        var = jnp.maximum(s2 * (1.0 / n) - mean * mean, 0.0)
        inv = jax.lax.rsqrt(var + 1e-5)
        return [jnp.maximum((z - mean) * inv, 0.0) for z in zs]

    # ---- stage 0: conv0 (stride 2) + bias + ReLU -------------------------
    w_in = x_ref.shape[2]
    k0 = cw0_ref.shape[0]
    sel0 = decim_matrix(w_in - k0 + 1, (w_in - k0) // 2 + 1)
    b0 = cb0_ref[...]                                           # (C, 1)
    y = [jnp.maximum(conv_s2(x_ref[b], cw0_ref, sel0) + b0, 0.0)
         for b in range(B)]

    # ---- stage 1: conv1 + BN + ReLU  (conv bias cancelled by BN) ---------
    l0 = y[0].shape[1]
    k1 = cw1_ref.shape[0]
    sel1 = decim_matrix(l0 - k1 + 1, (l0 - k1) // 2 + 1)
    y = bn_relu([conv_s2(y[b], cw1_ref, sel1) for b in range(B)])

    # ---- stage 2: conv2 + BN + ReLU --------------------------------------
    l1 = y[0].shape[1]
    k2 = cw2_ref.shape[0]
    sel2 = decim_matrix(l1 - k2 + 1, (l1 - k2) // 2 + 1)
    y = bn_relu([conv_s2(y[b], cw2_ref, sel2) for b in range(B)])

    # ---- AvgPool1d(10) + Flatten + linear1 folded into fw1, then ReLU ----
    # h[b] = fb1 + sum_c  y[b][c, :] @ fw1[c]      (fw1 pre-scaled by 1/10)
    fb1 = fb1_ref[...]                                          # (1, 200)
    fw2 = fw2_ref[...]                                          # (200, out_fea)
    fb2 = fb2_ref[...]                                          # (1, out_fea)
    for b in range(B):
        h = fb1
        for c in range(C):
            h = h + jnp.dot(y[b][c:c + 1, :], fw1_ref[c],
                            preferred_element_type=f32)
        h = jnp.maximum(h, 0.0)
        logits = jnp.dot(h, fw2, preferred_element_type=f32) + fb2
        o_ref[pl.ds(b, 1), :] = logits


# --------------------------------------------------------------------------
# Wrapper: one pallas_call, no grid, whole arrays resident in VMEM
# --------------------------------------------------------------------------
def discriminator_forward(x, packed):
    """x: (B, win_size, in_channels) — same input convention as the module."""
    x_ncw = jnp.transpose(x, (0, 2, 1))          # input.permute(0, 2, 1)
    B = x.shape[0]
    out_fea = packed["fb2"].shape[1]
    vmem = pl.BlockSpec(memory_space=pltpu.MemorySpace.VMEM)
    return pl.pallas_call(
        _disc_kernel,
        out_shape=jax.ShapeDtypeStruct((B, out_fea), jnp.float32),
        in_specs=[vmem] * 9,
        out_specs=vmem,
    )(x_ncw, packed["cw0"], packed["cb0"], packed["cw1"], packed["cw2"],
      packed["fw1"], packed["fb1"], packed["fw2"], packed["fb2"])


# --------------------------------------------------------------------------
# Parameters: PyTorch-layout construction + one-time kernel-layout packing
# --------------------------------------------------------------------------
def make_params(key, in_channels, win_size, out_fea=1):
    """Parameters in the PyTorch module's native layouts / init distributions."""
    filter_num = 10
    l0 = (win_size - 44) // 2 + 1
    l1 = (l0 - 20) // 2 + 1
    l2 = (l1 - 4) // 2 + 1
    flat = filter_num * (l2 // 10)      # AvgPool1d(10) + Flatten -> linear1 in_features
    assert flat > 0, "win_size too small for this architecture"

    ks = jax.random.split(key, 10)
    f32 = jnp.float32
    return {
        # conv weights: nn.init.normal_(w, 0, 1); biases: small init
        "w0": jax.random.normal(ks[0], (filter_num, in_channels, 44), f32),
        "b0": 0.1 * jax.random.normal(ks[1], (filter_num,), f32),
        "w1": jax.random.normal(ks[2], (filter_num, filter_num, 20), f32),
        "b1": 0.1 * jax.random.normal(ks[3], (filter_num,), f32),   # cancelled by bn1
        "w2": jax.random.normal(ks[4], (filter_num, filter_num, 4), f32),
        "b2": 0.1 * jax.random.normal(ks[5], (filter_num,), f32),   # cancelled by bn2
        # linear1 (lazily built in the torch forward): (200, flat), N(0,1) init
        "lw1": jax.random.normal(ks[6], (200, flat), f32),
        "lb1": jax.random.normal(ks[7], (200,), f32),
        # linear2: (out_fea, 200); bias N(0,1) per __init__
        "lw2": 0.05 * jax.random.normal(ks[8], (out_fea, 200), f32),
        "lb2": jax.random.normal(ks[9], (out_fea,), f32),
    }


def pack_params(params, win_size):
    """One-time repack into kernel layouts (runs outside the jitted forward)."""
    filter_num = params["w0"].shape[0]
    l0 = (win_size - 44) // 2 + 1
    l1 = (l0 - 20) // 2 + 1
    l2 = (l1 - 4) // 2 + 1
    lp = l2 // 10

    lw1_t = params["lw1"].T                                    # (flat, 200)
    # Fold AvgPool1d(10) + Flatten + linear1 into fw1 (C, L2, 200):
    #   fw1[c, j, :] = lw1_t[c*lp + j//10, :] / 10   for j < 10*lp, else 0
    cc = jnp.arange(filter_num)[:, None]                       # (C, 1)
    jj = jnp.arange(l2)[None, :]                               # (1, L2)
    idx = cc * lp + jnp.minimum(jj // 10, lp - 1)              # (C, L2)
    fw1 = lw1_t[idx] / 10.0                                    # (C, L2, 200)
    fw1 = jnp.where((jj < 10 * lp)[..., None], fw1, 0.0)

    return {
        "cw0": jnp.transpose(params["w0"], (2, 0, 1)),   # (K0, C_out, C_in)
        "cb0": params["b0"].reshape(filter_num, 1),      # bias column
        "cw1": jnp.transpose(params["w1"], (2, 0, 1)),   # b1/b2 dropped: BN mean-
        "cw2": jnp.transpose(params["w2"], (2, 0, 1)),   # subtraction cancels them
        "fw1": fw1,
        "fb1": params["lb1"].reshape(1, -1),             # (1, 200)
        "fw2": params["lw2"].T,                          # (200, out_fea)
        "fb2": params["lb2"].reshape(1, -1),             # (1, out_fea)
    }


# --------------------------------------------------------------------------
if __name__ == "__main__":
    B = 2
    win_size = 166        # smallest length that survives conv0/1/2 + AvgPool1d(10)
    in_channels = 4
    out_fea = 1

    key = jax.random.PRNGKey(0)
    k_x, k_p = jax.random.split(key)

    x = jax.random.normal(k_x, (B, win_size, in_channels), jnp.float32)
    params = make_params(k_p, in_channels, win_size, out_fea)
    packed = pack_params(params, win_size)        # one-time, outside the jit

    fwd = jax.jit(discriminator_forward)
    out = jax.block_until_ready(fwd(x, packed))

    assert out.shape == (B, out_fea), out.shape
    assert bool(jnp.all(jnp.isfinite(out)))
    print("KERNEL_OK")
</pallas_src>

<mosaic_0001>
module attributes {stable_mosaic.version = 11 : i64} {
  func.func @_disc_kernel(%arg0: memref<2x4x166xf32, #tpu.memory_space<vmem>>, %arg1: memref<44x10x4xf32, #tpu.memory_space<vmem>>, %arg2: memref<10x1xf32, #tpu.memory_space<vmem>>, %arg3: memref<20x10x10xf32, #tpu.memory_space<vmem>>, %arg4: memref<4x10x10xf32, #tpu.memory_space<vmem>>, %arg5: memref<10x10x200xf32, #tpu.memory_space<vmem>>, %arg6: memref<1x200xf32, #tpu.memory_space<vmem>>, %arg7: memref<200x1xf32, #tpu.memory_space<vmem>>, %arg8: memref<1x1xf32, #tpu.memory_space<vmem>>, %arg9: memref<2x1xf32, #tpu.memory_space<vmem>>) attributes {dimension_semantics = [], scalar_prefetch = 0 : i64, scratch_operands = 0 : i64, tpu.core_type = #tpu.core_type<tc>} {
    %0 = tpu.iota {dimensions = array<i32: 0>} : vector<123x62xi32>
    %1 = tpu.iota {dimensions = array<i32: 1>} : vector<123x62xi32>
    %c2_i32 = arith.constant 2 : i32
    %2 = vector.broadcast %c2_i32 : i32 to vector<123x62xi32>
    %3 = arith.muli %2, %1 : vector<123x62xi32>
    %4 = arith.cmpi eq, %0, %3 : vector<123x62xi32>
    %5 = arith.extui %4 : vector<123x62xi1> to vector<123x62xi32>
    %6 = arith.sitofp %5 : vector<123x62xi32> to vector<123x62xf32>
    %c0 = arith.constant 0 : index
    %c0_0 = arith.constant 0 : index
    %7 = vector.load %arg2[%c0, %c0_0] : memref<10x1xf32, #tpu.memory_space<vmem>>, vector<10x1xf32>
    %c0_1 = arith.constant 0 : index
    %c0_2 = arith.constant 0 : index
    %c0_3 = arith.constant 0 : index
    %8 = vector.load %arg0[%c0_1, %c0_2, %c0_3] : memref<2x4x166xf32, #tpu.memory_space<vmem>>, vector<1x4x166xf32>
    %9 = vector.shape_cast %8 : vector<1x4x166xf32> to vector<4x166xf32>
    %c0_4 = arith.constant 0 : index
    %c0_5 = arith.constant 0 : index
    %c0_6 = arith.constant 0 : index
    %10 = vector.load %arg1[%c0_4, %c0_5, %c0_6] : memref<44x10x4xf32, #tpu.memory_space<vmem>>, vector<1x10x4xf32>
    %11 = vector.shape_cast %10 : vector<1x10x4xf32> to vector<10x4xf32>
    %12 = vector.extract_strided_slice %9 {offsets = [0, 0], sizes = [4, 123], strides = [1, 1]} : vector<4x166xf32> to vector<4x123xf32>
    %cst = arith.constant dense<0.000000e+00> : vector<10x123xf32>
    %13 = tpu.matmul %11, %12, %cst {dimension_numbers = #tpu.dot_dimension_numbers<[1], [0], [0], [1], [0, 0, 1, 1], [], []>} : vector<10x4xf32>, vector<4x123xf32>, vector<10x123xf32> -> vector<10x123xf32>
    %c1 = arith.constant 1 : index
    %c0_7 = arith.constant 0 : index
    %c0_8 = arith.constant 0 : index
    %14 = vector.load %arg1[%c1, %c0_7, %c0_8] : memref<44x10x4xf32, #tpu.memory_space<vmem>>, vector<1x10x4xf32>
    %15 = vector.shape_cast %14 : vector<1x10x4xf32> to vector<10x4xf32>
    %16 = vector.extract_strided_slice %9 {offsets = [0, 1], sizes = [4, 123], strides = [1, 1]} : vector<4x166xf32> to vector<4x123xf32>
    %cst_9 = arith.constant dense<0.000000e+00> : vector<10x123xf32>
    %17 = tpu.matmul %15, %16, %cst_9 {dimension_numbers = #tpu.dot_dimension_numbers<[1], [0], [0], [1], [0, 0, 1, 1], [], []>} : vector<10x4xf32>, vector<4x123xf32>, vector<10x123xf32> -> vector<10x123xf32>
    %18 = arith.addf %13, %17 : vector<10x123xf32>
    %c2 = arith.constant 2 : index
    %c0_10 = arith.constant 0 : index
    %c0_11 = arith.constant 0 : index
    %19 = vector.load %arg1[%c2, %c0_10, %c0_11] : memref<44x10x4xf32, #tpu.memory_space<vmem>>, vector<1x10x4xf32>
    %20 = vector.shape_cast %19 : vector<1x10x4xf32> to vector<10x4xf32>
    %21 = vector.extract_strided_slice %9 {offsets = [0, 2], sizes = [4, 123], strides = [1, 1]} : vector<4x166xf32> to vector<4x123xf32>
    %cst_12 = arith.constant dense<0.000000e+00> : vector<10x123xf32>
    %22 = tpu.matmul %20, %21, %cst_12 {dimension_numbers = #tpu.dot_dimension_numbers<[1], [0], [0], [1], [0, 0, 1, 1], [], []>} : vector<10x4xf32>, vector<4x123xf32>, vector<10x123xf32> -> vector<10x123xf32>
    %23 = arith.addf %18, %22 : vector<10x123xf32>
    %c3 = arith.constant 3 : index
    %c0_13 = arith.constant 0 : index
    %c0_14 = arith.constant 0 : index
    %24 = vector.load %arg1[%c3, %c0_13, %c0_14] : memref<44x10x4xf32, #tpu.memory_space<vmem>>, vector<1x10x4xf32>
    %25 = vector.shape_cast %24 : vector<1x10x4xf32> to vector<10x4xf32>
    %26 = vector.extract_strided_slice %9 {offsets = [0, 3], sizes = [4, 123], strides = [1, 1]} : vector<4x166xf32> to vector<4x123xf32>
    %cst_15 = arith.constant dense<0.000000e+00> : vector<10x123xf32>
    %27 = tpu.matmul %25, %26, %cst_15 {dimension_numbers = #tpu.dot_dimension_numbers<[1], [0], [0], [1], [0, 0, 1, 1], [], []>} : vector<10x4xf32>, vector<4x123xf32>, vector<10x123xf32> -> vector<10x123xf32>
    %28 = arith.addf %23, %27 : vector<10x123xf32>
    %c4 = arith.constant 4 : index
    %c0_16 = arith.constant 0 : index
    %c0_17 = arith.constant 0 : index
    %29 = vector.load %arg1[%c4, %c0_16, %c0_17] : memref<44x10x4xf32, #tpu.memory_space<vmem>>, vector<1x10x4xf32>
    %30 = vector.shape_cast %29 : vector<1x10x4xf32> to vector<10x4xf32>
    %31 = vector.extract_strided_slice %9 {offsets = [0, 4], sizes = [4, 123], strides = [1, 1]} : vector<4x166xf32> to vector<4x123xf32>
    %cst_18 = arith.constant dense<0.000000e+00> : vector<10x123xf32>
    %32 = tpu.matmul %30, %31, %cst_18 {dimension_numbers = #tpu.dot_dimension_numbers<[1], [0], [0], [1], [0, 0, 1, 1], [], []>} : vector<10x4xf32>, vector<4x123xf32>, vector<10x123xf32> -> vector<10x123xf32>
    %33 = arith.addf %28, %32 : vector<10x123xf32>
    %c5 = arith.constant 5 : index
    %c0_19 = arith.constant 0 : index
    %c0_20 = arith.constant 0 : index
    %34 = vector.load %arg1[%c5, %c0_19, %c0_20] : memref<44x10x4xf32, #tpu.memory_space<vmem>>, vector<1x10x4xf32>
    %35 = vector.shape_cast %34 : vector<1x10x4xf32> to vector<10x4xf32>
    %36 = vector.extract_strided_slice %9 {offsets = [0, 5], sizes = [4, 123], strides = [1, 1]} : vector<4x166xf32> to vector<4x123xf32>
    %cst_21 = arith.constant dense<0.000000e+00> : vector<10x123xf32>
    %37 = tpu.matmul %35, %36, %cst_21 {dimension_numbers = #tpu.dot_dimension_numbers<[1], [0], [0], [1], [0, 0, 1, 1], [], []>} : vector<10x4xf32>, vector<4x123xf32>, vector<10x123xf32> -> vector<10x123xf32>
    %38 = arith.addf %33, %37 : vector<10x123xf32>
    %c6 = arith.constant 6 : index
    %c0_22 = arith.constant 0 : index
    %c0_23 = arith.constant 0 : index
    %39 = vector.load %arg1[%c6, %c0_22, %c0_23] : memref<44x10x4xf32, #tpu.memory_space<vmem>>, vector<1x10x4xf32>
    %40 = vector.shape_cast %39 : vector<1x10x4xf32> to vector<10x4xf32>
    %41 = vector.extract_strided_slice %9 {offsets = [0, 6], sizes = [4, 123], strides = [1, 1]} : vector<4x166xf32> to vector<4x123xf32>
    %cst_24 = arith.constant dense<0.000000e+00> : vector<10x123xf32>
    %42 = tpu.matmul %40, %41, %cst_24 {dimension_numbers = #tpu.dot_dimension_numbers<[1], [0], [0], [1], [0, 0, 1, 1], [], []>} : vector<10x4xf32>, vector<4x123xf32>, vector<10x123xf32> -> vector<10x123xf32>
    %43 = arith.addf %38, %42 : vector<10x123xf32>
    %c7 = arith.constant 7 : index
    %c0_25 = arith.constant 0 : index
    %c0_26 = arith.constant 0 : index
    %44 = vector.load %arg1[%c7, %c0_25, %c0_26] : memref<44x10x4xf32, #tpu.memory_space<vmem>>, vector<1x10x4xf32>
    %45 = vector.shape_cast %44 : vector<1x10x4xf32> to vector<10x4xf32>
    %46 = vector.extract_strided_slice %9 {offsets = [0, 7], sizes = [4, 123], strides = [1, 1]} : vector<4x166xf32> to vector<4x123xf32>
    %cst_27 = arith.constant dense<0.000000e+00> : vector<10x123xf32>
    %47 = tpu.matmul %45, %46, %cst_27 {dimension_numbers = #tpu.dot_dimension_numbers<[1], [0], [0], [1], [0, 0, 1, 1], [], []>} : vector<10x4xf32>, vector<4x123xf32>, vector<10x123xf32> -> vector<10x123xf32>
    %48 = arith.addf %43, %47 : vector<10x123xf32>
    %c8 = arith.constant 8 : index
    %c0_28 = arith.constant 0 : index
    %c0_29 = arith.constant 0 : index
    %49 = vector.load %arg1[%c8, %c0_28, %c0_29] : memref<44x10x4xf32, #tpu.memory_space<vmem>>, vector<1x10x4xf32>
    %50 = vector.shape_cast %49 : vector<1x10x4xf32> to vector<10x4xf32>
    %51 = vector.extract_strided_slice %9 {offsets = [0, 8], sizes = [4, 123], strides = [1, 1]} : vector<4x166xf32> to vector<4x123xf32>
    %cst_30 = arith.constant dense<0.000000e+00> : vector<10x123xf32>
    %52 = tpu.matmul %50, %51, %cst_30 {dimension_numbers = #tpu.dot_dimension_numbers<[1], [0], [0], [1], [0, 0, 1, 1], [], []>} : vector<10x4xf32>, vector<4x123xf32>, vector<10x123xf32> -> vector<10x123xf32>
    %53 = arith.addf %48, %52 : vector<10x123xf32>
    %c9 = arith.constant 9 : index
    %c0_31 = arith.constant 0 : index
    %c0_32 = arith.constant 0 : index
    %54 = vector.load %arg1[%c9, %c0_31, %c0_32] : memref<44x10x4xf32, #tpu.memory_space<vmem>>, vector<1x10x4xf32>
    %55 = vector.shape_cast %54 : vector<1x10x4xf32> to vector<10x4xf32>
    %56 = vector.extract_strided_slice %9 {offsets = [0, 9], sizes = [4, 123], strides = [1, 1]} : vector<4x166xf32> to vector<4x123xf32>
    %cst_33 = arith.constant dense<0.000000e+00> : vector<10x123xf32>
    %57 = tpu.matmul %55, %56, %cst_33 {dimension_numbers = #tpu.dot_dimension_numbers<[1], [0], [0], [1], [0, 0, 1, 1], [], []>} : vector<10x4xf32>, vector<4x123xf32>, vector<10x123xf32> -> vector<10x123xf32>
    %58 = arith.addf %53, %57 : vector<10x123xf32>
    %c10 = arith.constant 10 : index
    %c0_34 = arith.constant 0 : index
    %c0_35 = arith.constant 0 : index
    %59 = vector.load %arg1[%c10, %c0_34, %c0_35] : memref<44x10x4xf32, #tpu.memory_space<vmem>>, vector<1x10x4xf32>
    %60 = vector.shape_cast %59 : vector<1x10x4xf32> to vector<10x4xf32>
    %61 = vector.extract_strided_slice %9 {offsets = [0, 10], sizes = [4, 123], strides = [1, 1]} : vector<4x166xf32> to vector<4x123xf32>
    %cst_36 = arith.constant dense<0.000000e+00> : vector<10x123xf32>
    %62 = tpu.matmul %60, %61, %cst_36 {dimension_numbers = #tpu.dot_dimension_numbers<[1], [0], [0], [1], [0, 0, 1, 1], [], []>} : vector<10x4xf32>, vector<4x123xf32>, vector<10x123xf32> -> vector<10x123xf32>
    %63 = arith.addf %58, %62 : vector<10x123xf32>
    %c11 = arith.constant 11 : index
    %c0_37 = arith.constant 0 : index
    %c0_38 = arith.constant 0 : index
    %64 = vector.load %arg1[%c11, %c0_37, %c0_38] : memref<44x10x4xf32, #tpu.memory_space<vmem>>, vector<1x10x4xf32>
    %65 = vector.shape_cast %64 : vector<1x10x4xf32> to vector<10x4xf32>
    %66 = vector.extract_strided_slice %9 {offsets = [0, 11], sizes = [4, 123], strides = [1, 1]} : vector<4x166xf32> to vector<4x123xf32>
    %cst_39 = arith.constant dense<0.000000e+00> : vector<10x123xf32>
    %67 = tpu.matmul %65, %66, %cst_39 {dimension_numbers = #tpu.dot_dimension_numbers<[1], [0], [0], [1], [0, 0, 1, 1], [], []>} : vector<10x4xf32>, vector<4x123xf32>, vector<10x123xf32> -> vector<10x123xf32>
    %68 = arith.addf %63, %67 : vector<10x123xf32>
    %c12 = arith.constant 12 : index
    %c0_40 = arith.constant 0 : index
    %c0_41 = arith.constant 0 : index
    %69 = vector.load %arg1[%c12, %c0_40, %c0_41] : memref<44x10x4xf32, #tpu.memory_space<vmem>>, vector<1x10x4xf32>
    %70 = vector.shape_cast %69 : vector<1x10x4xf32> to vector<10x4xf32>
    %71 = vector.extract_strided_slice %9 {offsets = [0, 12], sizes = [4, 123], strides = [1, 1]} : vector<4x166xf32> to vector<4x123xf32>
    %cst_42 = arith.constant dense<0.000000e+00> : vector<10x123xf32>
    %72 = tpu.matmul %70, %71, %cst_42 {dimension_numbers = #tpu.dot_dimension_numbers<[1], [0], [0], [1], [0, 0, 1, 1], [], []>} : vector<10x4xf32>, vector<4x123xf32>, vector<10x123xf32> -> vector<10x123xf32>
    %73 = arith.addf %68, %72 : vector<10x123xf32>
    %c13 = arith.constant 13 : index
    %c0_43 = arith.constant 0 : index
    %c0_44 = arith.constant 0 : index
    %74 = vector.load %arg1[%c13, %c0_43, %c0_44] : memref<44x10x4xf32, #tpu.memory_space<vmem>>, vector<1x10x4xf32>
    %75 = vector.shape_cast %74 : vector<1x10x4xf32> to vector<10x4xf32>
    %76 = vector.extract_strided_slice %9 {offsets = [0, 13], sizes = [4, 123], strides = [1, 1]} : vector<4x166xf32> to vector<4x123xf32>
    %cst_45 = arith.constant dense<0.000000e+00> : vector<10x123xf32>
    %77 = tpu.matmul %75, %76, %cst_45 {dimension_numbers = #tpu.dot_dimension_numbers<[1], [0], [0], [1], [0, 0, 1, 1], [], []>} : vector<10x4xf32>, vector<4x123xf32>, vector<10x123xf32> -> vector<10x123xf32>
    %78 = arith.addf %73, %77 : vector<10x123xf32>
    %c14 = arith.constant 14 : index
    %c0_46 = arith.constant 0 : index
    %c0_47 = arith.constant 0 : index
    %79 = vector.load %arg1[%c14, %c0_46, %c0_47] : memref<44x10x4xf32, #tpu.memory_space<vmem>>, vector<1x10x4xf32>
    %80 = vector.shape_cast %79 : vector<1x10x4xf32> to vector<10x4xf32>
    %81 = vector.extract_strided_slice %9 {offsets = [0, 14], sizes = [4, 123], strides = [1, 1]} : vector<4x166xf32> to vector<4x123xf32>
    %cst_48 = arith.constant dense<0.000000e+00> : vector<10x123xf32>
    %82 = tpu.matmul %80, %81, %cst_48 {dimension_numbers = #tpu.dot_dimension_numbers<[1], [0], [0], [1], [0, 0, 1, 1], [], []>} : vector<10x4xf32>, vector<4x123xf32>, vector<10x123xf32> -> vector<10x123xf32>
    %83 = arith.addf %78, %82 : vector<10x123xf32>
    %c15 = arith.constant 15 : index
    %c0_49 = arith.constant 0 : index
    %c0_50 = arith.constant 0 : index
    %84 = vector.load %arg1[%c15, %c0_49, %c0_50] : memref<44x10x4xf32, #tpu.memory_space<vmem>>, vector<1x10x4xf32>
    %85 = vector.shape_cast %84 : vector<1x10x4xf32> to vector<10x4xf32>
    %86 = vector.extract_strided_slice %9 {offsets = [0, 15], sizes = [4, 123], strides = [1, 1]} : vector<4x166xf32> to vector<4x123xf32>
    %cst_51 = arith.constant dense<0.000000e+00> : vector<10x123xf32>
    %87 = tpu.matmul %85, %86, %cst_51 {dimension_numbers = #tpu.dot_dimension_numbers<[1], [0], [0], [1], [0, 0, 1, 1], [], []>} : vector<10x4xf32>, vector<4x123xf32>, vector<10x123xf32> -> vector<10x123xf32>
    %88 = arith.addf %83, %87 : vector<10x123xf32>
    %c16 = arith.constant 16 : index
    %c0_52 = arith.constant 0 : index
    %c0_53 = arith.constant 0 : index
    %89 = vector.load %arg1[%c16, %c0_52, %c0_53] : memref<44x10x4xf32, #tpu.memory_space<vmem>>, vector<1x10x4xf32>
    %90 = vector.shape_cast %89 : vector<1x10x4xf32> to vector<10x4xf32>
    %91 = vector.extract_strided_slice %9 {offsets = [0, 16], sizes = [4, 123], strides = [1, 1]} : vector<4x166xf32> to vector<4x123xf32>
    %cst_54 = arith.constant dense<0.000000e+00> : vector<10x123xf32>
    %92 = tpu.matmul %90, %91, %cst_54 {dimension_numbers = #tpu.dot_dimension_numbers<[1], [0], [0], [1], [0, 0, 1, 1], [], []>} : vector<10x4xf32>, vector<4x123xf32>, vector<10x123xf32> -> vector<10x123xf32>
    %93 = arith.addf %88, %92 : vector<10x123xf32>
    %c17 = arith.constant 17 : index
    %c0_55 = arith.constant 0 : index
    %c0_56 = arith.constant 0 : index
    %94 = vector.load %arg1[%c17, %c0_55, %c0_56] : memref<44x10x4xf32, #tpu.memory_space<vmem>>, vector<1x10x4xf32>
    %95 = vector.shape_cast %94 : vector<1x10x4xf32> to vector<10x4xf32>
    %96 = vector.extract_strided_slice %9 {offsets = [0, 17], sizes = [4, 123], strides = [1, 1]} : vector<4x166xf32> to vector<4x123xf32>
    %cst_57 = arith.constant dense<0.000000e+00> : vector<10x123xf32>
    %97 = tpu.matmul %95, %96, %cst_57 {dimension_numbers = #tpu.dot_dimension_numbers<[1], [0], [0], [1], [0, 0, 1, 1], [], []>} : vector<10x4xf32>, vector<4x123xf32>, vector<10x123xf32> -> vector<10x123xf32>
    %98 = arith.addf %93, %97 : vector<10x123xf32>
    %c18 = arith.constant 18 : index
    %c0_58 = arith.constant 0 : index
    %c0_59 = arith.constant 0 : index
    %99 = vector.load %arg1[%c18, %c0_58, %c0_59] : memref<44x10x4xf32, #tpu.memory_space<vmem>>, vector<1x10x4xf32>
    %100 = vector.shape_cast %99 : vector<1x10x4xf32> to vector<10x4xf32>
    %101 = vector.extract_strided_slice %9 {offsets = [0, 18], sizes = [4, 123], strides = [1, 1]} : vector<4x166xf32> to vector<4x123xf32>
    %cst_60 = arith.constant dense<0.000000e+00> : vector<10x123xf32>
    %102 = tpu.matmul %100, %101, %cst_60 {dimension_numbers = #tpu.dot_dimension_numbers<[1], [0], [0], [1], [0, 0, 1, 1], [], []>} : vector<10x4xf32>, vector<4x123xf32>, vector<10x123xf32> -> vector<10x123xf32>
    %103 = arith.addf %98, %102 : vector<10x123xf32>
    %c19 = arith.constant 19 : index
    %c0_61 = arith.constant 0 : index
    %c0_62 = arith.constant 0 : index
    %104 = vector.load %arg1[%c19, %c0_61, %c0_62] : memref<44x10x4xf32, #tpu.memory_space<vmem>>, vector<1x10x4xf32>
    %105 = vector.shape_cast %104 : vector<1x10x4xf32> to vector<10x4xf32>
    %106 = vector.extract_strided_slice %9 {offsets = [0, 19], sizes = [4, 123], strides = [1, 1]} : vector<4x166xf32> to vector<4x123xf32>
    %cst_63 = arith.constant dense<0.000000e+00> : vector<10x123xf32>
    %107 = tpu.matmul %105, %106, %cst_63 {dimension_numbers = #tpu.dot_dimension_numbers<[1], [0], [0], [1], [0, 0, 1, 1], [], []>} : vector<10x4xf32>, vector<4x123xf32>, vector<10x123xf32> -> vector<10x123xf32>
    %108 = arith.addf %103, %107 : vector<10x123xf32>
    %c20 = arith.constant 20 : index
    %c0_64 = arith.constant 0 : index
    %c0_65 = arith.constant 0 : index
    %109 = vector.load %arg1[%c20, %c0_64, %c0_65] : memref<44x10x4xf32, #tpu.memory_space<vmem>>, vector<1x10x4xf32>
    %110 = vector.shape_cast %109 : vector<1x10x4xf32> to vector<10x4xf32>
    %111 = vector.extract_strided_slice %9 {offsets = [0, 20], sizes = [4, 123], strides = [1, 1]} : vector<4x166xf32> to vector<4x123xf32>
    %cst_66 = arith.constant dense<0.000000e+00> : vector<10x123xf32>
    %112 = tpu.matmul %110, %111, %cst_66 {dimension_numbers = #tpu.dot_dimension_numbers<[1], [0], [0], [1], [0, 0, 1, 1], [], []>} : vector<10x4xf32>, vector<4x123xf32>, vector<10x123xf32> -> vector<10x123xf32>
    %113 = arith.addf %108, %112 : vector<10x123xf32>
    %c21 = arith.constant 21 : index
    %c0_67 = arith.constant 0 : index
    %c0_68 = arith.constant 0 : index
    %114 = vector.load %arg1[%c21, %c0_67, %c0_68] : memref<44x10x4xf32, #tpu.memory_space<vmem>>, vector<1x10x4xf32>
    %115 = vector.shape_cast %114 : vector<1x10x4xf32> to vector<10x4xf32>
    %116 = vector.extract_strided_slice %9 {offsets = [0, 21], sizes = [4, 123], strides = [1, 1]} : vector<4x166xf32> to vector<4x123xf32>
    %cst_69 = arith.constant dense<0.000000e+00> : vector<10x123xf32>
    %117 = tpu.matmul %115, %116, %cst_69 {dimension_numbers = #tpu.dot_dimension_numbers<[1], [0], [0], [1], [0, 0, 1, 1], [], []>} : vector<10x4xf32>, vector<4x123xf32>, vector<10x123xf32> -> vector<10x123xf32>
    %118 = arith.addf %113, %117 : vector<10x123xf32>
    %c22 = arith.constant 22 : index
    %c0_70 = arith.constant 0 : index
    %c0_71 = arith.constant 0 : index
    %119 = vector.load %arg1[%c22, %c0_70, %c0_71] : memref<44x10x4xf32, #tpu.memory_space<vmem>>, vector<1x10x4xf32>
    %120 = vector.shape_cast %119 : vector<1x10x4xf32> to vector<10x4xf32>
    %121 = vector.extract_strided_slice %9 {offsets = [0, 22], sizes = [4, 123], strides = [1, 1]} : vector<4x166xf32> to vector<4x123xf32>
    %cst_72 = arith.constant dense<0.000000e+00> : vector<10x123xf32>
    %122 = tpu.matmul %120, %121, %cst_72 {dimension_numbers = #tpu.dot_dimension_numbers<[1], [0], [0], [1], [0, 0, 1, 1], [], []>} : vector<10x4xf32>, vector<4x123xf32>, vector<10x123xf32> -> vector<10x123xf32>
    %123 = arith.addf %118, %122 : vector<10x123xf32>
    %c23 = arith.constant 23 : index
    %c0_73 = arith.constant 0 : index
    %c0_74 = arith.constant 0 : index
    %124 = vector.load %arg1[%c23, %c0_73, %c0_74] : memref<44x10x4xf32, #tpu.memory_space<vmem>>, vector<1x10x4xf32>
    %125 = vector.shape_cast %124 : vector<1x10x4xf32> to vector<10x4xf32>
    %126 = vector.extract_strided_slice %9 {offsets = [0, 23], sizes = [4, 123], strides = [1, 1]} : vector<4x166xf32> to vector<4x123xf32>
    %cst_75 = arith.constant dense<0.000000e+00> : vector<10x123xf32>
    %127 = tpu.matmul %125, %126, %cst_75 {dimension_numbers = #tpu.dot_dimension_numbers<[1], [0], [0], [1], [0, 0, 1, 1], [], []>} : vector<10x4xf32>, vector<4x123xf32>, vector<10x123xf32> -> vector<10x123xf32>
    %128 = arith.addf %123, %127 : vector<10x123xf32>
    %c24 = arith.constant 24 : index
    %c0_76 = arith.constant 0 : index
    %c0_77 = arith.constant 0 : index
    %129 = vector.load %arg1[%c24, %c0_76, %c0_77] : memref<44x10x4xf32, #tpu.memory_space<vmem>>, vector<1x10x4xf32>
    %130 = vector.shape_cast %129 : vector<1x10x4xf32> to vector<10x4xf32>
    %131 = vector.extract_strided_slice %9 {offsets = [0, 24], sizes = [4, 123], strides = [1, 1]} : vector<4x166xf32> to vector<4x123xf32>
    %cst_78 = arith.constant dense<0.000000e+00> : vector<10x123xf32>
    %132 = tpu.matmul %130, %131, %cst_78 {dimension_numbers = #tpu.dot_dimension_numbers<[1], [0], [0], [1], [0, 0, 1, 1], [], []>} : vector<10x4xf32>, vector<4x123xf32>, vector<10x123xf32> -> vector<10x123xf32>
    %133 = arith.addf %128, %132 : vector<10x123xf32>
    %c25 = arith.constant 25 : index
    %c0_79 = arith.constant 0 : index
    %c0_80 = arith.constant 0 : index
    %134 = vector.load %arg1[%c25, %c0_79, %c0_80] : memref<44x10x4xf32, #tpu.memory_space<vmem>>, vector<1x10x4xf32>
    %135 = vector.shape_cast %134 : vector<1x10x4xf32> to vector<10x4xf32>
    %136 = vector.extract_strided_slice %9 {offsets = [0, 25], sizes = [4, 123], strides = [1, 1]} : vector<4x166xf32> to vector<4x123xf32>
    %cst_81 = arith.constant dense<0.000000e+00> : vector<10x123xf32>
    %137 = tpu.matmul %135, %136, %cst_81 {dimension_numbers = #tpu.dot_dimension_numbers<[1], [0], [0], [1], [0, 0, 1, 1], [], []>} : vector<10x4xf32>, vector<4x123xf32>, vector<10x123xf32> -> vector<10x123xf32>
    %138 = arith.addf %133, %137 : vector<10x123xf32>
    %c26 = arith.constant 26 : index
    %c0_82 = arith.constant 0 : index
    %c0_83 = arith.constant 0 : index
    %139 = vector.load %arg1[%c26, %c0_82, %c0_83] : memref<44x10x4xf32, #tpu.memory_space<vmem>>, vector<1x10x4xf32>
    %140 = vector.shape_cast %139 : vector<1x10x4xf32> to vector<10x4xf32>
    %141 = vector.extract_strided_slice %9 {offsets = [0, 26], sizes = [4, 123], strides = [1, 1]} : vector<4x166xf32> to vector<4x123xf32>
    %cst_84 = arith.constant dense<0.000000e+00> : vector<10x123xf32>
    %142 = tpu.matmul %140, %141, %cst_84 {dimension_numbers = #tpu.dot_dimension_numbers<[1], [0], [0], [1], [0, 0, 1, 1], [], []>} : vector<10x4xf32>, vector<4x123xf32>, vector<10x123xf32> -> vector<10x123xf32>
    %143 = arith.addf %138, %142 : vector<10x123xf32>
    %c27 = arith.constant 27 : index
    %c0_85 = arith.constant 0 : index
    %c0_86 = arith.constant 0 : index
    %144 = vector.load %arg1[%c27, %c0_85, %c0_86] : memref<44x10x4xf32, #tpu.memory_space<vmem>>, vector<1x10x4xf32>
    %145 = vector.shape_cast %144 : vector<1x10x4xf32> to vector<10x4xf32>
    %146 = vector.extract_strided_slice %9 {offsets = [0, 27], sizes = [4, 123], strides = [1, 1]} : vector<4x166xf32> to vector<4x123xf32>
    %cst_87 = arith.constant dense<0.000000e+00> : vector<10x123xf32>
    %147 = tpu.matmul %145, %146, %cst_87 {dimension_numbers = #tpu.dot_dimension_numbers<[1], [0], [0], [1], [0, 0, 1, 1], [], []>} : vector<10x4xf32>, vector<4x123xf32>, vector<10x123xf32> -> vector<10x123xf32>
    %148 = arith.addf %143, %147 : vector<10x123xf32>
    %c28 = arith.constant 28 : index
    %c0_88 = arith.constant 0 : index
    %c0_89 = arith.constant 0 : index
    %149 = vector.load %arg1[%c28, %c0_88, %c0_89] : memref<44x10x4xf32, #tpu.memory_space<vmem>>, vector<1x10x4xf32>
    %150 = vector.shape_cast %149 : vector<1x10x4xf32> to vector<10x4xf32>
    %151 = vector.extract_strided_slice %9 {offsets = [0, 28], sizes = [4, 123], strides = [1, 1]} : vector<4x166xf32> to vector<4x123xf32>
    %cst_90 = arith.constant dense<0.000000e+00> : vector<10x123xf32>
    %152 = tpu.matmul %150, %151, %cst_90 {dimension_numbers = #tpu.dot_dimension_numbers<[1], [0], [0], [1], [0, 0, 1, 1], [], []>} : vector<10x4xf32>, vector<4x123xf32>, vector<10x123xf32> -> vector<10x123xf32>
    %153 = arith.addf %148, %152 : vector<10x123xf32>
    %c29 = arith.constant 29 : index
    %c0_91 = arith.constant 0 : index
    %c0_92 = arith.constant 0 : index
    %154 = vector.load %arg1[%c29, %c0_91, %c0_92] : memref<44x10x4xf32, #tpu.memory_space<vmem>>, vector<1x10x4xf32>
    %155 = vector.shape_cast %154 : vector<1x10x4xf32> to vector<10x4xf32>
    %156 = vector.extract_strided_slice %9 {offsets = [0, 29], sizes = [4, 123], strides = [1, 1]} : vector<4x166xf32> to vector<4x123xf32>
    %cst_93 = arith.constant dense<0.000000e+00> : vector<10x123xf32>
    %157 = tpu.matmul %155, %156, %cst_93 {dimension_numbers = #tpu.dot_dimension_numbers<[1], [0], [0], [1], [0, 0, 1, 1], [], []>} : vector<10x4xf32>, vector<4x123xf32>, vector<10x123xf32> -> vector<10x123xf32>
    %158 = arith.addf %153, %157 : vector<10x123xf32>
    %c30 = arith.constant 30 : index
    %c0_94 = arith.constant 0 : index
    %c0_95 = arith.constant 0 : index
    %159 = vector.load %arg1[%c30, %c0_94, %c0_95] : memref<44x10x4xf32, #tpu.memory_space<vmem>>, vector<1x10x4xf32>
    %160 = vector.shape_cast %159 : vector<1x10x4xf32> to vector<10x4xf32>
    %161 = vector.extract_strided_slice %9 {offsets = [0, 30], sizes = [4, 123], strides = [1, 1]} : vector<4x166xf32> to vector<4x123xf32>
    %cst_96 = arith.constant dense<0.000000e+00> : vector<10x123xf32>
    %162 = tpu.matmul %160, %161, %cst_96 {dimension_numbers = #tpu.dot_dimension_numbers<[1], [0], [0], [1], [0, 0, 1, 1], [], []>} : vector<10x4xf32>, vector<4x123xf32>, vector<10x123xf32> -> vector<10x123xf32>
    %163 = arith.addf %158, %162 : vector<10x123xf32>
    %c31 = arith.constant 31 : index
    %c0_97 = arith.constant 0 : index
    %c0_98 = arith.constant 0 : index
    %164 = vector.load %arg1[%c31, %c0_97, %c0_98] : memref<44x10x4xf32, #tpu.memory_space<vmem>>, vector<1x10x4xf32>
    %165 = vector.shape_cast %164 : vector<1x10x4xf32> to vector<10x4xf32>
    %166 = vector.extract_strided_slice %9 {offsets = [0, 31], sizes = [4, 123], strides = [1, 1]} : vector<4x166xf32> to vector<4x123xf32>
    %cst_99 = arith.constant dense<0.000000e+00> : vector<10x123xf32>
    %167 = tpu.matmul %165, %166, %cst_99 {dimension_numbers = #tpu.dot_dimension_numbers<[1], [0], [0], [1], [0, 0, 1, 1], [], []>} : vector<10x4xf32>, vector<4x123xf32>, vector<10x123xf32> -> vector<10x123xf32>
    %168 = arith.addf %163, %167 : vector<10x123xf32>
    %c32 = arith.constant 32 : index
    %c0_100 = arith.constant 0 : index
    %c0_101 = arith.constant 0 : index
    %169 = vector.load %arg1[%c32, %c0_100, %c0_101] : memref<44x10x4xf32, #tpu.memory_space<vmem>>, vector<1x10x4xf32>
    %170 = vector.shape_cast %169 : vector<1x10x4xf32> to vector<10x4xf32>
    %171 = vector.extract_strided_slice %9 {offsets = [0, 32], sizes = [4, 123], strides = [1, 1]} : vector<4x166xf32> to vector<4x123xf32>
    %cst_102 = arith.constant dense<0.000000e+00> : vector<10x123xf32>
    %172 = tpu.matmul %170, %171, %cst_102 {dimension_numbers = #tpu.dot_dimension_numbers<[1], [0], [0], [1], [0, 0, 1, 1], [], []>} : vector<10x4xf32>, vector<4x123xf32>, vector<10x123xf32> -> vector<10x123xf32>
    %173 = arith.addf %168, %172 : vector<10x123xf32>
    %c33 = arith.constant 33 : index
    %c0_103 = arith.constant 0 : index
    %c0_104 = arith.constant 0 : index
    %174 = vector.load %arg1[%c33, %c0_103, %c0_104] : memref<44x10x4xf32, #tpu.memory_space<vmem>>, vector<1x10x4xf32>
    %175 = vector.shape_cast %174 : vector<1x10x4xf32> to vector<10x4xf32>
    %176 = vector.extract_strided_slice %9 {offsets = [0, 33], sizes = [4, 123], strides = [1, 1]} : vector<4x166xf32> to vector<4x123xf32>
    %cst_105 = arith.constant dense<0.000000e+00> : vector<10x123xf32>
    %177 = tpu.matmul %175, %176, %cst_105 {dimension_numbers = #tpu.dot_dimension_numbers<[1], [0], [0], [1], [0, 0, 1, 1], [], []>} : vector<10x4xf32>, vector<4x123xf32>, vector<10x123xf32> -> vector<10x123xf32>
    %178 = arith.addf %173, %177 : vector<10x123xf32>
    %c34 = arith.constant 34 : index
    %c0_106 = arith.constant 0 : index
    %c0_107 = arith.constant 0 : index
    %179 = vector.load %arg1[%c34, %c0_106, %c0_107] : memref<44x10x4xf32, #tpu.memory_space<vmem>>, vector<1x10x4xf32>
    %180 = vector.shape_cast %179 : vector<1x10x4xf32> to vector<10x4xf32>
    %181 = vector.extract_strided_slice %9 {offsets = [0, 34], sizes = [4, 123], strides = [1, 1]} : vector<4x166xf32> to vector<4x123xf32>
    %cst_108 = arith.constant dense<0.000000e+00> : vector<10x123xf32>
    %182 = tpu.matmul %180, %181, %cst_108 {dimension_numbers = #tpu.dot_dimension_numbers<[1], [0], [0], [1], [0, 0, 1, 1], [], []>} : vector<10x4xf32>, vector<4x123xf32>, vector<10x123xf32> -> vector<10x123xf32>
    %183 = arith.addf %178, %182 : vector<10x123xf32>
    %c35 = arith.constant 35 : index
    %c0_109 = arith.constant 0 : index
    %c0_110 = arith.constant 0 : index
    %184 = vector.load %arg1[%c35, %c0_109, %c0_110] : memref<44x10x4xf32, #tpu.memory_space<vmem>>, vector<1x10x4xf32>
    %185 = vector.shape_cast %184 : vector<1x10x4xf32> to vector<10x4xf32>
    %186 = vector.extract_strided_slice %9 {offsets = [0, 35], sizes = [4, 123], strides = [1, 1]} : vector<4x166xf32> to vector<4x123xf32>
    %cst_111 = arith.constant dense<0.000000e+00> : vector<10x123xf32>
    %187 = tpu.matmul %185, %186, %cst_111 {dimension_numbers = #tpu.dot_dimension_numbers<[1], [0], [0], [1], [0, 0, 1, 1], [], []>} : vector<10x4xf32>, vector<4x123xf32>, vector<10x123xf32> -> vector<10x123xf32>
    %188 = arith.addf %183, %187 : vector<10x123xf32>
    %c36 = arith.constant 36 : index
    %c0_112 = arith.constant 0 : index
    %c0_113 = arith.constant 0 : index
    %189 = vector.load %arg1[%c36, %c0_112, %c0_113] : memref<44x10x4xf32, #tpu.memory_space<vmem>>, vector<1x10x4xf32>
    %190 = vector.shape_cast %189 : vector<1x10x4xf32> to vector<10x4xf32>
    %191 = vector.extract_strided_slice %9 {offsets = [0, 36], sizes = [4, 123], strides = [1, 1]} : vector<4x166xf32> to vector<4x123xf32>
    %cst_114 = arith.constant dense<0.000000e+00> : vector<10x123xf32>
    %192 = tpu.matmul %190, %191, %cst_114 {dimension_numbers = #tpu.dot_dimension_numbers<[1], [0], [0], [1], [0, 0, 1, 1], [], []>} : vector<10x4xf32>, vector<4x123xf32>, vector<10x123xf32> -> vector<10x123xf32>
    %193 = arith.addf %188, %192 : vector<10x123xf32>
    %c37 = arith.constant 37 : index
    %c0_115 = arith.constant 0 : index
    %c0_116 = arith.constant 0 : index
    %194 = vector.load %arg1[%c37, %c0_115, %c0_116] : memref<44x10x4xf32, #tpu.memory_space<vmem>>, vector<1x10x4xf32>
    %195 = vector.shape_cast %194 : vector<1x10x4xf32> to vector<10x4xf32>
    %196 = vector.extract_strided_slice %9 {offsets = [0, 37], sizes = [4, 123], strides = [1, 1]} : vector<4x166xf32> to vector<4x123xf32>
    %cst_117 = arith.constant dense<0.000000e+00> : vector<10x123xf32>
    %197 = tpu.matmul %195, %196, %cst_117 {dimension_numbers = #tpu.dot_dimension_numbers<[1], [0], [0], [1], [0, 0, 1, 1], [], []>} : vector<10x4xf32>, vector<4x123xf32>, vector<10x123xf32> -> vector<10x123xf32>
    %198 = arith.addf %193, %197 : vector<10x123xf32>
    %c38 = arith.constant 38 : index
    %c0_118 = arith.constant 0 : index
    %c0_119 = arith.constant 0 : index
    %199 = vector.load %arg1[%c38, %c0_118, %c0_119] : memref<44x10x4xf32, #tpu.memory_space<vmem>>, vector<1x10x4xf32>
    %200 = vector.shape_cast %199 : vector<1x10x4xf32> to vector<10x4xf32>
    %201 = vector.extract_strided_slice %9 {offsets = [0, 38], sizes = [4, 123], strides = [1, 1]} : vector<4x166xf32> to vector<4x123xf32>
    %cst_120 = arith.constant dense<0.000000e+00> : vector<10x123xf32>
    %202 = tpu.matmul %200, %201, %cst_120 {dimension_numbers = #tpu.dot_dimension_numbers<[1], [0], [0], [1], [0, 0, 1, 1], [], []>} : vector<10x4xf32>, vector<4x123xf32>, vector<10x123xf32> -> vector<10x123xf32>
    %203 = arith.addf %198, %202 : vector<10x123xf32>
    %c39 = arith.constant 39 : index
    %c0_121 = arith.constant 0 : index
    %c0_122 = arith.constant 0 : index
    %204 = vector.load %arg1[%c39, %c0_121, %c0_122] : memref<44x10x4xf32, #tpu.memory_space<vmem>>, vector<1x10x4xf32>
    %205 = vector.shape_cast %204 : vector<1x10x4xf32> to vector<10x4xf32>
    %206 = vector.extract_strided_slice %9 {offsets = [0, 39], sizes = [4, 123], strides = [1, 1]} : vector<4x166xf32> to vector<4x123xf32>
    %cst_123 = arith.constant dense<0.000000e+00> : vector<10x123xf32>
    %207 = tpu.matmul %205, %206, %cst_123 {dimension_numbers = #tpu.dot_dimension_numbers<[1], [0], [0], [1], [0, 0, 1, 1], [], []>} : vector<10x4xf32>, vector<4x123xf32>, vector<10x123xf32> -> vector<10x123xf32>
    %208 = arith.addf %203, %207 : vector<10x123xf32>
    %c40 = arith.constant 40 : index
    %c0_124 = arith.constant 0 : index
    %c0_125 = arith.constant 0 : index
    %209 = vector.load %arg1[%c40, %c0_124, %c0_125] : memref<44x10x4xf32, #tpu.memory_space<vmem>>, vector<1x10x4xf32>
    %210 = vector.shape_cast %209 : vector<1x10x4xf32> to vector<10x4xf32>
    %211 = vector.extract_strided_slice %9 {offsets = [0, 40], sizes = [4, 123], strides = [1, 1]} : vector<4x166xf32> to vector<4x123xf32>
    %cst_126 = arith.constant dense<0.000000e+00> : vector<10x123xf32>
    %212 = tpu.matmul %210, %211, %cst_126 {dimension_numbers = #tpu.dot_dimension_numbers<[1], [0], [0], [1], [0, 0, 1, 1], [], []>} : vector<10x4xf32>, vector<4x123xf32>, vector<10x123xf32> -> vector<10x123xf32>
    %213 = arith.addf %208, %212 : vector<10x123xf32>
    %c41 = arith.constant 41 : index
    %c0_127 = arith.constant 0 : index
    %c0_128 = arith.constant 0 : index
    %214 = vector.load %arg1[%c41, %c0_127, %c0_128] : memref<44x10x4xf32, #tpu.memory_space<vmem>>, vector<1x10x4xf32>
    %215 = vector.shape_cast %214 : vector<1x10x4xf32> to vector<10x4xf32>
    %216 = vector.extract_strided_slice %9 {offsets = [0, 41], sizes = [4, 123], strides = [1, 1]} : vector<4x166xf32> to vector<4x123xf32>
    %cst_129 = arith.constant dense<0.000000e+00> : vector<10x123xf32>
    %217 = tpu.matmul %215, %216, %cst_129 {dimension_numbers = #tpu.dot_dimension_numbers<[1], [0], [0], [1], [0, 0, 1, 1], [], []>} : vector<10x4xf32>, vector<4x123xf32>, vector<10x123xf32> -> vector<10x123xf32>
    %218 = arith.addf %213, %217 : vector<10x123xf32>
    %c42 = arith.constant 42 : index
    %c0_130 = arith.constant 0 : index
    %c0_131 = arith.constant 0 : index
    %219 = vector.load %arg1[%c42, %c0_130, %c0_131] : memref<44x10x4xf32, #tpu.memory_space<vmem>>, vector<1x10x4xf32>
    %220 = vector.shape_cast %219 : vector<1x10x4xf32> to vector<10x4xf32>
    %221 = vector.extract_strided_slice %9 {offsets = [0, 42], sizes = [4, 123], strides = [1, 1]} : vector<4x166xf32> to vector<4x123xf32>
    %cst_132 = arith.constant dense<0.000000e+00> : vector<10x123xf32>
    %222 = tpu.matmul %220, %221, %cst_132 {dimension_numbers = #tpu.dot_dimension_numbers<[1], [0], [0], [1], [0, 0, 1, 1], [], []>} : vector<10x4xf32>, vector<4x123xf32>, vector<10x123xf32> -> vector<10x123xf32>
    %223 = arith.addf %218, %222 : vector<10x123xf32>
    %c43 = arith.constant 43 : index
    %c0_133 = arith.constant 0 : index
    %c0_134 = arith.constant 0 : index
    %224 = vector.load %arg1[%c43, %c0_133, %c0_134] : memref<44x10x4xf32, #tpu.memory_space<vmem>>, vector<1x10x4xf32>
    %225 = vector.shape_cast %224 : vector<1x10x4xf32> to vector<10x4xf32>
    %226 = vector.extract_strided_slice %9 {offsets = [0, 43], sizes = [4, 123], strides = [1, 1]} : vector<4x166xf32> to vector<4x123xf32>
    %cst_135 = arith.constant dense<0.000000e+00> : vector<10x123xf32>
    %227 = tpu.matmul %225, %226, %cst_135 {dimension_numbers = #tpu.dot_dimension_numbers<[1], [0], [0], [1], [0, 0, 1, 1], [], []>} : vector<10x4xf32>, vector<4x123xf32>, vector<10x123xf32> -> vector<10x123xf32>
    %228 = arith.addf %223, %227 : vector<10x123xf32>
    %cst_136 = arith.constant dense<0.000000e+00> : vector<10x62xf32>
    %229 = tpu.matmul %228, %6, %cst_136 {dimension_numbers = #tpu.dot_dimension_numbers<[1], [0], [0], [1], [0, 0, 1, 1], [], []>} : vector<10x123xf32>, vector<123x62xf32>, vector<10x62xf32> -> vector<10x62xf32>
    %230 = vector.broadcast %7 : vector<10x1xf32> to vector<10x62xf32>
    %231 = arith.addf %229, %230 : vector<10x62xf32>
    %cst_137 = arith.constant 0.000000e+00 : f32
    %232 = vector.broadcast %cst_137 : f32 to vector<10x62xf32>
    %233 = arith.maximumf %231, %232 : vector<10x62xf32>
    %c1_138 = arith.constant 1 : index
    %c0_139 = arith.constant 0 : index
    %c0_140 = arith.constant 0 : index
    %234 = vector.load %arg0[%c1_138, %c0_139, %c0_140] : memref<2x4x166xf32, #tpu.memory_space<vmem>>, vector<1x4x166xf32>
    %235 = vector.shape_cast %234 : vector<1x4x166xf32> to vector<4x166xf32>
    %c0_141 = arith.constant 0 : index
    %c0_142 = arith.constant 0 : index
    %c0_143 = arith.constant 0 : index
    %236 = vector.load %arg1[%c0_141, %c0_142, %c0_143] : memref<44x10x4xf32, #tpu.memory_space<vmem>>, vector<1x10x4xf32>
    %237 = vector.shape_cast %236 : vector<1x10x4xf32> to vector<10x4xf32>
    %238 = vector.extract_strided_slice %235 {offsets = [0, 0], sizes = [4, 123], strides = [1, 1]} : vector<4x166xf32> to vector<4x123xf32>
    %cst_144 = arith.constant dense<0.000000e+00> : vector<10x123xf32>
    %239 = tpu.matmul %237, %238, %cst_144 {dimension_numbers = #tpu.dot_dimension_numbers<[1], [0], [0], [1], [0, 0, 1, 1], [], []>} : vector<10x4xf32>, vector<4x123xf32>, vector<10x123xf32> -> vector<10x123xf32>
    %c1_145 = arith.constant 1 : index
    %c0_146 = arith.constant 0 : index
    %c0_147 = arith.constant 0 : index
    %240 = vector.load %arg1[%c1_145, %c0_146, %c0_147] : memref<44x10x4xf32, #tpu.memory_space<vmem>>, vector<1x10x4xf32>
    %241 = vector.shape_cast %240 : vector<1x10x4xf32> to vector<10x4xf32>
    %242 = vector.extract_strided_slice %235 {offsets = [0, 1], sizes = [4, 123], strides = [1, 1]} : vector<4x166xf32> to vector<4x123xf32>
    %cst_148 = arith.constant dense<0.000000e+00> : vector<10x123xf32>
    %243 = tpu.matmul %241, %242, %cst_148 {dimension_numbers = #tpu.dot_dimension_numbers<[1], [0], [0], [1], [0, 0, 1, 1], [], []>} : vector<10x4xf32>, vector<4x123xf32>, vector<10x123xf32> -> vector<10x123xf32>
    %244 = arith.addf %239, %243 : vector<10x123xf32>
    %c2_149 = arith.constant 2 : index
    %c0_150 = arith.constant 0 : index
    %c0_151 = arith.constant 0 : index
    %245 = vector.load %arg1[%c2_149, %c0_150, %c0_151] : memref<44x10x4xf32, #tpu.memory_space<vmem>>, vector<1x10x4xf32>
    %246 = vector.shape_cast %245 : vector<1x10x4xf32> to vector<10x4xf32>
    %247 = vector.extract_strided_slice %235 {offsets = [0, 2], sizes = [4, 123], strides = [1, 1]} : vector<4x166xf32> to vector<4x123xf32>
    %cst_152 = arith.constant dense<0.000000e+00> : vector<10x123xf32>
    %248 = tpu.matmul %246, %247, %cst_152 {dimension_numbers = #tpu.dot_dimension_numbers<[1], [0], [0], [1], [0, 0, 1, 1], [], []>} : vector<10x4xf32>, vector<4x123xf32>, vector<10x123xf32> -> vector<10x123xf32>
    %249 = arith.addf %244, %248 : vector<10x123xf32>
    %c3_153 = arith.constant 3 : index
    %c0_154 = arith.constant 0 : index
    %c0_155 = arith.constant 0 : index
    %250 = vector.load %arg1[%c3_153, %c0_154, %c0_155] : memref<44x10x4xf32, #tpu.memory_space<vmem>>, vector<1x10x4xf32>
    %251 = vector.shape_cast %250 : vector<1x10x4xf32> to vector<10x4xf32>
    %252 = vector.extract_strided_slice %235 {offsets = [0, 3], sizes = [4, 123], strides = [1, 1]} : vector<4x166xf32> to vector<4x123xf32>
    %cst_156 = arith.constant dense<0.000000e+00> : vector<10x123xf32>
    %253 = tpu.matmul %251, %252, %cst_156 {dimension_numbers = #tpu.dot_dimension_numbers<[1], [0], [0], [1], [0, 0, 1, 1], [], []>} : vector<10x4xf32>, vector<4x123xf32>, vector<10x123xf32> -> vector<10x123xf32>
    %254 = arith.addf %249, %253 : vector<10x123xf32>
    %c4_157 = arith.constant 4 : index
    %c0_158 = arith.constant 0 : index
    %c0_159 = arith.constant 0 : index
    %255 = vector.load %arg1[%c4_157, %c0_158, %c0_159] : memref<44x10x4xf32, #tpu.memory_space<vmem>>, vector<1x10x4xf32>
    %256 = vector.shape_cast %255 : vector<1x10x4xf32> to vector<10x4xf32>
    %257 = vector.extract_strided_slice %235 {offsets = [0, 4], sizes = [4, 123], strides = [1, 1]} : vector<4x166xf32> to vector<4x123xf32>
    %cst_160 = arith.constant dense<0.000000e+00> : vector<10x123xf32>
    %258 = tpu.matmul %256, %257, %cst_160 {dimension_numbers = #tpu.dot_dimension_numbers<[1], [0], [0], [1], [0, 0, 1, 1], [], []>} : vector<10x4xf32>, vector<4x123xf32>, vector<10x123xf32> -> vector<10x123xf32>
    %259 = arith.addf %254, %258 : vector<10x123xf32>
    %c5_161 = arith.constant 5 : index
    %c0_162 = arith.constant 0 : index
    %c0_163 = arith.constant 0 : index
    %260 = vector.load %arg1[%c5_161, %c0_162, %c0_163] : memref<44x10x4xf32, #tpu.memory_space<vmem>>, vector<1x10x4xf32>
    %261 = vector.shape_cast %260 : vector<1x10x4xf32> to vector<10x4xf32>
    %262 = vector.extract_strided_slice %235 {offsets = [0, 5], sizes = [4, 123], strides = [1, 1]} : vector<4x166xf32> to vector<4x123xf32>
    %cst_164 = arith.constant dense<0.000000e+00> : vector<10x123xf32>
    %263 = tpu.matmul %261, %262, %cst_164 {dimension_numbers = #tpu.dot_dimension_numbers<[1], [0], [0], [1], [0, 0, 1, 1], [], []>} : vector<10x4xf32>, vector<4x123xf32>, vector<10x123xf32> -> vector<10x123xf32>
    %264 = arith.addf %259, %263 : vector<10x123xf32>
    %c6_165 = arith.constant 6 : index
    %c0_166 = arith.constant 0 : index
    %c0_167 = arith.constant 0 : index
    %265 = vector.load %arg1[%c6_165, %c0_166, %c0_167] : memref<44x10x4xf32, #tpu.memory_space<vmem>>, vector<1x10x4xf32>
    %266 = vector.shape_cast %265 : vector<1x10x4xf32> to vector<10x4xf32>
    %267 = vector.extract_strided_slice %235 {offsets = [0, 6], sizes = [4, 123], strides = [1, 1]} : vector<4x166xf32> to vector<4x123xf32>
    %cst_168 = arith.constant dense<0.000000e+00> : vector<10x123xf32>
    %268 = tpu.matmul %266, %267, %cst_168 {dimension_numbers = #tpu.dot_dimension_numbers<[1], [0], [0], [1], [0, 0, 1, 1], [], []>} : vector<10x4xf32>, vector<4x123xf32>, vector<10x123xf32> -> vector<10x123xf32>
    %269 = arith.addf %264, %268 : vector<10x123xf32>
    %c7_169 = arith.constant 7 : index
    %c0_170 = arith.constant 0 : index
    %c0_171 = arith.constant 0 : index
    %270 = vector.load %arg1[%c7_169, %c0_170, %c0_171] : memref<44x10x4xf32, #tpu.memory_space<vmem>>, vector<1x10x4xf32>
    %271 = vector.shape_cast %270 : vector<1x10x4xf32> to vector<10x4xf32>
    %272 = vector.extract_strided_slice %235 {offsets = [0, 7], sizes = [4, 123], strides = [1, 1]} : vector<4x166xf32> to vector<4x123xf32>
    %cst_172 = arith.constant dense<0.000000e+00> : vector<10x123xf32>
    %273 = tpu.matmul %271, %272, %cst_172 {dimension_numbers = #tpu.dot_dimension_numbers<[1], [0], [0], [1], [0, 0, 1, 1], [], []>} : vector<10x4xf32>, vector<4x123xf32>, vector<10x123xf32> -> vector<10x123xf32>
    %274 = arith.addf %269, %273 : vector<10x123xf32>
    %c8_173 = arith.constant 8 : index
    %c0_174 = arith.constant 0 : index
    %c0_175 = arith.constant 0 : index
    %275 = vector.load %arg1[%c8_173, %c0_174, %c0_175] : memref<44x10x4xf32, #tpu.memory_space<vmem>>, vector<1x10x4xf32>
    %276 = vector.shape_cast %275 : vector<1x10x4xf32> to vector<10x4xf32>
    %277 = vector.extract_strided_slice %235 {offsets = [0, 8], sizes = [4, 123], strides = [1, 1]} : vector<4x166xf32> to vector<4x123xf32>
    %cst_176 = arith.constant dense<0.000000e+00> : vector<10x123xf32>
    %278 = tpu.matmul %276, %277, %cst_176 {dimension_numbers = #tpu.dot_dimension_numbers<[1], [0], [0], [1], [0, 0, 1, 1], [], []>} : vector<10x4xf32>, vector<4x123xf32>, vector<10x123xf32> -> vector<10x123xf32>
    %279 = arith.addf %274, %278 : vector<10x123xf32>
    %c9_177 = arith.constant 9 : index
    %c0_178 = arith.constant 0 : index
    %c0_179 = arith.constant 0 : index
    %280 = vector.load %arg1[%c9_177, %c0_178, %c0_179] : memref<44x10x4xf32, #tpu.memory_space<vmem>>, vector<1x10x4xf32>
    %281 = vector.shape_cast %280 : vector<1x10x4xf32> to vector<10x4xf32>
    %282 = vector.extract_strided_slice %235 {offsets = [0, 9], sizes = [4, 123], strides = [1, 1]} : vector<4x166xf32> to vector<4x123xf32>
    %cst_180 = arith.constant dense<0.000000e+00> : vector<10x123xf32>
    %283 = tpu.matmul %281, %282, %cst_180 {dimension_numbers = #tpu.dot_dimension_numbers<[1], [0], [0], [1], [0, 0, 1, 1], [], []>} : vector<10x4xf32>, vector<4x123xf32>, vector<10x123xf32> -> vector<10x123xf32>
    %284 = arith.addf %279, %283 : vector<10x123xf32>
    %c10_181 = arith.constant 10 : index
    %c0_182 = arith.constant 0 : index
    %c0_183 = arith.constant 0 : index
    %285 = vector.load %arg1[%c10_181, %c0_182, %c0_183] : memref<44x10x4xf32, #tpu.memory_space<vmem>>, vector<1x10x4xf32>
    %286 = vector.shape_cast %285 : vector<1x10x4xf32> to vector<10x4xf32>
    %287 = vector.extract_strided_slice %235 {offsets = [0, 10], sizes = [4, 123], strides = [1, 1]} : vector<4x166xf32> to vector<4x123xf32>
    %cst_184 = arith.constant dense<0.000000e+00> : vector<10x123xf32>
    %288 = tpu.matmul %286, %287, %cst_184 {dimension_numbers = #tpu.dot_dimension_numbers<[1], [0], [0], [1], [0, 0, 1, 1], [], []>} : vector<10x4xf32>, vector<4x123xf32>, vector<10x123xf32> -> vector<10x123xf32>
    %289 = arith.addf %284, %288 : vector<10x123xf32>
    %c11_185 = arith.constant 11 : index
    %c0_186 = arith.constant 0 : index
    %c0_187 = arith.constant 0 : index
    %290 = vector.load %arg1[%c11_185, %c0_186, %c0_187] : memref<44x10x4xf32, #tpu.memory_space<vmem>>, vector<1x10x4xf32>
    %291 = vector.shape_cast %290 : vector<1x10x4xf32> to vector<10x4xf32>
    %292 = vector.extract_strided_slice %235 {offsets = [0, 11], sizes = [4, 123], strides = [1, 1]} : vector<4x166xf32> to vector<4x123xf32>
    %cst_188 = arith.constant dense<0.000000e+00> : vector<10x123xf32>
    %293 = tpu.matmul %291, %292, %cst_188 {dimension_numbers = #tpu.dot_dimension_numbers<[1], [0], [0], [1], [0, 0, 1, 1], [], []>} : vector<10x4xf32>, vector<4x123xf32>, vector<10x123xf32> -> vector<10x123xf32>
    %294 = arith.addf %289, %293 : vector<10x123xf32>
    %c12_189 = arith.constant 12 : index
    %c0_190 = arith.constant 0 : index
    %c0_191 = arith.constant 0 : index
    %295 = vector.load %arg1[%c12_189, %c0_190, %c0_191] : memref<44x10x4xf32, #tpu.memory_space<vmem>>, vector<1x10x4xf32>
    %296 = vector.shape_cast %295 : vector<1x10x4xf32> to vector<10x4xf32>
    %297 = vector.extract_strided_slice %235 {offsets = [0, 12], sizes = [4, 123], strides = [1, 1]} : vector<4x166xf32> to vector<4x123xf32>
    %cst_192 = arith.constant dense<0.000000e+00> : vector<10x123xf32>
    %298 = tpu.matmul %296, %297, %cst_192 {dimension_numbers = #tpu.dot_dimension_numbers<[1], [0], [0], [1], [0, 0, 1, 1], [], []>} : vector<10x4xf32>, vector<4x123xf32>, vector<10x123xf32> -> vector<10x123xf32>
    %299 = arith.addf %294, %298 : vector<10x123xf32>
    %c13_193 = arith.constant 13 : index
    %c0_194 = arith.constant 0 : index
    %c0_195 = arith.constant 0 : index
    %300 = vector.load %arg1[%c13_193, %c0_194, %c0_195] : memref<44x10x4xf32, #tpu.memory_space<vmem>>, vector<1x10x4xf32>
    %301 = vector.shape_cast %300 : vector<1x10x4xf32> to vector<10x4xf32>
    %302 = vector.extract_strided_slice %235 {offsets = [0, 13], sizes = [4, 123], strides = [1, 1]} : vector<4x166xf32> to vector<4x123xf32>
    %cst_196 = arith.constant dense<0.000000e+00> : vector<10x123xf32>
    %303 = tpu.matmul %301, %302, %cst_196 {dimension_numbers = #tpu.dot_dimension_numbers<[1], [0], [0], [1], [0, 0, 1, 1], [], []>} : vector<10x4xf32>, vector<4x123xf32>, vector<10x123xf32> -> vector<10x123xf32>
    %304 = arith.addf %299, %303 : vector<10x123xf32>
    %c14_197 = arith.constant 14 : index
    %c0_198 = arith.constant 0 : index
    %c0_199 = arith.constant 0 : index
    %305 = vector.load %arg1[%c14_197, %c0_198, %c0_199] : memref<44x10x4xf32, #tpu.memory_space<vmem>>, vector<1x10x4xf32>
    %306 = vector.shape_cast %305 : vector<1x10x4xf32> to vector<10x4xf32>
    %307 = vector.extract_strided_slice %235 {offsets = [0, 14], sizes = [4, 123], strides = [1, 1]} : vector<4x166xf32> to vector<4x123xf32>
    %cst_200 = arith.constant dense<0.000000e+00> : vector<10x123xf32>
    %308 = tpu.matmul %306, %307, %cst_200 {dimension_numbers = #tpu.dot_dimension_numbers<[1], [0], [0], [1], [0, 0, 1, 1], [], []>} : vector<10x4xf32>, vector<4x123xf32>, vector<10x123xf32> -> vector<10x123xf32>
    %309 = arith.addf %304, %308 : vector<10x123xf32>
    %c15_201 = arith.constant 15 : index
    %c0_202 = arith.constant 0 : index
    %c0_203 = arith.constant 0 : index
    %310 = vector.load %arg1[%c15_201, %c0_202, %c0_203] : memref<44x10x4xf32, #tpu.memory_space<vmem>>, vector<1x10x4xf32>
    %311 = vector.shape_cast %310 : vector<1x10x4xf32> to vector<10x4xf32>
    %312 = vector.extract_strided_slice %235 {offsets = [0, 15], sizes = [4, 123], strides = [1, 1]} : vector<4x166xf32> to vector<4x123xf32>
    %cst_204 = arith.constant dense<0.000000e+00> : vector<10x123xf32>
    %313 = tpu.matmul %311, %312, %cst_204 {dimension_numbers = #tpu.dot_dimension_numbers<[1], [0], [0], [1], [0, 0, 1, 1], [], []>} : vector<10x4xf32>, vector<4x123xf32>, vector<10x123xf32> -> vector<10x123xf32>
    %314 = arith.addf %309, %313 : vector<10x123xf32>
    %c16_205 = arith.constant 16 : index
    %c0_206 = arith.constant 0 : index
    %c0_207 = arith.constant 0 : index
    %315 = vector.load %arg1[%c16_205, %c0_206, %c0_207] : memref<44x10x4xf32, #tpu.memory_space<vmem>>, vector<1x10x4xf32>
    %316 = vector.shape_cast %315 : vector<1x10x4xf32> to vector<10x4xf32>
    %317 = vector.extract_strided_slice %235 {offsets = [0, 16], sizes = [4, 123], strides = [1, 1]} : vector<4x166xf32> to vector<4x123xf32>
    %cst_208 = arith.constant dense<0.000000e+00> : vector<10x123xf32>
    %318 = tpu.matmul %316, %317, %cst_208 {dimension_numbers = #tpu.dot_dimension_numbers<[1], [0], [0], [1], [0, 0, 1, 1], [], []>} : vector<10x4xf32>, vector<4x123xf32>, vector<10x123xf32> -> vector<10x123xf32>
    %319 = arith.addf %314, %318 : vector<10x123xf32>
    %c17_209 = arith.constant 17 : index
    %c0_210 = arith.constant 0 : index
    %c0_211 = arith.constant 0 : index
    %320 = vector.load %arg1[%c17_209, %c0_210, %c0_211] : memref<44x10x4xf32, #tpu.memory_space<vmem>>, vector<1x10x4xf32>
    %321 = vector.shape_cast %320 : vector<1x10x4xf32> to vector<10x4xf32>
    %322 = vector.extract_strided_slice %235 {offsets = [0, 17], sizes = [4, 123], strides = [1, 1]} : vector<4x166xf32> to vector<4x123xf32>
    %cst_212 = arith.constant dense<0.000000e+00> : vector<10x123xf32>
    %323 = tpu.matmul %321, %322, %cst_212 {dimension_numbers = #tpu.dot_dimension_numbers<[1], [0], [0], [1], [0, 0, 1, 1], [], []>} : vector<10x4xf32>, vector<4x123xf32>, vector<10x123xf32> -> vector<10x123xf32>
    %324 = arith.addf %319, %323 : vector<10x123xf32>
    %c18_213 = arith.constant 18 : index
    %c0_214 = arith.constant 0 : index
    %c0_215 = arith.constant 0 : index
    %325 = vector.load %arg1[%c18_213, %c0_214, %c0_215] : memref<44x10x4xf32, #tpu.memory_space<vmem>>, vector<1x10x4xf32>
    %326 = vector.shape_cast %325 : vector<1x10x4xf32> to vector<10x4xf32>
    %327 = vector.extract_strided_slice %235 {offsets = [0, 18], sizes = [4, 123], strides = [1, 1]} : vector<4x166xf32> to vector<4x123xf32>
    %cst_216 = arith.constant dense<0.000000e+00> : vector<10x123xf32>
    %328 = tpu.matmul %326, %327, %cst_216 {dimension_numbers = #tpu.dot_dimension_numbers<[1], [0], [0], [1], [0, 0, 1, 1], [], []>} : vector<10x4xf32>, vector<4x123xf32>, vector<10x123xf32> -> vector<10x123xf32>
    %329 = arith.addf %324, %328 : vector<10x123xf32>
    %c19_217 = arith.constant 19 : index
    %c0_218 = arith.constant 0 : index
    %c0_219 = arith.constant 0 : index
    %330 = vector.load %arg1[%c19_217, %c0_218, %c0_219] : memref<44x10x4xf32, #tpu.memory_space<vmem>>, vector<1x10x4xf32>
    %331 = vector.shape_cast %330 : vector<1x10x4xf32> to vector<10x4xf32>
    %332 = vector.extract_strided_slice %235 {offsets = [0, 19], sizes = [4, 123], strides = [1, 1]} : vector<4x166xf32> to vector<4x123xf32>
    %cst_220 = arith.constant dense<0.000000e+00> : vector<10x123xf32>
    %333 = tpu.matmul %331, %332, %cst_220 {dimension_numbers = #tpu.dot_dimension_numbers<[1], [0], [0], [1], [0, 0, 1, 1], [], []>} : vector<10x4xf32>, vector<4x123xf32>, vector<10x123xf32> -> vector<10x123xf32>
    %334 = arith.addf %329, %333 : vector<10x123xf32>
    %c20_221 = arith.constant 20 : index
    %c0_222 = arith.constant 0 : index
    %c0_223 = arith.constant 0 : index
    %335 = vector.load %arg1[%c20_221, %c0_222, %c0_223] : memref<44x10x4xf32, #tpu.memory_space<vmem>>, vector<1x10x4xf32>
    %336 = vector.shape_cast %335 : vector<1x10x4xf32> to vector<10x4xf32>
    %337 = vector.extract_strided_slice %235 {offsets = [0, 20], sizes = [4, 123], strides = [1, 1]} : vector<4x166xf32> to vector<4x123xf32>
    %cst_224 = arith.constant dense<0.000000e+00> : vector<10x123xf32>
    %338 = tpu.matmul %336, %337, %cst_224 {dimension_numbers = #tpu.dot_dimension_numbers<[1], [0], [0], [1], [0, 0, 1, 1], [], []>} : vector<10x4xf32>, vector<4x123xf32>, vector<10x123xf32> -> vector<10x123xf32>
    %339 = arith.addf %334, %338 : vector<10x123xf32>
    %c21_225 = arith.constant 21 : index
    %c0_226 = arith.constant 0 : index
    %c0_227 = arith.constant 0 : index
    %340 = vector.load %arg1[%c21_225, %c0_226, %c0_227] : memref<44x10x4xf32, #tpu.memory_space<vmem>>, vector<1x10x4xf32>
    %341 = vector.shape_cast %340 : vector<1x10x4xf32> to vector<10x4xf32>
    %342 = vector.extract_strided_slice %235 {offsets = [0, 21], sizes = [4, 123], strides = [1, 1]} : vector<4x166xf32> to vector<4x123xf32>
    %cst_228 = arith.constant dense<0.000000e+00> : vector<10x123xf32>
    %343 = tpu.matmul %341, %342, %cst_228 {dimension_numbers = #tpu.dot_dimension_numbers<[1], [0], [0], [1], [0, 0, 1, 1], [], []>} : vector<10x4xf32>, vector<4x123xf32>, vector<10x123xf32> -> vector<10x123xf32>
    %344 = arith.addf %339, %343 : vector<10x123xf32>
    %c22_229 = arith.constant 22 : index
    %c0_230 = arith.constant 0 : index
    %c0_231 = arith.constant 0 : index
    %345 = vector.load %arg1[%c22_229, %c0_230, %c0_231] : memref<44x10x4xf32, #tpu.memory_space<vmem>>, vector<1x10x4xf32>
    %346 = vector.shape_cast %345 : vector<1x10x4xf32> to vector<10x4xf32>
    %347 = vector.extract_strided_slice %235 {offsets = [0, 22], sizes = [4, 123], strides = [1, 1]} : vector<4x166xf32> to vector<4x123xf32>
    %cst_232 = arith.constant dense<0.000000e+00> : vector<10x123xf32>
    %348 = tpu.matmul %346, %347, %cst_232 {dimension_numbers = #tpu.dot_dimension_numbers<[1], [0], [0], [1], [0, 0, 1, 1], [], []>} : vector<10x4xf32>, vector<4x123xf32>, vector<10x123xf32> -> vector<10x123xf32>
    %349 = arith.addf %344, %348 : vector<10x123xf32>
    %c23_233 = arith.constant 23 : index
    %c0_234 = arith.constant 0 : index
    %c0_235 = arith.constant 0 : index
    %350 = vector.load %arg1[%c23_233, %c0_234, %c0_235] : memref<44x10x4xf32, #tpu.memory_space<vmem>>, vector<1x10x4xf32>
    %351 = vector.shape_cast %350 : vector<1x10x4xf32> to vector<10x4xf32>
    %352 = vector.extract_strided_slice %235 {offsets = [0, 23], sizes = [4, 123], strides = [1, 1]} : vector<4x166xf32> to vector<4x123xf32>
    %cst_236 = arith.constant dense<0.000000e+00> : vector<10x123xf32>
    %353 = tpu.matmul %351, %352, %cst_236 {dimension_numbers = #tpu.dot_dimension_numbers<[1], [0], [0], [1], [0, 0, 1, 1], [], []>} : vector<10x4xf32>, vector<4x123xf32>, vector<10x123xf32> -> vector<10x123xf32>
    %354 = arith.addf %349, %353 : vector<10x123xf32>
    %c24_237 = arith.constant 24 : index
    %c0_238 = arith.constant 0 : index
    %c0_239 = arith.constant 0 : index
    %355 = vector.load %arg1[%c24_237, %c0_238, %c0_239] : memref<44x10x4xf32, #tpu.memory_space<vmem>>, vector<1x10x4xf32>
    %356 = vector.shape_cast %355 : vector<1x10x4xf32> to vector<10x4xf32>
    %357 = vector.extract_strided_slice %235 {offsets = [0, 24], sizes = [4, 123], strides = [1, 1]} : vector<4x166xf32> to vector<4x123xf32>
    %cst_240 = arith.constant dense<0.000000e+00> : vector<10x123xf32>
    %358 = tpu.matmul %356, %357, %cst_240 {dimension_numbers = #tpu.dot_dimension_numbers<[1], [0], [0], [1], [0, 0, 1, 1], [], []>} : vector<10x4xf32>, vector<4x123xf32>, vector<10x123xf32> -> vector<10x123xf32>
    %359 = arith.addf %354, %358 : vector<10x123xf32>
    %c25_241 = arith.constant 25 : index
    %c0_242 = arith.constant 0 : index
    %c0_243 = arith.constant 0 : index
    %360 = vector.load %arg1[%c25_241, %c0_242, %c0_243] : memref<44x10x4xf32, #tpu.memory_space<vmem>>, vector<1x10x4xf32>
    %361 = vector.shape_cast %360 : vector<1x10x4xf32> to vector<10x4xf32>
    %362 = vector.extract_strided_slice %235 {offsets = [0, 25], sizes = [4, 123], strides = [1, 1]} : vector<4x166xf32> to vector<4x123xf32>
    %cst_244 = arith.constant dense<0.000000e+00> : vector<10x123xf32>
    %363 = tpu.matmul %361, %362, %cst_244 {dimension_numbers = #tpu.dot_dimension_numbers<[1], [0], [0], [1], [0, 0, 1, 1], [], []>} : vector<10x4xf32>, vector<4x123xf32>, vector<10x123xf32> -> vector<10x123xf32>
    %364 = arith.addf %359, %363 : vector<10x123xf32>
    %c26_245 = arith.constant 26 : index
    %c0_246 = arith.constant 0 : index
    %c0_247 = arith.constant 0 : index
    %365 = vector.load %arg1[%c26_245, %c0_246, %c0_247] : memref<44x10x4xf32, #tpu.memory_space<vmem>>, vector<1x10x4xf32>
    %366 = vector.shape_cast %365 : vector<1x10x4xf32> to vector<10x4xf32>
    %367 = vector.extract_strided_slice %235 {offsets = [0, 26], sizes = [4, 123], strides = [1, 1]} : vector<4x166xf32> to vector<4x123xf32>
    %cst_248 = arith.constant dense<0.000000e+00> : vector<10x123xf32>
    %368 = tpu.matmul %366, %367, %cst_248 {dimension_numbers = #tpu.dot_dimension_numbers<[1], [0], [0], [1], [0, 0, 1, 1], [], []>} : vector<10x4xf32>, vector<4x123xf32>, vector<10x123xf32> -> vector<10x123xf32>
    %369 = arith.addf %364, %368 : vector<10x123xf32>
    %c27_249 = arith.constant 27 : index
    %c0_250 = arith.constant 0 : index
    %c0_251 = arith.constant 0 : index
    %370 = vector.load %arg1[%c27_249, %c0_250, %c0_251] : memref<44x10x4xf32, #tpu.memory_space<vmem>>, vector<1x10x4xf32>
    %371 = vector.shape_cast %370 : vector<1x10x4xf32> to vector<10x4xf32>
    %372 = vector.extract_strided_slice %235 {offsets = [0, 27], sizes = [4, 123], strides = [1, 1]} : vector<4x166xf32> to vector<4x123xf32>
    %cst_252 = arith.constant dense<0.000000e+00> : vector<10x123xf32>
    %373 = tpu.matmul %371, %372, %cst_252 {dimension_numbers = #tpu.dot_dimension_numbers<[1], [0], [0], [1], [0, 0, 1, 1], [], []>} : vector<10x4xf32>, vector<4x123xf32>, vector<10x123xf32> -> vector<10x123xf32>
    %374 = arith.addf %369, %373 : vector<10x123xf32>
    %c28_253 = arith.constant 28 : index
    %c0_254 = arith.constant 0 : index
    %c0_255 = arith.constant 0 : index
    %375 = vector.load %arg1[%c28_253, %c0_254, %c0_255] : memref<44x10x4xf32, #tpu.memory_space<vmem>>, vector<1x10x4xf32>
    %376 = vector.shape_cast %375 : vector<1x10x4xf32> to vector<10x4xf32>
    %377 = vector.extract_strided_slice %235 {offsets = [0, 28], sizes = [4, 123], strides = [1, 1]} : vector<4x166xf32> to vector<4x123xf32>
    %cst_256 = arith.constant dense<0.000000e+00> : vector<10x123xf32>
    %378 = tpu.matmul %376, %377, %cst_256 {dimension_numbers = #tpu.dot_dimension_numbers<[1], [0], [0], [1], [0, 0, 1, 1], [], []>} : vector<10x4xf32>, vector<4x123xf32>, vector<10x123xf32> -> vector<10x123xf32>
    %379 = arith.addf %374, %378 : vector<10x123xf32>
    %c29_257 = arith.constant 29 : index
    %c0_258 = arith.constant 0 : index
    %c0_259 = arith.constant 0 : index
    %380 = vector.load %arg1[%c29_257, %c0_258, %c0_259] : memref<44x10x4xf32, #tpu.memory_space<vmem>>, vector<1x10x4xf32>
    %381 = vector.shape_cast %380 : vector<1x10x4xf32> to vector<10x4xf32>
    %382 = vector.extract_strided_slice %235 {offsets = [0, 29], sizes = [4, 123], strides = [1, 1]} : vector<4x166xf32> to vector<4x123xf32>
    %cst_260 = arith.constant dense<0.000000e+00> : vector<10x123xf32>
    %383 = tpu.matmul %381, %382, %cst_260 {dimension_numbers = #tpu.dot_dimension_numbers<[1], [0], [0], [1], [0, 0, 1, 1], [], []>} : vector<10x4xf32>, vector<4x123xf32>, vector<10x123xf32> -> vector<10x123xf32>
    %384 = arith.addf %379, %383 : vector<10x123xf32>
    %c30_261 = arith.constant 30 : index
    %c0_262 = arith.constant 0 : index
    %c0_263 = arith.constant 0 : index
    %385 = vector.load %arg1[%c30_261, %c0_262, %c0_263] : memref<44x10x4xf32, #tpu.memory_space<vmem>>, vector<1x10x4xf32>
    %386 = vector.shape_cast %385 : vector<1x10x4xf32> to vector<10x4xf32>
    %387 = vector.extract_strided_slice %235 {offsets = [0, 30], sizes = [4, 123], strides = [1, 1]} : vector<4x166xf32> to vector<4x123xf32>
    %cst_264 = arith.constant dense<0.000000e+00> : vector<10x123xf32>
    %388 = tpu.matmul %386, %387, %cst_264 {dimension_numbers = #tpu.dot_dimension_numbers<[1], [0], [0], [1], [0, 0, 1, 1], [], []>} : vector<10x4xf32>, vector<4x123xf32>, vector<10x123xf32> -> vector<10x123xf32>
    %389 = arith.addf %384, %388 : vector<10x123xf32>
    %c31_265 = arith.constant 31 : index
    %c0_266 = arith.constant 0 : index
    %c0_267 = arith.constant 0 : index
    %390 = vector.load %arg1[%c31_265, %c0_266, %c0_267] : memref<44x10x4xf32, #tpu.memory_space<vmem>>, vector<1x10x4xf32>
    %391 = vector.shape_cast %390 : vector<1x10x4xf32> to vector<10x4xf32>
    %392 = vector.extract_strided_slice %235 {offsets = [0, 31], sizes = [4, 123], strides = [1, 1]} : vector<4x166xf32> to vector<4x123xf32>
    %cst_268 = arith.constant dense<0.000000e+00> : vector<10x123xf32>
    %393 = tpu.matmul %391, %392, %cst_268 {dimension_numbers = #tpu.dot_dimension_numbers<[1], [0], [0], [1], [0, 0, 1, 1], [], []>} : vector<10x4xf32>, vector<4x123xf32>, vector<10x123xf32> -> vector<10x123xf32>
    %394 = arith.addf %389, %393 : vector<10x123xf32>
    %c32_269 = arith.constant 32 : index
    %c0_270 = arith.constant 0 : index
    %c0_271 = arith.constant 0 : index
    %395 = vector.load %arg1[%c32_269, %c0_270, %c0_271] : memref<44x10x4xf32, #tpu.memory_space<vmem>>, vector<1x10x4xf32>
    %396 = vector.shape_cast %395 : vector<1x10x4xf32> to vector<10x4xf32>
    %397 = vector.extract_strided_slice %235 {offsets = [0, 32], sizes = [4, 123], strides = [1, 1]} : vector<4x166xf32> to vector<4x123xf32>
    %cst_272 = arith.constant dense<0.000000e+00> : vector<10x123xf32>
    %398 = tpu.matmul %396, %397, %cst_272 {dimension_numbers = #tpu.dot_dimension_numbers<[1], [0], [0], [1], [0, 0, 1, 1], [], []>} : vector<10x4xf32>, vector<4x123xf32>, vector<10x123xf32> -> vector<10x123xf32>
    %399 = arith.addf %394, %398 : vector<10x123xf32>
    %c33_273 = arith.constant 33 : index
    %c0_274 = arith.constant 0 : index
    %c0_275 = arith.constant 0 : index
    %400 = vector.load %arg1[%c33_273, %c0_274, %c0_275] : memref<44x10x4xf32, #tpu.memory_space<vmem>>, vector<1x10x4xf32>
    %401 = vector.shape_cast %400 : vector<1x10x4xf32> to vector<10x4xf32>
    %402 = vector.extract_strided_slice %235 {offsets = [0, 33], sizes = [4, 123], strides = [1, 1]} : vector<4x166xf32> to vector<4x123xf32>
    %cst_276 = arith.constant dense<0.000000e+00> : vector<10x123xf32>
    %403 = tpu.matmul %401, %402, %cst_276 {dimension_numbers = #tpu.dot_dimension_numbers<[1], [0], [0], [1], [0, 0, 1, 1], [], []>} : vector<10x4xf32>, vector<4x123xf32>, vector<10x123xf32> -> vector<10x123xf32>
    %404 = arith.addf %399, %403 : vector<10x123xf32>
    %c34_277 = arith.constant 34 : index
    %c0_278 = arith.constant 0 : index
    %c0_279 = arith.constant 0 : index
    %405 = vector.load %arg1[%c34_277, %c0_278, %c0_279] : memref<44x10x4xf32, #tpu.memory_space<vmem>>, vector<1x10x4xf32>
    %406 = vector.shape_cast %405 : vector<1x10x4xf32> to vector<10x4xf32>
    %407 = vector.extract_strided_slice %235 {offsets = [0, 34], sizes = [4, 123], strides = [1, 1]} : vector<4x166xf32> to vector<4x123xf32>
    %cst_280 = arith.constant dense<0.000000e+00> : vector<10x123xf32>
    %408 = tpu.matmul %406, %407, %cst_280 {dimension_numbers = #tpu.dot_dimension_numbers<[1], [0], [0], [1], [0, 0, 1, 1], [], []>} : vector<10x4xf32>, vector<4x123xf32>, vector<10x123xf32> -> vector<10x123xf32>
    %409 = arith.addf %404, %408 : vector<10x123xf32>
    %c35_281 = arith.constant 35 : index
    %c0_282 = arith.constant 0 : index
    %c0_283 = arith.constant 0 : index
    %410 = vector.load %arg1[%c35_281, %c0_282, %c0_283] : memref<44x10x4xf32, #tpu.memory_space<vmem>>, vector<1x10x4xf32>
    %411 = vector.shape_cast %410 : vector<1x10x4xf32> to vector<10x4xf32>
    %412 = vector.extract_strided_slice %235 {offsets = [0, 35], sizes = [4, 123], strides = [1, 1]} : vector<4x166xf32> to vector<4x123xf32>
    %cst_284 = arith.constant dense<0.000000e+00> : vector<10x123xf32>
    %413 = tpu.matmul %411, %412, %cst_284 {dimension_numbers = #tpu.dot_dimension_numbers<[1], [0], [0], [1], [0, 0, 1, 1], [], []>} : vector<10x4xf32>, vector<4x123xf32>, vector<10x123xf32> -> vector<10x123xf32>
    %414 = arith.addf %409, %413 : vector<10x123xf32>
    %c36_285 = arith.constant 36 : index
    %c0_286 = arith.constant 0 : index
    %c0_287 = arith.constant 0 : index
    %415 = vector.load %arg1[%c36_285, %c0_286, %c0_287] : memref<44x10x4xf32, #tpu.memory_space<vmem>>, vector<1x10x4xf32>
    %416 = vector.shape_cast %415 : vector<1x10x4xf32> to vector<10x4xf32>
    %417 = vector.extract_strided_slice %235 {offsets = [0, 36], sizes = [4, 123], strides = [1, 1]} : vector<4x166xf32> to vector<4x123xf32>
    %cst_288 = arith.constant dense<0.000000e+00> : vector<10x123xf32>
    %418 = tpu.matmul %416, %417, %cst_288 {dimension_numbers = #tpu.dot_dimension_numbers<[1], [0], [0], [1], [0, 0, 1, 1], [], []>} : vector<10x4xf32>, vector<4x123xf32>, vector<10x123xf32> -> vector<10x123xf32>
    %419 = arith.addf %414, %418 : vector<10x123xf32>
    %c37_289 = arith.constant 37 : index
    %c0_290 = arith.constant 0 : index
    %c0_291 = arith.constant 0 : index
    %420 = vector.load %arg1[%c37_289, %c0_290, %c0_291] : memref<44x10x4xf32, #tpu.memory_space<vmem>>, vector<1x10x4xf32>
    %421 = vector.shape_cast %420 : vector<1x10x4xf32> to vector<10x4xf32>
    %422 = vector.extract_strided_slice %235 {offsets = [0, 37], sizes = [4, 123], strides = [1, 1]} : vector<4x166xf32> to vector<4x123xf32>
    %cst_292 = arith.constant dense<0.000000e+00> : vector<10x123xf32>
    %423 = tpu.matmul %421, %422, %cst_292 {dimension_numbers = #tpu.dot_dimension_numbers<[1], [0], [0], [1], [0, 0, 1, 1], [], []>} : vector<10x4xf32>, vector<4x123xf32>, vector<10x123xf32> -> vector<10x123xf32>
    %424 = arith.addf %419, %423 : vector<10x123xf32>
    %c38_293 = arith.constant 38 : index
    %c0_294 = arith.constant 0 : index
    %c0_295 = arith.constant 0 : index
    %425 = vector.load %arg1[%c38_293, %c0_294, %c0_295] : memref<44x10x4xf32, #tpu.memory_space<vmem>>, vector<1x10x4xf32>
    %426 = vector.shape_cast %425 : vector<1x10x4xf32> to vector<10x4xf32>
    %427 = vector.extract_strided_slice %235 {offsets = [0, 38], sizes = [4, 123], strides = [1, 1]} : vector<4x166xf32> to vector<4x123xf32>
    %cst_296 = arith.constant dense<0.000000e+00> : vector<10x123xf32>
    %428 = tpu.matmul %426, %427, %cst_296 {dimension_numbers = #tpu.dot_dimension_numbers<[1], [0], [0], [1], [0, 0, 1, 1], [], []>} : vector<10x4xf32>, vector<4x123xf32>, vector<10x123xf32> -> vector<10x123xf32>
    %429 = arith.addf %424, %428 : vector<10x123xf32>
    %c39_297 = arith.constant 39 : index
    %c0_298 = arith.constant 0 : index
    %c0_299 = arith.constant 0 : index
    %430 = vector.load %arg1[%c39_297, %c0_298, %c0_299] : memref<44x10x4xf32, #tpu.memory_space<vmem>>, vector<1x10x4xf32>
    %431 = vector.shape_cast %430 : vector<1x10x4xf32> to vector<10x4xf32>
    %432 = vector.extract_strided_slice %235 {offsets = [0, 39], sizes = [4, 123], strides = [1, 1]} : vector<4x166xf32> to vector<4x123xf32>
    %cst_300 = arith.constant dense<0.000000e+00> : vector<10x123xf32>
    %433 = tpu.matmul %431, %432, %cst_300 {dimension_numbers = #tpu.dot_dimension_numbers<[1], [0], [0], [1], [0, 0, 1, 1], [], []>} : vector<10x4xf32>, vector<4x123xf32>, vector<10x123xf32> -> vector<10x123xf32>
    %434 = arith.addf %429, %433 : vector<10x123xf32>
    %c40_301 = arith.constant 40 : index
    %c0_302 = arith.constant 0 : index
    %c0_303 = arith.constant 0 : index
    %435 = vector.load %arg1[%c40_301, %c0_302, %c0_303] : memref<44x10x4xf32, #tpu.memory_space<vmem>>, vector<1x10x4xf32>
    %436 = vector.shape_cast %435 : vector<1x10x4xf32> to vector<10x4xf32>
    %437 = vector.extract_strided_slice %235 {offsets = [0, 40], sizes = [4, 123], strides = [1, 1]} : vector<4x166xf32> to vector<4x123xf32>
    %cst_304 = arith.constant dense<0.000000e+00> : vector<10x123xf32>
    %438 = tpu.matmul %436, %437, %cst_304 {dimension_numbers = #tpu.dot_dimension_numbers<[1], [0], [0], [1], [0, 0, 1, 1], [], []>} : vector<10x4xf32>, vector<4x123xf32>, vector<10x123xf32> -> vector<10x123xf32>
    %439 = arith.addf %434, %438 : vector<10x123xf32>
    %c41_305 = arith.constant 41 : index
    %c0_306 = arith.constant 0 : index
    %c0_307 = arith.constant 0 : index
    %440 = vector.load %arg1[%c41_305, %c0_306, %c0_307] : memref<44x10x4xf32, #tpu.memory_space<vmem>>, vector<1x10x4xf32>
    %441 = vector.shape_cast %440 : vector<1x10x4xf32> to vector<10x4xf32>
    %442 = vector.extract_strided_slice %235 {offsets = [0, 41], sizes = [4, 123], strides = [1, 1]} : vector<4x166xf32> to vector<4x123xf32>
    %cst_308 = arith.constant dense<0.000000e+00> : vector<10x123xf32>
    %443 = tpu.matmul %441, %442, %cst_308 {dimension_numbers = #tpu.dot_dimension_numbers<[1], [0], [0], [1], [0, 0, 1, 1], [], []>} : vector<10x4xf32>, vector<4x123xf32>, vector<10x123xf32> -> vector<10x123xf32>
    %444 = arith.addf %439, %443 : vector<10x123xf32>
    %c42_309 = arith.constant 42 : index
    %c0_310 = arith.constant 0 : index
    %c0_311 = arith.constant 0 : index
    %445 = vector.load %arg1[%c42_309, %c0_310, %c0_311] : memref<44x10x4xf32, #tpu.memory_space<vmem>>, vector<1x10x4xf32>
    %446 = vector.shape_cast %445 : vector<1x10x4xf32> to vector<10x4xf32>
    %447 = vector.extract_strided_slice %235 {offsets = [0, 42], sizes = [4, 123], strides = [1, 1]} : vector<4x166xf32> to vector<4x123xf32>
    %cst_312 = arith.constant dense<0.000000e+00> : vector<10x123xf32>
    %448 = tpu.matmul %446, %447, %cst_312 {dimension_numbers = #tpu.dot_dimension_numbers<[1], [0], [0], [1], [0, 0, 1, 1], [], []>} : vector<10x4xf32>, vector<4x123xf32>, vector<10x123xf32> -> vector<10x123xf32>
    %449 = arith.addf %444, %448 : vector<10x123xf32>
    %c43_313 = arith.constant 43 : index
    %c0_314 = arith.constant 0 : index
    %c0_315 = arith.constant 0 : index
    %450 = vector.load %arg1[%c43_313, %c0_314, %c0_315] : memref<44x10x4xf32, #tpu.memory_space<vmem>>, vector<1x10x4xf32>
    %451 = vector.shape_cast %450 : vector<1x10x4xf32> to vector<10x4xf32>
    %452 = vector.extract_strided_slice %235 {offsets = [0, 43], sizes = [4, 123], strides = [1, 1]} : vector<4x166xf32> to vector<4x123xf32>
    %cst_316 = arith.constant dense<0.000000e+00> : vector<10x123xf32>
    %453 = tpu.matmul %451, %452, %cst_316 {dimension_numbers = #tpu.dot_dimension_numbers<[1], [0], [0], [1], [0, 0, 1, 1], [], []>} : vector<10x4xf32>, vector<4x123xf32>, vector<10x123xf32> -> vector<10x123xf32>
    %454 = arith.addf %449, %453 : vector<10x123xf32>
    %cst_317 = arith.constant dense<0.000000e+00> : vector<10x62xf32>
    %455 = tpu.matmul %454, %6, %cst_317 {dimension_numbers = #tpu.dot_dimension_numbers<[1], [0], [0], [1], [0, 0, 1, 1], [], []>} : vector<10x123xf32>, vector<123x62xf32>, vector<10x62xf32> -> vector<10x62xf32>
    %456 = vector.broadcast %7 : vector<10x1xf32> to vector<10x62xf32>
    %457 = arith.addf %455, %456 : vector<10x62xf32>
    %cst_318 = arith.constant 0.000000e+00 : f32
    %458 = vector.broadcast %cst_318 : f32 to vector<10x62xf32>
    %459 = arith.maximumf %457, %458 : vector<10x62xf32>
    %460 = tpu.iota {dimensions = array<i32: 0>} : vector<43x22xi32>
    %461 = tpu.iota {dimensions = array<i32: 1>} : vector<43x22xi32>
    %c2_i32_319 = arith.constant 2 : i32
    %462 = vector.broadcast %c2_i32_319 : i32 to vector<43x22xi32>
    %463 = arith.muli %462, %461 : vector<43x22xi32>
    %464 = arith.cmpi eq, %460, %463 : vector<43x22xi32>
    %465 = arith.extui %464 : vector<43x22xi1> to vector<43x22xi32>
    %466 = arith.sitofp %465 : vector<43x22xi32> to vector<43x22xf32>
    %c0_320 = arith.constant 0 : index
    %c0_321 = arith.constant 0 : index
    %c0_322 = arith.constant 0 : index
    %467 = vector.load %arg3[%c0_320, %c0_321, %c0_322] : memref<20x10x10xf32, #tpu.memory_space<vmem>>, vector<1x10x10xf32>
    %468 = vector.shape_cast %467 : vector<1x10x10xf32> to vector<10x10xf32>
    %469 = vector.extract_strided_slice %233 {offsets = [0, 0], sizes = [10, 43], strides = [1, 1]} : vector<10x62xf32> to vector<10x43xf32>
    %cst_323 = arith.constant dense<0.000000e+00> : vector<10x43xf32>
    %470 = tpu.matmul %468, %469, %cst_323 {dimension_numbers = #tpu.dot_dimension_numbers<[1], [0], [0], [1], [0, 0, 1, 1], [], []>} : vector<10x10xf32>, vector<10x43xf32>, vector<10x43xf32> -> vector<10x43xf32>
    %c1_324 = arith.constant 1 : index
    %c0_325 = arith.constant 0 : index
    %c0_326 = arith.constant 0 : index
    %471 = vector.load %arg3[%c1_324, %c0_325, %c0_326] : memref<20x10x10xf32, #tpu.memory_space<vmem>>, vector<1x10x10xf32>
    %472 = vector.shape_cast %471 : vector<1x10x10xf32> to vector<10x10xf32>
    %473 = vector.extract_strided_slice %233 {offsets = [0, 1], sizes = [10, 43], strides = [1, 1]} : vector<10x62xf32> to vector<10x43xf32>
    %cst_327 = arith.constant dense<0.000000e+00> : vector<10x43xf32>
    %474 = tpu.matmul %472, %473, %cst_327 {dimension_numbers = #tpu.dot_dimension_numbers<[1], [0], [0], [1], [0, 0, 1, 1], [], []>} : vector<10x10xf32>, vector<10x43xf32>, vector<10x43xf32> -> vector<10x43xf32>
    %475 = arith.addf %470, %474 : vector<10x43xf32>
    %c2_328 = arith.constant 2 : index
    %c0_329 = arith.constant 0 : index
    %c0_330 = arith.constant 0 : index
    %476 = vector.load %arg3[%c2_328, %c0_329, %c0_330] : memref<20x10x10xf32, #tpu.memory_space<vmem>>, vector<1x10x10xf32>
    %477 = vector.shape_cast %476 : vector<1x10x10xf32> to vector<10x10xf32>
    %478 = vector.extract_strided_slice %233 {offsets = [0, 2], sizes = [10, 43], strides = [1, 1]} : vector<10x62xf32> to vector<10x43xf32>
    %cst_331 = arith.constant dense<0.000000e+00> : vector<10x43xf32>
    %479 = tpu.matmul %477, %478, %cst_331 {dimension_numbers = #tpu.dot_dimension_numbers<[1], [0], [0], [1], [0, 0, 1, 1], [], []>} : vector<10x10xf32>, vector<10x43xf32>, vector<10x43xf32> -> vector<10x43xf32>
    %480 = arith.addf %475, %479 : vector<10x43xf32>
    %c3_332 = arith.constant 3 : index
    %c0_333 = arith.constant 0 : index
    %c0_334 = arith.constant 0 : index
    %481 = vector.load %arg3[%c3_332, %c0_333, %c0_334] : memref<20x10x10xf32, #tpu.memory_space<vmem>>, vector<1x10x10xf32>
    %482 = vector.shape_cast %481 : vector<1x10x10xf32> to vector<10x10xf32>
    %483 = vector.extract_strided_slice %233 {offsets = [0, 3], sizes = [10, 43], strides = [1, 1]} : vector<10x62xf32> to vector<10x43xf32>
    %cst_335 = arith.constant dense<0.000000e+00> : vector<10x43xf32>
    %484 = tpu.matmul %482, %483, %cst_335 {dimension_numbers = #tpu.dot_dimension_numbers<[1], [0], [0], [1], [0, 0, 1, 1], [], []>} : vector<10x10xf32>, vector<10x43xf32>, vector<10x43xf32> -> vector<10x43xf32>
    %485 = arith.addf %480, %484 : vector<10x43xf32>
    %c4_336 = arith.constant 4 : index
    %c0_337 = arith.constant 0 : index
    %c0_338 = arith.constant 0 : index
    %486 = vector.load %arg3[%c4_336, %c0_337, %c0_338] : memref<20x10x10xf32, #tpu.memory_space<vmem>>, vector<1x10x10xf32>
    %487 = vector.shape_cast %486 : vector<1x10x10xf32> to vector<10x10xf32>
    %488 = vector.extract_strided_slice %233 {offsets = [0, 4], sizes = [10, 43], strides = [1, 1]} : vector<10x62xf32> to vector<10x43xf32>
    %cst_339 = arith.constant dense<0.000000e+00> : vector<10x43xf32>
    %489 = tpu.matmul %487, %488, %cst_339 {dimension_numbers = #tpu.dot_dimension_numbers<[1], [0], [0], [1], [0, 0, 1, 1], [], []>} : vector<10x10xf32>, vector<10x43xf32>, vector<10x43xf32> -> vector<10x43xf32>
    %490 = arith.addf %485, %489 : vector<10x43xf32>
    %c5_340 = arith.constant 5 : index
    %c0_341 = arith.constant 0 : index
    %c0_342 = arith.constant 0 : index
    %491 = vector.load %arg3[%c5_340, %c0_341, %c0_342] : memref<20x10x10xf32, #tpu.memory_space<vmem>>, vector<1x10x10xf32>
    %492 = vector.shape_cast %491 : vector<1x10x10xf32> to vector<10x10xf32>
    %493 = vector.extract_strided_slice %233 {offsets = [0, 5], sizes = [10, 43], strides = [1, 1]} : vector<10x62xf32> to vector<10x43xf32>
    %cst_343 = arith.constant dense<0.000000e+00> : vector<10x43xf32>
    %494 = tpu.matmul %492, %493, %cst_343 {dimension_numbers = #tpu.dot_dimension_numbers<[1], [0], [0], [1], [0, 0, 1, 1], [], []>} : vector<10x10xf32>, vector<10x43xf32>, vector<10x43xf32> -> vector<10x43xf32>
    %495 = arith.addf %490, %494 : vector<10x43xf32>
    %c6_344 = arith.constant 6 : index
    %c0_345 = arith.constant 0 : index
    %c0_346 = arith.constant 0 : index
    %496 = vector.load %arg3[%c6_344, %c0_345, %c0_346] : memref<20x10x10xf32, #tpu.memory_space<vmem>>, vector<1x10x10xf32>
    %497 = vector.shape_cast %496 : vector<1x10x10xf32> to vector<10x10xf32>
    %498 = vector.extract_strided_slice %233 {offsets = [0, 6], sizes = [10, 43], strides = [1, 1]} : vector<10x62xf32> to vector<10x43xf32>
    %cst_347 = arith.constant dense<0.000000e+00> : vector<10x43xf32>
    %499 = tpu.matmul %497, %498, %cst_347 {dimension_numbers = #tpu.dot_dimension_numbers<[1], [0], [0], [1], [0, 0, 1, 1], [], []>} : vector<10x10xf32>, vector<10x43xf32>, vector<10x43xf32> -> vector<10x43xf32>
    %500 = arith.addf %495, %499 : vector<10x43xf32>
    %c7_348 = arith.constant 7 : index
    %c0_349 = arith.constant 0 : index
    %c0_350 = arith.constant 0 : index
    %501 = vector.load %arg3[%c7_348, %c0_349, %c0_350] : memref<20x10x10xf32, #tpu.memory_space<vmem>>, vector<1x10x10xf32>
    %502 = vector.shape_cast %501 : vector<1x10x10xf32> to vector<10x10xf32>
    %503 = vector.extract_strided_slice %233 {offsets = [0, 7], sizes = [10, 43], strides = [1, 1]} : vector<10x62xf32> to vector<10x43xf32>
    %cst_351 = arith.constant dense<0.000000e+00> : vector<10x43xf32>
    %504 = tpu.matmul %502, %503, %cst_351 {dimension_numbers = #tpu.dot_dimension_numbers<[1], [0], [0], [1], [0, 0, 1, 1], [], []>} : vector<10x10xf32>, vector<10x43xf32>, vector<10x43xf32> -> vector<10x43xf32>
    %505 = arith.addf %500, %504 : vector<10x43xf32>
    %c8_352 = arith.constant 8 : index
    %c0_353 = arith.constant 0 : index
    %c0_354 = arith.constant 0 : index
    %506 = vector.load %arg3[%c8_352, %c0_353, %c0_354] : memref<20x10x10xf32, #tpu.memory_space<vmem>>, vector<1x10x10xf32>
    %507 = vector.shape_cast %506 : vector<1x10x10xf32> to vector<10x10xf32>
    %508 = vector.extract_strided_slice %233 {offsets = [0, 8], sizes = [10, 43], strides = [1, 1]} : vector<10x62xf32> to vector<10x43xf32>
    %cst_355 = arith.constant dense<0.000000e+00> : vector<10x43xf32>
    %509 = tpu.matmul %507, %508, %cst_355 {dimension_numbers = #tpu.dot_dimension_numbers<[1], [0], [0], [1], [0, 0, 1, 1], [], []>} : vector<10x10xf32>, vector<10x43xf32>, vector<10x43xf32> -> vector<10x43xf32>
    %510 = arith.addf %505, %509 : vector<10x43xf32>
    %c9_356 = arith.constant 9 : index
    %c0_357 = arith.constant 0 : index
    %c0_358 = arith.constant 0 : index
    %511 = vector.load %arg3[%c9_356, %c0_357, %c0_358] : memref<20x10x10xf32, #tpu.memory_space<vmem>>, vector<1x10x10xf32>
    %512 = vector.shape_cast %511 : vector<1x10x10xf32> to vector<10x10xf32>
    %513 = vector.extract_strided_slice %233 {offsets = [0, 9], sizes = [10, 43], strides = [1, 1]} : vector<10x62xf32> to vector<10x43xf32>
    %cst_359 = arith.constant dense<0.000000e+00> : vector<10x43xf32>
    %514 = tpu.matmul %512, %513, %cst_359 {dimension_numbers = #tpu.dot_dimension_numbers<[1], [0], [0], [1], [0, 0, 1, 1], [], []>} : vector<10x10xf32>, vector<10x43xf32>, vector<10x43xf32> -> vector<10x43xf32>
    %515 = arith.addf %510, %514 : vector<10x43xf32>
    %c10_360 = arith.constant 10 : index
    %c0_361 = arith.constant 0 : index
    %c0_362 = arith.constant 0 : index
    %516 = vector.load %arg3[%c10_360, %c0_361, %c0_362] : memref<20x10x10xf32, #tpu.memory_space<vmem>>, vector<1x10x10xf32>
    %517 = vector.shape_cast %516 : vector<1x10x10xf32> to vector<10x10xf32>
    %518 = vector.extract_strided_slice %233 {offsets = [0, 10], sizes = [10, 43], strides = [1, 1]} : vector<10x62xf32> to vector<10x43xf32>
    %cst_363 = arith.constant dense<0.000000e+00> : vector<10x43xf32>
    %519 = tpu.matmul %517, %518, %cst_363 {dimension_numbers = #tpu.dot_dimension_numbers<[1], [0], [0], [1], [0, 0, 1, 1], [], []>} : vector<10x10xf32>, vector<10x43xf32>, vector<10x43xf32> -> vector<10x43xf32>
    %520 = arith.addf %515, %519 : vector<10x43xf32>
    %c11_364 = arith.constant 11 : index
    %c0_365 = arith.constant 0 : index
    %c0_366 = arith.constant 0 : index
    %521 = vector.load %arg3[%c11_364, %c0_365, %c0_366] : memref<20x10x10xf32, #tpu.memory_space<vmem>>, vector<1x10x10xf32>
    %522 = vector.shape_cast %521 : vector<1x10x10xf32> to vector<10x10xf32>
    %523 = vector.extract_strided_slice %233 {offsets = [0, 11], sizes = [10, 43], strides = [1, 1]} : vector<10x62xf32> to vector<10x43xf32>
    %cst_367 = arith.constant dense<0.000000e+00> : vector<10x43xf32>
    %524 = tpu.matmul %522, %523, %cst_367 {dimension_numbers = #tpu.dot_dimension_numbers<[1], [0], [0], [1], [0, 0, 1, 1], [], []>} : vector<10x10xf32>, vector<10x43xf32>, vector<10x43xf32> -> vector<10x43xf32>
    %525 = arith.addf %520, %524 : vector<10x43xf32>
    %c12_368 = arith.constant 12 : index
    %c0_369 = arith.constant 0 : index
    %c0_370 = arith.constant 0 : index
    %526 = vector.load %arg3[%c12_368, %c0_369, %c0_370] : memref<20x10x10xf32, #tpu.memory_space<vmem>>, vector<1x10x10xf32>
    %527 = vector.shape_cast %526 : vector<1x10x10xf32> to vector<10x10xf32>
    %528 = vector.extract_strided_slice %233 {offsets = [0, 12], sizes = [10, 43], strides = [1, 1]} : vector<10x62xf32> to vector<10x43xf32>
    %cst_371 = arith.constant dense<0.000000e+00> : vector<10x43xf32>
    %529 = tpu.matmul %527, %528, %cst_371 {dimension_numbers = #tpu.dot_dimension_numbers<[1], [0], [0], [1], [0, 0, 1, 1], [], []>} : vector<10x10xf32>, vector<10x43xf32>, vector<10x43xf32> -> vector<10x43xf32>
    %530 = arith.addf %525, %529 : vector<10x43xf32>
    %c13_372 = arith.constant 13 : index
    %c0_373 = arith.constant 0 : index
    %c0_374 = arith.constant 0 : index
    %531 = vector.load %arg3[%c13_372, %c0_373, %c0_374] : memref<20x10x10xf32, #tpu.memory_space<vmem>>, vector<1x10x10xf32>
    %532 = vector.shape_cast %531 : vector<1x10x10xf32> to vector<10x10xf32>
    %533 = vector.extract_strided_slice %233 {offsets = [0, 13], sizes = [10, 43], strides = [1, 1]} : vector<10x62xf32> to vector<10x43xf32>
    %cst_375 = arith.constant dense<0.000000e+00> : vector<10x43xf32>
    %534 = tpu.matmul %532, %533, %cst_375 {dimension_numbers = #tpu.dot_dimension_numbers<[1], [0], [0], [1], [0, 0, 1, 1], [], []>} : vector<10x10xf32>, vector<10x43xf32>, vector<10x43xf32> -> vector<10x43xf32>
    %535 = arith.addf %530, %534 : vector<10x43xf32>
    %c14_376 = arith.constant 14 : index
    %c0_377 = arith.constant 0 : index
    %c0_378 = arith.constant 0 : index
    %536 = vector.load %arg3[%c14_376, %c0_377, %c0_378] : memref<20x10x10xf32, #tpu.memory_space<vmem>>, vector<1x10x10xf32>
    %537 = vector.shape_cast %536 : vector<1x10x10xf32> to vector<10x10xf32>
    %538 = vector.extract_strided_slice %233 {offsets = [0, 14], sizes = [10, 43], strides = [1, 1]} : vector<10x62xf32> to vector<10x43xf32>
    %cst_379 = arith.constant dense<0.000000e+00> : vector<10x43xf32>
    %539 = tpu.matmul %537, %538, %cst_379 {dimension_numbers = #tpu.dot_dimension_numbers<[1], [0], [0], [1], [0, 0, 1, 1], [], []>} : vector<10x10xf32>, vector<10x43xf32>, vector<10x43xf32> -> vector<10x43xf32>
    %540 = arith.addf %535, %539 : vector<10x43xf32>
    %c15_380 = arith.constant 15 : index
    %c0_381 = arith.constant 0 : index
    %c0_382 = arith.constant 0 : index
    %541 = vector.load %arg3[%c15_380, %c0_381, %c0_382] : memref<20x10x10xf32, #tpu.memory_space<vmem>>, vector<1x10x10xf32>
    %542 = vector.shape_cast %541 : vector<1x10x10xf32> to vector<10x10xf32>
    %543 = vector.extract_strided_slice %233 {offsets = [0, 15], sizes = [10, 43], strides = [1, 1]} : vector<10x62xf32> to vector<10x43xf32>
    %cst_383 = arith.constant dense<0.000000e+00> : vector<10x43xf32>
    %544 = tpu.matmul %542, %543, %cst_383 {dimension_numbers = #tpu.dot_dimension_numbers<[1], [0], [0], [1], [0, 0, 1, 1], [], []>} : vector<10x10xf32>, vector<10x43xf32>, vector<10x43xf32> -> vector<10x43xf32>
    %545 = arith.addf %540, %544 : vector<10x43xf32>
    %c16_384 = arith.constant 16 : index
    %c0_385 = arith.constant 0 : index
    %c0_386 = arith.constant 0 : index
    %546 = vector.load %arg3[%c16_384, %c0_385, %c0_386] : memref<20x10x10xf32, #tpu.memory_space<vmem>>, vector<1x10x10xf32>
    %547 = vector.shape_cast %546 : vector<1x10x10xf32> to vector<10x10xf32>
    %548 = vector.extract_strided_slice %233 {offsets = [0, 16], sizes = [10, 43], strides = [1, 1]} : vector<10x62xf32> to vector<10x43xf32>
    %cst_387 = arith.constant dense<0.000000e+00> : vector<10x43xf32>
    %549 = tpu.matmul %547, %548, %cst_387 {dimension_numbers = #tpu.dot_dimension_numbers<[1], [0], [0], [1], [0, 0, 1, 1], [], []>} : vector<10x10xf32>, vector<10x43xf32>, vector<10x43xf32> -> vector<10x43xf32>
    %550 = arith.addf %545, %549 : vector<10x43xf32>
    %c17_388 = arith.constant 17 : index
    %c0_389 = arith.constant 0 : index
    %c0_390 = arith.constant 0 : index
    %551 = vector.load %arg3[%c17_388, %c0_389, %c0_390] : memref<20x10x10xf32, #tpu.memory_space<vmem>>, vector<1x10x10xf32>
    %552 = vector.shape_cast %551 : vector<1x10x10xf32> to vector<10x10xf32>
    %553 = vector.extract_strided_slice %233 {offsets = [0, 17], sizes = [10, 43], strides = [1, 1]} : vector<10x62xf32> to vector<10x43xf32>
    %cst_391 = arith.constant dense<0.000000e+00> : vector<10x43xf32>
    %554 = tpu.matmul %552, %553, %cst_391 {dimension_numbers = #tpu.dot_dimension_numbers<[1], [0], [0], [1], [0, 0, 1, 1], [], []>} : vector<10x10xf32>, vector<10x43xf32>, vector<10x43xf32> -> vector<10x43xf32>
    %555 = arith.addf %550, %554 : vector<10x43xf32>
    %c18_392 = arith.constant 18 : index
    %c0_393 = arith.constant 0 : index
    %c0_394 = arith.constant 0 : index
    %556 = vector.load %arg3[%c18_392, %c0_393, %c0_394] : memref<20x10x10xf32, #tpu.memory_space<vmem>>, vector<1x10x10xf32>
    %557 = vector.shape_cast %556 : vector<1x10x10xf32> to vector<10x10xf32>
    %558 = vector.extract_strided_slice %233 {offsets = [0, 18], sizes = [10, 43], strides = [1, 1]} : vector<10x62xf32> to vector<10x43xf32>
    %cst_395 = arith.constant dense<0.000000e+00> : vector<10x43xf32>
    %559 = tpu.matmul %557, %558, %cst_395 {dimension_numbers = #tpu.dot_dimension_numbers<[1], [0], [0], [1], [0, 0, 1, 1], [], []>} : vector<10x10xf32>, vector<10x43xf32>, vector<10x43xf32> -> vector<10x43xf32>
    %560 = arith.addf %555, %559 : vector<10x43xf32>
    %c19_396 = arith.constant 19 : index
    %c0_397 = arith.constant 0 : index
    %c0_398 = arith.constant 0 : index
    %561 = vector.load %arg3[%c19_396, %c0_397, %c0_398] : memref<20x10x10xf32, #tpu.memory_space<vmem>>, vector<1x10x10xf32>
    %562 = vector.shape_cast %561 : vector<1x10x10xf32> to vector<10x10xf32>
    %563 = vector.extract_strided_slice %233 {offsets = [0, 19], sizes = [10, 43], strides = [1, 1]} : vector<10x62xf32> to vector<10x43xf32>
    %cst_399 = arith.constant dense<0.000000e+00> : vector<10x43xf32>
    %564 = tpu.matmul %562, %563, %cst_399 {dimension_numbers = #tpu.dot_dimension_numbers<[1], [0], [0], [1], [0, 0, 1, 1], [], []>} : vector<10x10xf32>, vector<10x43xf32>, vector<10x43xf32> -> vector<10x43xf32>
    %565 = arith.addf %560, %564 : vector<10x43xf32>
    %cst_400 = arith.constant dense<0.000000e+00> : vector<10x22xf32>
    %566 = tpu.matmul %565, %466, %cst_400 {dimension_numbers = #tpu.dot_dimension_numbers<[1], [0], [0], [1], [0, 0, 1, 1], [], []>} : vector<10x43xf32>, vector<43x22xf32>, vector<10x22xf32> -> vector<10x22xf32>
    %c0_401 = arith.constant 0 : index
    %c0_402 = arith.constant 0 : index
    %c0_403 = arith.constant 0 : index
    %567 = vector.load %arg3[%c0_401, %c0_402, %c0_403] : memref<20x10x10xf32, #tpu.memory_space<vmem>>, vector<1x10x10xf32>
    %568 = vector.shape_cast %567 : vector<1x10x10xf32> to vector<10x10xf32>
    %569 = vector.extract_strided_slice %459 {offsets = [0, 0], sizes = [10, 43], strides = [1, 1]} : vector<10x62xf32> to vector<10x43xf32>
    %cst_404 = arith.constant dense<0.000000e+00> : vector<10x43xf32>
    %570 = tpu.matmul %568, %569, %cst_404 {dimension_numbers = #tpu.dot_dimension_numbers<[1], [0], [0], [1], [0, 0, 1, 1], [], []>} : vector<10x10xf32>, vector<10x43xf32>, vector<10x43xf32> -> vector<10x43xf32>
    %c1_405 = arith.constant 1 : index
    %c0_406 = arith.constant 0 : index
    %c0_407 = arith.constant 0 : index
    %571 = vector.load %arg3[%c1_405, %c0_406, %c0_407] : memref<20x10x10xf32, #tpu.memory_space<vmem>>, vector<1x10x10xf32>
    %572 = vector.shape_cast %571 : vector<1x10x10xf32> to vector<10x10xf32>
    %573 = vector.extract_strided_slice %459 {offsets = [0, 1], sizes = [10, 43], strides = [1, 1]} : vector<10x62xf32> to vector<10x43xf32>
    %cst_408 = arith.constant dense<0.000000e+00> : vector<10x43xf32>
    %574 = tpu.matmul %572, %573, %cst_408 {dimension_numbers = #tpu.dot_dimension_numbers<[1], [0], [0], [1], [0, 0, 1, 1], [], []>} : vector<10x10xf32>, vector<10x43xf32>, vector<10x43xf32> -> vector<10x43xf32>
    %575 = arith.addf %570, %574 : vector<10x43xf32>
    %c2_409 = arith.constant 2 : index
    %c0_410 = arith.constant 0 : index
    %c0_411 = arith.constant 0 : index
    %576 = vector.load %arg3[%c2_409, %c0_410, %c0_411] : memref<20x10x10xf32, #tpu.memory_space<vmem>>, vector<1x10x10xf32>
    %577 = vector.shape_cast %576 : vector<1x10x10xf32> to vector<10x10xf32>
    %578 = vector.extract_strided_slice %459 {offsets = [0, 2], sizes = [10, 43], strides = [1, 1]} : vector<10x62xf32> to vector<10x43xf32>
    %cst_412 = arith.constant dense<0.000000e+00> : vector<10x43xf32>
    %579 = tpu.matmul %577, %578, %cst_412 {dimension_numbers = #tpu.dot_dimension_numbers<[1], [0], [0], [1], [0, 0, 1, 1], [], []>} : vector<10x10xf32>, vector<10x43xf32>, vector<10x43xf32> -> vector<10x43xf32>
    %580 = arith.addf %575, %579 : vector<10x43xf32>
    %c3_413 = arith.constant 3 : index
    %c0_414 = arith.constant 0 : index
    %c0_415 = arith.constant 0 : index
    %581 = vector.load %arg3[%c3_413, %c0_414, %c0_415] : memref<20x10x10xf32, #tpu.memory_space<vmem>>, vector<1x10x10xf32>
    %582 = vector.shape_cast %581 : vector<1x10x10xf32> to vector<10x10xf32>
    %583 = vector.extract_strided_slice %459 {offsets = [0, 3], sizes = [10, 43], strides = [1, 1]} : vector<10x62xf32> to vector<10x43xf32>
    %cst_416 = arith.constant dense<0.000000e+00> : vector<10x43xf32>
    %584 = tpu.matmul %582, %583, %cst_416 {dimension_numbers = #tpu.dot_dimension_numbers<[1], [0], [0], [1], [0, 0, 1, 1], [], []>} : vector<10x10xf32>, vector<10x43xf32>, vector<10x43xf32> -> vector<10x43xf32>
    %585 = arith.addf %580, %584 : vector<10x43xf32>
    %c4_417 = arith.constant 4 : index
    %c0_418 = arith.constant 0 : index
    %c0_419 = arith.constant 0 : index
    %586 = vector.load %arg3[%c4_417, %c0_418, %c0_419] : memref<20x10x10xf32, #tpu.memory_space<vmem>>, vector<1x10x10xf32>
    %587 = vector.shape_cast %586 : vector<1x10x10xf32> to vector<10x10xf32>
    %588 = vector.extract_strided_slice %459 {offsets = [0, 4], sizes = [10, 43], strides = [1, 1]} : vector<10x62xf32> to vector<10x43xf32>
    %cst_420 = arith.constant dense<0.000000e+00> : vector<10x43xf32>
    %589 = tpu.matmul %587, %588, %cst_420 {dimension_numbers = #tpu.dot_dimension_numbers<[1], [0], [0], [1], [0, 0, 1, 1], [], []>} : vector<10x10xf32>, vector<10x43xf32>, vector<10x43xf32> -> vector<10x43xf32>
    %590 = arith.addf %585, %589 : vector<10x43xf32>
    %c5_421 = arith.constant 5 : index
    %c0_422 = arith.constant 0 : index
    %c0_423 = arith.constant 0 : index
    %591 = vector.load %arg3[%c5_421, %c0_422, %c0_423] : memref<20x10x10xf32, #tpu.memory_space<vmem>>, vector<1x10x10xf32>
    %592 = vector.shape_cast %591 : vector<1x10x10xf32> to vector<10x10xf32>
    %593 = vector.extract_strided_slice %459 {offsets = [0, 5], sizes = [10, 43], strides = [1, 1]} : vector<10x62xf32> to vector<10x43xf32>
    %cst_424 = arith.constant dense<0.000000e+00> : vector<10x43xf32>
    %594 = tpu.matmul %592, %593, %cst_424 {dimension_numbers = #tpu.dot_dimension_numbers<[1], [0], [0], [1], [0, 0, 1, 1], [], []>} : vector<10x10xf32>, vector<10x43xf32>, vector<10x43xf32> -> vector<10x43xf32>
    %595 = arith.addf %590, %594 : vector<10x43xf32>
    %c6_425 = arith.constant 6 : index
    %c0_426 = arith.constant 0 : index
    %c0_427 = arith.constant 0 : index
    %596 = vector.load %arg3[%c6_425, %c0_426, %c0_427] : memref<20x10x10xf32, #tpu.memory_space<vmem>>, vector<1x10x10xf32>
    %597 = vector.shape_cast %596 : vector<1x10x10xf32> to vector<10x10xf32>
    %598 = vector.extract_strided_slice %459 {offsets = [0, 6], sizes = [10, 43], strides = [1, 1]} : vector<10x62xf32> to vector<10x43xf32>
    %cst_428 = arith.constant dense<0.000000e+00> : vector<10x43xf32>
    %599 = tpu.matmul %597, %598, %cst_428 {dimension_numbers = #tpu.dot_dimension_numbers<[1], [0], [0], [1], [0, 0, 1, 1], [], []>} : vector<10x10xf32>, vector<10x43xf32>, vector<10x43xf32> -> vector<10x43xf32>
    %600 = arith.addf %595, %599 : vector<10x43xf32>
    %c7_429 = arith.constant 7 : index
    %c0_430 = arith.constant 0 : index
    %c0_431 = arith.constant 0 : index
    %601 = vector.load %arg3[%c7_429, %c0_430, %c0_431] : memref<20x10x10xf32, #tpu.memory_space<vmem>>, vector<1x10x10xf32>
    %602 = vector.shape_cast %601 : vector<1x10x10xf32> to vector<10x10xf32>
    %603 = vector.extract_strided_slice %459 {offsets = [0, 7], sizes = [10, 43], strides = [1, 1]} : vector<10x62xf32> to vector<10x43xf32>
    %cst_432 = arith.constant dense<0.000000e+00> : vector<10x43xf32>
    %604 = tpu.matmul %602, %603, %cst_432 {dimension_numbers = #tpu.dot_dimension_numbers<[1], [0], [0], [1], [0, 0, 1, 1], [], []>} : vector<10x10xf32>, vector<10x43xf32>, vector<10x43xf32> -> vector<10x43xf32>
    %605 = arith.addf %600, %604 : vector<10x43xf32>
    %c8_433 = arith.constant 8 : index
    %c0_434 = arith.constant 0 : index
    %c0_435 = arith.constant 0 : index
    %606 = vector.load %arg3[%c8_433, %c0_434, %c0_435] : memref<20x10x10xf32, #tpu.memory_space<vmem>>, vector<1x10x10xf32>
    %607 = vector.shape_cast %606 : vector<1x10x10xf32> to vector<10x10xf32>
    %608 = vector.extract_strided_slice %459 {offsets = [0, 8], sizes = [10, 43], strides = [1, 1]} : vector<10x62xf32> to vector<10x43xf32>
    %cst_436 = arith.constant dense<0.000000e+00> : vector<10x43xf32>
    %609 = tpu.matmul %607, %608, %cst_436 {dimension_numbers = #tpu.dot_dimension_numbers<[1], [0], [0], [1], [0, 0, 1, 1], [], []>} : vector<10x10xf32>, vector<10x43xf32>, vector<10x43xf32> -> vector<10x43xf32>
    %610 = arith.addf %605, %609 : vector<10x43xf32>
    %c9_437 = arith.constant 9 : index
    %c0_438 = arith.constant 0 : index
    %c0_439 = arith.constant 0 : index
    %611 = vector.load %arg3[%c9_437, %c0_438, %c0_439] : memref<20x10x10xf32, #tpu.memory_space<vmem>>, vector<1x10x10xf32>
    %612 = vector.shape_cast %611 : vector<1x10x10xf32> to vector<10x10xf32>
    %613 = vector.extract_strided_slice %459 {offsets = [0, 9], sizes = [10, 43], strides = [1, 1]} : vector<10x62xf32> to vector<10x43xf32>
    %cst_440 = arith.constant dense<0.000000e+00> : vector<10x43xf32>
    %614 = tpu.matmul %612, %613, %cst_440 {dimension_numbers = #tpu.dot_dimension_numbers<[1], [0], [0], [1], [0, 0, 1, 1], [], []>} : vector<10x10xf32>, vector<10x43xf32>, vector<10x43xf32> -> vector<10x43xf32>
    %615 = arith.addf %610, %614 : vector<10x43xf32>
    %c10_441 = arith.constant 10 : index
    %c0_442 = arith.constant 0 : index
    %c0_443 = arith.constant 0 : index
    %616 = vector.load %arg3[%c10_441, %c0_442, %c0_443] : memref<20x10x10xf32, #tpu.memory_space<vmem>>, vector<1x10x10xf32>
    %617 = vector.shape_cast %616 : vector<1x10x10xf32> to vector<10x10xf32>
    %618 = vector.extract_strided_slice %459 {offsets = [0, 10], sizes = [10, 43], strides = [1, 1]} : vector<10x62xf32> to vector<10x43xf32>
    %cst_444 = arith.constant dense<0.000000e+00> : vector<10x43xf32>
    %619 = tpu.matmul %617, %618, %cst_444 {dimension_numbers = #tpu.dot_dimension_numbers<[1], [0], [0], [1], [0, 0, 1, 1], [], []>} : vector<10x10xf32>, vector<10x43xf32>, vector<10x43xf32> -> vector<10x43xf32>
    %620 = arith.addf %615, %619 : vector<10x43xf32>
    %c11_445 = arith.constant 11 : index
    %c0_446 = arith.constant 0 : index
    %c0_447 = arith.constant 0 : index
    %621 = vector.load %arg3[%c11_445, %c0_446, %c0_447] : memref<20x10x10xf32, #tpu.memory_space<vmem>>, vector<1x10x10xf32>
    %622 = vector.shape_cast %621 : vector<1x10x10xf32> to vector<10x10xf32>
    %623 = vector.extract_strided_slice %459 {offsets = [0, 11], sizes = [10, 43], strides = [1, 1]} : vector<10x62xf32> to vector<10x43xf32>
    %cst_448 = arith.constant dense<0.000000e+00> : vector<10x43xf32>
    %624 = tpu.matmul %622, %623, %cst_448 {dimension_numbers = #tpu.dot_dimension_numbers<[1], [0], [0], [1], [0, 0, 1, 1], [], []>} : vector<10x10xf32>, vector<10x43xf32>, vector<10x43xf32> -> vector<10x43xf32>
    %625 = arith.addf %620, %624 : vector<10x43xf32>
    %c12_449 = arith.constant 12 : index
    %c0_450 = arith.constant 0 : index
    %c0_451 = arith.constant 0 : index
    %626 = vector.load %arg3[%c12_449, %c0_450, %c0_451] : memref<20x10x10xf32, #tpu.memory_space<vmem>>, vector<1x10x10xf32>
    %627 = vector.shape_cast %626 : vector<1x10x10xf32> to vector<10x10xf32>
    %628 = vector.extract_strided_slice %459 {offsets = [0, 12], sizes = [10, 43], strides = [1, 1]} : vector<10x62xf32> to vector<10x43xf32>
    %cst_452 = arith.constant dense<0.000000e+00> : vector<10x43xf32>
    %629 = tpu.matmul %627, %628, %cst_452 {dimension_numbers = #tpu.dot_dimension_numbers<[1], [0], [0], [1], [0, 0, 1, 1], [], []>} : vector<10x10xf32>, vector<10x43xf32>, vector<10x43xf32> -> vector<10x43xf32>
    %630 = arith.addf %625, %629 : vector<10x43xf32>
    %c13_453 = arith.constant 13 : index
    %c0_454 = arith.constant 0 : index
    %c0_455 = arith.constant 0 : index
    %631 = vector.load %arg3[%c13_453, %c0_454, %c0_455] : memref<20x10x10xf32, #tpu.memory_space<vmem>>, vector<1x10x10xf32>
    %632 = vector.shape_cast %631 : vector<1x10x10xf32> to vector<10x10xf32>
    %633 = vector.extract_strided_slice %459 {offsets = [0, 13], sizes = [10, 43], strides = [1, 1]} : vector<10x62xf32> to vector<10x43xf32>
    %cst_456 = arith.constant dense<0.000000e+00> : vector<10x43xf32>
    %634 = tpu.matmul %632, %633, %cst_456 {dimension_numbers = #tpu.dot_dimension_numbers<[1], [0], [0], [1], [0, 0, 1, 1], [], []>} : vector<10x10xf32>, vector<10x43xf32>, vector<10x43xf32> -> vector<10x43xf32>
    %635 = arith.addf %630, %634 : vector<10x43xf32>
    %c14_457 = arith.constant 14 : index
    %c0_458 = arith.constant 0 : index
    %c0_459 = arith.constant 0 : index
    %636 = vector.load %arg3[%c14_457, %c0_458, %c0_459] : memref<20x10x10xf32, #tpu.memory_space<vmem>>, vector<1x10x10xf32>
    %637 = vector.shape_cast %636 : vector<1x10x10xf32> to vector<10x10xf32>
    %638 = vector.extract_strided_slice %459 {offsets = [0, 14], sizes = [10, 43], strides = [1, 1]} : vector<10x62xf32> to vector<10x43xf32>
    %cst_460 = arith.constant dense<0.000000e+00> : vector<10x43xf32>
    %639 = tpu.matmul %637, %638, %cst_460 {dimension_numbers = #tpu.dot_dimension_numbers<[1], [0], [0], [1], [0, 0, 1, 1], [], []>} : vector<10x10xf32>, vector<10x43xf32>, vector<10x43xf32> -> vector<10x43xf32>
    %640 = arith.addf %635, %639 : vector<10x43xf32>
    %c15_461 = arith.constant 15 : index
    %c0_462 = arith.constant 0 : index
    %c0_463 = arith.constant 0 : index
    %641 = vector.load %arg3[%c15_461, %c0_462, %c0_463] : memref<20x10x10xf32, #tpu.memory_space<vmem>>, vector<1x10x10xf32>
    %642 = vector.shape_cast %641 : vector<1x10x10xf32> to vector<10x10xf32>
    %643 = vector.extract_strided_slice %459 {offsets = [0, 15], sizes = [10, 43], strides = [1, 1]} : vector<10x62xf32> to vector<10x43xf32>
    %cst_464 = arith.constant dense<0.000000e+00> : vector<10x43xf32>
    %644 = tpu.matmul %642, %643, %cst_464 {dimension_numbers = #tpu.dot_dimension_numbers<[1], [0], [0], [1], [0, 0, 1, 1], [], []>} : vector<10x10xf32>, vector<10x43xf32>, vector<10x43xf32> -> vector<10x43xf32>
    %645 = arith.addf %640, %644 : vector<10x43xf32>
    %c16_465 = arith.constant 16 : index
    %c0_466 = arith.constant 0 : index
    %c0_467 = arith.constant 0 : index
    %646 = vector.load %arg3[%c16_465, %c0_466, %c0_467] : memref<20x10x10xf32, #tpu.memory_space<vmem>>, vector<1x10x10xf32>
    %647 = vector.shape_cast %646 : vector<1x10x10xf32> to vector<10x10xf32>
    %648 = vector.extract_strided_slice %459 {offsets = [0, 16], sizes = [10, 43], strides = [1, 1]} : vector<10x62xf32> to vector<10x43xf32>
    %cst_468 = arith.constant dense<0.000000e+00> : vector<10x43xf32>
    %649 = tpu.matmul %647, %648, %cst_468 {dimension_numbers = #tpu.dot_dimension_numbers<[1], [0], [0], [1], [0, 0, 1, 1], [], []>} : vector<10x10xf32>, vector<10x43xf32>, vector<10x43xf32> -> vector<10x43xf32>
    %650 = arith.addf %645, %649 : vector<10x43xf32>
    %c17_469 = arith.constant 17 : index
    %c0_470 = arith.constant 0 : index
    %c0_471 = arith.constant 0 : index
    %651 = vector.load %arg3[%c17_469, %c0_470, %c0_471] : memref<20x10x10xf32, #tpu.memory_space<vmem>>, vector<1x10x10xf32>
    %652 = vector.shape_cast %651 : vector<1x10x10xf32> to vector<10x10xf32>
    %653 = vector.extract_strided_slice %459 {offsets = [0, 17], sizes = [10, 43], strides = [1, 1]} : vector<10x62xf32> to vector<10x43xf32>
    %cst_472 = arith.constant dense<0.000000e+00> : vector<10x43xf32>
    %654 = tpu.matmul %652, %653, %cst_472 {dimension_numbers = #tpu.dot_dimension_numbers<[1], [0], [0], [1], [0, 0, 1, 1], [], []>} : vector<10x10xf32>, vector<10x43xf32>, vector<10x43xf32> -> vector<10x43xf32>
    %655 = arith.addf %650, %654 : vector<10x43xf32>
    %c18_473 = arith.constant 18 : index
    %c0_474 = arith.constant 0 : index
    %c0_475 = arith.constant 0 : index
    %656 = vector.load %arg3[%c18_473, %c0_474, %c0_475] : memref<20x10x10xf32, #tpu.memory_space<vmem>>, vector<1x10x10xf32>
    %657 = vector.shape_cast %656 : vector<1x10x10xf32> to vector<10x10xf32>
    %658 = vector.extract_strided_slice %459 {offsets = [0, 18], sizes = [10, 43], strides = [1, 1]} : vector<10x62xf32> to vector<10x43xf32>
    %cst_476 = arith.constant dense<0.000000e+00> : vector<10x43xf32>
    %659 = tpu.matmul %657, %658, %cst_476 {dimension_numbers = #tpu.dot_dimension_numbers<[1], [0], [0], [1], [0, 0, 1, 1], [], []>} : vector<10x10xf32>, vector<10x43xf32>, vector<10x43xf32> -> vector<10x43xf32>
    %660 = arith.addf %655, %659 : vector<10x43xf32>
    %c19_477 = arith.constant 19 : index
    %c0_478 = arith.constant 0 : index
    %c0_479 = arith.constant 0 : index
    %661 = vector.load %arg3[%c19_477, %c0_478, %c0_479] : memref<20x10x10xf32, #tpu.memory_space<vmem>>, vector<1x10x10xf32>
    %662 = vector.shape_cast %661 : vector<1x10x10xf32> to vector<10x10xf32>
    %663 = vector.extract_strided_slice %459 {offsets = [0, 19], sizes = [10, 43], strides = [1, 1]} : vector<10x62xf32> to vector<10x43xf32>
    %cst_480 = arith.constant dense<0.000000e+00> : vector<10x43xf32>
    %664 = tpu.matmul %662, %663, %cst_480 {dimension_numbers = #tpu.dot_dimension_numbers<[1], [0], [0], [1], [0, 0, 1, 1], [], []>} : vector<10x10xf32>, vector<10x43xf32>, vector<10x43xf32> -> vector<10x43xf32>
    %665 = arith.addf %660, %664 : vector<10x43xf32>
    %cst_481 = arith.constant dense<0.000000e+00> : vector<10x22xf32>
    %666 = tpu.matmul %665, %466, %cst_481 {dimension_numbers = #tpu.dot_dimension_numbers<[1], [0], [0], [1], [0, 0, 1, 1], [], []>} : vector<10x43xf32>, vector<43x22xf32>, vector<10x22xf32> -> vector<10x22xf32>
    %cst_482 = arith.constant dense<0.000000e+00> : vector<10xf32>
    %667 = vector.multi_reduction <add>, %566, %cst_482 [1] : vector<10x22xf32> to vector<10xf32>
    %668 = vector.shape_cast %667 : vector<10xf32> to vector<10x1xf32>
    %669 = arith.mulf %566, %566 : vector<10x22xf32>
    %cst_483 = arith.constant dense<0.000000e+00> : vector<10xf32>
    %670 = vector.multi_reduction <add>, %669, %cst_483 [1] : vector<10x22xf32> to vector<10xf32>
    %671 = vector.shape_cast %670 : vector<10xf32> to vector<10x1xf32>
    %cst_484 = arith.constant dense<0.000000e+00> : vector<10xf32>
    %672 = vector.multi_reduction <add>, %666, %cst_484 [1] : vector<10x22xf32> to vector<10xf32>
    %673 = vector.shape_cast %672 : vector<10xf32> to vector<10x1xf32>
    %674 = arith.addf %668, %673 : vector<10x1xf32>
    %675 = arith.mulf %666, %666 : vector<10x22xf32>
    %cst_485 = arith.constant dense<0.000000e+00> : vector<10xf32>
    %676 = vector.multi_reduction <add>, %675, %cst_485 [1] : vector<10x22xf32> to vector<10xf32>
    %677 = vector.shape_cast %676 : vector<10xf32> to vector<10x1xf32>
    %678 = arith.addf %671, %677 : vector<10x1xf32>
    %cst_486 = arith.constant 0.0227272734 : f32
    %679 = vector.broadcast %cst_486 : f32 to vector<10x1xf32>
    %680 = arith.mulf %674, %679 : vector<10x1xf32>
    %cst_487 = arith.constant 0.0227272734 : f32
    %681 = vector.broadcast %cst_487 : f32 to vector<10x1xf32>
    %682 = arith.mulf %678, %681 : vector<10x1xf32>
    %683 = arith.mulf %680, %680 : vector<10x1xf32>
    %684 = arith.subf %682, %683 : vector<10x1xf32>
    %cst_488 = arith.constant 0.000000e+00 : f32
    %685 = vector.broadcast %cst_488 : f32 to vector<10x1xf32>
    %686 = arith.maximumf %684, %685 : vector<10x1xf32>
    %cst_489 = arith.constant 9.99999974E-6 : f32
    %687 = vector.broadcast %cst_489 : f32 to vector<10x1xf32>
    %688 = arith.addf %686, %687 : vector<10x1xf32>
    %689 = math.rsqrt %688 : vector<10x1xf32>
    %690 = vector.broadcast %680 : vector<10x1xf32> to vector<10x22xf32>
    %691 = arith.subf %566, %690 : vector<10x22xf32>
    %692 = vector.broadcast %689 : vector<10x1xf32> to vector<10x22xf32>
    %693 = arith.mulf %691, %692 : vector<10x22xf32>
    %cst_490 = arith.constant 0.000000e+00 : f32
    %694 = vector.broadcast %cst_490 : f32 to vector<10x22xf32>
    %695 = arith.maximumf %693, %694 : vector<10x22xf32>
    %696 = vector.broadcast %680 : vector<10x1xf32> to vector<10x22xf32>
    %697 = arith.subf %666, %696 : vector<10x22xf32>
    %698 = vector.broadcast %689 : vector<10x1xf32> to vector<10x22xf32>
    %699 = arith.mulf %697, %698 : vector<10x22xf32>
    %cst_491 = arith.constant 0.000000e+00 : f32
    %700 = vector.broadcast %cst_491 : f32 to vector<10x22xf32>
    %701 = arith.maximumf %699, %700 : vector<10x22xf32>
    %702 = tpu.iota {dimensions = array<i32: 0>} : vector<19x10xi32>
    %703 = tpu.iota {dimensions = array<i32: 1>} : vector<19x10xi32>
    %c2_i32_492 = arith.constant 2 : i32
    %704 = vector.broadcast %c2_i32_492 : i32 to vector<19x10xi32>
    %705 = arith.muli %704, %703 : vector<19x10xi32>
    %706 = arith.cmpi eq, %702, %705 : vector<19x10xi32>
    %707 = arith.extui %706 : vector<19x10xi1> to vector<19x10xi32>
    %708 = arith.sitofp %707 : vector<19x10xi32> to vector<19x10xf32>
    %c0_493 = arith.constant 0 : index
    %c0_494 = arith.constant 0 : index
    %c0_495 = arith.constant 0 : index
    %709 = vector.load %arg4[%c0_493, %c0_494, %c0_495] : memref<4x10x10xf32, #tpu.memory_space<vmem>>, vector<1x10x10xf32>
    %710 = vector.shape_cast %709 : vector<1x10x10xf32> to vector<10x10xf32>
    %711 = vector.extract_strided_slice %695 {offsets = [0, 0], sizes = [10, 19], strides = [1, 1]} : vector<10x22xf32> to vector<10x19xf32>
    %cst_496 = arith.constant dense<0.000000e+00> : vector<10x19xf32>
    %712 = tpu.matmul %710, %711, %cst_496 {dimension_numbers = #tpu.dot_dimension_numbers<[1], [0], [0], [1], [0, 0, 1, 1], [], []>} : vector<10x10xf32>, vector<10x19xf32>, vector<10x19xf32> -> vector<10x19xf32>
    %c1_497 = arith.constant 1 : index
    %c0_498 = arith.constant 0 : index
    %c0_499 = arith.constant 0 : index
    %713 = vector.load %arg4[%c1_497, %c0_498, %c0_499] : memref<4x10x10xf32, #tpu.memory_space<vmem>>, vector<1x10x10xf32>
    %714 = vector.shape_cast %713 : vector<1x10x10xf32> to vector<10x10xf32>
    %715 = vector.extract_strided_slice %695 {offsets = [0, 1], sizes = [10, 19], strides = [1, 1]} : vector<10x22xf32> to vector<10x19xf32>
    %cst_500 = arith.constant dense<0.000000e+00> : vector<10x19xf32>
    %716 = tpu.matmul %714, %715, %cst_500 {dimension_numbers = #tpu.dot_dimension_numbers<[1], [0], [0], [1], [0, 0, 1, 1], [], []>} : vector<10x10xf32>, vector<10x19xf32>, vector<10x19xf32> -> vector<10x19xf32>
    %717 = arith.addf %712, %716 : vector<10x19xf32>
    %c2_501 = arith.constant 2 : index
    %c0_502 = arith.constant 0 : index
    %c0_503 = arith.constant 0 : index
    %718 = vector.load %arg4[%c2_501, %c0_502, %c0_503] : memref<4x10x10xf32, #tpu.memory_space<vmem>>, vector<1x10x10xf32>
    %719 = vector.shape_cast %718 : vector<1x10x10xf32> to vector<10x10xf32>
    %720 = vector.extract_strided_slice %695 {offsets = [0, 2], sizes = [10, 19], strides = [1, 1]} : vector<10x22xf32> to vector<10x19xf32>
    %cst_504 = arith.constant dense<0.000000e+00> : vector<10x19xf32>
    %721 = tpu.matmul %719, %720, %cst_504 {dimension_numbers = #tpu.dot_dimension_numbers<[1], [0], [0], [1], [0, 0, 1, 1], [], []>} : vector<10x10xf32>, vector<10x19xf32>, vector<10x19xf32> -> vector<10x19xf32>
    %722 = arith.addf %717, %721 : vector<10x19xf32>
    %c3_505 = arith.constant 3 : index
    %c0_506 = arith.constant 0 : index
    %c0_507 = arith.constant 0 : index
    %723 = vector.load %arg4[%c3_505, %c0_506, %c0_507] : memref<4x10x10xf32, #tpu.memory_space<vmem>>, vector<1x10x10xf32>
    %724 = vector.shape_cast %723 : vector<1x10x10xf32> to vector<10x10xf32>
    %725 = vector.extract_strided_slice %695 {offsets = [0, 3], sizes = [10, 19], strides = [1, 1]} : vector<10x22xf32> to vector<10x19xf32>
    %cst_508 = arith.constant dense<0.000000e+00> : vector<10x19xf32>
    %726 = tpu.matmul %724, %725, %cst_508 {dimension_numbers = #tpu.dot_dimension_numbers<[1], [0], [0], [1], [0, 0, 1, 1], [], []>} : vector<10x10xf32>, vector<10x19xf32>, vector<10x19xf32> -> vector<10x19xf32>
    %727 = arith.addf %722, %726 : vector<10x19xf32>
    %cst_509 = arith.constant dense<0.000000e+00> : vector<10x10xf32>
    %728 = tpu.matmul %727, %708, %cst_509 {dimension_numbers = #tpu.dot_dimension_numbers<[1], [0], [0], [1], [0, 0, 1, 1], [], []>} : vector<10x19xf32>, vector<19x10xf32>, vector<10x10xf32> -> vector<10x10xf32>
    %c0_510 = arith.constant 0 : index
    %c0_511 = arith.constant 0 : index
    %c0_512 = arith.constant 0 : index
    %729 = vector.load %arg4[%c0_510, %c0_511, %c0_512] : memref<4x10x10xf32, #tpu.memory_space<vmem>>, vector<1x10x10xf32>
    %730 = vector.shape_cast %729 : vector<1x10x10xf32> to vector<10x10xf32>
    %731 = vector.extract_strided_slice %701 {offsets = [0, 0], sizes = [10, 19], strides = [1, 1]} : vector<10x22xf32> to vector<10x19xf32>
    %cst_513 = arith.constant dense<0.000000e+00> : vector<10x19xf32>
    %732 = tpu.matmul %730, %731, %cst_513 {dimension_numbers = #tpu.dot_dimension_numbers<[1], [0], [0], [1], [0, 0, 1, 1], [], []>} : vector<10x10xf32>, vector<10x19xf32>, vector<10x19xf32> -> vector<10x19xf32>
    %c1_514 = arith.constant 1 : index
    %c0_515 = arith.constant 0 : index
    %c0_516 = arith.constant 0 : index
    %733 = vector.load %arg4[%c1_514, %c0_515, %c0_516] : memref<4x10x10xf32, #tpu.memory_space<vmem>>, vector<1x10x10xf32>
    %734 = vector.shape_cast %733 : vector<1x10x10xf32> to vector<10x10xf32>
    %735 = vector.extract_strided_slice %701 {offsets = [0, 1], sizes = [10, 19], strides = [1, 1]} : vector<10x22xf32> to vector<10x19xf32>
    %cst_517 = arith.constant dense<0.000000e+00> : vector<10x19xf32>
    %736 = tpu.matmul %734, %735, %cst_517 {dimension_numbers = #tpu.dot_dimension_numbers<[1], [0], [0], [1], [0, 0, 1, 1], [], []>} : vector<10x10xf32>, vector<10x19xf32>, vector<10x19xf32> -> vector<10x19xf32>
    %737 = arith.addf %732, %736 : vector<10x19xf32>
    %c2_518 = arith.constant 2 : index
    %c0_519 = arith.constant 0 : index
    %c0_520 = arith.constant 0 : index
    %738 = vector.load %arg4[%c2_518, %c0_519, %c0_520] : memref<4x10x10xf32, #tpu.memory_space<vmem>>, vector<1x10x10xf32>
    %739 = vector.shape_cast %738 : vector<1x10x10xf32> to vector<10x10xf32>
    %740 = vector.extract_strided_slice %701 {offsets = [0, 2], sizes = [10, 19], strides = [1, 1]} : vector<10x22xf32> to vector<10x19xf32>
    %cst_521 = arith.constant dense<0.000000e+00> : vector<10x19xf32>
    %741 = tpu.matmul %739, %740, %cst_521 {dimension_numbers = #tpu.dot_dimension_numbers<[1], [0], [0], [1], [0, 0, 1, 1], [], []>} : vector<10x10xf32>, vector<10x19xf32>, vector<10x19xf32> -> vector<10x19xf32>
    %742 = arith.addf %737, %741 : vector<10x19xf32>
    %c3_522 = arith.constant 3 : index
    %c0_523 = arith.constant 0 : index
    %c0_524 = arith.constant 0 : index
    %743 = vector.load %arg4[%c3_522, %c0_523, %c0_524] : memref<4x10x10xf32, #tpu.memory_space<vmem>>, vector<1x10x10xf32>
    %744 = vector.shape_cast %743 : vector<1x10x10xf32> to vector<10x10xf32>
    %745 = vector.extract_strided_slice %701 {offsets = [0, 3], sizes = [10, 19], strides = [1, 1]} : vector<10x22xf32> to vector<10x19xf32>
    %cst_525 = arith.constant dense<0.000000e+00> : vector<10x19xf32>
    %746 = tpu.matmul %744, %745, %cst_525 {dimension_numbers = #tpu.dot_dimension_numbers<[1], [0], [0], [1], [0, 0, 1, 1], [], []>} : vector<10x10xf32>, vector<10x19xf32>, vector<10x19xf32> -> vector<10x19xf32>
    %747 = arith.addf %742, %746 : vector<10x19xf32>
    %cst_526 = arith.constant dense<0.000000e+00> : vector<10x10xf32>
    %748 = tpu.matmul %747, %708, %cst_526 {dimension_numbers = #tpu.dot_dimension_numbers<[1], [0], [0], [1], [0, 0, 1, 1], [], []>} : vector<10x19xf32>, vector<19x10xf32>, vector<10x10xf32> -> vector<10x10xf32>
    %cst_527 = arith.constant dense<0.000000e+00> : vector<10xf32>
    %749 = vector.multi_reduction <add>, %728, %cst_527 [1] : vector<10x10xf32> to vector<10xf32>
    %750 = vector.shape_cast %749 : vector<10xf32> to vector<10x1xf32>
    %751 = arith.mulf %728, %728 : vector<10x10xf32>
    %cst_528 = arith.constant dense<0.000000e+00> : vector<10xf32>
    %752 = vector.multi_reduction <add>, %751, %cst_528 [1] : vector<10x10xf32> to vector<10xf32>
    %753 = vector.shape_cast %752 : vector<10xf32> to vector<10x1xf32>
    %cst_529 = arith.constant dense<0.000000e+00> : vector<10xf32>
    %754 = vector.multi_reduction <add>, %748, %cst_529 [1] : vector<10x10xf32> to vector<10xf32>
    %755 = vector.shape_cast %754 : vector<10xf32> to vector<10x1xf32>
    %756 = arith.addf %750, %755 : vector<10x1xf32>
    %757 = arith.mulf %748, %748 : vector<10x10xf32>
    %cst_530 = arith.constant dense<0.000000e+00> : vector<10xf32>
    %758 = vector.multi_reduction <add>, %757, %cst_530 [1] : vector<10x10xf32> to vector<10xf32>
    %759 = vector.shape_cast %758 : vector<10xf32> to vector<10x1xf32>
    %760 = arith.addf %753, %759 : vector<10x1xf32>
    %cst_531 = arith.constant 5.000000e-02 : f32
    %761 = vector.broadcast %cst_531 : f32 to vector<10x1xf32>
    %762 = arith.mulf %756, %761 : vector<10x1xf32>
    %cst_532 = arith.constant 5.000000e-02 : f32
    %763 = vector.broadcast %cst_532 : f32 to vector<10x1xf32>
    %764 = arith.mulf %760, %763 : vector<10x1xf32>
    %765 = arith.mulf %762, %762 : vector<10x1xf32>
    %766 = arith.subf %764, %765 : vector<10x1xf32>
    %cst_533 = arith.constant 0.000000e+00 : f32
    %767 = vector.broadcast %cst_533 : f32 to vector<10x1xf32>
    %768 = arith.maximumf %766, %767 : vector<10x1xf32>
    %cst_534 = arith.constant 9.99999974E-6 : f32
    %769 = vector.broadcast %cst_534 : f32 to vector<10x1xf32>
    %770 = arith.addf %768, %769 : vector<10x1xf32>
    %771 = math.rsqrt %770 : vector<10x1xf32>
    %772 = vector.broadcast %762 : vector<10x1xf32> to vector<10x10xf32>
    %773 = arith.subf %728, %772 : vector<10x10xf32>
    %774 = vector.broadcast %771 : vector<10x1xf32> to vector<10x10xf32>
    %775 = arith.mulf %773, %774 : vector<10x10xf32>
    %cst_535 = arith.constant 0.000000e+00 : f32
    %776 = vector.broadcast %cst_535 : f32 to vector<10x10xf32>
    %777 = arith.maximumf %775, %776 : vector<10x10xf32>
    %778 = vector.broadcast %762 : vector<10x1xf32> to vector<10x10xf32>
    %779 = arith.subf %748, %778 : vector<10x10xf32>
    %780 = vector.broadcast %771 : vector<10x1xf32> to vector<10x10xf32>
    %781 = arith.mulf %779, %780 : vector<10x10xf32>
    %cst_536 = arith.constant 0.000000e+00 : f32
    %782 = vector.broadcast %cst_536 : f32 to vector<10x10xf32>
    %783 = arith.maximumf %781, %782 : vector<10x10xf32>
    %c0_537 = arith.constant 0 : index
    %c0_538 = arith.constant 0 : index
    %784 = vector.load %arg6[%c0_537, %c0_538] : memref<1x200xf32, #tpu.memory_space<vmem>>, vector<1x200xf32>
    %c0_539 = arith.constant 0 : index
    %c0_540 = arith.constant 0 : index
    %785 = vector.load %arg7[%c0_539, %c0_540] : memref<200x1xf32, #tpu.memory_space<vmem>>, vector<200x1xf32>
    %c0_541 = arith.constant 0 : index
    %c0_542 = arith.constant 0 : index
    %786 = vector.load %arg8[%c0_541, %c0_542] : memref<1x1xf32, #tpu.memory_space<vmem>>, vector<1x1xf32>
    %787 = vector.extract_strided_slice %777 {offsets = [0, 0], sizes = [1, 10], strides = [1, 1]} : vector<10x10xf32> to vector<1x10xf32>
    %c0_543 = arith.constant 0 : index
    %c0_544 = arith.constant 0 : index
    %c0_545 = arith.constant 0 : index
    %788 = vector.load %arg5[%c0_543, %c0_544, %c0_545] : memref<10x10x200xf32, #tpu.memory_space<vmem>>, vector<1x10x200xf32>
    %789 = vector.shape_cast %788 : vector<1x10x200xf32> to vector<10x200xf32>
    %cst_546 = arith.constant dense<0.000000e+00> : vector<1x200xf32>
    %790 = tpu.matmul %787, %789, %cst_546 {dimension_numbers = #tpu.dot_dimension_numbers<[1], [0], [0], [1], [0, 0, 1, 1], [], []>} : vector<1x10xf32>, vector<10x200xf32>, vector<1x200xf32> -> vector<1x200xf32>
    %791 = arith.addf %784, %790 : vector<1x200xf32>
    %792 = vector.extract_strided_slice %777 {offsets = [1, 0], sizes = [1, 10], strides = [1, 1]} : vector<10x10xf32> to vector<1x10xf32>
    %c1_547 = arith.constant 1 : index
    %c0_548 = arith.constant 0 : index
    %c0_549 = arith.constant 0 : index
    %793 = vector.load %arg5[%c1_547, %c0_548, %c0_549] : memref<10x10x200xf32, #tpu.memory_space<vmem>>, vector<1x10x200xf32>
    %794 = vector.shape_cast %793 : vector<1x10x200xf32> to vector<10x200xf32>
    %cst_550 = arith.constant dense<0.000000e+00> : vector<1x200xf32>
    %795 = tpu.matmul %792, %794, %cst_550 {dimension_numbers = #tpu.dot_dimension_numbers<[1], [0], [0], [1], [0, 0, 1, 1], [], []>} : vector<1x10xf32>, vector<10x200xf32>, vector<1x200xf32> -> vector<1x200xf32>
    %796 = arith.addf %791, %795 : vector<1x200xf32>
    %797 = vector.extract_strided_slice %777 {offsets = [2, 0], sizes = [1, 10], strides = [1, 1]} : vector<10x10xf32> to vector<1x10xf32>
    %c2_551 = arith.constant 2 : index
    %c0_552 = arith.constant 0 : index
    %c0_553 = arith.constant 0 : index
    %798 = vector.load %arg5[%c2_551, %c0_552, %c0_553] : memref<10x10x200xf32, #tpu.memory_space<vmem>>, vector<1x10x200xf32>
    %799 = vector.shape_cast %798 : vector<1x10x200xf32> to vector<10x200xf32>
    %cst_554 = arith.constant dense<0.000000e+00> : vector<1x200xf32>
    %800 = tpu.matmul %797, %799, %cst_554 {dimension_numbers = #tpu.dot_dimension_numbers<[1], [0], [0], [1], [0, 0, 1, 1], [], []>} : vector<1x10xf32>, vector<10x200xf32>, vector<1x200xf32> -> vector<1x200xf32>
    %801 = arith.addf %796, %800 : vector<1x200xf32>
    %802 = vector.extract_strided_slice %777 {offsets = [3, 0], sizes = [1, 10], strides = [1, 1]} : vector<10x10xf32> to vector<1x10xf32>
    %c3_555 = arith.constant 3 : index
    %c0_556 = arith.constant 0 : index
    %c0_557 = arith.constant 0 : index
    %803 = vector.load %arg5[%c3_555, %c0_556, %c0_557] : memref<10x10x200xf32, #tpu.memory_space<vmem>>, vector<1x10x200xf32>
    %804 = vector.shape_cast %803 : vector<1x10x200xf32> to vector<10x200xf32>
    %cst_558 = arith.constant dense<0.000000e+00> : vector<1x200xf32>
    %805 = tpu.matmul %802, %804, %cst_558 {dimension_numbers = #tpu.dot_dimension_numbers<[1], [0], [0], [1], [0, 0, 1, 1], [], []>} : vector<1x10xf32>, vector<10x200xf32>, vector<1x200xf32> -> vector<1x200xf32>
    %806 = arith.addf %801, %805 : vector<1x200xf32>
    %807 = vector.extract_strided_slice %777 {offsets = [4, 0], sizes = [1, 10], strides = [1, 1]} : vector<10x10xf32> to vector<1x10xf32>
    %c4_559 = arith.constant 4 : index
    %c0_560 = arith.constant 0 : index
    %c0_561 = arith.constant 0 : index
    %808 = vector.load %arg5[%c4_559, %c0_560, %c0_561] : memref<10x10x200xf32, #tpu.memory_space<vmem>>, vector<1x10x200xf32>
    %809 = vector.shape_cast %808 : vector<1x10x200xf32> to vector<10x200xf32>
    %cst_562 = arith.constant dense<0.000000e+00> : vector<1x200xf32>
    %810 = tpu.matmul %807, %809, %cst_562 {dimension_numbers = #tpu.dot_dimension_numbers<[1], [0], [0], [1], [0, 0, 1, 1], [], []>} : vector<1x10xf32>, vector<10x200xf32>, vector<1x200xf32> -> vector<1x200xf32>
    %811 = arith.addf %806, %810 : vector<1x200xf32>
    %812 = vector.extract_strided_slice %777 {offsets = [5, 0], sizes = [1, 10], strides = [1, 1]} : vector<10x10xf32> to vector<1x10xf32>
    %c5_563 = arith.constant 5 : index
    %c0_564 = arith.constant 0 : index
    %c0_565 = arith.constant 0 : index
    %813 = vector.load %arg5[%c5_563, %c0_564, %c0_565] : memref<10x10x200xf32, #tpu.memory_space<vmem>>, vector<1x10x200xf32>
    %814 = vector.shape_cast %813 : vector<1x10x200xf32> to vector<10x200xf32>
    %cst_566 = arith.constant dense<0.000000e+00> : vector<1x200xf32>
    %815 = tpu.matmul %812, %814, %cst_566 {dimension_numbers = #tpu.dot_dimension_numbers<[1], [0], [0], [1], [0, 0, 1, 1], [], []>} : vector<1x10xf32>, vector<10x200xf32>, vector<1x200xf32> -> vector<1x200xf32>
    %816 = arith.addf %811, %815 : vector<1x200xf32>
    %817 = vector.extract_strided_slice %777 {offsets = [6, 0], sizes = [1, 10], strides = [1, 1]} : vector<10x10xf32> to vector<1x10xf32>
    %c6_567 = arith.constant 6 : index
    %c0_568 = arith.constant 0 : index
    %c0_569 = arith.constant 0 : index
    %818 = vector.load %arg5[%c6_567, %c0_568, %c0_569] : memref<10x10x200xf32, #tpu.memory_space<vmem>>, vector<1x10x200xf32>
    %819 = vector.shape_cast %818 : vector<1x10x200xf32> to vector<10x200xf32>
    %cst_570 = arith.constant dense<0.000000e+00> : vector<1x200xf32>
    %820 = tpu.matmul %817, %819, %cst_570 {dimension_numbers = #tpu.dot_dimension_numbers<[1], [0], [0], [1], [0, 0, 1, 1], [], []>} : vector<1x10xf32>, vector<10x200xf32>, vector<1x200xf32> -> vector<1x200xf32>
    %821 = arith.addf %816, %820 : vector<1x200xf32>
    %822 = vector.extract_strided_slice %777 {offsets = [7, 0], sizes = [1, 10], strides = [1, 1]} : vector<10x10xf32> to vector<1x10xf32>
    %c7_571 = arith.constant 7 : index
    %c0_572 = arith.constant 0 : index
    %c0_573 = arith.constant 0 : index
    %823 = vector.load %arg5[%c7_571, %c0_572, %c0_573] : memref<10x10x200xf32, #tpu.memory_space<vmem>>, vector<1x10x200xf32>
    %824 = vector.shape_cast %823 : vector<1x10x200xf32> to vector<10x200xf32>
    %cst_574 = arith.constant dense<0.000000e+00> : vector<1x200xf32>
    %825 = tpu.matmul %822, %824, %cst_574 {dimension_numbers = #tpu.dot_dimension_numbers<[1], [0], [0], [1], [0, 0, 1, 1], [], []>} : vector<1x10xf32>, vector<10x200xf32>, vector<1x200xf32> -> vector<1x200xf32>
    %826 = arith.addf %821, %825 : vector<1x200xf32>
    %827 = vector.extract_strided_slice %777 {offsets = [8, 0], sizes = [1, 10], strides = [1, 1]} : vector<10x10xf32> to vector<1x10xf32>
    %c8_575 = arith.constant 8 : index
    %c0_576 = arith.constant 0 : index
    %c0_577 = arith.constant 0 : index
    %828 = vector.load %arg5[%c8_575, %c0_576, %c0_577] : memref<10x10x200xf32, #tpu.memory_space<vmem>>, vector<1x10x200xf32>
    %829 = vector.shape_cast %828 : vector<1x10x200xf32> to vector<10x200xf32>
    %cst_578 = arith.constant dense<0.000000e+00> : vector<1x200xf32>
    %830 = tpu.matmul %827, %829, %cst_578 {dimension_numbers = #tpu.dot_dimension_numbers<[1], [0], [0], [1], [0, 0, 1, 1], [], []>} : vector<1x10xf32>, vector<10x200xf32>, vector<1x200xf32> -> vector<1x200xf32>
    %831 = arith.addf %826, %830 : vector<1x200xf32>
    %832 = vector.extract_strided_slice %777 {offsets = [9, 0], sizes = [1, 10], strides = [1, 1]} : vector<10x10xf32> to vector<1x10xf32>
    %c9_579 = arith.constant 9 : index
    %c0_580 = arith.constant 0 : index
    %c0_581 = arith.constant 0 : index
    %833 = vector.load %arg5[%c9_579, %c0_580, %c0_581] : memref<10x10x200xf32, #tpu.memory_space<vmem>>, vector<1x10x200xf32>
    %834 = vector.shape_cast %833 : vector<1x10x200xf32> to vector<10x200xf32>
    %cst_582 = arith.constant dense<0.000000e+00> : vector<1x200xf32>
    %835 = tpu.matmul %832, %834, %cst_582 {dimension_numbers = #tpu.dot_dimension_numbers<[1], [0], [0], [1], [0, 0, 1, 1], [], []>} : vector<1x10xf32>, vector<10x200xf32>, vector<1x200xf32> -> vector<1x200xf32>
    %836 = arith.addf %831, %835 : vector<1x200xf32>
    %cst_583 = arith.constant 0.000000e+00 : f32
    %837 = vector.broadcast %cst_583 : f32 to vector<1x200xf32>
    %838 = arith.maximumf %836, %837 : vector<1x200xf32>
    %cst_584 = arith.constant dense<0.000000e+00> : vector<1x1xf32>
    %839 = tpu.matmul %838, %785, %cst_584 {dimension_numbers = #tpu.dot_dimension_numbers<[1], [0], [0], [1], [0, 0, 1, 1], [], []>} : vector<1x200xf32>, vector<200x1xf32>, vector<1x1xf32> -> vector<1x1xf32>
    %840 = arith.addf %839, %786 : vector<1x1xf32>
    %c0_585 = arith.constant 0 : index
    %c0_586 = arith.constant 0 : index
    %841 = vector.load %arg9[%c0_585, %c0_586] : memref<2x1xf32, #tpu.memory_space<vmem>>, vector<1x1xf32>
    tpu.vector_store %arg9[%c0_585, %c0_586], %840 {strides = array<i32>} : memref<2x1xf32, #tpu.memory_space<vmem>>, vector<1x1xf32>,
    %842 = vector.extract_strided_slice %783 {offsets = [0, 0], sizes = [1, 10], strides = [1, 1]} : vector<10x10xf32> to vector<1x10xf32>
    %c0_587 = arith.constant 0 : index
    %c0_588 = arith.constant 0 : index
    %c0_589 = arith.constant 0 : index
    %843 = vector.load %arg5[%c0_587, %c0_588, %c0_589] : memref<10x10x200xf32, #tpu.memory_space<vmem>>, vector<1x10x200xf32>
    %844 = vector.shape_cast %843 : vector<1x10x200xf32> to vector<10x200xf32>
    %cst_590 = arith.constant dense<0.000000e+00> : vector<1x200xf32>
    %845 = tpu.matmul %842, %844, %cst_590 {dimension_numbers = #tpu.dot_dimension_numbers<[1], [0], [0], [1], [0, 0, 1, 1], [], []>} : vector<1x10xf32>, vector<10x200xf32>, vector<1x200xf32> -> vector<1x200xf32>
    %846 = arith.addf %784, %845 : vector<1x200xf32>
    %847 = vector.extract_strided_slice %783 {offsets = [1, 0], sizes = [1, 10], strides = [1, 1]} : vector<10x10xf32> to vector<1x10xf32>
    %c1_591 = arith.constant 1 : index
    %c0_592 = arith.constant 0 : index
    %c0_593 = arith.constant 0 : index
    %848 = vector.load %arg5[%c1_591, %c0_592, %c0_593] : memref<10x10x200xf32, #tpu.memory_space<vmem>>, vector<1x10x200xf32>
    %849 = vector.shape_cast %848 : vector<1x10x200xf32> to vector<10x200xf32>
    %cst_594 = arith.constant dense<0.000000e+00> : vector<1x200xf32>
    %850 = tpu.matmul %847, %849, %cst_594 {dimension_numbers = #tpu.dot_dimension_numbers<[1], [0], [0], [1], [0, 0, 1, 1], [], []>} : vector<1x10xf32>, vector<10x200xf32>, vector<1x200xf32> -> vector<1x200xf32>
    %851 = arith.addf %846, %850 : vector<1x200xf32>
    %852 = vector.extract_strided_slice %783 {offsets = [2, 0], sizes = [1, 10], strides = [1, 1]} : vector<10x10xf32> to vector<1x10xf32>
    %c2_595 = arith.constant 2 : index
    %c0_596 = arith.constant 0 : index
    %c0_597 = arith.constant 0 : index
    %853 = vector.load %arg5[%c2_595, %c0_596, %c0_597] : memref<10x10x200xf32, #tpu.memory_space<vmem>>, vector<1x10x200xf32>
    %854 = vector.shape_cast %853 : vector<1x10x200xf32> to vector<10x200xf32>
    %cst_598 = arith.constant dense<0.000000e+00> : vector<1x200xf32>
    %855 = tpu.matmul %852, %854, %cst_598 {dimension_numbers = #tpu.dot_dimension_numbers<[1], [0], [0], [1], [0, 0, 1, 1], [], []>} : vector<1x10xf32>, vector<10x200xf32>, vector<1x200xf32> -> vector<1x200xf32>
    %856 = arith.addf %851, %855 : vector<1x200xf32>
    %857 = vector.extract_strided_slice %783 {offsets = [3, 0], sizes = [1, 10], strides = [1, 1]} : vector<10x10xf32> to vector<1x10xf32>
    %c3_599 = arith.constant 3 : index
    %c0_600 = arith.constant 0 : index
    %c0_601 = arith.constant 0 : index
    %858 = vector.load %arg5[%c3_599, %c0_600, %c0_601] : memref<10x10x200xf32, #tpu.memory_space<vmem>>, vector<1x10x200xf32>
    %859 = vector.shape_cast %858 : vector<1x10x200xf32> to vector<10x200xf32>
    %cst_602 = arith.constant dense<0.000000e+00> : vector<1x200xf32>
    %860 = tpu.matmul %857, %859, %cst_602 {dimension_numbers = #tpu.dot_dimension_numbers<[1], [0], [0], [1], [0, 0, 1, 1], [], []>} : vector<1x10xf32>, vector<10x200xf32>, vector<1x200xf32> -> vector<1x200xf32>
    %861 = arith.addf %856, %860 : vector<1x200xf32>
    %862 = vector.extract_strided_slice %783 {offsets = [4, 0], sizes = [1, 10], strides = [1, 1]} : vector<10x10xf32> to vector<1x10xf32>
    %c4_603 = arith.constant 4 : index
    %c0_604 = arith.constant 0 : index
    %c0_605 = arith.constant 0 : index
    %863 = vector.load %arg5[%c4_603, %c0_604, %c0_605] : memref<10x10x200xf32, #tpu.memory_space<vmem>>, vector<1x10x200xf32>
    %864 = vector.shape_cast %863 : vector<1x10x200xf32> to vector<10x200xf32>
    %cst_606 = arith.constant dense<0.000000e+00> : vector<1x200xf32>
    %865 = tpu.matmul %862, %864, %cst_606 {dimension_numbers = #tpu.dot_dimension_numbers<[1], [0], [0], [1], [0, 0, 1, 1], [], []>} : vector<1x10xf32>, vector<10x200xf32>, vector<1x200xf32> -> vector<1x200xf32>
    %866 = arith.addf %861, %865 : vector<1x200xf32>
    %867 = vector.extract_strided_slice %783 {offsets = [5, 0], sizes = [1, 10], strides = [1, 1]} : vector<10x10xf32> to vector<1x10xf32>
    %c5_607 = arith.constant 5 : index
    %c0_608 = arith.constant 0 : index
    %c0_609 = arith.constant 0 : index
    %868 = vector.load %arg5[%c5_607, %c0_608, %c0_609] : memref<10x10x200xf32, #tpu.memory_space<vmem>>, vector<1x10x200xf32>
    %869 = vector.shape_cast %868 : vector<1x10x200xf32> to vector<10x200xf32>
    %cst_610 = arith.constant dense<0.000000e+00> : vector<1x200xf32>
    %870 = tpu.matmul %867, %869, %cst_610 {dimension_numbers = #tpu.dot_dimension_numbers<[1], [0], [0], [1], [0, 0, 1, 1], [], []>} : vector<1x10xf32>, vector<10x200xf32>, vector<1x200xf32> -> vector<1x200xf32>
    %871 = arith.addf %866, %870 : vector<1x200xf32>
    %872 = vector.extract_strided_slice %783 {offsets = [6, 0], sizes = [1, 10], strides = [1, 1]} : vector<10x10xf32> to vector<1x10xf32>
    %c6_611 = arith.constant 6 : index
    %c0_612 = arith.constant 0 : index
    %c0_613 = arith.constant 0 : index
    %873 = vector.load %arg5[%c6_611, %c0_612, %c0_613] : memref<10x10x200xf32, #tpu.memory_space<vmem>>, vector<1x10x200xf32>
    %874 = vector.shape_cast %873 : vector<1x10x200xf32> to vector<10x200xf32>
    %cst_614 = arith.constant dense<0.000000e+00> : vector<1x200xf32>
    %875 = tpu.matmul %872, %874, %cst_614 {dimension_numbers = #tpu.dot_dimension_numbers<[1], [0], [0], [1], [0, 0, 1, 1], [], []>} : vector<1x10xf32>, vector<10x200xf32>, vector<1x200xf32> -> vector<1x200xf32>
    %876 = arith.addf %871, %875 : vector<1x200xf32>
    %877 = vector.extract_strided_slice %783 {offsets = [7, 0], sizes = [1, 10], strides = [1, 1]} : vector<10x10xf32> to vector<1x10xf32>
    %c7_615 = arith.constant 7 : index
    %c0_616 = arith.constant 0 : index
    %c0_617 = arith.constant 0 : index
    %878 = vector.load %arg5[%c7_615, %c0_616, %c0_617] : memref<10x10x200xf32, #tpu.memory_space<vmem>>, vector<1x10x200xf32>
    %879 = vector.shape_cast %878 : vector<1x10x200xf32> to vector<10x200xf32>
    %cst_618 = arith.constant dense<0.000000e+00> : vector<1x200xf32>
    %880 = tpu.matmul %877, %879, %cst_618 {dimension_numbers = #tpu.dot_dimension_numbers<[1], [0], [0], [1], [0, 0, 1, 1], [], []>} : vector<1x10xf32>, vector<10x200xf32>, vector<1x200xf32> -> vector<1x200xf32>
    %881 = arith.addf %876, %880 : vector<1x200xf32>
    %882 = vector.extract_strided_slice %783 {offsets = [8, 0], sizes = [1, 10], strides = [1, 1]} : vector<10x10xf32> to vector<1x10xf32>
    %c8_619 = arith.constant 8 : index
    %c0_620 = arith.constant 0 : index
    %c0_621 = arith.constant 0 : index
    %883 = vector.load %arg5[%c8_619, %c0_620, %c0_621] : memref<10x10x200xf32, #tpu.memory_space<vmem>>, vector<1x10x200xf32>
    %884 = vector.shape_cast %883 : vector<1x10x200xf32> to vector<10x200xf32>
    %cst_622 = arith.constant dense<0.000000e+00> : vector<1x200xf32>
    %885 = tpu.matmul %882, %884, %cst_622 {dimension_numbers = #tpu.dot_dimension_numbers<[1], [0], [0], [1], [0, 0, 1, 1], [], []>} : vector<1x10xf32>, vector<10x200xf32>, vector<1x200xf32> -> vector<1x200xf32>
    %886 = arith.addf %881, %885 : vector<1x200xf32>
    %887 = vector.extract_strided_slice %783 {offsets = [9, 0], sizes = [1, 10], strides = [1, 1]} : vector<10x10xf32> to vector<1x10xf32>
    %c9_623 = arith.constant 9 : index
    %c0_624 = arith.constant 0 : index
    %c0_625 = arith.constant 0 : index
    %888 = vector.load %arg5[%c9_623, %c0_624, %c0_625] : memref<10x10x200xf32, #tpu.memory_space<vmem>>, vector<1x10x200xf32>
    %889 = vector.shape_cast %888 : vector<1x10x200xf32> to vector<10x200xf32>
    %cst_626 = arith.constant dense<0.000000e+00> : vector<1x200xf32>
    %890 = tpu.matmul %887, %889, %cst_626 {dimension_numbers = #tpu.dot_dimension_numbers<[1], [0], [0], [1], [0, 0, 1, 1], [], []>} : vector<1x10xf32>, vector<10x200xf32>, vector<1x200xf32> -> vector<1x200xf32>
    %891 = arith.addf %886, %890 : vector<1x200xf32>
    %cst_627 = arith.constant 0.000000e+00 : f32
    %892 = vector.broadcast %cst_627 : f32 to vector<1x200xf32>
    %893 = arith.maximumf %891, %892 : vector<1x200xf32>
    %cst_628 = arith.constant dense<0.000000e+00> : vector<1x1xf32>
    %894 = tpu.matmul %893, %785, %cst_628 {dimension_numbers = #tpu.dot_dimension_numbers<[1], [0], [0], [1], [0, 0, 1, 1], [], []>} : vector<1x200xf32>, vector<200x1xf32>, vector<1x1xf32> -> vector<1x1xf32>
    %895 = arith.addf %894, %786 : vector<1x1xf32>
    %c1_629 = arith.constant 1 : index
    %c0_630 = arith.constant 0 : index
    %896 = vector.load %arg9[%c1_629, %c0_630] : memref<2x1xf32, #tpu.memory_space<vmem>>, vector<1x1xf32>
    tpu.vector_store %arg9[%c1_629, %c0_630], %895 {strides = array<i32>} : memref<2x1xf32, #tpu.memory_space<vmem>>, vector<1x1xf32>,
    return
  }
}

</mosaic_0001>

<bundles_post_ra>
// kernel: discriminator_forward.1
= control target key start
LH: loop header
LB: loop body
LE: loop exit
PB: predicated region body
PF: predicated region fallthrough
CT: control target
= control target key end

     0   :  { %vm113_vm0 = vcmask 31744   ;;  %s21493_s13 = smov 127   ;;  %s18365_s14 = smov 125   ;;  %vm120_vm1 = vcmask 1043456   ;;  %vm649_vm2 = vcmask 998400   ;;  %vm21574_vm3 = vcmask 990208   ;;  %s21483_s0 = inlined_call_operand.vmem [shape: f32[2,4,166], index: 0, kind: input, shape index: {}]   ;;  %s21484_s1 = inlined_call_operand.vmem [shape: f32[44,10,4], index: 1, kind: input, shape index: {}]   ;;  %s21485_s2 = inlined_call_operand.vmem [shape: f32[10,1], index: 2, kind: input, shape index: {}]   ;;  %s21486_s3 = inlined_call_operand.vmem [shape: f32[20,10,10], index: 3, kind: input, shape index: {}]   ;;  %s21487_s4 = inlined_call_operand.vmem [shape: f32[4,10,10], index: 4, kind: input, shape index: {}]   ;;  %s21488_s5 = inlined_call_operand.vmem [shape: f32[10,10,200], index: 5, kind: input, shape index: {}]   ;;  %s21489_s7 = inlined_call_operand.vmem [shape: f32[200,1], index: 7, kind: input, shape index: {}]   ;;  %s21490_s8 = inlined_call_operand.<no memory space> [shape: f32[1,1], index: 8, kind: input, shape index: {}]   ;;  %s21491_s6 = inlined_call_operand.vmem [shape: f32[1,200], index: 6, kind: input, shape index: {}]   ;;  %s21492_s9 = inlined_call_operand.vmem [shape: f32[2,1], index: 9, kind: output, shape index: {}]  }
   0x1   :  { %v18467_v0 = vld [vmem:[%s21483_s0] sm:$0xff]  ;;  %v15028_v1 = vld [vmem:[%s21484_s1 + $0x10] sm:$0xff]  ;;  %s18366_s15 = smov 126   ;;  %s18367_s16 = smov 124   ;;  %v15029_v4 = vld [vmem:[%s21484_s1 + $0x18] sm:$0x3] }
   0x2   :  { %111 = vrot.lane.b32.xlu0 %v18467_v0, %s21493_s13  ;;  %374 = vrot.lane.b32.xlu1 %v18467_v0, %s18365_s14  ;;  %s18368_s17 = smov 123   ;;  %s18369_s18 = smov 122   ;;  %v18487_v2 = vcombine.high %v18467_v0, %v18467_v0  ;;  %v105_v5 = vld [vmem:[%s21484_s1] sm:$0xff]  ;;  %v106_v7 = vld [vmem:[%s21484_s1 + $0x8] sm:$0x3]  ;;  %vm21572_vm4 = vcmask 982016  }
   0x3   :  { %16283 = vmatprep.mubr.msk.f32.mxu0 %vm113_vm0, %v15028_v1  ;;  %s18370_s19 = smov 121   ;;  %s18371_s20 = smov 120   ;;  %v15036_v8 = vld [vmem:[%s21484_s1 + $0x20] sm:$0xff]  ;;  %v15037_v10 = vld [vmem:[%s21484_s1 + $0x28] sm:$0x3]  ;;  %v15041_v11 = vld [vmem:[%s21484_s1 + $0x30] sm:$0xff] }
   0x4   :  { %s18372_s21 = smov 119   ;;  %s18373_s22 = smov 118   ;;  %v15042_v13 = vld [vmem:[%s21484_s1 + $0x38] sm:$0x3]  ;;  %v15046_v14 = vld [vmem:[%s21484_s1 + $0x40] sm:$0xff]  ;;  %v15051_v19 = vld [vmem:[%s21484_s1 + $0x50] sm:$0xff] }
   0x5   :  { %s18374_s23 = smov 117   ;;  %s18375_s24 = smov 116   ;;  %v15047_v18 = vld [vmem:[%s21484_s1 + $0x48] sm:$0x3]  ;;  %v15052_v23 = vld [vmem:[%s21484_s1 + $0x58] sm:$0x3] }
   0x6   :  { %284 = vrot.lane.b32.xlu0 %v18467_v0, %s18366_s15  ;;  %464 = vrot.lane.b32.xlu1 %v18467_v0, %s18367_s16  ;;  %s18376_s25 = smov 115   ;;  %s18377_s26 = smov 114   ;;  %v15056_v24 = vld [vmem:[%s21484_s1 + $0x60] sm:$0xff]  ;;  %v15057_v28 = vld [vmem:[%s21484_s1 + $0x68] sm:$0x3]  ;;  %vm21571_vm5 = vcmask 973824  }
   0x7   :  { %s21581_s27 = smov 113   ;;  %s21579_s28 = smov 112   ;;  %v15061_v29 = vld [vmem:[%s21484_s1 + $0x70] sm:$0xff]  ;;  %v15062_v33 = vld [vmem:[%s21484_s1 + $0x78] sm:$0x3]  ;;  %v15066_v34 = vld [vmem:[%s21484_s1 + $0x80] sm:$0xff] }
   0x8   :  { %s21519_s29 = smov 111   ;;  %s21515_s30 = smov 110   ;;  %vm21570_vm6 = vcmask 965632   ;;  %v15067_v38 = vld [vmem:[%s21484_s1 + $0x88] sm:$0x3]  ;;  %v15071_v39 = vld [vmem:[%s21484_s1 + $0x90] sm:$0xff] }
   0x9   :  { %s21495_s10 = smov 109   ;;  %s21497_s11 = smov 108   ;;  %vm21568_vm7 = vcmask 957440   ;;  %v15072_v43 = vld [vmem:[%s21484_s1 + $0x98] sm:$0x3]  ;;  %v15076_v44 = vld [vmem:[%s21484_s1 + $0xa0] sm:$0xff] }
   0xa   :  { %554 = vrot.lane.b32.xlu0 %v18467_v0, %s18368_s17  ;;  %645 = vrot.lane.b32.xlu1 %v18467_v0, %s18369_s18  ;;  %s21499_s12 = smov 107   ;;  %s21501_s13 = smov 106   ;;  %vm21567_vm8 = vcmask 949248   ;;  %v15077_v48 = vld [vmem:[%s21484_s1 + $0xa8] sm:$0x3]  ;;  %v15081_v49 = vld [vmem:[%s21484_s1 + $0xb0] sm:$0xff] }
   0xb   :  { %vm21565_vm9 = vcmask 941056   ;;  %v15082_v53 = vld [vmem:[%s21484_s1 + $0xb8] sm:$0x3]  ;;  %v15086_v54 = vld [vmem:[%s21484_s1 + $0xc0] sm:$0xff]  ;;  %vm21564_vm10 = vcmask 932864   ;;  %v15091_v59 = vld [vmem:[%s21484_s1 + $0xd0] sm:$0xff] }
   0xc   :  { %v15087_v58 = vld [vmem:[%s21484_s1 + $0xc8] sm:$0x3]  ;;  %vm21563_vm11 = vcmask 924672   ;;  %v15092_v63 = vld [vmem:[%s21484_s1 + $0xd8] sm:$0x3]  ;;  %vm21562_vm12 = vcmask 916480  }
   0xd   :  { %vm21561_vm13 = vcmask 908288   ;;  %vm21547_vm14 = vcmask 900096   ;;  %vm21548_vm15 = vcmask 891904  }
   0xe   :  { %647 = vrot.lane.b32.xlu0 %v18487_v2, %s18369_s18  ;;  %739 = vrot.lane.b32.xlu1 %v18467_v0, %s18370_s19 }
  0x12   :  { %741 = vrot.lane.b32.xlu0 %v18487_v2, %s18370_s19  ;;  %833 = vrot.lane.b32.xlu1 %v18467_v0, %s18371_s20 }
  0x16   :  { %835 = vrot.lane.b32.xlu0 %v18487_v2, %s18371_s20  ;;  %927 = vrot.lane.b32.xlu1 %v18467_v0, %s18372_s21 }
  0x1a   :  { %929 = vrot.lane.b32.xlu0 %v18487_v2, %s18372_s21  ;;  %1021 = vrot.lane.b32.xlu1 %v18467_v0, %s18373_s22 }
  0x1e   :  { %1023 = vrot.lane.b32.xlu0 %v18487_v2, %s18373_s22  ;;  %1115 = vrot.lane.b32.xlu1 %v18467_v0, %s18374_s23 }
  0x22   :  { %1117 = vrot.lane.b32.xlu0 %v18487_v2, %s18374_s23  ;;  %1209 = vrot.lane.b32.xlu1 %v18467_v0, %s18375_s24 }
  0x26   :  { %1211 = vrot.lane.b32.xlu0 %v18487_v2, %s18375_s24  ;;  %1303 = vrot.lane.b32.xlu1 %v18467_v0, %s18376_s25 }
  0x2a   :  { %1305 = vrot.lane.b32.xlu0 %v18487_v2, %s18376_s25  ;;  %1397 = vrot.lane.b32.xlu1 %v18467_v0, %s18377_s26 }
  0x2e   :  { %1399 = vrot.lane.b32.xlu0 %v18487_v2, %s18377_s26  ;;  %1491 = vrot.lane.b32.xlu1 %v18467_v0, %s21581_s27 }
  0x32   :  { %1493 = vrot.lane.b32.xlu0 %v18487_v2, %s21581_s27  ;;  %1585 = vrot.lane.b32.xlu1 %v18467_v0, %s21579_s28 }
  0x36   :  { %1587 = vrot.lane.b32.xlu0 %v18487_v2, %s21579_s28  ;;  %1679 = vrot.lane.b32.xlu1 %v18467_v0, %s21519_s29 }
  0x3a   :  { %1681 = vrot.lane.b32.xlu0 %v18487_v2, %s21519_s29  ;;  %1773 = vrot.lane.b32.xlu1 %v18467_v0, %s21515_s30  ;;  %s21661_s29 = smov 108  }
  0x3e   :  { %1775 = vrot.lane.b32.xlu0 %v18487_v2, %s21515_s30  ;;  %1867 = vrot.lane.b32.xlu1 %v18467_v0, %s21495_s10  ;;  %s21525_s30 = smov 96  }
  0x42   :  { %1869 = vrot.lane.b32.xlu0 %v18487_v2, %s21495_s10  ;;  %1961 = vrot.lane.b32.xlu1 %v18467_v0, %s21497_s11  ;;  %s21503_s10 = smov 105  }
  0x46   :  { %1963 = vrot.lane.b32.xlu0 %v18487_v2, %s21497_s11  ;;  %2055 = vrot.lane.b32.xlu1 %v18467_v0, %s21499_s12  ;;  %s21505_s11 = smov 104  }
  0x4a   :  { %2057 = vrot.lane.b32.xlu0 %v18487_v2, %s21499_s12  ;;  %2149 = vrot.lane.b32.xlu1 %v18467_v0, %s21501_s13  ;;  %s21507_s12 = smov 103  }
  0x4e   :  { %2151 = vrot.lane.b32.xlu0 %v18487_v2, %s21501_s13  ;;  %2243 = vrot.lane.b32.xlu1 %v18467_v0, %s21503_s10  ;;  %s21509_s13 = smov 102  }
  0x52   :  { %2245 = vrot.lane.b32.xlu0 %v18487_v2, %s21503_s10  ;;  %2337 = vrot.lane.b32.xlu1 %v18467_v0, %s21505_s11  ;;  %s21511_s10 = smov 101  }
  0x56   :  { %2339 = vrot.lane.b32.xlu0 %v18487_v2, %s21505_s11  ;;  %2431 = vrot.lane.b32.xlu1 %v18467_v0, %s21507_s12  ;;  %s21513_s11 = smov 100  }
  0x5a   :  { %2433 = vrot.lane.b32.xlu0 %v18487_v2, %s21507_s12  ;;  %2525 = vrot.lane.b32.xlu1 %v18467_v0, %s21509_s13  ;;  %s21517_s12 = smov 99  }
  0x5e   :  { %2527 = vrot.lane.b32.xlu0 %v18487_v2, %s21509_s13  ;;  %2619 = vrot.lane.b32.xlu1 %v18467_v0, %s21511_s10  ;;  %s21523_s13 = smov 98  }
  0x62   :  { %2621 = vrot.lane.b32.xlu0 %v18487_v2, %s21511_s10  ;;  %2713 = vrot.lane.b32.xlu1 %v18467_v0, %s21513_s11  ;;  %s21521_s10 = smov 97  }
  0x66   :  { %2715 = vrot.lane.b32.xlu0 %v18487_v2, %s21513_s11  ;;  %2807 = vrot.lane.b32.xlu1 %v18467_v0, %s21517_s12  ;;  %s21691_s11 = smov 93  }
  0x6a   :  { %2809 = vrot.lane.b32.xlu0 %v18487_v2, %s21517_s12  ;;  %2901 = vrot.lane.b32.xlu1 %v18467_v0, %s21523_s13  ;;  %s21668_s12 = smov 105  }
  0x6e   :  { %2903 = vrot.lane.b32.xlu0 %v18487_v2, %s21523_s13  ;;  %2995 = vrot.lane.b32.xlu1 %v18467_v0, %s21521_s10  ;;  %s21527_s13 = smov 95  }
  0x72   :  { %2997 = vrot.lane.b32.xlu0 %v18487_v2, %s21521_s10  ;;  %3089 = vrot.lane.b32.xlu1 %v18467_v0, %s21525_s30  ;;  %s21696_s10 = smov 88  }
  0x74   :  { %v112_v3 = vpop.permute.xlu0 %111  ;;  %v375_v9 = vpop.permute.xlu1 %374 }
  0x75   :  { %16281 = vmatprep.subr.msk.mxu0 %vm120_vm1, %v112_v3 }
  0x76   :  { %16282 = vmatpush3.msk.msra.mxu0 %vm120_vm1, %v112_v3  ;;  %3091 = vrot.lane.b32.xlu0 %v18487_v2, %s21525_s30  ;;  %s21557_s30 = smov 94  }
  0x77   :  { %16284 = vmatmul.mubr.msk.f32.vlgmr.msra.gmra.mrb[0].mxu0 %vm113_vm0, %v15029_v4  ;;  %16286 = vmatprep.subr.msk.mxu0 %vm120_vm1, %v18467_v0  ;;  %v15097_v4 = vld [vmem:[%s21484_s1 + $0xe8] sm:$0x3] }
  0x78   :  { %16287 = vmatpush3.msk.msra.mxu0 %vm120_vm1, %v18467_v0  ;;  %v285_v6 = vpop.permute.xlu0 %284  ;;  %16288 = vmatprep.mubr.msk.f32.mxu0 %vm113_vm0, %v105_v5  ;;  %v465_v12 = vpop.permute.xlu1 %464  ;;  %v15101_v5 = vld [vmem:[%s21484_s1 + $0xf0] sm:$0xff] }
  0x79   :  { %16291 = vmatprep.subr.msk.mxu0 %vm120_vm1, %v285_v6  ;;  %3183 = vrot.lane.b32.xlu1 %v18467_v0, %s21527_s13 }
  0x7a   :  { %3185 = vrot.lane.b32.xlu0 %v18487_v2, %s21527_s13  ;;  %s21529_s13 = smov 93  }
  0x7c   :  { %v555_v15 = vpop.permute.xlu0 %554  ;;  %v646_v16 = vpop.permute.xlu1 %645 }
  0x7d   :  { %3277 = vrot.lane.b32.xlu1 %v18467_v0, %s21557_s30 }
  0x7e   :  { %3279 = vrot.lane.b32.xlu0 %v18487_v2, %s21557_s30  ;;  %s21657_s30 = smov 110  }
  0x7f   :  { %16289 = vmatmul.mubr.msk.f32.vlgmr.msra.gmra.mrb[0].mxu0 %vm113_vm0, %v106_v7 }
  0x80   :  { %16292 = vmatpush3.msk.msra.mxu0 %vm120_vm1, %v285_v6  ;;  %16293 = vmatprep.mubr.msk.f32.mxu0 %vm113_vm0, %v15036_v8  ;;  %v648_v17 = vpop.permute.xlu0 %647  ;;  %v740_v21 = vpop.permute.xlu1 %739 }
  0x81   :  { %16296 = vmatprep.subr.msk.mxu0 %vm120_vm1, %v375_v9  ;;  %3371 = vrot.lane.b32.xlu1 %v18467_v0, %s21529_s13  ;;  %v650_v20 = vsel %vm649_vm2, %v646_v16, %v648_v17 }
  0x82   :  { %3373 = vrot.lane.b32.xlu0 %v18487_v2, %s21529_s13  ;;  %s21531_s13 = smov 92  }
  0x84   :  { %v742_v22 = vpop.permute.xlu0 %741  ;;  %v834_v26 = vpop.permute.xlu1 %833 }
  0x85   :  { %3465 = vrot.lane.b32.xlu1 %v18467_v0, %s21531_s13  ;;  %v744_v25 = vsel %vm21574_vm3, %v740_v21, %v742_v22 }
  0x86   :  { %3467 = vrot.lane.b32.xlu0 %v18487_v2, %s21531_s13  ;;  %s21533_s13 = smov 91  }
  0x87   :  { %16294 = vmatmul.mubr.msk.f32.vlgmr.msra.gmra.mrb[0].mxu0 %vm113_vm0, %v15037_v10  ;;  %v15106_v10 = vld [vmem:[%s21484_s1 + $0x100] sm:$0xff] }
  0x88   :  { %16297 = vmatpush3.msk.msra.mxu0 %vm120_vm1, %v375_v9  ;;  %16298 = vmatprep.mubr.msk.f32.mxu0 %vm113_vm0, %v15041_v11  ;;  %v836_v27 = vpop.permute.xlu0 %835  ;;  %v928_v31 = vpop.permute.xlu1 %927  ;;  %v15102_v9 = vld [vmem:[%s21484_s1 + $0xf8] sm:$0x3] }
  0x89   :  { %16301 = vmatprep.subr.msk.mxu0 %vm120_vm1, %v465_v12  ;;  %3559 = vrot.lane.b32.xlu1 %v18467_v0, %s21533_s13  ;;  %v838_v30 = vsel %vm21572_vm4, %v834_v26, %v836_v27 }
  0x8a   :  { %3561 = vrot.lane.b32.xlu0 %v18487_v2, %s21533_s13  ;;  %s21535_s13 = smov 90  }
  0x8c   :  { %v930_v32 = vpop.permute.xlu0 %929  ;;  %v1022_v36 = vpop.permute.xlu1 %1021 }
  0x8d   :  { %3653 = vrot.lane.b32.xlu1 %v18467_v0, %s21535_s13  ;;  %v932_v35 = vsel %vm21571_vm5, %v928_v31, %v930_v32 }
  0x8e   :  { %3655 = vrot.lane.b32.xlu0 %v18487_v2, %s21535_s13  ;;  %s21537_s13 = smov 89  }
  0x8f   :  { %16299 = vmatmul.mubr.msk.f32.vlgmr.msra.gmra.mrb[0].mxu0 %vm113_vm0, %v15042_v13 }
  0x90   :  { %16302 = vmatpush3.msk.msra.mxu0 %vm120_vm1, %v465_v12  ;;  %16303 = vmatprep.mubr.msk.f32.mxu0 %vm113_vm0, %v15046_v14  ;;  %v1024_v37 = vpop.permute.xlu0 %1023  ;;  %v1116_v41 = vpop.permute.xlu1 %1115  ;;  %v15107_v14 = vld [vmem:[%s21484_s1 + $0x108] sm:$0x3] }
  0x91   :  { %16306 = vmatprep.subr.msk.mxu0 %vm120_vm1, %v555_v15  ;;  %3747 = vrot.lane.b32.xlu1 %v18467_v0, %s21537_s13  ;;  %v1026_v40 = vsel %vm21570_vm6, %v1022_v36, %v1024_v37 }
  0x92   :  { %3749 = vrot.lane.b32.xlu0 %v18487_v2, %s21537_s13  ;;  %s21539_s13 = smov 88  }
  0x94   :  { %v1118_v42 = vpop.permute.xlu0 %1117  ;;  %v1210_v46 = vpop.permute.xlu1 %1209 }
  0x95   :  { %3841 = vrot.lane.b32.xlu1 %v18467_v0, %s21539_s13  ;;  %v1120_v45 = vsel %vm21568_vm7, %v1116_v41, %v1118_v42 }
  0x96   :  { %3843 = vrot.lane.b32.xlu0 %v18487_v2, %s21539_s13  ;;  %s21541_s13 = smov 87  }
  0x97   :  { %16304 = vmatmul.mubr.msk.f32.vlgmr.msra.gmra.mrb[0].mxu0 %vm113_vm0, %v15047_v18 }
  0x98   :  { %16307 = vmatpush3.msk.msra.mxu0 %vm120_vm1, %v555_v15  ;;  %16308 = vmatprep.mubr.msk.f32.mxu0 %vm113_vm0, %v15051_v19  ;;  %v1212_v47 = vpop.permute.xlu0 %1211  ;;  %v1304_v51 = vpop.permute.xlu1 %1303  ;;  %v15111_v15 = vld [vmem:[%s21484_s1 + $0x110] sm:$0xff]  ;;  %v15112_v19 = vld [vmem:[%s21484_s1 + $0x118] sm:$0x3] }
  0x99   :  { %16311 = vmatprep.subr.msk.mxu0 %vm120_vm1, %v650_v20  ;;  %3935 = vrot.lane.b32.xlu1 %v18467_v0, %s21541_s13  ;;  %v1214_v50 = vsel %vm21567_vm8, %v1210_v46, %v1212_v47 }
  0x9a   :  { %3937 = vrot.lane.b32.xlu0 %v18487_v2, %s21541_s13  ;;  %s21543_s13 = smov 86  }
  0x9c   :  { %v1306_v52 = vpop.permute.xlu0 %1305  ;;  %v1398_v56 = vpop.permute.xlu1 %1397 }
  0x9d   :  { %4029 = vrot.lane.b32.xlu1 %v18467_v0, %s21543_s13  ;;  %v1308_v55 = vsel %vm21565_vm9, %v1304_v51, %v1306_v52 }
  0x9e   :  { %4031 = vrot.lane.b32.xlu0 %v18487_v2, %s21543_s13  ;;  %s21545_s13 = smov 85  }
  0x9f   :  { %16309 = vmatmul.mubr.msk.f32.vlgmr.msra.gmra.mrb[0].mxu0 %vm113_vm0, %v15052_v23 }
  0xa0   :  { %16312 = vmatpush3.msk.msra.mxu0 %vm120_vm1, %v650_v20  ;;  %16313 = vmatprep.mubr.msk.f32.mxu0 %vm113_vm0, %v15056_v24  ;;  %v1400_v57 = vpop.permute.xlu0 %1399  ;;  %v1492_v61 = vpop.permute.xlu1 %1491  ;;  %v15116_v20 = vld [vmem:[%s21484_s1 + $0x120] sm:$0xff]  ;;  %v15117_v24 = vld [vmem:[%s21484_s1 + $0x128] sm:$0x3] }
  0xa1   :  { %16316 = vmatprep.subr.msk.mxu0 %vm120_vm1, %v744_v25  ;;  %4123 = vrot.lane.b32.xlu1 %v18467_v0, %s21545_s13  ;;  %v1402_v60 = vsel %vm21564_vm10, %v1398_v56, %v1400_v57  ;;  %v15096_v0 = vld [vmem:[%s21484_s1 + $0xe0] sm:$0xff] }
  0xa2   :  { %4125 = vrot.lane.b32.xlu0 %v18487_v2, %s21545_s13  ;;  %s21660_s13 = smov 109  }
  0xa4   :  { %v1494_v62 = vpop.permute.xlu0 %1493  ;;  %v1586_v2 = vpop.permute.xlu1 %1585 }
  0xa5   :  { %v1496_v1 = vsel %vm21563_vm11, %v1492_v61, %v1494_v62 }
  0xa7   :  { %16314 = vmatmul.mubr.msk.f32.vlgmr.msra.gmra.mrb[0].mxu0 %vm113_vm0, %v15057_v28 }
  0xa8   :  { %16317 = vmatpush3.msk.msra.mxu0 %vm120_vm1, %v744_v25  ;;  %16318 = vmatprep.mubr.msk.f32.mxu0 %vm113_vm0, %v15061_v29  ;;  %v1588_v3 = vpop.permute.xlu0 %1587  ;;  %v1680_v7 = vpop.permute.xlu1 %1679  ;;  %v15121_v25 = vld [vmem:[%s21484_s1 + $0x130] sm:$0xff]  ;;  %v15122_v29 = vld [vmem:[%s21484_s1 + $0x138] sm:$0x3] }
  0xa9   :  { %16321 = vmatprep.subr.msk.mxu0 %vm120_vm1, %v838_v30  ;;  %v1590_v6 = vsel %vm21562_vm12, %v1586_v2, %v1588_v3 }
  0xac   :  { %v1682_v8 = vpop.permute.xlu0 %1681  ;;  %v1774_v12 = vpop.permute.xlu1 %1773 }
  0xad   :  { %v1684_v11 = vsel %vm21561_vm13, %v1680_v7, %v1682_v8  ;;  %v18948_v8 = vld [vmem:[%s21483_s0 + $0x8] sm:$0xff]  ;;  %s21656_s0 = smov 111  }
  0xae   :  { %4471 = vrot.lane.b32.xlu1 %v18948_v8, %s18366_s15  ;;  %4552 = vrot.lane.b32.xlu0 %v18948_v8, %s18365_s14 }
  0xaf   :  { %16319 = vmatmul.mubr.msk.f32.vlgmr.msra.gmra.mrb[0].mxu0 %vm113_vm0, %v15062_v33 }
  0xb0   :  { %16322 = vmatpush3.msk.msra.mxu0 %vm120_vm1, %v838_v30  ;;  %16323 = vmatprep.mubr.msk.f32.mxu0 %vm113_vm0, %v15066_v34  ;;  %v1776_v13 = vpop.permute.xlu0 %1775  ;;  %v1868_v17 = vpop.permute.xlu1 %1867  ;;  %v15126_v30 = vld [vmem:[%s21484_s1 + $0x140] sm:$0xff]  ;;  %v15127_v34 = vld [vmem:[%s21484_s1 + $0x148] sm:$0x3] }
  0xb1   :  { %16326 = vmatprep.subr.msk.mxu0 %vm120_vm1, %v932_v35  ;;  %v1778_v16 = vsel %vm21547_vm14, %v1774_v12, %v1776_v13  ;;  %vm21549_vm14 = vcmask 883712  }
  0xb2   :  { %4633 = vrot.lane.b32.xlu1 %v18948_v8, %s18367_s16  ;;  %4714 = vrot.lane.b32.xlu0 %v18948_v8, %s18368_s17 }
  0xb4   :  { %v1870_v18 = vpop.permute.xlu0 %1869  ;;  %v1962_v22 = vpop.permute.xlu1 %1961 }
  0xb5   :  { %v1872_v21 = vsel %vm21548_vm15, %v1868_v17, %v1870_v18  ;;  %vm21550_vm15 = vcmask 875520   ;;  %v15167_v18 = vld [vmem:[%s21484_s1 + $0x1c8] sm:$0x3] }
  0xb6   :  { %4796 = vrot.lane.b32.xlu1 %v18948_v8, %s18369_s18 }
  0xb7   :  { %16324 = vmatmul.mubr.msk.f32.vlgmr.msra.gmra.mrb[0].mxu0 %vm113_vm0, %v15067_v38 }
  0xb8   :  { %16327 = vmatpush3.msk.msra.mxu0 %vm120_vm1, %v932_v35  ;;  %16328 = vmatprep.mubr.msk.f32.mxu0 %vm113_vm0, %v15071_v39  ;;  %v1964_v23 = vpop.permute.xlu0 %1963  ;;  %v2056_v27 = vpop.permute.xlu1 %2055  ;;  %v15131_v35 = vld [vmem:[%s21484_s1 + $0x150] sm:$0xff]  ;;  %v15132_v39 = vld [vmem:[%s21484_s1 + $0x158] sm:$0x3] }
  0xb9   :  { %16331 = vmatprep.subr.msk.mxu0 %vm120_vm1, %v1026_v40  ;;  %v1966_v26 = vsel %vm21549_vm14, %v1962_v22, %v1964_v23  ;;  %vm21551_vm14 = vcmask 867328   ;;  %v18989_v23 = vcombine.high %v18948_v8, %v18948_v8 }
  0xba   :  { %4880 = vrot.lane.b32.xlu1 %v18948_v8, %s18370_s19 }
  0xbb   :  { %4798 = vrot.lane.b32.xlu0 %v18989_v23, %s18369_s18 }
  0xbc   :  { %v2058_v28 = vpop.permute.xlu0 %2057  ;;  %v2150_v32 = vpop.permute.xlu1 %2149 }
  0xbd   :  { %v2060_v31 = vsel %vm21550_vm15, %v2056_v27, %v2058_v28  ;;  %vm21552_vm15 = vcmask 859136  }
  0xbe   :  { %4964 = vrot.lane.b32.xlu1 %v18948_v8, %s18371_s20 }
  0xbf   :  { %16329 = vmatmul.mubr.msk.f32.vlgmr.msra.gmra.mrb[0].mxu0 %vm113_vm0, %v15072_v43  ;;  %4882 = vrot.lane.b32.xlu0 %v18989_v23, %s18370_s19 }
  0xc0   :  { %16332 = vmatpush3.msk.msra.mxu0 %vm120_vm1, %v1026_v40  ;;  %16333 = vmatprep.mubr.msk.f32.mxu0 %vm113_vm0, %v15076_v44  ;;  %v2152_v33 = vpop.permute.xlu0 %2151  ;;  %v2244_v37 = vpop.permute.xlu1 %2243  ;;  %v15136_v40 = vld [vmem:[%s21484_s1 + $0x160] sm:$0xff]  ;;  %v15137_v44 = vld [vmem:[%s21484_s1 + $0x168] sm:$0x3] }
  0xc1   :  { %16336 = vmatprep.subr.msk.mxu0 %vm120_vm1, %v1120_v45  ;;  %v2154_v36 = vsel %vm21551_vm14, %v2150_v32, %v2152_v33  ;;  %vm21553_vm14 = vcmask 850944  }
  0xc2   :  { %5048 = vrot.lane.b32.xlu1 %v18948_v8, %s18372_s21 }
  0xc3   :  { %4966 = vrot.lane.b32.xlu0 %v18989_v23, %s18371_s20 }
  0xc4   :  { %v2246_v38 = vpop.permute.xlu0 %2245  ;;  %v2338_v42 = vpop.permute.xlu1 %2337 }
  0xc5   :  { %v2248_v41 = vsel %vm21552_vm15, %v2244_v37, %v2246_v38  ;;  %vm21554_vm15 = vcmask 842752   ;;  %v15176_v37 = vld [vmem:[%s21484_s1 + $0x1e0] sm:$0xff] }
  0xc6   :  { %5132 = vrot.lane.b32.xlu1 %v18948_v8, %s18373_s22 }
  0xc7   :  { %16334 = vmatmul.mubr.msk.f32.vlgmr.msra.gmra.mrb[0].mxu0 %vm113_vm0, %v15077_v48  ;;  %5050 = vrot.lane.b32.xlu0 %v18989_v23, %s18372_s21 }
  0xc8   :  { %16337 = vmatpush3.msk.msra.mxu0 %vm120_vm1, %v1120_v45  ;;  %16338 = vmatprep.mubr.msk.f32.mxu0 %vm113_vm0, %v15081_v49  ;;  %v2340_v43 = vpop.permute.xlu0 %2339  ;;  %v15141_v45 = vld [vmem:[%s21484_s1 + $0x170] sm:$0xff]  ;;  %v2432_v47 = vpop.permute.xlu1 %2431  ;;  %v15142_v49 = vld [vmem:[%s21484_s1 + $0x178] sm:$0x3] }
  0xc9   :  { %16341 = vmatprep.subr.msk.mxu0 %vm120_vm1, %v1214_v50  ;;  %v2342_v46 = vsel %vm21553_vm14, %v2338_v42, %v2340_v43  ;;  %vm21555_vm14 = vcmask 834560  }
  0xca   :  { %5216 = vrot.lane.b32.xlu1 %v18948_v8, %s18374_s23 }
  0xcb   :  { %5134 = vrot.lane.b32.xlu0 %v18989_v23, %s18373_s22 }
  0xcc   :  { %v2434_v48 = vpop.permute.xlu0 %2433  ;;  %v2526_v52 = vpop.permute.xlu1 %2525 }
  0xcd   :  { %v2436_v51 = vsel %vm21554_vm15, %v2432_v47, %v2434_v48  ;;  %vm21556_vm15 = vcmask 826368   ;;  %v18329_v47 = vld [vmem:[%s21484_s1 + $0xe0] sm:$0xff] }
  0xce   :  { %5300 = vrot.lane.b32.xlu1 %v18948_v8, %s18375_s24 }
  0xcf   :  { %16339 = vmatmul.mubr.msk.f32.vlgmr.msra.gmra.mrb[0].mxu0 %vm113_vm0, %v15082_v53  ;;  %5218 = vrot.lane.b32.xlu0 %v18989_v23, %s18374_s23 }
  0xd0   :  { %16342 = vmatpush3.msk.msra.mxu0 %vm120_vm1, %v1214_v50  ;;  %16343 = vmatprep.mubr.msk.f32.mxu0 %vm113_vm0, %v15086_v54  ;;  %v15146_v50 = vld [vmem:[%s21484_s1 + $0x180] sm:$0xff]  ;;  %v2528_v53 = vpop.permute.xlu0 %2527  ;;  %v15147_v54 = vld [vmem:[%s21484_s1 + $0x188] sm:$0x3]  ;;  %v2620_v57 = vpop.permute.xlu1 %2619 }
  0xd1   :  { %16346 = vmatprep.subr.msk.mxu0 %vm120_vm1, %v1308_v55  ;;  %v2530_v56 = vsel %vm21555_vm14, %v2526_v52, %v2528_v53  ;;  %vm21560_vm14 = vcmask 818176   ;;  %v18331_v53 = vld [vmem:[%s21484_s1 + $0xf0] sm:$0xff] }
  0xd2   :  { %5384 = vrot.lane.b32.xlu1 %v18948_v8, %s18376_s25 }
  0xd3   :  { %5302 = vrot.lane.b32.xlu0 %v18989_v23, %s18375_s24 }
  0xd4   :  { %v2714_v62 = vpop.permute.xlu1 %2713 }
  0xd6   :  { %5468 = vrot.lane.b32.xlu1 %v18948_v8, %s18377_s26 }
  0xd7   :  { %16344 = vmatmul.mubr.msk.f32.vlgmr.msra.gmra.mrb[0].mxu0 %vm113_vm0, %v15087_v58  ;;  %v2622_v58 = vpop.permute.xlu0 %2621  ;;  %5386 = vrot.lane.b32.xlu0 %v18989_v23, %s18376_s25 }
  0xd8   :  { %16347 = vmatpush3.msk.msra.mxu0 %vm120_vm1, %v1308_v55  ;;  %16348 = vmatprep.mubr.msk.f32.mxu0 %vm113_vm0, %v15091_v59  ;;  %v15151_v55 = vld [vmem:[%s21484_s1 + $0x190] sm:$0xff]  ;;  %v15152_v59 = vld [vmem:[%s21484_s1 + $0x198] sm:$0x3]  ;;  %v2624_v61 = vsel %vm21556_vm15, %v2620_v57, %v2622_v58  ;;  %v2808_v3 = vpop.permute.xlu1 %2807  ;;  %vm21559_vm15 = vcmask 809984   ;;  %v18333_v58 = vld [vmem:[%s21484_s1 + $0x100] sm:$0xff] }
  0xd9   :  { %16351 = vmatprep.subr.msk.mxu0 %vm120_vm1, %v1402_v60  ;;  %v19133_v57 = vld [vmem:[%s21484_s1 + $0x1f8] sm:$0x3] }
  0xda   :  { %21644 = vst [vmem:[#allocation8_spill] sm:$0xff] %v19133_v57  ;;  %5552 = vrot.lane.b32.xlu1 %v18948_v8, %s21581_s27 }
  0xdb   :  { %5470 = vrot.lane.b32.xlu0 %v18989_v23, %s18377_s26 }
  0xdc   :  { %v2902_v12 = vpop.permute.xlu1 %2901 }
  0xde   :  { %5636 = vrot.lane.b32.xlu1 %v18948_v8, %s21579_s28 }
  0xdf   :  { %16349 = vmatmul.mubr.msk.f32.vlgmr.msra.gmra.mrb[0].mxu0 %vm113_vm0, %v15092_v63  ;;  %v2716_v63 = vpop.permute.xlu0 %2715  ;;  %5554 = vrot.lane.b32.xlu0 %v18989_v23, %s21581_s27  ;;  %s21664_s27 = smov 107  }
  0xe0   :  { %16352 = vmatpush3.msk.msra.mxu0 %vm120_vm1, %v1402_v60  ;;  %16353 = vmatprep.mubr.msk.f32.mxu0 %vm113_vm0, %v15096_v0  ;;  %v15156_v60 = vld [vmem:[%s21484_s1 + $0x1a0] sm:$0xff]  ;;  %v15157_v0 = vld [vmem:[%s21484_s1 + $0x1a8] sm:$0x3]  ;;  %v2718_v2 = vsel %vm21560_vm14, %v2714_v62, %v2716_v63  ;;  %v2996_v33 = vpop.permute.xlu1 %2995 }
  0xe1   :  { %16356 = vmatprep.subr.msk.mxu0 %vm120_vm1, %v1496_v1  ;;  %v18334_v63 = vld [vmem:[%s21484_s1 + $0x108] sm:$0x3] }
  0xe2   :  { %5720 = vrot.lane.b32.xlu1 %v18948_v8, %s21656_s0 }
  0xe3   :  { %5638 = vrot.lane.b32.xlu0 %v18989_v23, %s21579_s28  ;;  %s21665_s28 = smov 106  }
  0xe6   :  { %5804 = vrot.lane.b32.xlu1 %v18948_v8, %s21657_s30 }
  0xe7   :  { %16354 = vmatmul.mubr.msk.f32.vlgmr.msra.gmra.mrb[0].mxu0 %vm113_vm0, %v15097_v4  ;;  %v2810_v4 = vpop.permute.xlu0 %2809  ;;  %5722 = vrot.lane.b32.xlu0 %v18989_v23, %s21656_s0 }
  0xe8   :  { %16357 = vmatpush3.msk.msra.mxu0 %vm120_vm1, %v1496_v1  ;;  %16358 = vmatprep.mubr.msk.f32.mxu0 %vm113_vm0, %v15101_v5  ;;  %v15161_v1 = vld [vmem:[%s21484_s1 + $0x1b0] sm:$0xff]  ;;  %v15162_v5 = vld [vmem:[%s21484_s1 + $0x1b8] sm:$0x3]  ;;  %v2812_v7 = vsel %vm21559_vm15, %v2808_v3, %v2810_v4  ;;  %vm21576_vm15 = vcmask 801792  }
  0xe9   :  { %16361 = vmatprep.subr.msk.mxu0 %vm120_vm1, %v1590_v6  ;;  %v19189_v3 = vld [vmem:[%s21484_s1 + $0x210] sm:$0xff] }
  0xea   :  { %21651 = vst [vmem:[#allocation11_spill] sm:$0xff] %v19189_v3  ;;  %5888 = vrot.lane.b32.xlu1 %v18948_v8, %s21660_s13 }
  0xeb   :  { %v2904_v13 = vpop.permute.xlu0 %2903  ;;  %5806 = vrot.lane.b32.xlu0 %v18989_v23, %s21657_s30 }
  0xec   :  { %v2906_v22 = vsel %vm21576_vm15, %v2902_v12, %v2904_v13  ;;  %vm21577_vm15 = vcmask 1042432  }
  0xee   :  { %5972 = vrot.lane.b32.xlu1 %v18948_v8, %s21661_s29 }
  0xef   :  { %16359 = vmatmul.mubr.msk.f32.vlgmr.msra.gmra.mrb[0].mxu0 %vm113_vm0, %v15102_v9  ;;  %v34_v9 = vlaneseq  ;;  %5890 = vrot.lane.b32.xlu0 %v18989_v23, %s21660_s13 }
  0xf0   :  { %16362 = vmatpush3.msk.msra.mxu0 %vm120_vm1, %v1590_v6  ;;  %16363 = vmatprep.mubr.msk.f32.mxu0 %vm113_vm0, %v15106_v10  ;;  %v15166_v6 = vld [vmem:[%s21484_s1 + $0x1c0] sm:$0xff] }
  0xf1   :  { %16366 = vmatprep.subr.msk.mxu0 %vm120_vm1, %v1684_v11  ;;  %v18955_v10 = vshrl.u32 %v34_v9, 7 }
  0xf2   :  { %6056 = vrot.lane.b32.xlu1 %v18948_v8, %s21664_s27 }
  0xf3   :  { %21627 = vst [vmem:[#allocation3_spill] sm:$0xff] %v18955_v10  ;;  %v38_v17 = vadd.s32 24, %v18955_v10  ;;  %v42_v32 = vadd.s32 56, %v18955_v10  ;;  %v43_v38 = vadd.s32 64, %v18955_v10  ;;  %v45_v42 = vadd.s32 80, %v18955_v10  ;;  %5974 = vrot.lane.b32.xlu0 %v18989_v23, %s21661_s29  ;;  %s21694_s29 = smov 90  }
  0xf4   :  { %v46_v43 = vadd.s32 88, %v18955_v10  ;;  %v47_v48 = vadd.s32 96, %v18955_v10 }
  0xf6   :  { %6140 = vrot.lane.b32.xlu1 %v18948_v8, %s21665_s28 }
  0xf7   :  { %16364 = vmatmul.mubr.msk.f32.vlgmr.msra.gmra.mrb[0].mxu0 %vm113_vm0, %v15107_v14  ;;  %v36_v14 = vadd.s32 8, %v18955_v10  ;;  %6058 = vrot.lane.b32.xlu0 %v18989_v23, %s21664_s27  ;;  %s21693_s27 = smov 91  }
  0xf8   :  { %16367 = vmatpush3.msk.msra.mxu0 %vm120_vm1, %v1684_v11  ;;  %16368 = vmatprep.mubr.msk.f32.mxu0 %vm113_vm0, %v15111_v15  ;;  %v52_v11 = vand.u32 127, %v34_v9  ;;  %v19219_v9 = vld [vmem:[%s21484_s1 + $0x220] sm:$0xff] }
  0xf9   :  { %16371 = vmatprep.subr.msk.mxu0 %vm120_vm1, %v1778_v16  ;;  %21653 = vst [vmem:[#allocation13_spill] sm:$0xff] %v19219_v9 }
  0xfa   :  { %v18960_v15 = vmul.u32 2, %v52_v11  ;;  %6224 = vrot.lane.b32.xlu1 %v18948_v8, %s21668_s12 }
  0xfb   :  { %6142 = vrot.lane.b32.xlu0 %v18989_v23, %s21665_s28  ;;  %s21669_s28 = smov 104  }
  0xfc   :  { %21628 = vst [vmem:[#allocation4_spill] sm:$0xff] %v18960_v15  ;;  %vm54_vm14 = vcmp.eq.s32.totalorder %v18955_v10, %v18960_v15  ;;  %vm55_vm13 = vcmp.eq.s32.totalorder %v36_v14, %v18960_v15  ;;  %vm57_vm11 = vcmp.eq.s32.totalorder %v38_v17, %v18960_v15  ;;  %vm61_vm7 = vcmp.eq.s32.totalorder %v42_v32, %v18960_v15  ;;  %v19239_v14 = vld [vmem:[%s21484_s1 + $0x228] sm:$0x3]  ;;  %v19244_v17 = vld [vmem:[%s21484_s1 + $0x230] sm:$0xff] }
  0xfd   :  { %vm18991_vm10 = vmpackc.low %vm55_vm13, %vm54_vm14  ;;  %vm64_vm5 = vcmp.eq.s32.totalorder %v45_v42, %v18960_v15  ;;  %vm65_vm4 = vcmp.eq.s32.totalorder %v46_v43, %v18960_v15  ;;  %21654 = vst [vmem:[#allocation14_spill] sm:$0xff] %v19239_v14 }
  0xfe   :  { %21655 = vst [vmem:[#allocation15_spill] sm:$0xff] %v19244_v17  ;;  %6308 = vrot.lane.b32.xlu1 %v18948_v8, %s21669_s28 }
  0xff   :  { %16369 = vmatmul.mubr.msk.f32.vlgmr.msra.gmra.mrb[0].mxu0 %vm113_vm0, %v15112_v19  ;;  %v18970_v19 = vadd.s32 32, %v18955_v10  ;;  %6226 = vrot.lane.b32.xlu0 %v18989_v23, %s21668_s12  ;;  %s21672_s12 = smov 103  }
 0x100   :  { %16372 = vmatpush3.msk.msra.mxu0 %vm120_vm1, %v1778_v16  ;;  %16373 = vmatprep.mubr.msk.f32.mxu0 %vm113_vm0, %v15116_v20  ;;  %v18963_v16 = vadd.s32 16, %v18955_v10  ;;  %v40_v20 = vadd.s32 40, %v18955_v10 }
 0x101   :  { %16376 = vmatprep.subr.msk.mxu0 %vm120_vm1, %v1872_v21  ;;  %21630 = vst [vmem:[#allocation6_spill] sm:$0xff] %v18970_v19  ;;  %vm21569_vm14 = vcmp.eq.s32.totalorder %v18970_v19, %v18960_v15 }
 0x102   :  { %21629 = vst [vmem:[#allocation5_spill] sm:$0xff] %v18963_v16  ;;  %vm21566_vm12 = vcmp.eq.s32.totalorder %v18963_v16, %v18960_v15  ;;  %vm59_vm9 = vcmp.eq.s32.totalorder %v40_v20, %v18960_v15  ;;  %6392 = vrot.lane.b32.xlu1 %v18948_v8, %s21672_s12 }
 0x103   :  { %vm19008_vm13 = vmpackc.low %vm57_vm11, %vm21566_vm12  ;;  %vm21575_vm11 = vcmask 793600   ;;  %6310 = vrot.lane.b32.xlu0 %v18989_v23, %s21669_s28  ;;  %s21673_s28 = smov 102  }
 0x104   :  { %vm19038_vm12 = vmpackc.low %vm59_vm9, %vm21569_vm14  ;;  %vm62_vm14 = vcmp.eq.s32.totalorder %v43_v38, %v18960_v15 }
 0x106   :  { %6476 = vrot.lane.b32.xlu1 %v18948_v8, %s21673_s28 }
 0x107   :  { %16374 = vmatmul.mubr.msk.f32.vlgmr.msra.gmra.mrb[0].mxu0 %vm113_vm0, %v15117_v24  ;;  %6394 = vrot.lane.b32.xlu0 %v18989_v23, %s21672_s12  ;;  %s21676_s12 = smov 101  }
 0x108   :  { %16377 = vmatpush3.msk.msra.mxu0 %vm120_vm1, %v1872_v21  ;;  %16378 = vmatprep.mubr.msk.f32.mxu0 %vm113_vm0, %v15121_v25  ;;  %v15171_v21 = vld [vmem:[%s21484_s1 + $0x1d0] sm:$0xff]  ;;  %v21590_v25 = vmov 1.0|1.0  }
 0x109   :  { %16381 = vmatprep.subr.msk.mxu0 %vm120_vm1, %v1966_v26  ;;  %17176 = vmatprep.subr.msk.bf16.mxu1 %vm18991_vm10, %v21590_v25 }
 0x10a   :  { %17178 = vmatpush3.bf16.msk.msra.mxu1 %vm18991_vm10, %v21590_v25  ;;  %6560 = vrot.lane.b32.xlu1 %v18948_v8, %s21676_s12 }
 0x10b   :  { %17180 = vmatprep.subr.msk.bf16.mxu1 %vm19008_vm13, %v21590_v25  ;;  %6478 = vrot.lane.b32.xlu0 %v18989_v23, %s21673_s28  ;;  %s21677_s28 = smov 100  }
 0x10e   :  { %17182 = vmatpush3.bf16.msk.msra.mxu1 %vm19008_vm13, %v21590_v25  ;;  %6644 = vrot.lane.b32.xlu1 %v18948_v8, %s21677_s28 }
 0x10f   :  { %16379 = vmatmul.mubr.msk.f32.vlgmr.msra.gmra.mrb[0].mxu0 %vm113_vm0, %v15122_v29  ;;  %v18409_v29 = vmov 1.0   ;;  %17184 = vmatprep.subr.msk.bf16.mxu1 %vm19038_vm12, %v21590_v25 }
 0x110   :  { %16382 = vmatpush3.msk.msra.mxu0 %vm120_vm1, %v1966_v26  ;;  %16383 = vmatprep.mubr.msk.f32.mxu0 %vm113_vm0, %v15126_v30  ;;  %v21588_v26 = vmov 0.0  }
 0x111   :  { %16386 = vmatprep.subr.msk.mxu0 %vm120_vm1, %v2060_v31  ;;  %v15017_v27 = vsel %vm59_vm9, 1.0, %v21588_v26  ;;  %6562 = vrot.lane.b32.xlu0 %v18989_v23, %s21676_s12  ;;  %s21680_s12 = smov 99  }
 0x112   :  { %v19013_v30 = vpack.c.bf16 %v15017_v27, %v18409_v29  ;;  %17186 = vmatpush3.bf16.msk.msra.mxu1 %vm19038_vm12, %v21590_v25  ;;  %v19269_v27 = vld [vmem:[%s21484_s1 + $0x240] sm:$0xff]  ;;  %6728 = vrot.lane.b32.xlu1 %v18948_v8, %s21680_s12 }
 0x113   :  { %21659 = vst [vmem:[#allocation17_spill] sm:$0xff] %v19269_v27 }
 0x114   :  { %21635 = vst [vmem:[#allocation7_spill] sm:$0xff] %v19013_v30 }
 0x115   :  { %6646 = vrot.lane.b32.xlu0 %v18989_v23, %s21677_s28  ;;  %s21681_s28 = smov 98  }
 0x116   :  { %6812 = vrot.lane.b32.xlu1 %v18948_v8, %s21681_s28 }
 0x117   :  { %16384 = vmatmul.mubr.msk.f32.vlgmr.msra.gmra.mrb[0].mxu0 %vm113_vm0, %v15127_v34  ;;  %v2998_v34 = vpop.permute.xlu0 %2997 }
 0x118   :  { %16387 = vmatpush3.msk.msra.mxu0 %vm120_vm1, %v2060_v31  ;;  %16388 = vmatprep.mubr.msk.f32.mxu0 %vm113_vm0, %v15131_v35  ;;  %v41_v31 = vadd.s32 48, %v18955_v10  ;;  %v15172_v35 = vld [vmem:[%s21484_s1 + $0x1d8] sm:$0x3] }
 0x119   :  { %16391 = vmatprep.subr.msk.mxu0 %vm120_vm1, %v2154_v36  ;;  %6730 = vrot.lane.b32.xlu0 %v18989_v23, %s21680_s12  ;;  %s21684_s12 = smov 97  }
 0x11a   :  { %vm60_vm8 = vcmp.eq.s32.totalorder %v41_v31, %v18960_v15  ;;  %6896 = vrot.lane.b32.xlu1 %v18948_v8, %s21684_s12 }
 0x11b   :  { %vm19063_vm9 = vmpackc.low %vm61_vm7, %vm60_vm8  ;;  %vm21573_vm7 = vcmask 785408  }
 0x11c   :  { %17188 = vmatprep.subr.msk.bf16.mxu1 %vm19063_vm9, %v21590_v25 }
 0x11d   :  { %17190 = vmatpush3.bf16.msk.msra.mxu1 %vm19063_vm9, %v21590_v25  ;;  %6814 = vrot.lane.b32.xlu0 %v18989_v23, %s21681_s28  ;;  %s21685_s28 = smov 96  }
 0x11e   :  { %6980 = vrot.lane.b32.xlu1 %v18948_v8, %s21685_s28 }
 0x11f   :  { %16389 = vmatmul.mubr.msk.f32.vlgmr.msra.gmra.mrb[0].mxu0 %vm113_vm0, %v15132_v39  ;;  %v44_v39 = vadd.s32 72, %v18955_v10 }
 0x120   :  { %16392 = vmatpush3.msk.msra.mxu0 %vm120_vm1, %v2154_v36  ;;  %16393 = vmatprep.mubr.msk.f32.mxu0 %vm113_vm0, %v15136_v40  ;;  %v3000_v40 = vsel %vm21575_vm11, %v2996_v33, %v2998_v34  ;;  %v19289_v33 = vld [vmem:[%s21484_s1 + $0x248] sm:$0x3]  ;;  %v19294_v34 = vld [vmem:[%s21484_s1 + $0x250] sm:$0xff] }
 0x121   :  { %16396 = vmatprep.subr.msk.mxu0 %vm120_vm1, %v2248_v41  ;;  %vm63_vm6 = vcmp.eq.s32.totalorder %v44_v39, %v18960_v15  ;;  %21662 = vst [vmem:[#allocation18_spill] sm:$0xff] %v19289_v33  ;;  %21663 = vst [vmem:[#allocation19_spill] sm:$0xff] %v19294_v34  ;;  %v19314_v39 = vld [vmem:[%s21484_s1 + $0x258] sm:$0x3]  ;;  %6898 = vrot.lane.b32.xlu0 %v18989_v23, %s21684_s12  ;;  %s21688_s12 = smov 95   ;;  %v18327_v36 = vld [vmem:[%s21484_s1 + $0xd0] sm:$0xff] }
 0x122   :  { %vm19085_vm8 = vmpackc.low %vm63_vm6, %vm62_vm14  ;;  %vm66_vm14 = vcmp.eq.s32.totalorder %v47_v48, %v18960_v15  ;;  %21666 = vst [vmem:[#allocation20_spill] sm:$0xff] %v19314_v39  ;;  %7064 = vrot.lane.b32.xlu1 %v18948_v8, %s21688_s12 }
 0x123   :  { %17192 = vmatprep.subr.msk.bf16.mxu1 %vm19085_vm8, %v21590_v25  ;;  %vm19111_vm6 = vmpackc.low %vm65_vm4, %vm64_vm5  ;;  %vm3187_vm4 = vcmask 777216  }
 0x124   :  { %17194 = vmatpush3.bf16.msk.msra.mxu1 %vm19085_vm8, %v21590_v25 }
 0x125   :  { %17196 = vmatprep.subr.msk.bf16.mxu1 %vm19111_vm6, %v21590_v25  ;;  %6982 = vrot.lane.b32.xlu0 %v18989_v23, %s21685_s28  ;;  %s21689_s28 = smov 94  }
 0x126   :  { %7148 = vrot.lane.b32.xlu1 %v18948_v8, %s21689_s28 }
 0x127   :  { %16394 = vmatmul.mubr.msk.f32.vlgmr.msra.gmra.mrb[0].mxu0 %vm113_vm0, %v15137_v44  ;;  %v3090_v44 = vpop.permute.xlu1 %3089 }
 0x128   :  { %16397 = vmatpush3.msk.msra.mxu0 %vm120_vm1, %v2248_v41  ;;  %16398 = vmatprep.mubr.msk.f32.mxu0 %vm113_vm0, %v15141_v45  ;;  %v3092_v45 = vpop.permute.xlu0 %3091  ;;  %v18328_v41 = vld [vmem:[%s21484_s1 + $0xd8] sm:$0x3] }
 0x129   :  { %16401 = vmatprep.subr.msk.mxu0 %vm120_vm1, %v2342_v46  ;;  %v3094_v52 = vsel %vm21573_vm7, %v3090_v44, %v3092_v45  ;;  %17198 = vmatpush3.bf16.msk.msra.mxu1 %vm19111_vm6, %v21590_v25  ;;  %v19339_v45 = vld [vmem:[%s21484_s1 + $0x268] sm:$0x3] }
 0x12a   :  { %21670 = vst [vmem:[#allocation22_spill] sm:$0xff] %v19339_v45  ;;  %7066 = vrot.lane.b32.xlu0 %v18989_v23, %s21688_s12  ;;  %7232 = vrot.lane.b32.xlu1 %v18948_v8, %s21691_s11  ;;  %s21697_s12 = smov 87  }
 0x12e   :  { %7150 = vrot.lane.b32.xlu0 %v18989_v23, %s21689_s28  ;;  %s21692_s28 = smov 92  }
 0x12f   :  { %16399 = vmatmul.mubr.msk.f32.vlgmr.msra.gmra.mrb[0].mxu0 %vm113_vm0, %v15142_v49  ;;  %v15181_v49 = vld [vmem:[%s21484_s1 + $0x1f0] sm:$0xff]  ;;  %7316 = vrot.lane.b32.xlu1 %v18948_v8, %s21692_s28 }
 0x130   :  { %16402 = vmatpush3.msk.msra.mxu0 %vm120_vm1, %v2342_v46  ;;  %16403 = vmatprep.mubr.msk.f32.mxu0 %vm113_vm0, %v15146_v50  ;;  %v15177_v46 = vld [vmem:[%s21484_s1 + $0x1e8] sm:$0x3]  ;;  %v48_v50 = vadd.s32 104, %v18955_v10 }
 0x131   :  { %16406 = vmatprep.subr.msk.mxu0 %vm120_vm1, %v2436_v51 }
 0x132   :  { %vm67_vm7 = vcmp.eq.s32.totalorder %v48_v50, %v18960_v15  ;;  %7234 = vrot.lane.b32.xlu0 %v18989_v23, %s21691_s11  ;;  %s21695_s11 = smov 89  }
 0x133   :  { %vm19135_vm5 = vmpackc.low %vm67_vm7, %vm66_vm14  ;;  %vm3281_vm7 = vcmask 769024   ;;  %vm21626_vm14 = vcmask 752640   ;;  %7400 = vrot.lane.b32.xlu1 %v18948_v8, %s21693_s27 }
 0x134   :  { %17200 = vmatprep.subr.msk.bf16.mxu1 %vm19135_vm5, %v21590_v25 }
 0x135   :  { %17202 = vmatpush3.bf16.msk.msra.mxu1 %vm19135_vm5, %v21590_v25 }
 0x136   :  { %7318 = vrot.lane.b32.xlu0 %v18989_v23, %s21692_s28  ;;  %s21698_s28 = smov 86  }
 0x137   :  { %16404 = vmatmul.mubr.msk.f32.vlgmr.msra.gmra.mrb[0].mxu0 %vm113_vm0, %v15147_v54  ;;  %v49_v54 = vadd.s32 112, %v18955_v10  ;;  %7484 = vrot.lane.b32.xlu1 %v18948_v8, %s21694_s29 }
 0x138   :  { %16407 = vmatpush3.msk.msra.mxu0 %vm120_vm1, %v2436_v51  ;;  %16408 = vmatprep.mubr.msk.f32.mxu0 %vm113_vm0, %v15151_v55  ;;  %v50_v51 = vadd.s32 120, %v18955_v10  ;;  %v3184_v55 = vpop.permute.xlu1 %3183 }
 0x139   :  { %16411 = vmatprep.subr.msk.mxu0 %vm120_vm1, %v2530_v56  ;;  %vm68_vm11 = vcmp.eq.s32.totalorder %v49_v54, %v18960_v15 }
 0x13a   :  { %vm69_vm3 = vcmp.eq.s32.totalorder %v50_v51, %v18960_v15  ;;  %v19364_v51 = vld [vmem:[%s21484_s1 + $0x278] sm:$0x3]  ;;  %7402 = vrot.lane.b32.xlu0 %v18989_v23, %s21693_s27  ;;  %s21699_s27 = smov 85  }
 0x13b   :  { %21674 = vst [vmem:[#allocation24_spill] sm:$0xff] %v19364_v51  ;;  %7568 = vrot.lane.b32.xlu1 %v18948_v8, %s21695_s11 }
 0x13e   :  { %7486 = vrot.lane.b32.xlu0 %v18989_v23, %s21694_s29  ;;  %s21700_s29 = smov 127  }
 0x13f   :  { %16409 = vmatmul.mubr.msk.f32.vlgmr.msra.gmra.mrb[0].mxu0 %vm113_vm0, %v15152_v59  ;;  %v15027_v59 = vsel %vm69_vm3, 1.0, %v21588_v26  ;;  %vm19166_vm3 = vmpackc.low %vm21577_vm15, %vm68_vm11  ;;  %vm3375_vm11 = vcmask 760832   ;;  %vm21578_vm15 = vcmask 744448   ;;  %7652 = vrot.lane.b32.xlu1 %v18948_v8, %s21696_s10 }
 0x140   :  { %16412 = vmatpush3.msk.msra.mxu0 %vm120_vm1, %v2530_v56  ;;  %16413 = vmatprep.mubr.msk.f32.mxu0 %vm113_vm0, %v15156_v60  ;;  %v3186_v56 = vpop.permute.xlu0 %3185  ;;  %v19143_v60 = vld [vmem:[%s21484_s1 + $0x200] sm:$0xff]  ;;  %v19160_v62 = vpack.c.bf16 %v15027_v59, %v18409_v29  ;;  %v19389_v59 = vld [vmem:[%s21484_s1 + $0x288] sm:$0x3] }
 0x141   :  { %16416 = vmatprep.subr.msk.mxu0 %vm120_vm1, %v2624_v61  ;;  %21647 = vst [vmem:[#allocation9_spill] sm:$0xff] %v19143_v60  ;;  %21678 = vst [vmem:[#allocation26_spill] sm:$0xff] %v19389_v59 }
 0x142   :  { %17205 = vmatprep.subr.msk.bf16.mxu1 %vm19166_vm3, %v19160_v62  ;;  %7570 = vrot.lane.b32.xlu0 %v18989_v23, %s21695_s11 }
 0x143   :  { %17208 = vmatpush3.bf16.msk.msra.mxu1 %vm19166_vm3, %v19160_v62  ;;  %7736 = vrot.lane.b32.xlu1 %v18948_v8, %s21697_s12 }
 0x144   :  { %16541 = vmatprep.subr.msk.mxu1 %vm120_vm1, %v18948_v8 }
 0x146   :  { %7654 = vrot.lane.b32.xlu0 %v18989_v23, %s21696_s10 }
 0x147   :  { %16414 = vmatmul.mubr.msk.f32.vlgmr.msra.gmra.mrb[0].mxu0 %vm113_vm0, %v15157_v0  ;;  %v3278_v0 = vpop.permute.xlu1 %3277  ;;  %7820 = vrot.lane.b32.xlu1 %v18948_v8, %s21698_s28 }
 0x148   :  { %16417 = vmatpush3.msk.msra.mxu0 %vm120_vm1, %v2624_v61  ;;  %16418 = vmatprep.mubr.msk.f32.mxu0 %vm113_vm0, %v15161_v1  ;;  %v3188_v61 = vsel %vm3187_vm4, %v3184_v55, %v3186_v56  ;;  %v3280_v1 = vpop.permute.xlu0 %3279 }
 0x149   :  { %16421 = vmatprep.subr.msk.mxu0 %vm120_vm1, %v2718_v2  ;;  %v3282_v4 = vsel %vm3281_vm7, %v3278_v0, %v3280_v1 }
 0x14a   :  { %7738 = vrot.lane.b32.xlu0 %v18989_v23, %s21697_s12 }
 0x14b   :  { %7904 = vrot.lane.b32.xlu1 %v18948_v8, %s21699_s27 }
 0x14e   :  { %7822 = vrot.lane.b32.xlu0 %v18989_v23, %s21698_s28 }
 0x14f   :  { %16419 = vmatmul.mubr.msk.f32.vlgmr.msra.gmra.mrb[0].mxu0 %vm113_vm0, %v15162_v5  ;;  %v3372_v5 = vpop.permute.xlu1 %3371  ;;  %4315 = vrot.lane.b32.xlu1 %v18948_v8, %s21700_s29 }
 0x150   :  { %16422 = vmatpush3.msk.msra.mxu0 %vm120_vm1, %v2718_v2  ;;  %16423 = vmatprep.mubr.msk.f32.mxu0 %vm113_vm0, %v15166_v6  ;;  %v19184_v2 = vld [vmem:[%s21484_s1 + $0x208] sm:$0x3]  ;;  %v3374_v6 = vpop.permute.xlu0 %3373 }
 0x151   :  { %16426 = vmatprep.subr.msk.mxu0 %vm120_vm1, %v2812_v7  ;;  %21650 = vst [vmem:[#allocation10_spill] sm:$0xff] %v19184_v2  ;;  %v3376_v11 = vsel %vm3375_vm11, %v3372_v5, %v3374_v6  ;;  %v19414_v5 = vld [vmem:[%s21484_s1 + $0x298] sm:$0x3]  ;;  %v19419_v6 = vld [vmem:[%s21484_s1 + $0x2a0] sm:$0xff] }
 0x152   :  { %21682 = vst [vmem:[#allocation28_spill] sm:$0xff] %v19414_v5  ;;  %21683 = vst [vmem:[#allocation29_spill] sm:$0xff] %v19419_v6  ;;  %7906 = vrot.lane.b32.xlu0 %v18989_v23, %s21699_s27 }
 0x153   :  { %v3466_v12 = vpop.permute.xlu1 %3465 }
 0x154   :  { %v3468_v13 = vpop.permute.xlu0 %3467 }
 0x157   :  { %16424 = vmatmul.mubr.msk.f32.vlgmr.msra.gmra.mrb[0].mxu0 %vm113_vm0, %v15167_v18  ;;  %v3470_v18 = vsel %vm21626_vm14, %v3466_v12, %v3468_v13  ;;  %v3560_v20 = vpop.permute.xlu1 %3559  ;;  %v19439_v12 = vld [vmem:[%s21484_s1 + $0x2a8] sm:$0x3]  ;;  %v19444_v13 = vld [vmem:[%s21484_s1 + $0x2b0] sm:$0xff]  ;;  %vm21706_vm14 = vcmask 990208  }
 0x158   :  { %16427 = vmatpush3.msk.msra.mxu0 %vm120_vm1, %v2812_v7  ;;  %16428 = vmatprep.mubr.msk.f32.mxu0 %vm113_vm0, %v15171_v21  ;;  %v19214_v7 = vld [vmem:[%s21484_s1 + $0x218] sm:$0x3]  ;;  %v3562_v21 = vpop.permute.xlu0 %3561  ;;  %21686 = vst [vmem:[#allocation30_spill] sm:$0xff] %v19439_v12  ;;  %21687 = vst [vmem:[#allocation31_spill] sm:$0xff] %v19444_v13 }
 0x159   :  { %16431 = vmatprep.subr.msk.mxu0 %vm120_vm1, %v2906_v22  ;;  %21652 = vst [vmem:[#allocation12_spill] sm:$0xff] %v19214_v7  ;;  %v3564_v29 = vsel %vm21578_vm15, %v3560_v20, %v3562_v21  ;;  %vm21583_vm15 = vcmask 736256   ;;  %v18301_v20 = vld [vmem:[%s21484_s1 + $0x10] sm:$0xff] }
 0x15b   :  { %v3654_v31 = vpop.permute.xlu1 %3653 }
 0x15c   :  { %v3656_v32 = vpop.permute.xlu0 %3655 }
 0x15f   :  { %16429 = vmatmul.mubr.msk.f32.vlgmr.msra.gmra.mrb[0].mxu0 %vm113_vm0, %v15172_v35  ;;  %v3658_v35 = vsel %vm21583_vm15, %v3654_v31, %v3656_v32  ;;  %vm21584_vm15 = vcmask 728064  }
 0x160   :  { %16432 = vmatpush3.msk.msra.mxu0 %vm120_vm1, %v2906_v22  ;;  %16433 = vmatprep.mubr.msk.f32.mxu0 %vm113_vm0, %v15176_v37  ;;  %v19264_v22 = vld [vmem:[%s21484_s1 + $0x238] sm:$0x3]  ;;  %v3748_v37 = vpop.permute.xlu1 %3747  ;;  %v3750_v38 = vpop.permute.xlu0 %3749 }
 0x161   :  { %16436 = vmatprep.subr.msk.mxu0 %vm120_vm1, %v3000_v40  ;;  %21658 = vst [vmem:[#allocation16_spill] sm:$0xff] %v19264_v22  ;;  %v3752_v42 = vsel %vm21584_vm15, %v3748_v37, %v3750_v38  ;;  %vm21585_vm15 = vcmask 719872  }
 0x164   :  { %v3842_v43 = vpop.permute.xlu1 %3841  ;;  %v3844_v44 = vpop.permute.xlu0 %3843 }
 0x165   :  { %v3846_v48 = vsel %vm21585_vm15, %v3842_v43, %v3844_v44  ;;  %vm21586_vm15 = vcmask 711680  }
 0x167   :  { %16434 = vmatmul.mubr.msk.f32.vlgmr.msra.gmra.mrb[0].mxu0 %vm113_vm0, %v15177_v46  ;;  %v19344_v46 = vld [vmem:[%s21484_s1 + $0x270] sm:$0xff] }
 0x168   :  { %16437 = vmatpush3.msk.msra.mxu0 %vm120_vm1, %v3000_v40  ;;  %16438 = vmatprep.mubr.msk.f32.mxu0 %vm113_vm0, %v15181_v49  ;;  %v19319_v40 = vld [vmem:[%s21484_s1 + $0x260] sm:$0xff]  ;;  %21671 = vst [vmem:[#allocation23_spill] sm:$0xff] %v19344_v46  ;;  %v3936_v49 = vpop.permute.xlu1 %3935  ;;  %v3938_v50 = vpop.permute.xlu0 %3937 }
 0x169   :  { %16441 = vmatprep.subr.msk.mxu0 %vm120_vm1, %v3094_v52  ;;  %21667 = vst [vmem:[#allocation21_spill] sm:$0xff] %v19319_v40  ;;  %v3940_v54 = vsel %vm21586_vm15, %v3936_v49, %v3938_v50  ;;  %vm21587_vm15 = vcmask 703488  }
 0x16c   :  { %v4030_v55 = vpop.permute.xlu1 %4029  ;;  %v4032_v56 = vpop.permute.xlu0 %4031 }
 0x16d   :  { %v4034_v0 = vsel %vm21587_vm15, %v4030_v55, %v4032_v56  ;;  %vm21608_vm15 = vcmask 695296  }
 0x16f   :  { %16439 = vmatmul.mubr.msk.f32.vlgmr.msra.gmra.mrb[0].mxu0 %vm113_vm0, %v19133_v57 }
 0x170   :  { %16442 = vmatpush3.msk.msra.mxu0 %vm120_vm1, %v3094_v52  ;;  %16443 = vmatprep.mubr.msk.f32.mxu0 %vm113_vm0, %v19143_v60  ;;  %v19369_v52 = vld [vmem:[%s21484_s1 + $0x280] sm:$0xff]  ;;  %v4124_v1 = vpop.permute.xlu1 %4123 }
 0x171   :  { %16446 = vmatprep.subr.msk.mxu0 %vm120_vm1, %v3188_v61  ;;  %21675 = vst [vmem:[#allocation25_spill] sm:$0xff] %v19369_v52 }
 0x174   :  { %v4472_v21 = vpop.permute.xlu1 %4471 }
 0x177   :  { %16444 = vmatmul.mubr.msk.f32.vlgmr.msra.gmra.mrb[0].mxu0 %vm113_vm0, %v19184_v2 }
 0x178   :  { %16447 = vmatpush3.msk.msra.mxu0 %vm120_vm1, %v3188_v61  ;;  %16448 = vmatprep.mubr.msk.f32.mxu0 %vm113_vm0, %v19189_v3  ;;  %v19394_v61 = vld [vmem:[%s21484_s1 + $0x290] sm:$0xff] }
 0x179   :  { %16451 = vmatprep.subr.msk.mxu0 %vm120_vm1, %v3282_v4  ;;  %21679 = vst [vmem:[#allocation27_spill] sm:$0xff] %v19394_v61 }
 0x17f   :  { %16449 = vmatmul.mubr.msk.f32.vlgmr.msra.gmra.mrb[0].mxu0 %vm113_vm0, %v19214_v7 }
 0x180   :  { %16452 = vmatpush3.msk.msra.mxu0 %vm120_vm1, %v3282_v4  ;;  %16453 = vmatprep.mubr.msk.f32.mxu0 %vm113_vm0, %v19219_v9  ;;  %v4126_v4 = vpop.permute.xlu0 %4125 }
 0x181   :  { %16456 = vmatprep.subr.msk.mxu0 %vm120_vm1, %v3376_v11 }
 0x184   :  { %v19510_v31 = vpop.permute.xlu0 %4552 }
 0x187   :  { %16454 = vmatmul.mubr.msk.f32.vlgmr.msra.gmra.mrb[0].mxu0 %vm113_vm0, %v19239_v14 }
 0x188   :  { %16457 = vmatpush3.msk.msra.mxu0 %vm120_vm1, %v3376_v11  ;;  %16458 = vmatprep.mubr.msk.f32.mxu0 %vm113_vm0, %v19244_v17  ;;  %v4128_v11 = vsel %vm21608_vm15, %v4124_v1, %v4126_v4  ;;  %v103_v1 = vld [vmem:[%s21485_s2 + $0x8] sm:$0x3]  ;;  %vm21625_vm15 = vcmask 1006592  }
 0x189   :  { %16461 = vmatprep.subr.msk.mxu0 %vm120_vm1, %v3470_v18 }
 0x18f   :  { %16459 = vmatmul.mubr.msk.f32.vlgmr.msra.gmra.mrb[0].mxu0 %vm113_vm0, %v19264_v22 }
 0x190   :  { %16462 = vmatpush3.msk.msra.mxu0 %vm120_vm1, %v3470_v18  ;;  %16463 = vmatprep.mubr.msk.f32.mxu0 %vm113_vm0, %v19269_v27  ;;  %v19462_v18 = vld [vmem:[%s21484_s1 + $0x2b8] sm:$0x3] }
 0x191   :  { %16466 = vmatprep.subr.msk.mxu0 %vm120_vm1, %v3564_v29  ;;  %21690 = vst [vmem:[#allocation32_spill] sm:$0xff] %v19462_v18 }
 0x197   :  { %16464 = vmatmul.mubr.msk.f32.vlgmr.msra.gmra.mrb[0].mxu0 %vm113_vm0, %v19289_v33  ;;  %v18302_v33 = vld [vmem:[%s21484_s1] sm:$0xff] }
 0x198   :  { %16467 = vmatpush3.msk.msra.mxu0 %vm120_vm1, %v3564_v29  ;;  %16468 = vmatprep.mubr.msk.f32.mxu0 %vm113_vm0, %v19294_v34  ;;  %v19508_v29 = vpop.permute.xlu1 %4633 }
 0x199   :  { %16471 = vmatprep.subr.msk.mxu0 %vm120_vm1, %v3658_v35 }
 0x19c   :  { %v19512_v32 = vpop.permute.xlu1 %4796 }
 0x19f   :  { %16469 = vmatmul.mubr.msk.f32.vlgmr.msra.gmra.mrb[0].mxu0 %vm113_vm0, %v19314_v39 }
 0x1a0   :  { %16472 = vmatpush3.msk.msra.mxu0 %vm120_vm1, %v3658_v35  ;;  %16473 = vmatprep.mubr.msk.f32.mxu0 %vm113_vm0, %v19319_v40  ;;  %v19514_v35 = vpop.permute.xlu0 %4714  ;;  %v19516_v37 = vpop.permute.xlu1 %4880 }
 0x1a1   :  { %16476 = vmatprep.subr.msk.mxu0 %vm120_vm1, %v3752_v42 }
 0x1a4   :  { %v19518_v38 = vpop.permute.xlu0 %4798 }
 0x1a7   :  { %16474 = vmatmul.mubr.msk.f32.vlgmr.msra.gmra.mrb[0].mxu0 %vm113_vm0, %v19339_v45 }
 0x1a8   :  { %16477 = vmatpush3.msk.msra.mxu0 %vm120_vm1, %v3752_v42  ;;  %16478 = vmatprep.mubr.msk.f32.mxu0 %vm113_vm0, %v19344_v46  ;;  %v19520_v42 = vpop.permute.xlu1 %4964  ;;  %v19522_v43 = vpop.permute.xlu0 %4882 }
 0x1a9   :  { %16481 = vmatprep.subr.msk.mxu0 %vm120_vm1, %v3846_v48 }
 0x1ac   :  { %v19524_v23 = vpop.permute.xlu1 %5048  ;;  %v19526_v44 = vpop.permute.xlu0 %4966 }
 0x1af   :  { %16479 = vmatmul.mubr.msk.f32.vlgmr.msra.gmra.mrb[0].mxu0 %vm113_vm0, %v19364_v51 }
 0x1b0   :  { %16482 = vmatpush3.msk.msra.mxu0 %vm120_vm1, %v3846_v48  ;;  %16483 = vmatprep.mubr.msk.f32.mxu0 %vm113_vm0, %v19369_v52  ;;  %v19528_v48 = vpop.permute.xlu1 %5132  ;;  %v19530_v49 = vpop.permute.xlu0 %5050 }
 0x1b1   :  { %16486 = vmatprep.subr.msk.mxu0 %vm120_vm1, %v3940_v54 }
 0x1b4   :  { %v19532_v50 = vpop.permute.xlu0 %5134 }
 0x1b7   :  { %16484 = vmatmul.mubr.msk.f32.vlgmr.msra.gmra.mrb[0].mxu0 %vm113_vm0, %v19389_v59 }
 0x1b8   :  { %16487 = vmatpush3.msk.msra.mxu0 %vm120_vm1, %v3940_v54  ;;  %16488 = vmatprep.mubr.msk.f32.mxu0 %vm113_vm0, %v19394_v61  ;;  %v19534_v54 = vpop.permute.xlu1 %5216  ;;  %v19536_v55 = vpop.permute.xlu0 %5218 }
 0x1b9   :  { %16491 = vmatprep.subr.msk.mxu0 %vm120_vm1, %v4034_v0 }
 0x1bc   :  { %v19538_v56 = vpop.permute.xlu1 %5300  ;;  %v19543_v4 = vpop.permute.xlu0 %5302 }
 0x1bf   :  { %16489 = vmatmul.mubr.msk.f32.vlgmr.msra.gmra.mrb[0].mxu0 %vm113_vm0, %v19414_v5 }
 0x1c0   :  { %16492 = vmatpush3.msk.msra.mxu0 %vm120_vm1, %v4034_v0  ;;  %16493 = vmatprep.mubr.msk.f32.mxu0 %vm113_vm0, %v19419_v6  ;;  %v18410_v0 = vmov 0   ;;  %v19552_v25 = vpop.permute.xlu0 %5386 }
 0x1c1   :  { %16496 = vmatprep.subr.msk.mxu0 %vm120_vm1, %v4128_v11  ;;  %18070 = vset.pattern.permute.xlu1 %v18410_v0 }
 0x1c2   :  { %18069 = vset.pattern.permute.xlu0 %v18410_v0  ;;  %4221 = vperm.xlu1 %18070, %v103_v1  }
 0x1c4   :  { %v19556_v0 = vpop.permute.xlu0 %5470 }
 0x1c7   :  { %16494 = vmatmul.mubr.msk.f32.vlgmr.msra.gmra.mrb[0].mxu0 %vm113_vm0, %v19439_v12 }
 0x1c8   :  { %16497 = vmatpush3.msk.msra.mxu0 %vm120_vm1, %v4128_v11  ;;  %16498 = vmatprep.mubr.msk.f32.mxu0 %vm113_vm0, %v19444_v13  ;;  %v19545_v11 = vpop.permute.xlu1 %5384  ;;  %v19560_v30 = vpop.permute.xlu0 %5554 }
 0x1cc   :  { %v19550_v26 = vpop.permute.xlu1 %5468  ;;  %v19564_v15 = vpop.permute.xlu0 %5638 }
 0x1cf   :  { %16499 = vmatmul.mubr.msk.f32.vlgmr.msra.gmra.mrb[0].mxu0 %vm113_vm0, %v19462_v18 }
 0x1d0   :  { %16538 = vmatprep.mubr.msk.f32.mxu0 %vm113_vm0, %v18301_v20  ;;  %v102_v20 = vld [vmem:[%s21485_s2] sm:$0xff]  ;;  %v19554_v10 = vpop.permute.xlu1 %5552  ;;  %v19568_v18 = vpop.permute.xlu0 %5722 }
 0x1d1   :  { %4216 = vperm.xlu0 %18069, %v102_v20  }
 0x1d4   :  { %v19558_v16 = vpop.permute.xlu1 %5636  ;;  %v19572_v13 = vpop.permute.xlu0 %5806 }
 0x1d8   :  { %v19562_v1 = vpop.permute.xlu1 %5720  ;;  %v19576_v6 = vpop.permute.xlu0 %5890 }
 0x1dc   :  { %v19566_v19 = vpop.permute.xlu1 %5804  ;;  %v19580_v61 = vpop.permute.xlu0 %5974 }
 0x1e0   :  { %v19570_v20 = vpop.permute.xlu1 %5888  ;;  %v19584_v52 = vpop.permute.xlu0 %6058 }
 0x1e4   :  { %v19574_v12 = vpop.permute.xlu1 %5972  ;;  %v19588_v46 = vpop.permute.xlu0 %6142 }
 0x1e8   :  { %v19578_v5 = vpop.permute.xlu1 %6056  ;;  %v19594_v34 = vpop.permute.xlu0 %6226 }
 0x1ec   :  { %v19582_v59 = vpop.permute.xlu1 %6140 }
 0x1f0   :  { %v19586_v51 = vpop.permute.xlu1 %6224 }
 0x1f4   :  { %v19590_v40 = vpop.permute.xlu1 %6308 }
 0x1f8   :  { %v19602_v27 = vpop.permute.xlu1 %6392 }
 0x2a2   :  { %v16500_v45 = vpop.f32.mrb[0].mxu0 }
 0x2a3   :  { %v4203_v39 = vpop.f32.mrb[1].mxu0 }
 0x2a4   :  { %16533 = vmatprep.mubr.msk.f32.mxu1 %vm21625_vm15, %v4203_v39  ;;  %v18303_v39 = vld [vmem:[%s21484_s1 + $0x8] sm:$0x3] }
 0x2a5   :  { %16534 = vmatmul.mubr.msk.f32.vlgmr.msra.gmra.mrb[0].mxu1 %vm21625_vm15, %v16500_v45  ;;  %v19609_v45 = vpop.permute.xlu0 %6310  ;;  %vm21704_vm15 = vcmask 801792  }
 0x2a6   :  { %16542 = vmatpush3.msk.msra.mxu1 %vm120_vm1, %v18948_v8  ;;  %16543 = vmatprep.mubr.msk.f32.mxu1 %vm113_vm0, %v18302_v33  ;;  %v18304_v8 = vld [vmem:[%s21484_s1 + $0x20] sm:$0xff]  ;;  %v19616_v33 = vpop.permute.xlu1 %6476 }
 0x2a7   :  { %16546 = vmatprep.subr.msk.mxu1 %vm120_vm1, %v4472_v21 }
 0x2a9   :  { %16544 = vmatmul.mubr.msk.f32.vlgmr.msra.gmra.mrb[2].mxu1 %vm113_vm0, %v18303_v39  ;;  %v19620_v22 = vpop.permute.xlu0 %6394  ;;  %v18305_v39 = vld [vmem:[%s21484_s1 + $0x28] sm:$0x3] }
 0x2aa   :  { %16547 = vmatpush3.msk.msra.mxu1 %vm120_vm1, %v4472_v21  ;;  %16548 = vmatprep.mubr.msk.f32.mxu1 %vm113_vm0, %v18304_v8  ;;  %v19622_v17 = vpop.permute.xlu1 %6560  ;;  %v18306_v8 = vld [vmem:[%s21484_s1 + $0x30] sm:$0xff] }
 0x2ab   :  { %16551 = vmatprep.subr.msk.mxu1 %vm120_vm1, %v19510_v31 }
 0x2ad   :  { %v19628_v21 = vpop.permute.xlu0 %6478 }
 0x2ae   :  { %v19636_v14 = vpop.permute.xlu1 %6644 }
 0x2af   :  { %21701 = vst [vmem:[#allocation33_spill] sm:$0xff] %v19636_v14  ;;  %v18311_v14 = vld [vmem:[%s21484_s1 + $0x58] sm:$0x3] }
 0x2b1   :  { %16549 = vmatmul.mubr.msk.f32.vlgmr.msra.gmra.mrb[2].mxu1 %vm113_vm0, %v18305_v39  ;;  %v19640_v9 = vpop.permute.xlu0 %6562  ;;  %v18307_v39 = vld [vmem:[%s21484_s1 + $0x38] sm:$0x3] }
 0x2b2   :  { %16552 = vmatpush3.msk.msra.mxu1 %vm120_vm1, %v19510_v31  ;;  %16553 = vmatprep.mubr.msk.f32.mxu1 %vm113_vm0, %v18306_v8  ;;  %v19642_v7 = vpop.permute.xlu1 %6728  ;;  %v18308_v8 = vld [vmem:[%s21484_s1 + $0x40] sm:$0xff] }
 0x2b3   :  { %16556 = vmatprep.subr.msk.mxu1 %vm120_vm1, %v19508_v29  ;;  %21702 = vst [vmem:[#allocation34_spill] sm:$0xff] %v19642_v7 }
 0x2b5   :  { %v19648_v31 = vpop.permute.xlu0 %6646 }
 0x2b6   :  { %v6813_v3 = vpop.permute.xlu1 %6812 }
 0x2b9   :  { %16554 = vmatmul.mubr.msk.f32.vlgmr.msra.gmra.mrb[2].mxu1 %vm113_vm0, %v18307_v39  ;;  %v19658_v2 = vpop.permute.xlu0 %6730  ;;  %v4800_v39 = vsel %vm649_vm2, %v19512_v32, %v19518_v38  ;;  %vm21705_vm2 = vcmask 793600  }
 0x2ba   :  { %16557 = vmatpush3.msk.msra.mxu1 %vm120_vm1, %v19508_v29  ;;  %16558 = vmatprep.mubr.msk.f32.mxu1 %vm113_vm0, %v18308_v8  ;;  %21703 = vst [vmem:[#allocation35_spill] sm:$0xff] %v19658_v2  ;;  %v6897_v60 = vpop.permute.xlu1 %6896  ;;  %v18309_v29 = vld [vmem:[%s21484_s1 + $0x48] sm:$0x3]  ;;  %v18310_v8 = vld [vmem:[%s21484_s1 + $0x50] sm:$0xff] }
 0x2bb   :  { %16561 = vmatprep.subr.msk.mxu1 %vm120_vm1, %v19514_v35 }
 0x2bd   :  { %v6815_v57 = vpop.permute.xlu0 %6814 }
 0x2be   :  { %v19674_v7 = vsel %vm21704_vm15, %v6813_v3, %v6815_v57  ;;  %v6981_v32 = vpop.permute.xlu1 %6980  ;;  %v18312_v3 = vld [vmem:[%s21484_s1 + $0x60] sm:$0xff]  ;;  %vm21707_vm15 = vcmask 785408  }
 0x2c1   :  { %16559 = vmatmul.mubr.msk.f32.vlgmr.msra.gmra.mrb[2].mxu1 %vm113_vm0, %v18309_v29  ;;  %v6899_v38 = vpop.permute.xlu0 %6898 }
 0x2c2   :  { %16562 = vmatpush3.msk.msra.mxu1 %vm120_vm1, %v19514_v35  ;;  %16563 = vmatprep.mubr.msk.f32.mxu1 %vm113_vm0, %v18310_v8  ;;  %v19678_v2 = vsel %vm21705_vm2, %v6897_v60, %v6899_v38  ;;  %v7065_v29 = vpop.permute.xlu1 %7064  ;;  %v4884_v35 = vsel %vm21706_vm14, %v19516_v37, %v19522_v43  ;;  %vm21708_vm14 = vcmask 982016   ;;  %v18313_v38 = vld [vmem:[%s21484_s1 + $0x68] sm:$0x3]  ;;  %vm21712_vm2 = vcmask 965632  }
 0x2c3   :  { %16566 = vmatprep.subr.msk.mxu1 %vm120_vm1, %v4800_v39 }
 0x2c5   :  { %v6983_v57 = vpop.permute.xlu0 %6982 }
 0x2c6   :  { %v19693_v60 = vsel %vm21707_vm15, %v6981_v32, %v6983_v57  ;;  %v7149_v8 = vpop.permute.xlu1 %7148  ;;  %v18314_v57 = vld [vmem:[%s21484_s1 + $0x70] sm:$0xff]  ;;  %vm21713_vm15 = vcmask 736256  }
 0x2c9   :  { %16564 = vmatmul.mubr.msk.f32.vlgmr.msra.gmra.mrb[2].mxu1 %vm113_vm0, %v18311_v14  ;;  %v7067_v37 = vpop.permute.xlu0 %7066 }
 0x2ca   :  { %16567 = vmatpush3.msk.msra.mxu1 %vm120_vm1, %v4800_v39  ;;  %16568 = vmatprep.mubr.msk.f32.mxu1 %vm113_vm0, %v18312_v3  ;;  %v19697_v43 = vsel %vm3187_vm4, %v7065_v29, %v7067_v37  ;;  %v7233_v14 = vpop.permute.xlu1 %7232  ;;  %v4968_v39 = vsel %vm21708_vm14, %v19520_v42, %v19526_v44  ;;  %vm21709_vm4 = vcmask 973824   ;;  %vm21714_vm14 = vcmask 728064  }
 0x2cb   :  { %16571 = vmatprep.subr.msk.mxu1 %vm120_vm1, %v4884_v35 }
 0x2cd   :  { %v7151_v32 = vpop.permute.xlu0 %7150 }
 0x2ce   :  { %v19712_v29 = vsel %vm3281_vm7, %v7149_v8, %v7151_v32  ;;  %v7317_v3 = vpop.permute.xlu1 %7316  ;;  %v18316_v32 = vld [vmem:[%s21484_s1 + $0x80] sm:$0xff]  ;;  %vm21710_vm7 = vcmask 752640  }
 0x2d1   :  { %16569 = vmatmul.mubr.msk.f32.vlgmr.msra.gmra.mrb[2].mxu1 %vm113_vm0, %v18313_v38  ;;  %v7235_v42 = vpop.permute.xlu0 %7234  ;;  %v18315_v38 = vld [vmem:[%s21484_s1 + $0x78] sm:$0x3] }
 0x2d2   :  { %16572 = vmatpush3.msk.msra.mxu1 %vm120_vm1, %v4884_v35  ;;  %16573 = vmatprep.mubr.msk.f32.mxu1 %vm113_vm0, %v18314_v57  ;;  %v19716_v44 = vsel %vm3375_vm11, %v7233_v14, %v7235_v42  ;;  %v7401_v37 = vpop.permute.xlu1 %7400  ;;  %v5052_v35 = vsel %vm21709_vm4, %v19524_v23, %v19530_v49  ;;  %vm21711_vm11 = vcmask 744448   ;;  %vm21715_vm4 = vcmask 957440  }
 0x2d3   :  { %16576 = vmatprep.subr.msk.mxu1 %vm120_vm1, %v4968_v39 }
 0x2d5   :  { %v7319_v8 = vpop.permute.xlu0 %7318 }
 0x2d6   :  { %v19731_v14 = vsel %vm21710_vm7, %v7317_v3, %v7319_v8  ;;  %v7485_v57 = vpop.permute.xlu1 %7484  ;;  %v18318_v8 = vld [vmem:[%s21484_s1 + $0x90] sm:$0xff]  ;;  %vm21716_vm7 = vcmask 719872  }
 0x2d9   :  { %16574 = vmatmul.mubr.msk.f32.vlgmr.msra.gmra.mrb[2].mxu1 %vm113_vm0, %v18315_v38  ;;  %v7403_v23 = vpop.permute.xlu0 %7402  ;;  %v18317_v38 = vld [vmem:[%s21484_s1 + $0x88] sm:$0x3] }
 0x2da   :  { %16577 = vmatpush3.msk.msra.mxu1 %vm120_vm1, %v4968_v39  ;;  %16578 = vmatprep.mubr.msk.f32.mxu1 %vm113_vm0, %v18316_v32  ;;  %v19735_v49 = vsel %vm21711_vm11, %v7401_v37, %v7403_v23  ;;  %v7569_v42 = vpop.permute.xlu1 %7568  ;;  %v5136_v39 = vsel %vm21712_vm2, %v19528_v48, %v19532_v50  ;;  %vm21717_vm11 = vcmask 711680   ;;  %vm21718_vm2 = vcmask 949248  }
 0x2db   :  { %16581 = vmatprep.subr.msk.mxu1 %vm120_vm1, %v5052_v35 }
 0x2dd   :  { %v7487_v3 = vpop.permute.xlu0 %7486 }
 0x2de   :  { %v19750_v37 = vsel %vm21713_vm15, %v7485_v57, %v7487_v3  ;;  %v7653_v32 = vpop.permute.xlu1 %7652  ;;  %v18320_v3 = vld [vmem:[%s21484_s1 + $0xa0] sm:$0xff]  ;;  %vm21719_vm15 = vcmask 703488  }
 0x2e1   :  { %16579 = vmatmul.mubr.msk.f32.vlgmr.msra.gmra.mrb[2].mxu1 %vm113_vm0, %v18317_v38  ;;  %v7571_v48 = vpop.permute.xlu0 %7570  ;;  %v18319_v38 = vld [vmem:[%s21484_s1 + $0x98] sm:$0x3] }
 0x2e2   :  { %16582 = vmatpush3.msk.msra.mxu1 %vm120_vm1, %v5052_v35  ;;  %16583 = vmatprep.mubr.msk.f32.mxu1 %vm113_vm0, %v18318_v8  ;;  %v19754_v50 = vsel %vm21714_vm14, %v7569_v42, %v7571_v48  ;;  %v7737_v23 = vpop.permute.xlu1 %7736  ;;  %v5220_v35 = vsel %vm21715_vm4, %v19534_v54, %v19536_v55  ;;  %vm21721_vm14 = vcmask 695296   ;;  %vm21722_vm4 = vcmask 941056  }
 0x2e3   :  { %16586 = vmatprep.subr.msk.mxu1 %vm120_vm1, %v5136_v39 }
 0x2e5   :  { %v7655_v57 = vpop.permute.xlu0 %7654 }
 0x2e6   :  { %v19769_v42 = vsel %vm21716_vm7, %v7653_v32, %v7655_v57  ;;  %v7821_v8 = vpop.permute.xlu1 %7820  ;;  %v18322_v57 = vld [vmem:[%s21484_s1 + $0xb0] sm:$0xff]  ;;  %vm21723_vm7 = vcmask 932864  }
 0x2e9   :  { %16584 = vmatmul.mubr.msk.f32.vlgmr.msra.gmra.mrb[2].mxu1 %vm113_vm0, %v18319_v38  ;;  %v7739_v54 = vpop.permute.xlu0 %7738  ;;  %v18321_v38 = vld [vmem:[%s21484_s1 + $0xa8] sm:$0x3] }
 0x2ea   :  { %16587 = vmatpush3.msk.msra.mxu1 %vm120_vm1, %v5136_v39  ;;  %16588 = vmatprep.mubr.msk.f32.mxu1 %vm113_vm0, %v18320_v3  ;;  %v19773_v55 = vsel %vm21717_vm11, %v7737_v23, %v7739_v54  ;;  %v7905_v48 = vpop.permute.xlu1 %7904  ;;  %v5304_v39 = vsel %vm21718_vm2, %v19538_v56, %v19543_v4  ;;  %v21720_v4 = vmov 1.0|1.0   ;;  %v5388_v54 = vsel %vm21722_vm4, %v19545_v11, %v19552_v25  ;;  %v18326_v11 = vld [vmem:[%s21484_s1 + $0xc8] sm:$0x3] }
 0x2eb   :  { %16591 = vmatprep.subr.msk.mxu1 %vm120_vm1, %v5220_v35  ;;  %v5472_v25 = vsel %vm21723_vm7, %v19550_v26, %v19556_v0  ;;  %v18337_v0 = vld [vmem:[%s21484_s1 + $0x120] sm:$0xff]  ;;  %vm21730_vm11 = vcmask 875520   ;;  %vm21731_vm2 = vcmask 867328   ;;  %vm21734_vm4 = vcmask 842752  }
 0x2ec   :  { %vm21735_vm7 = vcmask 834560  }
 0x2ed   :  { %v7823_v32 = vpop.permute.xlu0 %7822 }
 0x2ee   :  { %v19788_v23 = vsel %vm21719_vm15, %v7821_v8, %v7823_v32  ;;  %v4316_v3 = vpop.permute.xlu1 %4315  ;;  %v18343_v32 = vld [vmem:[%s21484_s1 + $0x150] sm:$0xff]  ;;  %vm21732_vm15 = vcmask 859136  }
 0x2ef   :  { %16536 = vmatprep.subr.msk.mxu0 %vm120_vm1, %v4316_v3 }
 0x2f0   :  { %16537 = vmatpush3.msk.msra.mxu0 %vm120_vm1, %v4316_v3  ;;  %v18347_v3 = vld [vmem:[%s21484_s1 + $0x170] sm:$0xff] }
 0x2f1   :  { %16589 = vmatmul.mubr.msk.f32.vlgmr.msra.gmra.mrb[2].mxu1 %vm113_vm0, %v18321_v38  ;;  %v7907_v56 = vpop.permute.xlu0 %7906  ;;  %17210 = vmatprep.subr.msk.bf16.mxu0 %vm18991_vm10, %v21720_v4  ;;  %v18324_v38 = vld [vmem:[%s21484_s1 + $0xb8] sm:$0x3] }
 0x2f2   :  { %16592 = vmatpush3.msk.msra.mxu1 %vm120_vm1, %v5220_v35  ;;  %16593 = vmatprep.mubr.msk.f32.mxu1 %vm113_vm0, %v18322_v57  ;;  %v18323_v35 = vld [vmem:[%s21484_s1 + $0x18] sm:$0x3]  ;;  %v19801_v8 = vsel %vm21721_vm14, %v7905_v48, %v7907_v56  ;;  %v18325_v48 = vld [vmem:[%s21484_s1 + $0xc0] sm:$0xff]  ;;  %vm21733_vm14 = vcmask 850944  }
 0x2f3   :  { %16596 = vmatprep.subr.msk.mxu1 %vm120_vm1, %v5304_v39  ;;  %16539 = vmatmul.mubr.msk.f32.vlgmr.msra.gmra.mrb[2].mxu0 %vm113_vm0, %v18323_v35  ;;  %v18345_v57 = vld [vmem:[%s21484_s1 + $0x160] sm:$0xff]  ;;  %v18351_v35 = vld [vmem:[%s21484_s1 + $0x190] sm:$0xff] }
 0x2f4   :  { %17212 = vmatpush3.bf16.msk.msra.mxu0 %vm18991_vm10, %v21720_v4  ;;  %v18349_v56 = vld [vmem:[%s21484_s1 + $0x180] sm:$0xff] }
 0x2f5   :  { %17214 = vmatprep.subr.msk.bf16.mxu0 %vm19008_vm13, %v21720_v4 }
 0x2f8   :  { %17216 = vmatpush3.bf16.msk.msra.mxu0 %vm19008_vm13, %v21720_v4 }
 0x2f9   :  { %16594 = vmatmul.mubr.msk.f32.vlgmr.msra.gmra.mrb[2].mxu1 %vm113_vm0, %v18324_v38  ;;  %17218 = vmatprep.subr.msk.bf16.mxu0 %vm19038_vm12, %v21720_v4  ;;  %v21737_v38 = vld [vmem:[#allocation33_spill] sm:$0xff] }
 0x2fa   :  { %16597 = vmatpush3.msk.msra.mxu1 %vm120_vm1, %v5304_v39  ;;  %16598 = vmatprep.mubr.msk.f32.mxu1 %vm113_vm0, %v18325_v48  ;;  %v18341_v39 = vld [vmem:[%s21484_s1 + $0x140] sm:$0xff]  ;;  %v18355_v48 = vld [vmem:[%s21484_s1 + $0x1b0] sm:$0xff] }
 0x2fb   :  { %16601 = vmatprep.subr.msk.mxu1 %vm120_vm1, %v5388_v54 }
 0x2fc   :  { %17220 = vmatpush3.bf16.msk.msra.mxu0 %vm19038_vm12, %v21720_v4  ;;  %vm21724_vm12 = vcmask 924672  }
 0x2fd   :  { %17222 = vmatprep.subr.msk.bf16.mxu0 %vm19063_vm9, %v21720_v4  ;;  %v5556_v26 = vsel %vm21724_vm12, %v19554_v10, %v19560_v30  ;;  %v18330_v30 = vld [vmem:[%s21484_s1 + $0xe8] sm:$0x3]  ;;  %vm21736_vm12 = vcmask 826368  }
 0x300   :  { %17224 = vmatpush3.bf16.msk.msra.mxu0 %vm19063_vm9, %v21720_v4  ;;  %vm21725_vm9 = vcmask 916480  }
 0x301   :  { %16599 = vmatmul.mubr.msk.f32.vlgmr.msra.gmra.mrb[2].mxu1 %vm113_vm0, %v18326_v11  ;;  %17226 = vmatprep.subr.msk.bf16.mxu0 %vm19085_vm8, %v21720_v4  ;;  %v5640_v10 = vsel %vm21725_vm9, %v19558_v16, %v19564_v15  ;;  %v18332_v16 = vld [vmem:[%s21484_s1 + $0xf8] sm:$0x3]  ;;  %vm21738_vm9 = vcmask 818176   ;;  %v20058_v11 = vpop.permute.xlu0 %4216 }
 0x302   :  { %16602 = vmatpush3.msk.msra.mxu1 %vm120_vm1, %v5388_v54  ;;  %16603 = vmatprep.mubr.msk.f32.mxu1 %vm113_vm0, %v18327_v36  ;;  %v18353_v54 = vld [vmem:[%s21484_s1 + $0x1a0] sm:$0xff] }
 0x303   :  { %16606 = vmatprep.subr.msk.mxu1 %vm120_vm1, %v5472_v25  ;;  %v21740_v36 = vld [vmem:[#allocation34_spill] sm:$0xff] }
 0x304   :  { %17228 = vmatpush3.bf16.msk.msra.mxu0 %vm19085_vm8, %v21720_v4  ;;  %vm21726_vm8 = vcmask 908288  }
 0x305   :  { %17230 = vmatprep.subr.msk.bf16.mxu0 %vm19111_vm6, %v21720_v4  ;;  %v5724_v15 = vsel %vm21726_vm8, %v19562_v1, %v19568_v18  ;;  %v18335_v18 = vld [vmem:[%s21484_s1 + $0x110] sm:$0xff]  ;;  %v18338_v1 = vld [vmem:[%s21484_s1 + $0x128] sm:$0x3]  ;;  %vm21741_vm8 = vcmask 809984  }
 0x308   :  { %17232 = vmatpush3.bf16.msk.msra.mxu0 %vm19111_vm6, %v21720_v4  ;;  %vm21727_vm6 = vcmask 900096  }
 0x309   :  { %16604 = vmatmul.mubr.msk.f32.vlgmr.msra.gmra.mrb[2].mxu1 %vm113_vm0, %v18328_v41  ;;  %17234 = vmatprep.subr.msk.bf16.mxu0 %vm19135_vm5, %v21720_v4 }
 0x30a   :  { %16607 = vmatpush3.msk.msra.mxu1 %vm120_vm1, %v5472_v25  ;;  %16608 = vmatprep.mubr.msk.f32.mxu1 %vm113_vm0, %v18329_v47  ;;  %v20056_v25 = vpop.permute.xlu1 %4221 }
 0x30b   :  { %16611 = vmatprep.subr.msk.mxu1 %vm120_vm1, %v5556_v26 }
 0x30c   :  { %17236 = vmatpush3.bf16.msk.msra.mxu0 %vm19135_vm5, %v21720_v4  ;;  %vm21728_vm5 = vcmask 891904  }
 0x30d   :  { %17239 = vmatprep.subr.msk.bf16.mxu0 %vm19166_vm3, %v19160_v62 }
 0x310   :  { %17242 = vmatpush3.bf16.msk.msra.mxu0 %vm19166_vm3, %v19160_v62  ;;  %v5808_v62 = vsel %vm21727_vm6, %v19566_v19, %v19572_v13  ;;  %v5892_v19 = vsel %vm21728_vm5, %v19570_v20, %v19576_v6  ;;  %v18336_v13 = vld [vmem:[%s21484_s1 + $0x118] sm:$0x3]  ;;  %vm21729_vm3 = vcmask 883712   ;;  %v18339_v20 = vld [vmem:[%s21484_s1 + $0x130] sm:$0xff]  ;;  %vm8090_vm6 = vcmask 1041408  }
 0x311   :  { %16609 = vmatmul.mubr.msk.f32.vlgmr.msra.gmra.mrb[2].mxu1 %vm113_vm0, %v18330_v30  ;;  %v5976_v6 = vsel %vm21729_vm3, %v19574_v12, %v19580_v61  ;;  %v6060_v61 = vsel %vm21730_vm11, %v19578_v5, %v19584_v52  ;;  %v18340_v12 = vld [vmem:[%s21484_s1 + $0x138] sm:$0x3]  ;;  %v6144_v52 = vsel %vm21731_vm2, %v19582_v59, %v19588_v46  ;;  %v18342_v5 = vld [vmem:[%s21484_s1 + $0x148] sm:$0x3]  ;;  %v6228_v46 = vsel %vm21732_vm15, %v19586_v51, %v19594_v34 }
 0x312   :  { %16612 = vmatpush3.msk.msra.mxu1 %vm120_vm1, %v5556_v26  ;;  %16613 = vmatprep.mubr.msk.f32.mxu1 %vm113_vm0, %v18331_v53  ;;  %v18344_v59 = vld [vmem:[%s21484_s1 + $0x158] sm:$0x3]  ;;  %v6312_v34 = vsel %vm21733_vm14, %v19590_v40, %v19609_v45  ;;  %v18346_v51 = vld [vmem:[%s21484_s1 + $0x168] sm:$0x3]  ;;  %v6396_v40 = vsel %vm21734_vm4, %v19602_v27, %v19620_v22  ;;  %v6480_v22 = vsel %vm21735_vm7, %v19616_v33, %v19628_v21  ;;  %vm18411_vm5 = vmmov 1  }
 0x313   :  { %16616 = vmatprep.subr.msk.mxu1 %vm120_vm1, %v5640_v10  ;;  %v18348_v45 = vld [vmem:[%s21484_s1 + $0x178] sm:$0x3]  ;;  %v18350_v27 = vld [vmem:[%s21484_s1 + $0x188] sm:$0x3]  ;;  %v6564_v33 = vsel %vm21736_vm12, %v19622_v17, %v19640_v9  ;;  %v6648_v9 = vsel %vm21738_vm9, %v21737_v38, %v19648_v31  ;;  %vm20212_vm3 = vmpackc.low %vm8090_vm6, %vm18411_vm5  ;;  %vm21769_vm11 = vcmask 1006592   ;;  %vm21776_vm15 = vcmask 1042432  }
 0x314   :  { %v18352_v21 = vld [vmem:[%s21484_s1 + $0x198] sm:$0x3]  ;;  %v18354_v17 = vld [vmem:[%s21484_s1 + $0x1a8] sm:$0x3]  ;;  %vm21770_vm2 = vmmov %vm21769_vm11  ;;  %vm9925_vm4 = vcmask 351232   ;;  %vm11768_vm7 = vcmask 173056  }
 0x315   :  { %v21739_v31 = vld [vmem:[#allocation35_spill] sm:$0xff]  ;;  %v18356_v30 = vld [vmem:[%s21484_s1 + $0x1b8] sm:$0x3]  ;;  %vm11764_vm12 = vcmask 179200   ;;  %vm21783_vm9 = vmmov %vm21776_vm15  ;;  %vm12188_vm6 = vcmask 154624  }
 0x316   :  { %v6732_v26 = vsel %vm21741_vm8, %v21740_v36, %v21739_v31  ;;  %v20232_v31 = vld [vmem:[%s21486_s3 + $0x18] sm:$0x3]  ;;  %v20240_v36 = vld [vmem:[%s21486_s3] sm:$0xff]  ;;  %vm21784_vm8 = vmmov %vm21783_vm9 }
 0x317   :  { %vm21785_vm5 = vmmov %vm21784_vm8 }
 0x319   :  { %16614 = vmatmul.mubr.msk.f32.vlgmr.msra.gmra.mrb[2].mxu1 %vm113_vm0, %v18332_v16 }
 0x31a   :  { %16617 = vmatpush3.msk.msra.mxu1 %vm120_vm1, %v5640_v10  ;;  %16618 = vmatprep.mubr.msk.f32.mxu1 %vm113_vm0, %v18333_v58 }
 0x31b   :  { %16621 = vmatprep.subr.msk.mxu1 %vm120_vm1, %v5724_v15 }
 0x321   :  { %16619 = vmatmul.mubr.msk.f32.vlgmr.msra.gmra.mrb[2].mxu1 %vm113_vm0, %v18334_v63 }
 0x322   :  { %16622 = vmatpush3.msk.msra.mxu1 %vm120_vm1, %v5724_v15  ;;  %16623 = vmatprep.mubr.msk.f32.mxu1 %vm113_vm0, %v18335_v18  ;;  %v18357_v15 = vld [vmem:[%s21484_s1 + $0x1c0] sm:$0xff]  ;;  %v18358_v18 = vld [vmem:[%s21484_s1 + $0x1c8] sm:$0x3] }
 0x323   :  { %16626 = vmatprep.subr.msk.mxu1 %vm120_vm1, %v5808_v62 }
 0x329   :  { %16624 = vmatmul.mubr.msk.f32.vlgmr.msra.gmra.mrb[2].mxu1 %vm113_vm0, %v18336_v13  ;;  %v18360_v13 = vld [vmem:[%s21484_s1 + $0x1d8] sm:$0x3] }
 0x32a   :  { %16627 = vmatpush3.msk.msra.mxu1 %vm120_vm1, %v5808_v62  ;;  %16628 = vmatprep.mubr.msk.f32.mxu1 %vm113_vm0, %v18337_v0  ;;  %v18361_v0 = vld [vmem:[%s21484_s1 + $0x1e0] sm:$0xff] }
 0x32b   :  { %16631 = vmatprep.subr.msk.mxu1 %vm120_vm1, %v5892_v19 }
 0x331   :  { %16629 = vmatmul.mubr.msk.f32.vlgmr.msra.gmra.mrb[2].mxu1 %vm113_vm0, %v18338_v1  ;;  %v21742_v1 = vld [vmem:[#allocation8_spill] sm:$0xff] }
 0x332   :  { %16632 = vmatpush3.msk.msra.mxu1 %vm120_vm1, %v5892_v19  ;;  %16633 = vmatprep.mubr.msk.f32.mxu1 %vm113_vm0, %v18339_v20  ;;  %v18359_v19 = vld [vmem:[%s21484_s1 + $0x1d0] sm:$0xff] }
 0x333   :  { %16636 = vmatprep.subr.msk.mxu1 %vm120_vm1, %v5976_v6  ;;  %v21743_v20 = vld [vmem:[#allocation9_spill] sm:$0xff] }
 0x339   :  { %16634 = vmatmul.mubr.msk.f32.vlgmr.msra.gmra.mrb[2].mxu1 %vm113_vm0, %v18340_v12  ;;  %v21746_v12 = vld [vmem:[#allocation12_spill] sm:$0xff] }
 0x33a   :  { %16637 = vmatpush3.msk.msra.mxu1 %vm120_vm1, %v5976_v6  ;;  %16638 = vmatprep.mubr.msk.f32.mxu1 %vm113_vm0, %v18341_v39  ;;  %v18362_v6 = vld [vmem:[%s21484_s1 + $0x1e8] sm:$0x3]  ;;  %v21748_v39 = vld [vmem:[#allocation14_spill] sm:$0xff] }
 0x33b   :  { %16641 = vmatprep.subr.msk.mxu1 %vm120_vm1, %v6060_v61 }
 0x341   :  { %16639 = vmatmul.mubr.msk.f32.vlgmr.msra.gmra.mrb[2].mxu1 %vm113_vm0, %v18342_v5  ;;  %v21752_v5 = vld [vmem:[#allocation18_spill] sm:$0xff] }
 0x342   :  { %16642 = vmatpush3.msk.msra.mxu1 %vm120_vm1, %v6060_v61  ;;  %16643 = vmatprep.mubr.msk.f32.mxu1 %vm113_vm0, %v18343_v32  ;;  %v21745_v61 = vld [vmem:[#allocation11_spill] sm:$0xff] }
 0x343   :  { %16646 = vmatprep.subr.msk.mxu1 %vm120_vm1, %v6144_v52 }
 0x349   :  { %16644 = vmatmul.mubr.msk.f32.vlgmr.msra.gmra.mrb[2].mxu1 %vm113_vm0, %v18344_v59  ;;  %v21755_v59 = vld [vmem:[#allocation21_spill] sm:$0xff] }
 0x34a   :  { %16647 = vmatpush3.msk.msra.mxu1 %vm120_vm1, %v6144_v52  ;;  %16648 = vmatprep.mubr.msk.f32.mxu1 %vm113_vm0, %v18345_v57  ;;  %v21750_v52 = vld [vmem:[#allocation16_spill] sm:$0xff]  ;;  %v21757_v57 = vld [vmem:[#allocation23_spill] sm:$0xff] }
 0x34b   :  { %16651 = vmatprep.subr.msk.mxu1 %vm120_vm1, %v6228_v46 }
 0x351   :  { %16649 = vmatmul.mubr.msk.f32.vlgmr.msra.gmra.mrb[2].mxu1 %vm113_vm0, %v18346_v51  ;;  %v21760_v51 = vld [vmem:[#allocation26_spill] sm:$0xff] }
 0x352   :  { %16652 = vmatpush3.msk.msra.mxu1 %vm120_vm1, %v6228_v46  ;;  %16653 = vmatprep.mubr.msk.f32.mxu1 %vm113_vm0, %v18347_v3  ;;  %v21762_v3 = vld [vmem:[#allocation28_spill] sm:$0xff] }
 0x353   :  { %16656 = vmatprep.subr.msk.mxu1 %vm120_vm1, %v6312_v34 }
 0x359   :  { %16654 = vmatmul.mubr.msk.f32.vlgmr.msra.gmra.mrb[2].mxu1 %vm113_vm0, %v18348_v45  ;;  %v21765_v45 = vld [vmem:[#allocation31_spill] sm:$0xff] }
 0x35a   :  { %16657 = vmatpush3.msk.msra.mxu1 %vm120_vm1, %v6312_v34  ;;  %16658 = vmatprep.mubr.msk.f32.mxu1 %vm113_vm0, %v18349_v56  ;;  %v21758_v34 = vld [vmem:[#allocation24_spill] sm:$0xff] }
 0x35b   :  { %16661 = vmatprep.subr.msk.mxu1 %vm120_vm1, %v6396_v40 }
 0x361   :  { %16659 = vmatmul.mubr.msk.f32.vlgmr.msra.gmra.mrb[2].mxu1 %vm113_vm0, %v18350_v27 }
 0x362   :  { %16662 = vmatpush3.msk.msra.mxu1 %vm120_vm1, %v6396_v40  ;;  %16663 = vmatprep.mubr.msk.f32.mxu1 %vm113_vm0, %v18351_v35  ;;  %v21764_v40 = vld [vmem:[#allocation30_spill] sm:$0xff]  ;;  %v21768_v35 = vld [vmem:[#allocation32_spill] sm:$0xff] }
 0x363   :  { %16666 = vmatprep.subr.msk.mxu1 %vm120_vm1, %v6480_v22 }
 0x369   :  { %16664 = vmatmul.mubr.msk.f32.vlgmr.msra.gmra.mrb[2].mxu1 %vm113_vm0, %v18352_v21 }
 0x36a   :  { %16667 = vmatpush3.msk.msra.mxu1 %vm120_vm1, %v6480_v22  ;;  %16668 = vmatprep.mubr.msk.f32.mxu1 %vm113_vm0, %v18353_v54 }
 0x36b   :  { %16671 = vmatprep.subr.msk.mxu1 %vm120_vm1, %v6564_v33 }
 0x371   :  { %16669 = vmatmul.mubr.msk.f32.vlgmr.msra.gmra.mrb[2].mxu1 %vm113_vm0, %v18354_v17 }
 0x372   :  { %16672 = vmatpush3.msk.msra.mxu1 %vm120_vm1, %v6564_v33  ;;  %16673 = vmatprep.mubr.msk.f32.mxu1 %vm113_vm0, %v18355_v48 }
 0x373   :  { %16676 = vmatprep.subr.msk.mxu1 %vm120_vm1, %v6648_v9 }
 0x378   :  { %v16535_v41 = vpop.f32.mrb[0].mxu1 }
 0x379   :  { %v4307_v47 = vadd.f32 %v16535_v41, %v20056_v25  ;;  %v4301_v10 = vpop.f32.mrb[1].mxu1  ;;  %16674 = vmatmul.mubr.msk.f32.vlgmr.msra.gmra.mrb[2].mxu1 %vm113_vm0, %v18356_v30  ;;  %v20254_v41 = vld [vmem:[%s21486_s3 + $0x8] sm:$0x3] }
 0x37a   :  { %16677 = vmatpush3.msk.msra.mxu1 %vm120_vm1, %v6648_v9  ;;  %v4302_v53 = vadd.f32 %v4301_v10, %v20058_v11  ;;  %16678 = vmatprep.mubr.msk.f32.mxu1 %vm113_vm0, %v18357_v15  ;;  %v20269_v15 = vld [vmem:[%s21486_s3 + $0x28] sm:$0x3] }
 0x37b   :  { %v4311_v16 = vmax.f32 %v4307_v47, 0.0  ;;  %16681 = vmatprep.subr.msk.mxu1 %vm120_vm1, %v6732_v26 }
 0x37c   :  { %v4310_v58 = vmax.f32 %v4302_v53, 0.0  ;;  %v20264_v53 = vld [vmem:[%s21486_s3 + $0x20] sm:$0xff] }
 0x37e   :  { %v20075_v62 = vpack.i.bf16 %v4311_v16, %v4310_v58  ;;  %v20077_v63 = vpack.c.bf16 %v4311_v16, %v4310_v58 }
 0x380   :  { %18072 = vrot.lane.b32.xlu1 %v20075_v62, %s21700_s29 }
 0x381   :  { %16679 = vmatmul.mubr.msk.f32.vlgmr.msra.gmra.mrb[2].mxu1 %vm113_vm0, %v18358_v18  ;;  %v20281_v18 = vld [vmem:[%s21486_s3 + $0x30] sm:$0xff] }
 0x382   :  { %16682 = vmatpush3.msk.msra.mxu1 %vm120_vm1, %v6732_v26  ;;  %16683 = vmatprep.mubr.msk.f32.mxu1 %vm113_vm0, %v18359_v19 }
 0x383   :  { %16686 = vmatprep.subr.msk.mxu1 %vm120_vm1, %v19674_v7 }
 0x384   :  { %18082 = vrot.lane.b32.xlu1 %v20075_v62, %s18366_s15 }
 0x389   :  { %16684 = vmatmul.mubr.msk.f32.vlgmr.msra.gmra.mrb[2].mxu1 %vm113_vm0, %v18360_v13 }
 0x38a   :  { %16687 = vmatpush3.msk.msra.mxu1 %vm120_vm1, %v19674_v7  ;;  %16688 = vmatprep.mubr.msk.f32.mxu1 %vm113_vm0, %v18361_v0  ;;  %v18363_v7 = vld [vmem:[%s21484_s1 + $0x1f0] sm:$0xff] }
 0x38b   :  { %16691 = vmatprep.subr.msk.mxu1 %vm120_vm1, %v19678_v2 }
 0x391   :  { %16689 = vmatmul.mubr.msk.f32.vlgmr.msra.gmra.mrb[2].mxu1 %vm113_vm0, %v18362_v6 }
 0x392   :  { %16692 = vmatpush3.msk.msra.mxu1 %vm120_vm1, %v19678_v2  ;;  %16693 = vmatprep.mubr.msk.f32.mxu1 %vm113_vm0, %v18363_v7  ;;  %v21744_v2 = vld [vmem:[#allocation10_spill] sm:$0xff] }
 0x393   :  { %16696 = vmatprep.subr.msk.mxu1 %vm120_vm1, %v19693_v60 }
 0x399   :  { %16694 = vmatmul.mubr.msk.f32.vlgmr.msra.gmra.mrb[2].mxu1 %vm113_vm0, %v21742_v1 }
 0x39a   :  { %16697 = vmatpush3.msk.msra.mxu1 %vm120_vm1, %v19693_v60  ;;  %16698 = vmatprep.mubr.msk.f32.mxu1 %vm113_vm0, %v21743_v20  ;;  %v21747_v60 = vld [vmem:[#allocation13_spill] sm:$0xff] }
 0x39b   :  { %16701 = vmatprep.subr.msk.mxu1 %vm120_vm1, %v19697_v43 }
 0x3a1   :  { %16699 = vmatmul.mubr.msk.f32.vlgmr.msra.gmra.mrb[2].mxu1 %vm113_vm0, %v21744_v2 }
 0x3a2   :  { %16702 = vmatpush3.msk.msra.mxu1 %vm120_vm1, %v19697_v43  ;;  %16703 = vmatprep.mubr.msk.f32.mxu1 %vm113_vm0, %v21745_v61  ;;  %v21749_v43 = vld [vmem:[#allocation15_spill] sm:$0xff] }
 0x3a3   :  { %16706 = vmatprep.subr.msk.mxu1 %vm120_vm1, %v19712_v29 }
 0x3a9   :  { %16704 = vmatmul.mubr.msk.f32.vlgmr.msra.gmra.mrb[2].mxu1 %vm113_vm0, %v21746_v12 }
 0x3aa   :  { %16707 = vmatpush3.msk.msra.mxu1 %vm120_vm1, %v19712_v29  ;;  %16708 = vmatprep.mubr.msk.f32.mxu1 %vm113_vm0, %v21747_v60  ;;  %v21751_v29 = vld [vmem:[#allocation17_spill] sm:$0xff] }
 0x3ab   :  { %16711 = vmatprep.subr.msk.mxu1 %vm120_vm1, %v19716_v44 }
 0x3b1   :  { %16709 = vmatmul.mubr.msk.f32.vlgmr.msra.gmra.mrb[2].mxu1 %vm113_vm0, %v21748_v39 }
 0x3b2   :  { %16712 = vmatpush3.msk.msra.mxu1 %vm120_vm1, %v19716_v44  ;;  %16713 = vmatprep.mubr.msk.f32.mxu1 %vm113_vm0, %v21749_v43  ;;  %v21753_v44 = vld [vmem:[#allocation19_spill] sm:$0xff] }
 0x3b3   :  { %16716 = vmatprep.subr.msk.mxu1 %vm120_vm1, %v19731_v14 }
 0x3b9   :  { %16714 = vmatmul.mubr.msk.f32.vlgmr.msra.gmra.mrb[2].mxu1 %vm113_vm0, %v21750_v52 }
 0x3ba   :  { %16717 = vmatpush3.msk.msra.mxu1 %vm120_vm1, %v19731_v14  ;;  %16718 = vmatprep.mubr.msk.f32.mxu1 %vm113_vm0, %v21751_v29  ;;  %v21754_v14 = vld [vmem:[#allocation20_spill] sm:$0xff] }
 0x3bb   :  { %16721 = vmatprep.subr.msk.mxu1 %vm120_vm1, %v19735_v49 }
 0x3c1   :  { %16719 = vmatmul.mubr.msk.f32.vlgmr.msra.gmra.mrb[2].mxu1 %vm113_vm0, %v21752_v5  ;;  %v15429_v5 = vld [vmem:[%s21486_s3 + $0x38] sm:$0x3] }
 0x3c2   :  { %16722 = vmatpush3.msk.msra.mxu1 %vm120_vm1, %v19735_v49  ;;  %16723 = vmatprep.mubr.msk.f32.mxu1 %vm113_vm0, %v21753_v44  ;;  %v21756_v49 = vld [vmem:[#allocation22_spill] sm:$0xff] }
 0x3c3   :  { %16726 = vmatprep.subr.msk.mxu1 %vm120_vm1, %v19750_v37 }
 0x3c6   :  { %v16540_v32 = vpop.f32.mrb[2].mxu0 }
 0x3c7   :  { %v4385_v46 = vpop.f32.mrb[3].mxu0 }
 0x3c9   :  { %16724 = vmatmul.mubr.msk.f32.vlgmr.msra.gmra.mrb[2].mxu1 %vm113_vm0, %v21754_v14 }
 0x3ca   :  { %16727 = vmatpush3.msk.msra.mxu1 %vm120_vm1, %v19750_v37  ;;  %16728 = vmatprep.mubr.msk.f32.mxu1 %vm113_vm0, %v21755_v59  ;;  %v21759_v37 = vld [vmem:[#allocation25_spill] sm:$0xff] }
 0x3cb   :  { %16731 = vmatprep.subr.msk.mxu1 %vm120_vm1, %v19754_v50 }
 0x3d1   :  { %16729 = vmatmul.mubr.msk.f32.vlgmr.msra.gmra.mrb[2].mxu1 %vm113_vm0, %v21756_v49 }
 0x3d2   :  { %16732 = vmatpush3.msk.msra.mxu1 %vm120_vm1, %v19754_v50  ;;  %16733 = vmatprep.mubr.msk.f32.mxu1 %vm113_vm0, %v21757_v57  ;;  %v21761_v50 = vld [vmem:[#allocation27_spill] sm:$0xff] }
 0x3d3   :  { %16736 = vmatprep.subr.msk.mxu1 %vm120_vm1, %v19769_v42 }
 0x3d9   :  { %16734 = vmatmul.mubr.msk.f32.vlgmr.msra.gmra.mrb[2].mxu1 %vm113_vm0, %v21758_v34 }
 0x3da   :  { %16737 = vmatpush3.msk.msra.mxu1 %vm120_vm1, %v19769_v42  ;;  %16738 = vmatprep.mubr.msk.f32.mxu1 %vm113_vm0, %v21759_v37  ;;  %v21763_v42 = vld [vmem:[#allocation29_spill] sm:$0xff] }
 0x3db   :  { %16741 = vmatprep.subr.msk.mxu1 %vm120_vm1, %v19773_v55 }
 0x3e1   :  { %16739 = vmatmul.mubr.msk.f32.vlgmr.msra.gmra.mrb[2].mxu1 %vm113_vm0, %v21760_v51 }
 0x3e2   :  { %16742 = vmatpush3.msk.msra.mxu1 %vm120_vm1, %v19773_v55  ;;  %16743 = vmatprep.mubr.msk.f32.mxu1 %vm113_vm0, %v21761_v50 }
 0x3e3   :  { %16746 = vmatprep.subr.msk.mxu1 %vm120_vm1, %v19788_v23 }
 0x3e9   :  { %16744 = vmatmul.mubr.msk.f32.vlgmr.msra.gmra.mrb[2].mxu1 %vm113_vm0, %v21762_v3 }
 0x3ea   :  { %16747 = vmatpush3.msk.msra.mxu1 %vm120_vm1, %v19788_v23  ;;  %16748 = vmatprep.mubr.msk.f32.mxu1 %vm113_vm0, %v21763_v42  ;;  %v12751_v23 = vld [vmem:[%s21489_s7 + $0x40] sm:$0xff] }
 0x3eb   :  { %16751 = vmatprep.subr.msk.mxu1 %vm120_vm1, %v19801_v8 }
 0x3f1   :  { %16749 = vmatmul.mubr.msk.f32.vlgmr.msra.gmra.mrb[2].mxu1 %vm113_vm0, %v21764_v40  ;;  %v15434_v40 = vld [vmem:[%s21486_s3 + $0x48] sm:$0x3] }
 0x3f2   :  { %16752 = vmatpush3.msk.msra.mxu1 %vm120_vm1, %v19801_v8  ;;  %v18073_v55 = vpop.permute.xlu1 %18072  ;;  %16753 = vmatprep.mubr.msk.f32.mxu1 %vm113_vm0, %v21765_v45  ;;  %v15415_v8 = vld [vmem:[%s21486_s3 + $0x10] sm:$0xff]  ;;  %vm8083_vm1 = vcmask 80896  }
 0x3f3   :  { %v18075_v56 = vunpack.i.h.bf16 %v18073_v55  ;;  %v18074_v22 = vunpack.i.l.bf16 %v18073_v55  ;;  %v15438_v45 = vld [vmem:[%s21486_s3 + $0x50] sm:$0xff] }
 0x3f5   :  { %v17243_v27 = vpack.c.bf16 %v18075_v56, %v18074_v22 }
 0x3f6   :  { %v18083_v38 = vpop.permute.xlu1 %18082 }
 0x3f7   :  { %17245 = vmatprep.subr.msk.bf16.mxu0 %vm20212_vm3, %v17243_v27  ;;  %v18085_v17 = vunpack.i.h.bf16 %v18083_v38  ;;  %v18084_v48 = vunpack.i.l.bf16 %v18083_v38  ;;  %v15443_v38 = vld [vmem:[%s21486_s3 + $0x60] sm:$0xff] }
 0x3f9   :  { %16754 = vmatmul.mubr.msk.f32.vlgmr.msra.gmra.mrb[2].mxu1 %vm113_vm0, %v21768_v35  ;;  %v17255_v26 = vpack.c.bf16 %v18085_v17, %v18084_v48 }
 0x3fa   :  { %16950 = vmatprep.mubr.msk.f32.mxu1 %vm8083_vm1, %v15415_v8 }
 0x4cc   :  { %v16755_v33 = vpop.f32.mrb[2].mxu1 }
 0x4cd   :  { %v17759_v21 = vadd.f32 %v16755_v33, %v16540_v32  ;;  %v7977_v54 = vpop.f32.mrb[3].mxu1  ;;  %v15433_v32 = vld [vmem:[%s21486_s3 + $0x40] sm:$0xff] }
 0x4ce   :  { %v17760_v9 = vadd.f32 %v7977_v54, %v4385_v46  ;;  %v15439_v54 = vld [vmem:[%s21486_s3 + $0x58] sm:$0x3] }
 0x4d0   :  { %16788 = vmatprep.mubr.msk.f32.mxu0 %vm21769_vm11, %v17760_v9  ;;  %vm21786_vm11 = vmmov %vm21785_vm5 }
 0x4d1   :  { %16789 = vmatmul.mubr.msk.f32.vlgmr.msra.gmra.mrb[4].mxu0 %vm21770_vm2, %v17759_v21 }
 0x4d2   :  { %17248 = vmatpush3.bf16.msk.msra.mxu0 %vm20212_vm3, %v17243_v27  ;;  %16795 = vmatprep.mubr.msk.f32.mxu0 %vm8083_vm1, %v15415_v8 }
 0x4d3   :  { %17251 = vmatprep.subr.msk.bf16.mxu0 %vm20212_vm3, %v20077_v63 }
 0x4d5   :  { %16796 = vmatmul.mubr.msk.f32.vlgmr.msra.gmra.mrb[6].mxu0 %vm8083_vm1, %v20232_v31 }
 0x4d6   :  { %17254 = vmatpush3.bf16.msk.msra.mxu0 %vm20212_vm3, %v20077_v63  ;;  %16802 = vmatprep.mubr.msk.f32.mxu0 %vm8083_vm1, %v20240_v36 }
 0x4d7   :  { %17257 = vmatprep.subr.msk.bf16.mxu0 %vm20212_vm3, %v17255_v26 }
 0x4dd   :  { %16803 = vmatmul.mubr.msk.f32.vlgmr.msra.gmra.mrb[6].mxu0 %vm8083_vm1, %v20254_v41 }
 0x4de   :  { %17260 = vmatpush3.bf16.msk.msra.mxu0 %vm20212_vm3, %v17255_v26  ;;  %16809 = vmatprep.mubr.msk.f32.mxu0 %vm8083_vm1, %v20264_v53 }
 0x4e5   :  { %16810 = vmatmul.mubr.msk.f32.vlgmr.msra.gmra.mrb[6].mxu0 %vm8083_vm1, %v20269_v15 }
 0x4e6   :  { %16816 = vmatprep.mubr.msk.f32.mxu0 %vm8083_vm1, %v20281_v18 }
 0x5a4   :  { %v16790_v47 = vpop.f32.mrb[4].mxu0 }
 0x5a5   :  { %v8066_v10 = vadd.f32 %v16790_v47, %v20056_v25  ;;  %v8060_v30 = vpop.f32.mrb[5].mxu0 }
 0x5a6   :  { %v8061_v16 = vadd.f32 %v8060_v30, %v20058_v11  ;;  %v15448_v30 = vld [vmem:[%s21486_s3 + $0x70] sm:$0xff] }
 0x5a7   :  { %v8070_v58 = vmax.f32 %v8066_v10, 0.0  ;;  %v15444_v10 = vld [vmem:[%s21486_s3 + $0x68] sm:$0x3] }
 0x5a8   :  { %v8069_v25 = vmax.f32 %v8061_v16, 0.0 }
 0x5aa   :  { %v18076_v63 = vpack.i.bf16 %v8070_v58, %v8069_v25  ;;  %v17383_v11 = vpack.c.bf16 %v8070_v58, %v8069_v25 }
 0x5ac   :  { %18077 = vrot.lane.b32.xlu0 %v18076_v63, %s21700_s29  ;;  %18092 = vrot.lane.b32.xlu1 %v18076_v63, %s18366_s15 }
 0x5b0   :  { %18087 = vrot.lane.b32.xlu0 %v20075_v62, %s18365_s14  ;;  %18102 = vrot.lane.b32.xlu1 %v18076_v63, %s18365_s14 }
 0x5b4   :  { %18097 = vrot.lane.b32.xlu0 %v20075_v62, %s18367_s16  ;;  %18112 = vrot.lane.b32.xlu1 %v18076_v63, %s18367_s16  ;;  %s21771_s16 = smov 113  }
 0x5b8   :  { %18107 = vrot.lane.b32.xlu0 %v20075_v62, %s18368_s17  ;;  %18122 = vrot.lane.b32.xlu1 %v18076_v63, %s18368_s17  ;;  %s21772_s17 = smov 112  }
 0x5bc   :  { %18117 = vrot.lane.b32.xlu0 %v20075_v62, %s18369_s18  ;;  %18132 = vrot.lane.b32.xlu1 %v18076_v63, %s18369_s18 }
 0x5c0   :  { %18127 = vrot.lane.b32.xlu0 %v20075_v62, %s18370_s19  ;;  %18142 = vrot.lane.b32.xlu1 %v18076_v63, %s18370_s19 }
 0x5c4   :  { %18137 = vrot.lane.b32.xlu0 %v20075_v62, %s18371_s20  ;;  %18152 = vrot.lane.b32.xlu1 %v18076_v63, %s18371_s20 }
 0x5c8   :  { %18147 = vrot.lane.b32.xlu0 %v20075_v62, %s18372_s21  ;;  %18162 = vrot.lane.b32.xlu1 %v18076_v63, %s18372_s21 }
 0x5cc   :  { %18157 = vrot.lane.b32.xlu0 %v20075_v62, %s18373_s22  ;;  %18172 = vrot.lane.b32.xlu1 %v18076_v63, %s18373_s22 }
 0x5d0   :  { %18167 = vrot.lane.b32.xlu0 %v20075_v62, %s18374_s23  ;;  %18182 = vrot.lane.b32.xlu1 %v18076_v63, %s18374_s23 }
 0x5d4   :  { %18177 = vrot.lane.b32.xlu0 %v20075_v62, %s18375_s24  ;;  %18192 = vrot.lane.b32.xlu1 %v18076_v63, %s18375_s24 }
 0x5d8   :  { %18187 = vrot.lane.b32.xlu0 %v20075_v62, %s18376_s25  ;;  %18202 = vrot.lane.b32.xlu1 %v18076_v63, %s18376_s25 }
 0x5dc   :  { %18197 = vrot.lane.b32.xlu0 %v20075_v62, %s18377_s26  ;;  %18212 = vrot.lane.b32.xlu1 %v18076_v63, %s18377_s26 }
 0x5e0   :  { %18207 = vrot.lane.b32.xlu0 %v20075_v62, %s21771_s16  ;;  %18222 = vrot.lane.b32.xlu1 %v18076_v63, %s21771_s16 }
 0x5e4   :  { %18217 = vrot.lane.b32.xlu0 %v20075_v62, %s21772_s17  ;;  %18232 = vrot.lane.b32.xlu1 %v18076_v63, %s21772_s17 }
 0x5e8   :  { %18227 = vrot.lane.b32.xlu0 %v20075_v62, %s21656_s0  ;;  %18242 = vrot.lane.b32.xlu1 %v18076_v63, %s21656_s0 }
 0x5ec   :  { %18237 = vrot.lane.b32.xlu0 %v20075_v62, %s21657_s30  ;;  %18252 = vrot.lane.b32.xlu1 %v18076_v63, %s21657_s30 }
 0x5f0   :  { %18247 = vrot.lane.b32.xlu0 %v20075_v62, %s21660_s13 }
 0x5f4   :  { %18257 = vrot.lane.b32.xlu0 %v18076_v63, %s21660_s13 }
 0x61e   :  { %v18078_v19 = vpop.permute.xlu0 %18077  ;;  %v18093_v6 = vpop.permute.xlu1 %18092 }
 0x61f   :  { %v18080_v13 = vunpack.i.h.bf16 %v18078_v19  ;;  %v18079_v0 = vunpack.i.l.bf16 %v18078_v19  ;;  %v18095_v20 = vunpack.i.h.bf16 %v18093_v6  ;;  %v18094_v2 = vunpack.i.l.bf16 %v18093_v6  ;;  %v15449_v19 = vld [vmem:[%s21486_s3 + $0x78] sm:$0x3] }
 0x621   :  { %v17377_v7 = vpack.c.bf16 %v18080_v13, %v18079_v0  ;;  %v17389_v39 = vpack.c.bf16 %v18095_v20, %v18094_v2  ;;  %v15453_v13 = vld [vmem:[%s21486_s3 + $0x80] sm:$0xff] }
 0x622   :  { %v18088_v1 = vpop.permute.xlu0 %18087  ;;  %v18103_v29 = vpop.permute.xlu1 %18102 }
 0x623   :  { %v18090_v61 = vunpack.i.h.bf16 %v18088_v1  ;;  %v18089_v12 = vunpack.i.l.bf16 %v18088_v1  ;;  %17379 = vmatprep.subr.msk.bf16.mxu1 %vm20212_vm3, %v17377_v7  ;;  %v18105_v46 = vunpack.i.h.bf16 %v18103_v29  ;;  %v18104_v59 = vunpack.i.l.bf16 %v18103_v29 }
 0x624   :  { %17382 = vmatpush3.bf16.msk.msra.mxu1 %vm20212_vm3, %v17377_v7 }
 0x625   :  { %v17261_v60 = vpack.c.bf16 %v18090_v61, %v18089_v12  ;;  %17385 = vmatprep.subr.msk.bf16.mxu1 %vm20212_vm3, %v17383_v11  ;;  %v17395_v51 = vpack.c.bf16 %v18105_v46, %v18104_v59  ;;  %v15459_v46 = vld [vmem:[%s21486_s3 + $0x98] sm:$0x3]  ;;  %v15463_v59 = vld [vmem:[%s21486_s3 + $0xa0] sm:$0xff] }
 0x626   :  { %v18098_v62 = vpop.permute.xlu0 %18097  ;;  %v18113_v42 = vpop.permute.xlu1 %18112 }
 0x627   :  { %v18100_v43 = vunpack.i.h.bf16 %v18098_v62  ;;  %v18099_v52 = vunpack.i.l.bf16 %v18098_v62  ;;  %17263 = vmatprep.subr.msk.bf16.mxu0 %vm20212_vm3, %v17261_v60  ;;  %16951 = vmatmul.mubr.msk.f32.vlgmr.msra.gmra.mrb[4].mxu1 %vm8083_vm1, %v20232_v31  ;;  %v18115_v56 = vunpack.i.h.bf16 %v18113_v42  ;;  %v18114_v22 = vunpack.i.l.bf16 %v18113_v42  ;;  %v15458_v62 = vld [vmem:[%s21486_s3 + $0x90] sm:$0xff] }
 0x628   :  { %17266 = vmatpush3.bf16.msk.msra.mxu0 %vm20212_vm3, %v17261_v60  ;;  %17388 = vmatpush3.bf16.msk.msra.mxu1 %vm20212_vm3, %v17383_v11  ;;  %v15454_v60 = vld [vmem:[%s21486_s3 + $0x88] sm:$0x3] }
 0x629   :  { %v17267_v44 = vpack.c.bf16 %v18100_v43, %v18099_v52  ;;  %17391 = vmatprep.subr.msk.bf16.mxu1 %vm20212_vm3, %v17389_v39  ;;  %16957 = vmatprep.mubr.msk.f32.mxu1 %vm8083_vm1, %v20240_v36  ;;  %v17401_v35 = vpack.c.bf16 %v18115_v56, %v18114_v22 }
 0x62a   :  { %v18108_v14 = vpop.permute.xlu0 %18107  ;;  %v18123_v21 = vpop.permute.xlu1 %18122 }
 0x62b   :  { %v18110_v49 = vunpack.i.h.bf16 %v18108_v14  ;;  %v18109_v57 = vunpack.i.l.bf16 %v18108_v14  ;;  %16817 = vmatmul.mubr.msk.f32.vlgmr.msra.gmra.mrb[6].mxu0 %vm8083_vm1, %v15429_v5  ;;  %17269 = vmatprep.subr.msk.bf16.mxu0 %vm20212_vm3, %v17267_v44  ;;  %v18125_v9 = vunpack.i.h.bf16 %v18123_v21  ;;  %v18124_v17 = vunpack.i.l.bf16 %v18123_v21 }
 0x62c   :  { %17272 = vmatpush3.bf16.msk.msra.mxu0 %vm20212_vm3, %v17267_v44  ;;  %16823 = vmatprep.mubr.msk.f32.mxu0 %vm8083_vm1, %v15433_v32 }
 0x62d   :  { %v17273_v34 = vpack.c.bf16 %v18110_v49, %v18109_v57  ;;  %v17407_v36 = vpack.c.bf16 %v18125_v9, %v18124_v17 }
 0x62e   :  { %v18118_v37 = vpop.permute.xlu0 %18117  ;;  %v18133_v47 = vpop.permute.xlu1 %18132 }
 0x62f   :  { %v18120_v50 = vunpack.i.h.bf16 %v18118_v37  ;;  %v18119_v3 = vunpack.i.l.bf16 %v18118_v37  ;;  %17275 = vmatprep.subr.msk.bf16.mxu0 %vm20212_vm3, %v17273_v34  ;;  %16958 = vmatmul.mubr.msk.f32.vlgmr.msra.gmra.mrb[4].mxu1 %vm8083_vm1, %v20254_v41 }
 0x630   :  { %17394 = vmatpush3.bf16.msk.msra.mxu1 %vm20212_vm3, %v17389_v39  ;;  %16964 = vmatprep.mubr.msk.f32.mxu1 %vm8083_vm1, %v20264_v53  ;;  %v18135_v53 = vunpack.i.h.bf16 %v18133_v47 }
 0x631   :  { %v17279_v55 = vpack.c.bf16 %v18120_v50, %v18119_v3  ;;  %17397 = vmatprep.subr.msk.bf16.mxu1 %vm20212_vm3, %v17395_v51 }
 0x632   :  { %v18128_v27 = vpop.permute.xlu0 %18127  ;;  %v18143_v11 = vpop.permute.xlu1 %18142 }
 0x633   :  { %16824 = vmatmul.mubr.msk.f32.vlgmr.msra.gmra.mrb[6].mxu0 %vm8083_vm1, %v15434_v40  ;;  %v18130_v8 = vunpack.i.h.bf16 %v18128_v27  ;;  %v18129_v33 = vunpack.i.l.bf16 %v18128_v27  ;;  %v18145_v0 = vunpack.i.h.bf16 %v18143_v11  ;;  %v18144_v6 = vunpack.i.l.bf16 %v18143_v11 }
 0x634   :  { %17278 = vmatpush3.bf16.msk.msra.mxu0 %vm20212_vm3, %v17273_v34  ;;  %16830 = vmatprep.mubr.msk.f32.mxu0 %vm8083_vm1, %v15438_v45 }
 0x635   :  { %17281 = vmatprep.subr.msk.bf16.mxu0 %vm20212_vm3, %v17279_v55  ;;  %v17285_v48 = vpack.c.bf16 %v18130_v8, %v18129_v33  ;;  %v17419_v20 = vpack.c.bf16 %v18145_v0, %v18144_v6 }
 0x636   :  { %v18138_v31 = vpop.permute.xlu0 %18137  ;;  %v18153_v12 = vpop.permute.xlu1 %18152 }
 0x637   :  { %16965 = vmatmul.mubr.msk.f32.vlgmr.msra.gmra.mrb[4].mxu1 %vm8083_vm1, %v20269_v15  ;;  %v18140_v26 = vunpack.i.h.bf16 %v18138_v31  ;;  %v18139_v41 = vunpack.i.l.bf16 %v18138_v31  ;;  %v18134_v15 = vunpack.i.l.bf16 %v18133_v47  ;;  %v18155_v39 = vunpack.i.h.bf16 %v18153_v12 }
 0x638   :  { %17400 = vmatpush3.bf16.msk.msra.mxu1 %vm20212_vm3, %v17395_v51  ;;  %16971 = vmatprep.mubr.msk.f32.mxu1 %vm8083_vm1, %v20281_v18  ;;  %v18154_v43 = vunpack.i.l.bf16 %v18153_v12 }
 0x639   :  { %17403 = vmatprep.subr.msk.bf16.mxu1 %vm20212_vm3, %v17401_v35  ;;  %v17291_v16 = vpack.c.bf16 %v18140_v26, %v18139_v41  ;;  %v17413_v25 = vpack.c.bf16 %v18135_v53, %v18134_v15 }
 0x63a   :  { %v18148_v58 = vpop.permute.xlu0 %18147  ;;  %v18163_v14 = vpop.permute.xlu1 %18162 }
 0x63b   :  { %16831 = vmatmul.mubr.msk.f32.vlgmr.msra.gmra.mrb[6].mxu0 %vm8083_vm1, %v15439_v54  ;;  %v18150_v63 = vunpack.i.h.bf16 %v18148_v58  ;;  %v18149_v18 = vunpack.i.l.bf16 %v18148_v58  ;;  %v18165_v49 = vunpack.i.h.bf16 %v18163_v14  ;;  %v18164_v57 = vunpack.i.l.bf16 %v18163_v14 }
 0x63c   :  { %17284 = vmatpush3.bf16.msk.msra.mxu0 %vm20212_vm3, %v17279_v55  ;;  %16837 = vmatprep.mubr.msk.f32.mxu0 %vm8083_vm1, %v15443_v38  ;;  %v15468_v55 = vld [vmem:[%s21486_s3 + $0xb0] sm:$0xff] }
 0x63d   :  { %17287 = vmatprep.subr.msk.bf16.mxu0 %vm20212_vm3, %v17285_v48  ;;  %v17297_v7 = vpack.c.bf16 %v18150_v63, %v18149_v18  ;;  %v17431_v51 = vpack.c.bf16 %v18165_v49, %v18164_v57 }
 0x63e   :  { %v18158_v1 = vpop.permute.xlu0 %18157  ;;  %v18173_v42 = vpop.permute.xlu1 %18172 }
 0x63f   :  { %16972 = vmatmul.mubr.msk.f32.vlgmr.msra.gmra.mrb[4].mxu1 %vm8083_vm1, %v15429_v5  ;;  %v18160_v2 = vunpack.i.h.bf16 %v18158_v1  ;;  %v18159_v61 = vunpack.i.l.bf16 %v18158_v1  ;;  %v17425_v5 = vpack.c.bf16 %v18155_v39, %v18154_v43  ;;  %v18174_v56 = vunpack.i.l.bf16 %v18173_v42 }
 0x640   :  { %17406 = vmatpush3.bf16.msk.msra.mxu1 %vm20212_vm3, %v17401_v35  ;;  %16978 = vmatprep.mubr.msk.f32.mxu1 %vm8083_vm1, %v15433_v32 }
 0x641   :  { %17409 = vmatprep.subr.msk.bf16.mxu1 %vm20212_vm3, %v17407_v36  ;;  %v17303_v52 = vpack.c.bf16 %v18160_v2, %v18159_v61 }
 0x642   :  { %v18168_v29 = vpop.permute.xlu0 %18167  ;;  %v18183_v21 = vpop.permute.xlu1 %18182 }
 0x643   :  { %16838 = vmatmul.mubr.msk.f32.vlgmr.msra.gmra.mrb[6].mxu0 %vm8083_vm1, %v15444_v10  ;;  %v18170_v44 = vunpack.i.h.bf16 %v18168_v29  ;;  %v18169_v32 = vunpack.i.l.bf16 %v18168_v29  ;;  %v18185_v9 = vunpack.i.h.bf16 %v18183_v21  ;;  %v18184_v17 = vunpack.i.l.bf16 %v18183_v21 }
 0x644   :  { %17290 = vmatpush3.bf16.msk.msra.mxu0 %vm20212_vm3, %v17285_v48  ;;  %16844 = vmatprep.mubr.msk.f32.mxu0 %vm8083_vm1, %v15448_v30 }
 0x645   :  { %17293 = vmatprep.subr.msk.bf16.mxu0 %vm20212_vm3, %v17291_v16  ;;  %v17309_v34 = vpack.c.bf16 %v18170_v44, %v18169_v32 }
 0x646   :  { %v18178_v37 = vpop.permute.xlu0 %18177  ;;  %v18193_v47 = vpop.permute.xlu1 %18192 }
 0x647   :  { %16979 = vmatmul.mubr.msk.f32.vlgmr.msra.gmra.mrb[4].mxu1 %vm8083_vm1, %v15434_v40  ;;  %v18180_v50 = vunpack.i.h.bf16 %v18178_v37  ;;  %v18179_v3 = vunpack.i.l.bf16 %v18178_v37  ;;  %v15464_v40 = vld [vmem:[%s21486_s3 + $0xa8] sm:$0x3]  ;;  %v18195_v53 = vunpack.i.h.bf16 %v18193_v47  ;;  %v18194_v15 = vunpack.i.l.bf16 %v18193_v47 }
 0x648   :  { %17412 = vmatpush3.bf16.msk.msra.mxu1 %vm20212_vm3, %v17407_v36  ;;  %16985 = vmatprep.mubr.msk.f32.mxu1 %vm8083_vm1, %v15438_v45  ;;  %v18175_v45 = vunpack.i.h.bf16 %v18173_v42  ;;  %v17443_v36 = vpack.c.bf16 %v18185_v9, %v18184_v17 }
 0x649   :  { %17415 = vmatprep.subr.msk.bf16.mxu1 %vm20212_vm3, %v17413_v25  ;;  %v17315_v22 = vpack.c.bf16 %v18180_v50, %v18179_v3 }
 0x64a   :  { %v18188_v27 = vpop.permute.xlu0 %18187  ;;  %v17437_v35 = vpack.c.bf16 %v18175_v45, %v18174_v56  ;;  %v18203_v11 = vpop.permute.xlu1 %18202 }
 0x64b   :  { %16845 = vmatmul.mubr.msk.f32.vlgmr.msra.gmra.mrb[6].mxu0 %vm8083_vm1, %v15449_v19  ;;  %v18190_v8 = vunpack.i.h.bf16 %v18188_v27  ;;  %v18189_v33 = vunpack.i.l.bf16 %v18188_v27  ;;  %v18205_v0 = vunpack.i.h.bf16 %v18203_v11  ;;  %v18204_v6 = vunpack.i.l.bf16 %v18203_v11 }
 0x64c   :  { %17296 = vmatpush3.bf16.msk.msra.mxu0 %vm20212_vm3, %v17291_v16  ;;  %16851 = vmatprep.mubr.msk.f32.mxu0 %vm8083_vm1, %v15453_v13 }
 0x64d   :  { %17299 = vmatprep.subr.msk.bf16.mxu0 %vm20212_vm3, %v17297_v7  ;;  %v17321_v48 = vpack.c.bf16 %v18190_v8, %v18189_v33 }
 0x64e   :  { %v18198_v31 = vpop.permute.xlu0 %18197  ;;  %v18213_v12 = vpop.permute.xlu1 %18212 }
 0x64f   :  { %16986 = vmatmul.mubr.msk.f32.vlgmr.msra.gmra.mrb[4].mxu1 %vm8083_vm1, %v15439_v54  ;;  %v15469_v54 = vld [vmem:[%s21486_s3 + $0xb8] sm:$0x3]  ;;  %v18200_v26 = vunpack.i.h.bf16 %v18198_v31  ;;  %v18199_v41 = vunpack.i.l.bf16 %v18198_v31  ;;  %v18215_v39 = vunpack.i.h.bf16 %v18213_v12  ;;  %v18214_v43 = vunpack.i.l.bf16 %v18213_v12 }
 0x650   :  { %17418 = vmatpush3.bf16.msk.msra.mxu1 %vm20212_vm3, %v17413_v25  ;;  %16992 = vmatprep.mubr.msk.f32.mxu1 %vm8083_vm1, %v15443_v38  ;;  %v15473_v38 = vld [vmem:[%s21486_s3 + $0xc0] sm:$0xff]  ;;  %v17449_v25 = vpack.c.bf16 %v18195_v53, %v18194_v15  ;;  %v15509_v15 = vld [vmem:[%s21486_s3 + $0x138] sm:$0x3] }
 0x651   :  { %17421 = vmatprep.subr.msk.bf16.mxu1 %vm20212_vm3, %v17419_v20  ;;  %v17327_v16 = vpack.c.bf16 %v18200_v26, %v18199_v41  ;;  %v15504_v26 = vld [vmem:[%s21486_s3 + $0x128] sm:$0x3]  ;;  %v15508_v41 = vld [vmem:[%s21486_s3 + $0x130] sm:$0xff] }
 0x652   :  { %v18208_v58 = vpop.permute.xlu0 %18207  ;;  %v18223_v14 = vpop.permute.xlu1 %18222 }
 0x653   :  { %16852 = vmatmul.mubr.msk.f32.vlgmr.msra.gmra.mrb[6].mxu0 %vm8083_vm1, %v15454_v60  ;;  %v18210_v63 = vunpack.i.h.bf16 %v18208_v58  ;;  %v18209_v18 = vunpack.i.l.bf16 %v18208_v58  ;;  %v18225_v49 = vunpack.i.h.bf16 %v18223_v14  ;;  %v18224_v57 = vunpack.i.l.bf16 %v18223_v14 }
 0x654   :  { %17302 = vmatpush3.bf16.msk.msra.mxu0 %vm20212_vm3, %v17297_v7  ;;  %16858 = vmatprep.mubr.msk.f32.mxu0 %vm8083_vm1, %v15458_v62 }
 0x655   :  { %17305 = vmatprep.subr.msk.bf16.mxu0 %vm20212_vm3, %v17303_v52  ;;  %v17333_v7 = vpack.c.bf16 %v18210_v63, %v18209_v18  ;;  %v21773_v63 = vld [vmem:[#allocation6_spill] sm:$0xff]  ;;  %v21774_v18 = vld [vmem:[#allocation4_spill] sm:$0xff] }
 0x656   :  { %v18218_v1 = vpop.permute.xlu0 %18217  ;;  %v18233_v42 = vpop.permute.xlu1 %18232  ;;  %vm21775_vm0 = vcmp.eq.s32.totalorder %v21773_v63, %v21774_v18 }
 0x657   :  { %16993 = vmatmul.mubr.msk.f32.vlgmr.msra.gmra.mrb[4].mxu1 %vm8083_vm1, %v15444_v10  ;;  %v15474_v10 = vld [vmem:[%s21486_s3 + $0xc8] sm:$0x3]  ;;  %v18220_v2 = vunpack.i.h.bf16 %v18218_v1  ;;  %v18219_v61 = vunpack.i.l.bf16 %v18218_v1  ;;  %v18235_v45 = vunpack.i.h.bf16 %v18233_v42  ;;  %v18234_v56 = vunpack.i.l.bf16 %v18233_v42  ;;  %vm20664_vm14 = vmpackc.low %vm21776_vm15, %vm21775_vm0 }
 0x658   :  { %17424 = vmatpush3.bf16.msk.msra.mxu1 %vm20212_vm3, %v17419_v20  ;;  %16999 = vmatprep.mubr.msk.f32.mxu1 %vm8083_vm1, %v15448_v30  ;;  %v15478_v30 = vld [vmem:[%s21486_s3 + $0xd0] sm:$0xff]  ;;  %v17455_v20 = vpack.c.bf16 %v18205_v0, %v18204_v6 }
 0x659   :  { %17427 = vmatprep.subr.msk.bf16.mxu1 %vm20212_vm3, %v17425_v5 }
 0x65a   :  { %v18228_v29 = vpop.permute.xlu0 %18227  ;;  %v18243_v21 = vpop.permute.xlu1 %18242 }
 0x65b   :  { %16859 = vmatmul.mubr.msk.f32.vlgmr.msra.gmra.mrb[6].mxu0 %vm8083_vm1, %v15459_v46  ;;  %v18230_v44 = vunpack.i.h.bf16 %v18228_v29  ;;  %v18229_v32 = vunpack.i.l.bf16 %v18228_v29  ;;  %v18245_v9 = vunpack.i.h.bf16 %v18243_v21  ;;  %v18244_v17 = vunpack.i.l.bf16 %v18243_v21 }
 0x65c   :  { %17308 = vmatpush3.bf16.msk.msra.mxu0 %vm20212_vm3, %v17303_v52  ;;  %16865 = vmatprep.mubr.msk.f32.mxu0 %vm8083_vm1, %v15463_v59  ;;  %v17339_v52 = vpack.c.bf16 %v18220_v2, %v18219_v61 }
 0x65d   :  { %17311 = vmatprep.subr.msk.bf16.mxu0 %vm20212_vm3, %v17309_v34  ;;  %v17479_v31 = vpack.c.bf16 %v18245_v9, %v18244_v17 }
 0x65e   :  { %v18238_v37 = vpop.permute.xlu0 %18237 }
 0x65f   :  { %17000 = vmatmul.mubr.msk.f32.vlgmr.msra.gmra.mrb[4].mxu1 %vm8083_vm1, %v15449_v19  ;;  %v15479_v19 = vld [vmem:[%s21486_s3 + $0xd8] sm:$0x3]  ;;  %v18240_v50 = vunpack.i.h.bf16 %v18238_v37  ;;  %v18239_v3 = vunpack.i.l.bf16 %v18238_v37 }
 0x660   :  { %17430 = vmatpush3.bf16.msk.msra.mxu1 %vm20212_vm3, %v17425_v5  ;;  %17006 = vmatprep.mubr.msk.f32.mxu1 %vm8083_vm1, %v15453_v13  ;;  %v15483_v13 = vld [vmem:[%s21486_s3 + $0xe0] sm:$0xff]  ;;  %v17461_v5 = vpack.c.bf16 %v18215_v39, %v18214_v43 }
 0x661   :  { %17433 = vmatprep.subr.msk.bf16.mxu1 %vm20212_vm3, %v17431_v51 }
 0x662   :  { %v18248_v27 = vpop.permute.xlu0 %18247 }
 0x663   :  { %16866 = vmatmul.mubr.msk.f32.vlgmr.msra.gmra.mrb[6].mxu0 %vm8083_vm1, %v15464_v40  ;;  %v18250_v8 = vunpack.i.h.bf16 %v18248_v27  ;;  %v18249_v33 = vunpack.i.l.bf16 %v18248_v27 }
 0x664   :  { %17314 = vmatpush3.bf16.msk.msra.mxu0 %vm20212_vm3, %v17309_v34  ;;  %16872 = vmatprep.mubr.msk.f32.mxu0 %vm8083_vm1, %v15468_v55  ;;  %v17345_v34 = vpack.c.bf16 %v18230_v44, %v18229_v32 }
 0x665   :  { %17317 = vmatprep.subr.msk.bf16.mxu0 %vm20212_vm3, %v17315_v22 }
 0x666   :  { %v18258_v53 = vpop.permute.xlu0 %18257 }
 0x667   :  { %17007 = vmatmul.mubr.msk.f32.vlgmr.msra.gmra.mrb[4].mxu1 %vm8083_vm1, %v15454_v60  ;;  %v15484_v60 = vld [vmem:[%s21486_s3 + $0xe8] sm:$0x3]  ;;  %v18259_v58 = vunpack.i.l.bf16 %v18258_v53 }
 0x668   :  { %17436 = vmatpush3.bf16.msk.msra.mxu1 %vm20212_vm3, %v17431_v51  ;;  %17013 = vmatprep.mubr.msk.f32.mxu1 %vm8083_vm1, %v15458_v62  ;;  %v15488_v62 = vld [vmem:[%s21486_s3 + $0xf0] sm:$0xff]  ;;  %v17467_v51 = vpack.c.bf16 %v18225_v49, %v18224_v57 }
 0x669   :  { %17439 = vmatprep.subr.msk.bf16.mxu1 %vm20212_vm3, %v17437_v35 }
 0x66b   :  { %16873 = vmatmul.mubr.msk.f32.vlgmr.msra.gmra.mrb[6].mxu0 %vm8083_vm1, %v15469_v54 }
 0x66c   :  { %17320 = vmatpush3.bf16.msk.msra.mxu0 %vm20212_vm3, %v17315_v22  ;;  %16879 = vmatprep.mubr.msk.f32.mxu0 %vm8083_vm1, %v15473_v38  ;;  %v17351_v22 = vpack.c.bf16 %v18240_v50, %v18239_v3 }
 0x66d   :  { %17323 = vmatprep.subr.msk.bf16.mxu0 %vm20212_vm3, %v17321_v48 }
 0x66f   :  { %17014 = vmatmul.mubr.msk.f32.vlgmr.msra.gmra.mrb[4].mxu1 %vm8083_vm1, %v15459_v46  ;;  %v15489_v46 = vld [vmem:[%s21486_s3 + $0xf8] sm:$0x3] }
 0x670   :  { %17442 = vmatpush3.bf16.msk.msra.mxu1 %vm20212_vm3, %v17437_v35  ;;  %17020 = vmatprep.mubr.msk.f32.mxu1 %vm8083_vm1, %v15463_v59  ;;  %v15493_v59 = vld [vmem:[%s21486_s3 + $0x100] sm:$0xff]  ;;  %v17473_v35 = vpack.c.bf16 %v18235_v45, %v18234_v56 }
 0x671   :  { %17445 = vmatprep.subr.msk.bf16.mxu1 %vm20212_vm3, %v17443_v36 }
 0x673   :  { %16880 = vmatmul.mubr.msk.f32.vlgmr.msra.gmra.mrb[6].mxu0 %vm8083_vm1, %v15474_v10 }
 0x674   :  { %17326 = vmatpush3.bf16.msk.msra.mxu0 %vm20212_vm3, %v17321_v48  ;;  %16886 = vmatprep.mubr.msk.f32.mxu0 %vm8083_vm1, %v15478_v30  ;;  %v17357_v48 = vpack.c.bf16 %v18250_v8, %v18249_v33 }
 0x675   :  { %17329 = vmatprep.subr.msk.bf16.mxu0 %vm20212_vm3, %v17327_v16 }
 0x677   :  { %17021 = vmatmul.mubr.msk.f32.vlgmr.msra.gmra.mrb[4].mxu1 %vm8083_vm1, %v15464_v40  ;;  %v15494_v40 = vld [vmem:[%s21486_s3 + $0x108] sm:$0x3] }
 0x678   :  { %17448 = vmatpush3.bf16.msk.msra.mxu1 %vm20212_vm3, %v17443_v36  ;;  %17027 = vmatprep.mubr.msk.f32.mxu1 %vm8083_vm1, %v15468_v55  ;;  %v15498_v55 = vld [vmem:[%s21486_s3 + $0x110] sm:$0xff]  ;;  %v18253_v36 = vpop.permute.xlu1 %18252 }
 0x679   :  { %17451 = vmatprep.subr.msk.bf16.mxu1 %vm20212_vm3, %v17449_v25  ;;  %v18255_v47 = vunpack.i.h.bf16 %v18253_v36 }
 0x67b   :  { %16887 = vmatmul.mubr.msk.f32.vlgmr.msra.gmra.mrb[6].mxu0 %vm8083_vm1, %v15479_v19 }
 0x67c   :  { %17332 = vmatpush3.bf16.msk.msra.mxu0 %vm20212_vm3, %v17327_v16  ;;  %16893 = vmatprep.mubr.msk.f32.mxu0 %vm8083_vm1, %v15483_v13  ;;  %v18260_v16 = vunpack.i.h.bf16 %v18258_v53 }
 0x67d   :  { %17335 = vmatprep.subr.msk.bf16.mxu0 %vm20212_vm3, %v17333_v7 }
 0x67f   :  { %17028 = vmatmul.mubr.msk.f32.vlgmr.msra.gmra.mrb[4].mxu1 %vm8083_vm1, %v15469_v54  ;;  %v15499_v54 = vld [vmem:[%s21486_s3 + $0x118] sm:$0x3] }
 0x680   :  { %17454 = vmatpush3.bf16.msk.msra.mxu1 %vm20212_vm3, %v17449_v25  ;;  %17034 = vmatprep.mubr.msk.f32.mxu1 %vm8083_vm1, %v15473_v38  ;;  %v15503_v38 = vld [vmem:[%s21486_s3 + $0x120] sm:$0xff]  ;;  %v17491_v25 = vpack.c.bf16 %v18260_v16, %v18259_v58  ;;  %v15589_v16 = vld [vmem:[%s21487_s4 + $0x10] sm:$0xff] }
 0x681   :  { %17457 = vmatprep.subr.msk.bf16.mxu1 %vm20212_vm3, %v17455_v20 }
 0x683   :  { %16894 = vmatmul.mubr.msk.f32.vlgmr.msra.gmra.mrb[6].mxu0 %vm8083_vm1, %v15484_v60 }
 0x684   :  { %17338 = vmatpush3.bf16.msk.msra.mxu0 %vm20212_vm3, %v17333_v7  ;;  %16900 = vmatprep.mubr.msk.f32.mxu0 %vm8083_vm1, %v15488_v62 }
 0x685   :  { %17341 = vmatprep.subr.msk.bf16.mxu0 %vm20212_vm3, %v17339_v52 }
 0x687   :  { %17035 = vmatmul.mubr.msk.f32.vlgmr.msra.gmra.mrb[4].mxu1 %vm8083_vm1, %v15474_v10  ;;  %v18254_v10 = vunpack.i.l.bf16 %v18253_v36 }
 0x688   :  { %17460 = vmatpush3.bf16.msk.msra.mxu1 %vm20212_vm3, %v17455_v20  ;;  %17041 = vmatprep.mubr.msk.f32.mxu1 %vm8083_vm1, %v15478_v30 }
 0x689   :  { %17463 = vmatprep.subr.msk.bf16.mxu1 %vm20212_vm3, %v17461_v5  ;;  %v17485_v30 = vpack.c.bf16 %v18255_v47, %v18254_v10 }
 0x68b   :  { %16901 = vmatmul.mubr.msk.f32.vlgmr.msra.gmra.mrb[6].mxu0 %vm8083_vm1, %v15489_v46 }
 0x68c   :  { %17344 = vmatpush3.bf16.msk.msra.mxu0 %vm20212_vm3, %v17339_v52  ;;  %16907 = vmatprep.mubr.msk.f32.mxu0 %vm8083_vm1, %v15493_v59 }
 0x68d   :  { %17347 = vmatprep.subr.msk.bf16.mxu0 %vm20212_vm3, %v17345_v34 }
 0x68f   :  { %17042 = vmatmul.mubr.msk.f32.vlgmr.msra.gmra.mrb[4].mxu1 %vm8083_vm1, %v15479_v19  ;;  %v21779_v19 = vld [vmem:[#allocation7_spill] sm:$0xff] }
 0x690   :  { %17466 = vmatpush3.bf16.msk.msra.mxu1 %vm20212_vm3, %v17461_v5  ;;  %17048 = vmatprep.mubr.msk.f32.mxu1 %vm8083_vm1, %v15483_v13 }
 0x691   :  { %17469 = vmatprep.subr.msk.bf16.mxu1 %vm20212_vm3, %v17467_v51 }
 0x693   :  { %16908 = vmatmul.mubr.msk.f32.vlgmr.msra.gmra.mrb[6].mxu0 %vm8083_vm1, %v15494_v40 }
 0x694   :  { %17350 = vmatpush3.bf16.msk.msra.mxu0 %vm20212_vm3, %v17345_v34  ;;  %16914 = vmatprep.mubr.msk.f32.mxu0 %vm8083_vm1, %v15498_v55 }
 0x695   :  { %17353 = vmatprep.subr.msk.bf16.mxu0 %vm20212_vm3, %v17351_v22 }
 0x697   :  { %17049 = vmatmul.mubr.msk.f32.vlgmr.msra.gmra.mrb[4].mxu1 %vm8083_vm1, %v15484_v60 }
 0x698   :  { %17472 = vmatpush3.bf16.msk.msra.mxu1 %vm20212_vm3, %v17467_v51  ;;  %17055 = vmatprep.mubr.msk.f32.mxu1 %vm8083_vm1, %v15488_v62 }
 0x699   :  { %17475 = vmatprep.subr.msk.bf16.mxu1 %vm20212_vm3, %v17473_v35 }
 0x69b   :  { %16915 = vmatmul.mubr.msk.f32.vlgmr.msra.gmra.mrb[6].mxu0 %vm8083_vm1, %v15499_v54 }
 0x69c   :  { %17356 = vmatpush3.bf16.msk.msra.mxu0 %vm20212_vm3, %v17351_v22  ;;  %16921 = vmatprep.mubr.msk.f32.mxu0 %vm8083_vm1, %v15503_v38 }
 0x69d   :  { %17359 = vmatprep.subr.msk.bf16.mxu0 %vm20212_vm3, %v17357_v48 }
 0x69f   :  { %17056 = vmatmul.mubr.msk.f32.vlgmr.msra.gmra.mrb[4].mxu1 %vm8083_vm1, %v15489_v46 }
 0x6a0   :  { %17478 = vmatpush3.bf16.msk.msra.mxu1 %vm20212_vm3, %v17473_v35  ;;  %17062 = vmatprep.mubr.msk.f32.mxu1 %vm8083_vm1, %v15493_v59 }
 0x6a1   :  { %17481 = vmatprep.subr.msk.bf16.mxu1 %vm20212_vm3, %v17479_v31 }
 0x6a3   :  { %16922 = vmatmul.mubr.msk.f32.vlgmr.msra.gmra.mrb[6].mxu0 %vm8083_vm1, %v15504_v26 }
 0x6a4   :  { %17362 = vmatpush3.bf16.msk.msra.mxu0 %vm20212_vm3, %v17357_v48  ;;  %16928 = vmatprep.mubr.msk.f32.mxu0 %vm8083_vm1, %v15508_v41 }
 0x6a5   :  { %17364 = vmatprep.subr.msk.bf16.mxu0 %vm18991_vm10, %v21720_v4 }
 0x6a7   :  { %17063 = vmatmul.mubr.msk.f32.vlgmr.msra.gmra.mrb[4].mxu1 %vm8083_vm1, %v15494_v40 }
 0x6a8   :  { %17484 = vmatpush3.bf16.msk.msra.mxu1 %vm20212_vm3, %v17479_v31  ;;  %17069 = vmatprep.mubr.msk.f32.mxu1 %vm8083_vm1, %v15498_v55 }
 0x6a9   :  { %17487 = vmatprep.subr.msk.bf16.mxu1 %vm20212_vm3, %v17485_v30 }
 0x6ab   :  { %16929 = vmatmul.mubr.msk.f32.vlgmr.msra.gmra.mrb[6].mxu0 %vm8083_vm1, %v15509_v15 }
 0x6ac   :  { %17366 = vmatpush3.bf16.msk.msra.mxu0 %vm18991_vm10, %v21720_v4 }
 0x6ad   :  { %17368 = vmatprep.subr.msk.bf16.mxu0 %vm19008_vm13, %v21720_v4 }
 0x6af   :  { %17070 = vmatmul.mubr.msk.f32.vlgmr.msra.gmra.mrb[4].mxu1 %vm8083_vm1, %v15499_v54 }
 0x6b0   :  { %17490 = vmatpush3.bf16.msk.msra.mxu1 %vm20212_vm3, %v17485_v30  ;;  %17076 = vmatprep.mubr.msk.f32.mxu1 %vm8083_vm1, %v15503_v38 }
 0x6b1   :  { %17493 = vmatprep.subr.msk.bf16.mxu1 %vm20212_vm3, %v17491_v25  ;;  %17370 = vmatpush3.bf16.msk.msra.mxu0 %vm19008_vm13, %v21720_v4 }
 0x6b2   :  { %17373 = vmatprep.subr.msk.bf16.mxu0 %vm20664_vm14, %v21779_v19 }
 0x6b5   :  { %17376 = vmatpush3.bf16.msk.msra.mxu0 %vm20664_vm14, %v21779_v19 }
 0x6b6   :  { %17498 = vmatprep.subr.msk.bf16.mxu0 %vm18991_vm10, %v21720_v4 }
 0x6b7   :  { %17077 = vmatmul.mubr.msk.f32.vlgmr.msra.gmra.mrb[4].mxu1 %vm8083_vm1, %v15504_v26 }
 0x6b8   :  { %17496 = vmatpush3.bf16.msk.msra.mxu1 %vm20212_vm3, %v17491_v25  ;;  %17083 = vmatprep.mubr.msk.f32.mxu1 %vm8083_vm1, %v15508_v41 }
 0x6bf   :  { %17084 = vmatmul.mubr.msk.f32.vlgmr.msra.gmra.mrb[4].mxu1 %vm8083_vm1, %v15509_v15 }
 0x6c0   :  { %17142 = vmatprep.mubr.msk.f32.mxu1 %vm8083_vm1, %v15589_v16 }
 0x77e   :  { %v16930_v13 = vpop.f32.mrb[6].mxu0 }
 0x77f   :  { %v9914_v0 = vpop.f32.mrb[7].mxu0 }
 0x780   :  { %16943 = vmatprep.mubr.msk.f32.mxu0 %vm9925_vm4, %v9914_v0 }
 0x781   :  { %16944 = vmatmul.mubr.msk.f32.vlgmr.msra.gmra.mrb[8].mxu0 %vm9925_vm4, %v16930_v13 }
 0x782   :  { %17500 = vmatpush3.bf16.msk.msra.mxu0 %vm18991_vm10, %v21720_v4 }
 0x783   :  { %17502 = vmatprep.subr.msk.bf16.mxu0 %vm19008_vm13, %v21720_v4 }
 0x786   :  { %17504 = vmatpush3.bf16.msk.msra.mxu0 %vm19008_vm13, %v21720_v4 }
 0x787   :  { %17507 = vmatprep.subr.msk.bf16.mxu0 %vm20664_vm14, %v21779_v19 }
 0x78a   :  { %17510 = vmatpush3.bf16.msk.msra.mxu0 %vm20664_vm14, %v21779_v19 }
 0x792   :  { %v17085_v6 = vpop.f32.mrb[4].mxu1 }
 0x793   :  { %v11672_v7 = vpop.f32.mrb[5].mxu1 }
 0x794   :  { %17098 = vmatprep.mubr.msk.f32.mxu0 %vm9925_vm4, %v11672_v7 }
 0x795   :  { %17099 = vmatmul.mubr.msk.f32.vlgmr.msra.gmra.mrb[10].mxu0 %vm9925_vm4, %v17085_v6 }
 0x796   :  { %17105 = vmatprep.mubr.msk.f32.mxu0 %vm8083_vm1, %v15589_v16  ;;  %v20840_v16 = vld [vmem:[%s21488_s5 + $0x8] sm:$0xff] }
 0x854   :  { %v16945_v1 = vpop.f32.mrb[8].mxu0 }
 0x855   :  { %v10001_v20 = vpop.f32.mrb[9].mxu0  ;;  %v11769_v2 = vsel %vm11768_vm7, %v16945_v1, 0.0  ;;  %v11773_v28 = vmul.f32 %v16945_v1, %v16945_v1 }
 0x856   :  { %v11772_v61 = vmul.f32 %v10001_v20, %v10001_v20  ;;  %11770 = vadd.xlane.f32.xlu0 %v11769_v2  ;;  %v11765_v12 = vsel %vm11764_vm12, %v10001_v20, 0.0 }
 0x857   :  { %11766 = vadd.xlane.f32.xlu1 %v11765_v12  ;;  %v11777_v62 = vsel %vm11768_vm7, %v11773_v28, 0.0 }
 0x858   :  { %v11774_v60 = vsel %vm11764_vm12, %v11772_v61, 0.0 }
 0x85a   :  { %11775 = vadd.xlane.f32.xlu0 %v11774_v60 }
 0x85b   :  { %11778 = vadd.xlane.f32.xlu1 %v11777_v62 }
 0x868   :  { %v17100_v39 = vpop.f32.mrb[10].mxu0 }
 0x869   :  { %v11789_v43 = vmul.f32 %v17100_v39, %v17100_v39  ;;  %v11755_v52 = vpop.f32.mrb[11].mxu0  ;;  %v11783_v29 = vsel %vm11768_vm7, %v17100_v39, 0.0 }
 0x86a   :  { %v11788_v5 = vmul.f32 %v11755_v52, %v11755_v52  ;;  %11784 = vadd.xlane.f32.xlu1 %v11783_v29  ;;  %v11780_v44 = vsel %vm11764_vm12, %v11755_v52, 0.0 }
 0x86b   :  { %11781 = vadd.xlane.f32.xlu0 %v11780_v44  ;;  %v11793_v32 = vsel %vm11768_vm7, %v11789_v43, 0.0  ;;  %v15590_v44 = vld [vmem:[%s21487_s4 + $0x18] sm:$0x3] }
 0x86c   :  { %v11790_v14 = vsel %vm11764_vm12, %v11788_v5, 0.0 }
 0x86e   :  { %11794 = vadd.xlane.f32.xlu1 %v11793_v32 }
 0x86f   :  { %11791 = vadd.xlane.f32.xlu0 %v11790_v14 }
 0x8e3   :  { %v11771_v59 = vpop.xlane.xlu0 %11770 }
 0x8e4   :  { %v11767_v46 = vpop.xlane.xlu1 %11766 }
 0x8e7   :  { %v11776_v57 = vpop.xlane.xlu0 %11775 }
 0x8e8   :  { %v11779_v49 = vpop.xlane.xlu1 %11778 }
 0x8f7   :  { %v11785_v34 = vpop.xlane.xlu1 %11784 }
 0x8f8   :  { %v11787_v37 = vadd.f32 %v11785_v34, %v11771_v59  ;;  %v11782_v51 = vpop.xlane.xlu0 %11781 }
 0x8f9   :  { %v11786_v50 = vadd.f32 %v11782_v51, %v11767_v46  ;;  %v11824_v46 = vld [vmem:[%s21487_s4] sm:$0xff] }
 0x8fa   :  { %v11799_v3 = vmul.f32 0.022727273, %v11787_v37 }
 0x8fb   :  { %v11798_v42 = vmul.f32 0.022727273, %v11786_v50  ;;  %v11795_v40 = vpop.xlane.xlu1 %11794  ;;  %v11825_v50 = vld [vmem:[%s21487_s4 + $0x8] sm:$0x3] }
 0x8fc   :  { %v11797_v55 = vadd.f32 %v11795_v40, %v11779_v49  ;;  %v11792_v45 = vpop.xlane.xlu0 %11791  ;;  %v11803_v22 = vmul.f32 %v11799_v3, %v11799_v3  ;;  %v11813_v48 = vsub.f32 %v16945_v1, %v11799_v3  ;;  %v11819_v31 = vsub.f32 %v17100_v39, %v11799_v3  ;;  %v15597_v40 = vld [vmem:[%s21487_s4 + $0x20] sm:$0xff] }
 0x8fd   :  { %v11796_v56 = vadd.f32 %v11792_v45, %v11776_v57  ;;  %v11802_v35 = vmul.f32 %v11798_v42, %v11798_v42  ;;  %v11812_v26 = vsub.f32 %v10001_v20, %v11798_v42  ;;  %v11818_v41 = vsub.f32 %v11755_v52, %v11798_v42  ;;  %v15602_v45 = vld [vmem:[%s21487_s4 + $0x30] sm:$0xff] }
 0x8fe   :  { %v11801_v27 = vmul.f32 0.022727273, %v11797_v55  ;;  %v15598_v55 = vld [vmem:[%s21487_s4 + $0x28] sm:$0x3] }
 0x8ff   :  { %v11800_v8 = vmul.f32 0.022727273, %v11796_v56  ;;  %v15603_v56 = vld [vmem:[%s21487_s4 + $0x38] sm:$0x3] }
 0x900   :  { %v11805_v33 = vsub.f32 %v11801_v27, %v11803_v22  ;;  %v21780_v22 = vmov 0.0   ;;  %v21781_v27 = vld [vmem:[#allocation5_spill] sm:$0xff] }
 0x901   :  { %v11804_v21 = vsub.f32 %v11800_v8, %v11802_v35  ;;  %vm21782_vm13 = vcmp.eq.s32.totalorder %v21781_v27, %v21774_v18 }
 0x902   :  { %v11807_v54 = vmax.f32 %v11805_v33, 0.0  ;;  %v15014_v35 = vsel %vm21782_vm13, 1.0, %v21780_v22 }
 0x903   :  { %v11806_v38 = vmax.f32 %v11804_v21, 0.0 }
 0x904   :  { %v11809_v9 = vadd.f32 1e-05, %v11807_v54 }
 0x905   :  { %v11808_v17 = vadd.f32 1e-05, %v11806_v38 }
 0x906   :  { %18293 = vrsqrt.f32 %v11809_v9 }
 0x907   :  { %18295 = vrsqrt.f32 %v11808_v17 }
 0x910   :  { %v18294_v36 = vpop.eup %18293 }
 0x911   :  { %v18296_v47 = vpop.eup %18295  ;;  %v11815_v10 = vmul.f32 %v18294_v36, %v11813_v48  ;;  %v11821_v30 = vmul.f32 %v18294_v36, %v11819_v31 }
 0x912   :  { %v11814_v53 = vmul.f32 %v18296_v47, %v11812_v26  ;;  %v11820_v15 = vmul.f32 %v18296_v47, %v11818_v41 }
 0x913   :  { %v11823_v58 = vmax.f32 %v11821_v30, 0.0  ;;  %v11817_v25 = vmax.f32 %v11815_v10, 0.0 }
 0x914   :  { %v11822_v63 = vmax.f32 %v11820_v15, 0.0  ;;  %v11816_v11 = vmax.f32 %v11814_v53, 0.0 }
 0x916   :  { %v18266_v19 = vpack.i.bf16 %v11823_v58, %v11822_v63  ;;  %v18261_v13 = vpack.i.bf16 %v11817_v25, %v11816_v11  ;;  %v17517_v0 = vpack.c.bf16 %v11817_v25, %v11816_v11  ;;  %v17545_v6 = vpack.c.bf16 %v11823_v58, %v11822_v63  ;;  %v12772_v58 = vld [vmem:[%s21488_s5 + $0x18] sm:$0x3]  ;;  %v20849_v63 = vld [vmem:[%s21488_s5] sm:$0xff]  ;;  %v12771_v11 = vld [vmem:[%s21488_s5 + $0x10] sm:$0x3] }
 0x917   :  { %v17567_v25 = vpack.c.bf16 %v12772_v58, %v20840_v16  ;;  %v20968_v58 = vld [vmem:[%s21488_s5 + $0x88] sm:$0xff] }
 0x918   :  { %18267 = vrot.lane.b32.xlu1 %v18266_v19, %s21700_s29  ;;  %18262 = vrot.lane.b32.xlu0 %v18261_v13, %s21700_s29 }
 0x91c   :  { %18272 = vrot.lane.b32.xlu1 %v18261_v13, %s18366_s15  ;;  %18277 = vrot.lane.b32.xlu0 %v18266_v19, %s18366_s15 }
 0x920   :  { %18282 = vrot.lane.b32.xlu1 %v18261_v13, %s18365_s14  ;;  %18287 = vrot.lane.b32.xlu0 %v18266_v19, %s18365_s14  ;;  %v20857_v19 = vld [vmem:[%s21488_s5 + $0x28] sm:$0xff]  ;;  %v17570_v13 = vpack.c.bf16 %v12771_v11, %v20849_v63  ;;  %v20977_v11 = vld [vmem:[%s21488_s5 + $0x60] sm:$0xff] }
 0x98a   :  { %v18268_v7 = vpop.permute.xlu1 %18267  ;;  %v18263_v1 = vpop.permute.xlu0 %18262 }
 0x98b   :  { %v18270_v20 = vunpack.i.h.bf16 %v18268_v7  ;;  %v18269_v2 = vunpack.i.l.bf16 %v18268_v7  ;;  %v18265_v28 = vunpack.i.h.bf16 %v18263_v1  ;;  %v18264_v61 = vunpack.i.l.bf16 %v18263_v1  ;;  %v15634_v7 = vld [vmem:[%s21488_s5 + $0x30] sm:$0x3] }
 0x98d   :  { %v17539_v12 = vpack.c.bf16 %v18270_v20, %v18269_v2  ;;  %v17511_v60 = vpack.c.bf16 %v18265_v28, %v18264_v61  ;;  %v20878_v2 = vld [vmem:[%s21488_s5 + $0x48] sm:$0xff]  ;;  %v15642_v28 = vld [vmem:[%s21488_s5 + $0x58] sm:$0x3] }
 0x98e   :  { %v18273_v62 = vpop.permute.xlu1 %18272  ;;  %v18278_v39 = vpop.permute.xlu0 %18277  ;;  %v17579_v61 = vpack.c.bf16 %v15642_v28, %v20878_v2 }
 0x98f   :  { %v18275_v43 = vunpack.i.h.bf16 %v18273_v62  ;;  %v18274_v52 = vunpack.i.l.bf16 %v18273_v62  ;;  %v18280_v29 = vunpack.i.h.bf16 %v18278_v39  ;;  %v18279_v5 = vunpack.i.l.bf16 %v18278_v39  ;;  %17513 = vmatprep.subr.msk.bf16.mxu0 %vm20212_vm3, %v17511_v60  ;;  %17541 = vmatprep.subr.msk.bf16.mxu1 %vm20212_vm3, %v17539_v12  ;;  %v20906_v39 = vld [vmem:[%s21488_s5 + $0x18] sm:$0x3] }
 0x990   :  { %17516 = vmatpush3.bf16.msk.msra.mxu0 %vm20212_vm3, %v17511_v60  ;;  %17544 = vmatpush3.bf16.msk.msra.mxu1 %vm20212_vm3, %v17539_v12  ;;  %v20891_v12 = vld [vmem:[%s21488_s5 + $0x68] sm:$0xff]  ;;  %v15649_v60 = vld [vmem:[%s21488_s5 + $0x78] sm:$0x3] }
 0x991   :  { %17519 = vmatprep.subr.msk.bf16.mxu0 %vm20212_vm3, %v17517_v0  ;;  %17547 = vmatprep.subr.msk.bf16.mxu1 %vm20212_vm3, %v17545_v6  ;;  %v17523_v32 = vpack.c.bf16 %v18275_v43, %v18274_v52  ;;  %v17551_v14 = vpack.c.bf16 %v18280_v29, %v18279_v5  ;;  %v17585_v62 = vpack.c.bf16 %v15649_v60, %v20891_v12  ;;  %v20911_v43 = vld [vmem:[%s21488_s5 + $0x10] sm:$0x3]  ;;  %v20920_v5 = vld [vmem:[%s21488_s5 + $0x38] sm:$0x3] }
 0x992   :  { %v18283_v59 = vpop.permute.xlu1 %18282  ;;  %v18288_v49 = vpop.permute.xlu0 %18287  ;;  %v17663_v52 = vpack.c.bf16 %v20906_v39, %v20840_v16  ;;  %v17666_v29 = vpack.c.bf16 %v20911_v43, %v20849_v63  ;;  %v15655_v60 = vld [vmem:[%s21488_s5 + $0x90] sm:$0x3]  ;;  %v12750_v43 = vld [vmem:[%s21489_s7 + $0x38] sm:$0xff] }
 0x993   :  { %17106 = vmatmul.mubr.msk.f32.vlgmr.msra.gmra.mrb[12].mxu0 %vm8083_vm1, %v15590_v44  ;;  %17143 = vmatmul.mubr.msk.f32.vlgmr.msra.gmra.mrb[6].mxu1 %vm8083_vm1, %v15590_v44  ;;  %v18285_v57 = vunpack.i.h.bf16 %v18283_v59  ;;  %v18284_v34 = vunpack.i.l.bf16 %v18283_v59  ;;  %v18290_v37 = vunpack.i.h.bf16 %v18288_v49  ;;  %v18289_v51 = vunpack.i.l.bf16 %v18288_v49  ;;  %v20925_v44 = vld [vmem:[%s21488_s5 + $0x30] sm:$0x3]  ;;  %v20941_v49 = vld [vmem:[%s21488_s5 + $0x78] sm:$0x3] }
 0x994   :  { %17522 = vmatpush3.bf16.msk.msra.mxu0 %vm20212_vm3, %v17517_v0  ;;  %17550 = vmatpush3.bf16.msk.msra.mxu1 %vm20212_vm3, %v17545_v6  ;;  %v15635_v0 = vld [vmem:[%s21488_s5 + $0x38] sm:$0x3]  ;;  %v20866_v6 = vld [vmem:[%s21488_s5 + $0x20] sm:$0xff]  ;;  %v15708_v39 = vld [vmem:[%s21488_s5 + $0x50] sm:$0x3] }
 0x995   :  { %17525 = vmatprep.subr.msk.bf16.mxu0 %vm20212_vm3, %v17523_v32  ;;  %17553 = vmatprep.subr.msk.bf16.mxu1 %vm20212_vm3, %v17551_v14  ;;  %v17529_v3 = vpack.c.bf16 %v18285_v57, %v18284_v34  ;;  %v17557_v42 = vpack.c.bf16 %v18290_v37, %v18289_v51  ;;  %v17573_v1 = vpack.c.bf16 %v15635_v0, %v20857_v19 }
 0x996   :  { %17112 = vmatprep.mubr.msk.f32.mxu0 %vm8083_vm1, %v11824_v46  ;;  %17149 = vmatprep.mubr.msk.f32.mxu1 %vm8083_vm1, %v11824_v46  ;;  %v17576_v20 = vpack.c.bf16 %v15634_v7, %v20866_v6  ;;  %v20934_v46 = vld [vmem:[%s21488_s5 + $0x58] sm:$0x3]  ;;  %v17681_v57 = vpack.c.bf16 %v20941_v49, %v20891_v12  ;;  %v20986_v7 = vld [vmem:[%s21488_s5 + $0xa8] sm:$0xff] }
 0x997   :  { %v17675_v59 = vpack.c.bf16 %v20934_v46, %v20878_v2  ;;  %v15722_v46 = vld [vmem:[%s21488_s5 + $0x90] sm:$0x3] }
 0x99b   :  { %17113 = vmatmul.mubr.msk.f32.vlgmr.msra.gmra.mrb[12].mxu0 %vm8083_vm1, %v11825_v50  ;;  %17150 = vmatmul.mubr.msk.f32.vlgmr.msra.gmra.mrb[6].mxu1 %vm8083_vm1, %v11825_v50 }
 0x99c   :  { %17528 = vmatpush3.bf16.msk.msra.mxu0 %vm20212_vm3, %v17523_v32  ;;  %17556 = vmatpush3.bf16.msk.msra.mxu1 %vm20212_vm3, %v17551_v14  ;;  %v17669_v32 = vpack.c.bf16 %v20920_v5, %v20857_v19  ;;  %v17672_v14 = vpack.c.bf16 %v20925_v44, %v20866_v6  ;;  %v12749_v19 = vld [vmem:[%s21489_s7 + $0x30] sm:$0xff]  ;;  %v15723_v6 = vld [vmem:[%s21488_s5 + $0x98] sm:$0x3] }
 0x99d   :  { %17531 = vmatprep.subr.msk.bf16.mxu0 %vm20212_vm3, %v17529_v3  ;;  %17559 = vmatprep.subr.msk.bf16.mxu1 %vm20212_vm3, %v17557_v42  ;;  %v15715_v5 = vld [vmem:[%s21488_s5 + $0x70] sm:$0x3]  ;;  %v21226_v44 = vpack.c.bf16 %v12750_v43, %v12749_v19  ;;  %v12766_v43 = vld [vmem:[%s21489_s7 + $0xb8] sm:$0xff] }
 0x99e   :  { %17119 = vmatprep.mubr.msk.f32.mxu0 %vm8083_vm1, %v15597_v40  ;;  %17156 = vmatprep.mubr.msk.f32.mxu1 %vm8083_vm1, %v15597_v40  ;;  %v17684_v2 = vpack.c.bf16 %v15715_v5, %v20977_v11  ;;  %v12765_v19 = vld [vmem:[%s21489_s7 + $0xb0] sm:$0xff]  ;;  %v14_v5 = vstv %s21490_s8 }
 0x99f   :  { %15 = vst [vmem:[#allocation2] sm:$0x1] %v14_v5 }
 0x9a3   :  { %17120 = vmatmul.mubr.msk.f32.vlgmr.msra.gmra.mrb[12].mxu0 %vm8083_vm1, %v15598_v55  ;;  %17157 = vmatmul.mubr.msk.f32.vlgmr.msra.gmra.mrb[6].mxu1 %vm8083_vm1, %v15598_v55 }
 0x9a4   :  { %17534 = vmatpush3.bf16.msk.msra.mxu0 %vm20212_vm3, %v17529_v3  ;;  %17562 = vmatpush3.bf16.msk.msra.mxu1 %vm20212_vm3, %v17557_v42 }
 0x9a5   :  { %17126 = vmatprep.mubr.msk.f32.mxu0 %vm8083_vm1, %v15602_v45  ;;  %17163 = vmatprep.mubr.msk.f32.mxu1 %vm8083_vm1, %v15602_v45 }
 0x9a6   :  { %17536 = vmatprep.subr.msk.bf16.mxu0 %vm18991_vm10, %v21720_v4  ;;  %17575 = vmatprep.subr.msk.bf16.mxu1 %vm20212_vm3, %v17573_v1  ;;  %v15663_v1 = vld [vmem:[%s21488_s5 + $0xb8] sm:$0x3] }
 0x9ab   :  { %17127 = vmatmul.mubr.msk.f32.vlgmr.msra.gmra.mrb[12].mxu0 %vm8083_vm1, %v15603_v56  ;;  %17164 = vmatmul.mubr.msk.f32.vlgmr.msra.gmra.mrb[6].mxu1 %vm8083_vm1, %v15603_v56 }
 0x9ac   :  { %17538 = vmatpush3.bf16.msk.msra.mxu0 %vm18991_vm10, %v21720_v4  ;;  %12950 = vmatprep.mubr.f32.mxu1 %v21780_v22 }
 0x9ad   :  { %17133 = vmatprep.subr.msk.mxu0 %vm21783_vm9, %v15014_v35  ;;  %17578 = vmatpush1.bf16.msk.msra.mxu1 %vm20212_vm3, %v17576_v20 }
 0x9ae   :  { %17587 = vmatprep.subr.msk.bf16.mxu1 %vm20212_vm3, %v17585_v62 }
 0x9b0   :  { %17134 = vmatpush3.msk.msra.mxu0 %vm21784_vm8, %v15014_v35 }
 0x9b1   :  { %17564 = vmatprep.subr.msk.bf16.mxu0 %vm18991_vm10, %v21720_v4 }
 0xa7e   :  { %v17128_v8 = vpop.f32.mrb[12].mxu0  ;;  %v17165_v33 = vpop.f32.mrb[6].mxu1 }
 0xa7f   :  { %v12177_v21 = vpop.f32.mrb[13].mxu0  ;;  %v12591_v54 = vpop.f32.mrb[7].mxu1 }
 0xa80   :  { %17135 = vmatprep.mubr.msk.f32.mxu0 %vm12188_vm6, %v12177_v21 }
 0xa81   :  { %17136 = vmatmul.mubr.msk.f32.vlgmr.msra.gmra.mrb[14].mxu0 %vm12188_vm6, %v17128_v8 }
 0xa82   :  { %17566 = vmatpush3.bf16.msk.msra.mxu0 %vm18991_vm10, %v21720_v4  ;;  %17172 = vmatprep.mubr.msk.f32.mxu0 %vm12188_vm6, %v12591_v54  ;;  %vm12686_vm10 = vcmask 74752  }
 0xa83   :  { %17170 = vmatprep.subr.msk.mxu0 %vm21785_vm5, %v15014_v35 }
 0xa86   :  { %17171 = vmatpush3.msk.msra.mxu0 %vm21786_vm11, %v15014_v35 }
 0xa87   :  { %17173 = vmatmul.mubr.msk.f32.vlgmr.msra.gmra.mrb[16].mxu0 %vm12188_vm6, %v17165_v33  ;;  %17569 = vmatprep.subr.msk.bf16.mxu0 %vm20212_vm3, %v17567_v25 }
 0xa88   :  { %12846 = vmatprep.mubr.f32.mxu0 %v21780_v22  ;;  %17572 = vmatpush1.bf16.msk.msra.mxu0 %vm20212_vm3, %v17570_v13  ;;  %v15648_v13 = vld [vmem:[%s21488_s5 + $0x70] sm:$0x3] }
 0xa89   :  { %17581 = vmatprep.subr.msk.bf16.mxu0 %vm20212_vm3, %v17579_v61  ;;  %v20997_v61 = vld [vmem:[%s21488_s5 + $0x80] sm:$0xff]  ;;  %v17588_v62 = vpack.c.bf16 %v15648_v13, %v20977_v11 }
 0xa8a   :  { %v17690_v12 = vpack.c.bf16 %v15722_v46, %v20997_v61 }
 0xb54   :  { %v20813_v18 = vpop.f32.mrb[14].mxu0 }
 0xb55   :  { %v20815_v38 = vpop.f32.mrb[15].mxu0  ;;  %v12691_v10 = vmul.f32 %v20813_v18, %v20813_v18  ;;  %v12687_v30 = vsel %vm12686_vm10, %v20813_v18, 0.0 }
 0xb56   :  { %v12683_v9 = vsel %vm8083_vm1, %v20815_v38, 0.0  ;;  %v12690_v4 = vmul.f32 %v20815_v38, %v20815_v38 }
 0xb57   :  { %12684 = vadd.xlane.f32.xlu1 %v12683_v9  ;;  %v12695_v15 = vsel %vm12686_vm10, %v12691_v10, 0.0 }
 0xb58   :  { %v12692_v26 = vsel %vm8083_vm1, %v12690_v4, 0.0 }
 0xb5a   :  { %v20819_v17 = vpop.f32.mrb[16].mxu0 }
 0xb5b   :  { %v20821_v24 = vpop.f32.mrb[17].mxu0  ;;  %v12707_v41 = vmul.f32 %v20819_v17, %v20819_v17  ;;  %v12701_v47 = vsel %vm12686_vm10, %v20819_v17, 0.0 }
 0xb5c   :  { %v12706_v48 = vmul.f32 %v20821_v24, %v20821_v24  ;;  %v12698_v31 = vsel %vm8083_vm1, %v20821_v24, 0.0 }
 0xb5d   :  { %12699 = vadd.xlane.f32.xlu0 %v12698_v31  ;;  %v12711_v53 = vsel %vm12686_vm10, %v12707_v41, 0.0 }
 0xb5e   :  { %v12708_v36 = vsel %vm8083_vm1, %v12706_v48, 0.0 }
 0xb5f   :  { %12709 = vadd.xlane.f32.xlu1 %v12708_v36 }
 0xb61   :  { %12693 = vadd.xlane.f32.xlu0 %v12692_v26 }
 0xb63   :  { %12702 = vadd.xlane.f32.xlu1 %v12701_v47 }
 0xb65   :  { %12688 = vadd.xlane.f32.xlu0 %v12687_v30  ;;  %v20958_v30 = vld [vmem:[%s21488_s5 + $0x40] sm:$0xff] }
 0xb67   :  { %12712 = vadd.xlane.f32.xlu1 %v12711_v53  ;;  %v15641_v53 = vld [vmem:[%s21488_s5 + $0x50] sm:$0x3] }
 0xb68   :  { %v17582_v0 = vpack.c.bf16 %v15641_v53, %v20958_v30  ;;  %v15691_v53 = vld [vmem:[%s21488_s5 + $0x138] sm:$0x3] }
 0xb69   :  { %12696 = vadd.xlane.f32.xlu0 %v12695_v15 }
 0xbe4   :  { %v12685_v34 = vpop.xlane.xlu1 %12684 }
 0xbea   :  { %v12700_v37 = vpop.xlane.xlu0 %12699 }
 0xbeb   :  { %v12704_v51 = vadd.f32 %v12700_v37, %v12685_v34  ;;  %v21006_v34 = vld [vmem:[%s21488_s5 + $0xc8] sm:$0xff]  ;;  %v15670_v37 = vld [vmem:[%s21488_s5 + $0xd8] sm:$0x3] }
 0xbec   :  { %v12710_v50 = vpop.xlane.xlu1 %12709 }
 0xbed   :  { %v20945_v3 = vmul.f32 0.05, %v12704_v51 }
 0xbee   :  { %v12694_v42 = vpop.xlane.xlu0 %12693 }
 0xbef   :  { %v12714_v40 = vadd.f32 %v12710_v50, %v12694_v42  ;;  %v12720_v55 = vmul.f32 %v20945_v3, %v20945_v3  ;;  %v12730_v10 = vsub.f32 %v20815_v38, %v20945_v3  ;;  %v15656_v38 = vld [vmem:[%s21488_s5 + $0x98] sm:$0x3]  ;;  %v17597_v50 = vpack.c.bf16 %v15663_v1, %v20986_v7  ;;  %v21018_v42 = vld [vmem:[%s21488_s5 + $0xa0] sm:$0xff]  ;;  %v15683_v1 = vld [vmem:[%s21488_s5 + $0x110] sm:$0x3] }
 0xbf0   :  { %v12703_v56 = vpop.xlane.xlu1 %12702  ;;  %v17591_v28 = vpack.c.bf16 %v15656_v38, %v20968_v58 }
 0xbf1   :  { %v12718_v45 = vmul.f32 0.05, %v12714_v40  ;;  %v15662_v40 = vld [vmem:[%s21488_s5 + $0xb0] sm:$0x3] }
 0xbf2   :  { %v12689_v27 = vpop.xlane.xlu0 %12688 }
 0xbf3   :  { %v12722_v35 = vsub.f32 %v12718_v45, %v12720_v55  ;;  %v12705_v8 = vadd.f32 %v12703_v56, %v12689_v27  ;;  %v17594_v55 = vpack.c.bf16 %v15655_v60, %v20997_v61  ;;  %v21030_v45 = vld [vmem:[%s21488_s5 + $0xe8] sm:$0xff]  ;;  %v15677_v56 = vld [vmem:[%s21488_s5 + $0xf8] sm:$0x3] }
 0xbf4   :  { %v12713_v4 = vpop.xlane.xlu1 %12712 }
 0xbf5   :  { %v12724_v33 = vmax.f32 %v12722_v35, 0.0  ;;  %v20949_v21 = vmul.f32 0.05, %v12705_v8  ;;  %v17603_v35 = vpack.c.bf16 %v15670_v37, %v21006_v34  ;;  %v21043_v8 = vld [vmem:[%s21488_s5 + $0xc0] sm:$0xff]  ;;  %v15690_v37 = vld [vmem:[%s21488_s5 + $0x130] sm:$0x3] }
 0xbf6   :  { %v12697_v54 = vpop.xlane.xlu0 %12696 }
 0xbf7   :  { %v12726_v9 = vadd.f32 1e-05, %v12724_v33  ;;  %v12715_v48 = vadd.f32 %v12713_v4, %v12697_v54  ;;  %v12721_v31 = vmul.f32 %v20949_v21, %v20949_v21  ;;  %v15669_v33 = vld [vmem:[%s21488_s5 + $0xd0] sm:$0x3]  ;;  %v17600_v54 = vpack.c.bf16 %v15662_v40, %v21018_v42  ;;  %v15684_v4 = vld [vmem:[%s21488_s5 + $0x118] sm:$0x3] }
 0xbf8   :  { %v12731_v38 = vsub.f32 %v20813_v18, %v20949_v21 }
 0xbf9   :  { %18297 = vrsqrt.f32 %v12726_v9  ;;  %v12719_v36 = vmul.f32 0.05, %v12715_v48  ;;  %v21055_v9 = vld [vmem:[%s21488_s5 + $0x108] sm:$0xff] }
 0xbfa   :  { %v17615_v13 = vpack.c.bf16 %v15684_v4, %v21055_v9  ;;  %v12736_v4 = vsub.f32 %v20821_v24, %v20945_v3 }
 0xbfb   :  { %v12723_v26 = vsub.f32 %v12719_v36, %v12721_v31  ;;  %v17609_v31 = vpack.c.bf16 %v15677_v56, %v21030_v45  ;;  %v21068_v36 = vld [vmem:[%s21488_s5 + $0xe0] sm:$0xff]  ;;  %v12744_v56 = vld [vmem:[%s21489_s7 + $0x8] sm:$0xff] }
 0xbfd   :  { %v12725_v41 = vmax.f32 %v12723_v26, 0.0  ;;  %v15676_v26 = vld [vmem:[%s21488_s5 + $0xf0] sm:$0x3] }
 0xbfe   :  { %v17612_v18 = vpack.c.bf16 %v15676_v26, %v21068_v36 }
 0xbff   :  { %v12727_v47 = vadd.f32 1e-05, %v12725_v41 }
 0xc01   :  { %18299 = vrsqrt.f32 %v12727_v47  ;;  %v17606_v47 = vpack.c.bf16 %v15669_v33, %v21043_v8 }
 0xc03   :  { %v20963_v15 = vpop.eup %18297 }
 0xc04   :  { %v12732_v25 = vmul.f32 %v20963_v15, %v12730_v10  ;;  %v21082_v10 = vld [vmem:[%s21488_s5 + $0x128] sm:$0xff]  ;;  %v12738_v24 = vmul.f32 %v20963_v15, %v12736_v4  ;;  %v12747_v15 = vld [vmem:[%s21489_s7 + $0x20] sm:$0xff]  ;;  %v12758_v4 = vld [vmem:[%s21489_s7 + $0x78] sm:$0xff] }
 0xc05   :  { %v17621_v60 = vpack.c.bf16 %v15691_v53, %v21082_v10  ;;  %v15736_v53 = vld [vmem:[%s21488_s5 + $0xd0] sm:$0x3] }
 0xc06   :  { %v20991_v20 = vmax.f32 %v12732_v25, 0.0  ;;  %v21184_v16 = vmax.f32 %v12738_v24, 0.0  ;;  %v12760_v24 = vld [vmem:[%s21489_s7 + $0x88] sm:$0xff] }
 0xc08   :  { %15631 = vmatmul.mubr.msk.f32.vlgmr.msra.gmra.mrb[18].mxu0 %vm8083_vm1, %v20991_v20  ;;  %v12877_v51 = vrot.slane %v20991_v20, 1  ;;  %v12981_v27 = vrot.slane %v20991_v20, 2  ;;  %v13085_v48 = vrot.slane %v20991_v20, 3  ;;  %v13189_v25 = vrot.slane %v20991_v20, 4 }
 0xc09   :  { %17584 = vmatpush1.bf16.msk.msra.mxu0 %vm20212_vm3, %v17582_v0  ;;  %13054 = vmatprep.mubr.f32.mxu0 %v21780_v22  ;;  %v21097_v0 = vld [vmem:[%s21488_s5 + $0x100] sm:$0xff]  ;;  %v13397_v40 = vrot.slane %v20991_v20, 6  ;;  %v14207_v49 = vrot.slane %v21184_v16, 3  ;;  %v14310_v61 = vrot.slane %v21184_v16, 4 }
 0xc0a   :  { %15638 = vmatmul.mubr.msk.f32.vlgmr.msra.gmra.mrb[8].mxu1 %vm8083_vm1, %v12877_v51  ;;  %17593 = vmatprep.subr.msk.bf16.mxu0 %vm20212_vm3, %v17591_v28  ;;  %v13293_v28 = vrot.slane %v20991_v20, 5 }
 0xc0b   :  { %17590 = vmatpush1.bf16.msk.msra.mxu1 %vm20212_vm3, %v17588_v62  ;;  %13158 = vmatprep.mubr.f32.mxu1 %v21780_v22  ;;  %v21073_v41 = vpop.eup %18299  ;;  %v21114_v62 = vld [vmem:[%s21488_s5 + $0x120] sm:$0xff] }
 0xc0c   :  { %15645 = vmatmul.mubr.msk.f32.vlgmr.msra.gmra.mrb[20].mxu0 %vm8083_vm1, %v12981_v27  ;;  %17599 = vmatprep.subr.msk.bf16.mxu1 %vm20212_vm3, %v17597_v50  ;;  %v12733_v51 = vmul.f32 %v21073_v41, %v12731_v38  ;;  %v17618_v50 = vpack.c.bf16 %v15683_v1, %v21097_v0  ;;  %v17624_v27 = vpack.c.bf16 %v15690_v37, %v21114_v62  ;;  %v15744_v38 = vld [vmem:[%s21488_s5 + $0xf8] sm:$0x3] }
 0xc0d   :  { %17596 = vmatpush1.bf16.msk.msra.mxu0 %vm20212_vm3, %v17594_v55  ;;  %13262 = vmatprep.mubr.f32.mxu0 %v21780_v22  ;;  %v12743_v55 = vld [vmem:[%s21489_s7] sm:$0xff]  ;;  %v15751_v1 = vld [vmem:[%s21488_s5 + $0x118] sm:$0x3]  ;;  %v12737_v37 = vsub.f32 %v20819_v17, %v20949_v21  ;;  %v15757_v17 = vld [vmem:[%s21488_s5 + $0x130] sm:$0x3] }
 0xc0e   :  { %15652 = vmatmul.mubr.msk.f32.vlgmr.msra.gmra.mrb[10].mxu1 %vm8083_vm1, %v13085_v48  ;;  %17605 = vmatprep.subr.msk.bf16.mxu0 %vm20212_vm3, %v17603_v35  ;;  %v13501_v35 = vrot.slane %v20991_v20, 7  ;;  %v12735_v33 = vmax.f32 %v12733_v51, 0.0  ;;  %v18412_v48 = vmov 0.0|0.0   ;;  %v12745_v20 = vld [vmem:[%s21489_s7 + $0x10] sm:$0xff]  ;;  %v17720_v21 = vpack.c.bf16 %v15757_v17, %v21114_v62 }
 0xc0f   :  { %17602 = vmatpush1.bf16.msk.msra.mxu1 %vm20212_vm3, %v17600_v54  ;;  %13366 = vmatprep.mubr.f32.mxu1 %v21780_v22  ;;  %v21145_v54 = vpack.c.bf16 %v12744_v56, %v12743_v55  ;;  %v12739_v51 = vmul.f32 %v21073_v41, %v12737_v37  ;;  %v12754_v55 = vld [vmem:[%s21489_s7 + $0x58] sm:$0xff] }
 0xc10   :  { %15659 = vmatmul.mubr.msk.f32.vlgmr.msra.gmra.mrb[22].mxu0 %vm8083_vm1, %v13189_v25  ;;  %17611 = vmatprep.subr.msk.bf16.mxu1 %vm20212_vm3, %v17609_v31  ;;  %v12746_v31 = vld [vmem:[%s21489_s7 + $0x18] sm:$0xff]  ;;  %v13709_v3 = vrot.slane %v12735_v33, 1  ;;  %v14413_v25 = vrot.slane %v21184_v16, 5 }
 0xc11   :  { %17608 = vmatpush1.bf16.msk.msra.mxu0 %vm20212_vm3, %v17606_v47  ;;  %13470 = vmatprep.mubr.f32.mxu0 %v21780_v22  ;;  %v21168_v26 = vpack.c.bf16 %v12746_v31, %v12745_v20  ;;  %v12748_v47 = vld [vmem:[%s21489_s7 + $0x28] sm:$0xff]  ;;  %v12759_v31 = vld [vmem:[%s21489_s7 + $0x80] sm:$0xff] }
 0xc12   :  { %15666 = vmatmul.mubr.msk.f32.vlgmr.msra.gmra.mrb[12].mxu1 %vm8083_vm1, %v13293_v28  ;;  %17617 = vmatprep.subr.msk.bf16.mxu0 %vm20212_vm3, %v17615_v13  ;;  %v21195_v63 = vpack.c.bf16 %v12748_v47, %v12747_v15  ;;  %v15743_v13 = vld [vmem:[%s21488_s5 + $0xf0] sm:$0x3]  ;;  %v12762_v15 = vld [vmem:[%s21489_s7 + $0x98] sm:$0xff] }
 0xc13   :  { %17614 = vmatpush1.bf16.msk.msra.mxu1 %vm20212_vm3, %v17612_v18  ;;  %13574 = vmatprep.mubr.f32.mxu1 %v21780_v22  ;;  %v14516_v18 = vrot.slane %v21184_v16, 6  ;;  %v15750_v28 = vld [vmem:[%s21488_s5 + $0x110] sm:$0x3] }
 0xc14   :  { %15673 = vmatmul.mubr.msk.f32.vlgmr.msra.gmra.mrb[24].mxu0 %vm8083_vm1, %v13397_v40  ;;  %17623 = vmatprep.subr.msk.bf16.mxu1 %vm20212_vm3, %v17621_v60  ;;  %v15758_v60 = vld [vmem:[%s21488_s5 + $0x138] sm:$0x3]  ;;  %v12753_v40 = vld [vmem:[%s21489_s7 + $0x50] sm:$0xff] }
 0xc15   :  { %17620 = vmatpush1.bf16.msk.msra.mxu0 %vm20212_vm3, %v17618_v50  ;;  %13678 = vmatprep.mubr.f32.mxu0 %v21780_v22  ;;  %v17717_v50 = vpack.c.bf16 %v15758_v60, %v21082_v10  ;;  %v12752_v10 = vld [vmem:[%s21489_s7 + $0x48] sm:$0xff]  ;;  %v17643_v56 = vpack.c.bf16 %v12754_v55, %v12753_v40 }
 0xc16   :  { %15680 = vmatmul.mubr.msk.f32.vlgmr.msra.gmra.mrb[14].mxu1 %vm8083_vm1, %v13501_v35  ;;  %17627 = vmatprep.subr.bf16.mxu0 %v18412_v48  ;;  %v17640_v62 = vpack.c.bf16 %v12752_v10, %v12751_v23  ;;  %v12756_v35 = vld [vmem:[%s21489_s7 + $0x68] sm:$0xff] }
 0xc17   :  { %17626 = vmatpush1.bf16.msk.msra.mxu1 %vm20212_vm3, %v17624_v27  ;;  %13782 = vmatprep.mubr.f32.mxu1 %v21780_v22  ;;  %v12755_v27 = vld [vmem:[%s21489_s7 + $0x60] sm:$0xff] }
 0xc18   :  { %15687 = vmatmul.mubr.msk.f32.vlgmr.msra.gmra.mrb[26].mxu0 %vm8083_vm1, %v12735_v33  ;;  %17665 = vmatprep.subr.msk.bf16.mxu1 %vm20212_vm3, %v17663_v52  ;;  %v17678_v52 = vpack.c.bf16 %v15708_v39, %v20958_v30  ;;  %v15729_v30 = vld [vmem:[%s21488_s5 + $0xb0] sm:$0x3]  ;;  %v17646_v33 = vpack.c.bf16 %v12756_v35, %v12755_v27  ;;  %v12764_v39 = vld [vmem:[%s21489_s7 + $0xa8] sm:$0xff] }
 0xc19   :  { %17629 = vmatpush1.bf16.msra.mxu0 %v21145_v54  ;;  %v17696_v11 = vpack.c.bf16 %v15729_v30, %v21018_v42  ;;  %v17702_v42 = vpack.c.bf16 %v15736_v53, %v21043_v8  ;;  %v17708_v8 = vpack.c.bf16 %v15743_v13, %v21068_v36  ;;  %v14619_v36 = vrot.slane %v21184_v16, 7 }
 0xc1a   :  { %15694 = vmatmul.mubr.msk.f32.vlgmr.msra.gmra.mrb[16].mxu1 %vm8083_vm1, %v13709_v3  ;;  %17630 = vmatprep.subr.bf16.mxu0 %v18412_v48  ;;  %v17652_v3 = vpack.c.bf16 %v12760_v24, %v12759_v31 }
 0xc1b   :  { %17668 = vmatpush1.bf16.msk.msra.mxu1 %vm20212_vm3, %v17666_v29  ;;  %13971 = vmatprep.mubr.f32.mxu1 %v21780_v22  ;;  %v14001_v29 = vrot.slane %v21184_v16, 1 }
 0xc1c   :  { %17671 = vmatprep.subr.msk.bf16.mxu1 %vm20212_vm3, %v17669_v32  ;;  %v14104_v32 = vrot.slane %v21184_v16, 2 }
 0xc1d   :  { %17632 = vmatpush1.bf16.msra.mxu0 %v21168_v26 }
 0xc1e   :  { %15698 = vmatmul.mubr.msk.f32.vlgmr.msra.gmra.mrb[18].mxu1 %vm8083_vm1, %v21184_v16  ;;  %17633 = vmatprep.subr.bf16.mxu0 %v18412_v48  ;;  %v12763_v16 = vld [vmem:[%s21489_s7 + $0xa0] sm:$0xff] }
 0xc1f   :  { %17674 = vmatpush1.bf16.msk.msra.mxu1 %vm20212_vm3, %v17672_v14  ;;  %14074 = vmatprep.mubr.f32.mxu1 %v21780_v22  ;;  %v17687_v14 = vpack.c.bf16 %v15723_v6, %v20968_v58  ;;  %v15737_v58 = vld [vmem:[%s21488_s5 + $0xd8] sm:$0x3]  ;;  %v18413_v6 = vmov 1966171168  }
 0xc20   :  { %17677 = vmatprep.subr.msk.bf16.mxu1 %vm20212_vm3, %v17675_v59  ;;  %v15730_v59 = vld [vmem:[%s21488_s5 + $0xb8] sm:$0x3] }
 0xc21   :  { %17635 = vmatpush1.bf16.msra.mxu0 %v21195_v63 }
 0xc22   :  { %15705 = vmatmul.mubr.msk.f32.vlgmr.msra.gmra.mrb[20].mxu1 %vm8083_vm1, %v14001_v29  ;;  %17636 = vmatprep.subr.bf16.mxu0 %v18412_v48  ;;  %v12767_v29 = vld [vmem:[%s21489_s7 + $0xc0] sm:$0xff] }
 0xc23   :  { %17680 = vmatpush1.bf16.msk.msra.mxu1 %vm20212_vm3, %v17678_v52  ;;  %14177 = vmatprep.mubr.f32.mxu1 %v21780_v22  ;;  %v17661_v52 = vpack.c.bf16 %v12766_v43, %v12765_v19 }
 0xc24   :  { %17683 = vmatprep.subr.msk.bf16.mxu1 %vm20212_vm3, %v17681_v57  ;;  %v17693_v57 = vpack.c.bf16 %v15730_v59, %v20986_v7  ;;  %v17699_v7 = vpack.c.bf16 %v15737_v58, %v21006_v34  ;;  %v17705_v34 = vpack.c.bf16 %v15744_v38, %v21030_v45  ;;  %v17711_v45 = vpack.c.bf16 %v15751_v1, %v21055_v9  ;;  %v21422_v58 = vld [vmem:[%s21491_s6] sm:$0x3] }
 0xc25   :  { %17638 = vmatpush1.bf16.msra.mxu0 %v21226_v44  ;;  %v17714_v9 = vpack.c.bf16 %v15750_v28, %v21097_v0  ;;  %v12741_v0 = vmax.f32 %v12739_v51, 0.0 }
 0xc26   :  { %15712 = vmatmul.mubr.msk.f32.vlgmr.msra.gmra.mrb[22].mxu1 %vm8083_vm1, %v14104_v32  ;;  %17639 = vmatprep.subr.bf16.mxu0 %v18412_v48 }
 0xc27   :  { %17686 = vmatpush1.bf16.msk.msra.mxu1 %vm20212_vm3, %v17684_v2  ;;  %14280 = vmatprep.mubr.f32.mxu1 %v21780_v22  ;;  %v14825_v41 = vrot.slane %v12741_v0, 1  ;;  %v21787_v2 = vld [vmem:[#allocation3_spill] sm:$0xff] }
 0xc28   :  { %17689 = vmatprep.subr.msk.bf16.mxu1 %vm20212_vm3, %v17687_v14 }
 0xc29   :  { %17641 = vmatpush1.bf16.msra.mxu0 %v17640_v62 }
 0xc2a   :  { %15719 = vmatmul.mubr.msk.f32.vlgmr.msra.gmra.mrb[24].mxu1 %vm8083_vm1, %v14207_v49  ;;  %17642 = vmatprep.subr.bf16.mxu0 %v18412_v48 }
 0xc2b   :  { %17692 = vmatpush1.bf16.msk.msra.mxu1 %vm20212_vm3, %v17690_v12  ;;  %14383 = vmatprep.mubr.f32.mxu1 %v21780_v22 }
 0xc2c   :  { %17695 = vmatprep.subr.msk.bf16.mxu1 %vm20212_vm3, %v17693_v57 }
 0xc2d   :  { %17644 = vmatpush1.bf16.msra.mxu0 %v17643_v56 }
 0xc2e   :  { %15726 = vmatmul.mubr.msk.f32.vlgmr.msra.gmra.mrb[26].mxu1 %vm8083_vm1, %v14310_v61  ;;  %17645 = vmatprep.subr.bf16.mxu0 %v18412_v48 }
 0xc2f   :  { %17698 = vmatpush1.bf16.msk.msra.mxu1 %vm20212_vm3, %v17696_v11  ;;  %14486 = vmatprep.mubr.f32.mxu1 %v21780_v22 }
 0xc30   :  { %17701 = vmatprep.subr.msk.bf16.mxu1 %vm20212_vm3, %v17699_v7 }
 0xc31   :  { %17647 = vmatpush1.bf16.msra.mxu0 %v17646_v33 }
 0xc32   :  { %15733 = vmatmul.mubr.msk.f32.vlgmr.msra.gmra.mrb[28].mxu1 %vm8083_vm1, %v14413_v25  ;;  %17648 = vmatprep.subr.bf16.mxu0 %v18412_v48 }
 0xc33   :  { %17704 = vmatpush1.bf16.msk.msra.mxu1 %vm20212_vm3, %v17702_v42  ;;  %14589 = vmatprep.mubr.f32.mxu1 %v21780_v22 }
 0xc34   :  { %17707 = vmatprep.subr.msk.bf16.mxu1 %vm20212_vm3, %v17705_v34 }
 0xc36   :  { %15740 = vmatmul.mubr.msk.f32.vlgmr.msra.gmra.mrb[30].mxu1 %vm8083_vm1, %v14516_v18 }
 0xc37   :  { %17710 = vmatpush1.bf16.msk.msra.mxu1 %vm20212_vm3, %v17708_v8  ;;  %14692 = vmatprep.mubr.f32.mxu1 %v21780_v22 }
 0xc38   :  { %17713 = vmatprep.subr.msk.bf16.mxu1 %vm20212_vm3, %v17711_v45 }
 0xc3a   :  { %15747 = vmatmul.mubr.msk.f32.vlgmr.msra.gmra.mrb[32].mxu1 %vm8083_vm1, %v14619_v36 }
 0xc3b   :  { %17716 = vmatpush1.bf16.msk.msra.mxu1 %vm20212_vm3, %v17714_v9  ;;  %14795 = vmatprep.mubr.f32.mxu1 %v21780_v22 }
 0xc3c   :  { %17719 = vmatprep.subr.msk.bf16.mxu1 %vm20212_vm3, %v17717_v50 }
 0xc3e   :  { %15754 = vmatmul.mubr.msk.f32.vlgmr.msra.gmra.mrb[34].mxu1 %vm8083_vm1, %v12741_v0 }
 0xc3f   :  { %17722 = vmatpush1.bf16.msk.msra.mxu1 %vm20212_vm3, %v17720_v21  ;;  %14898 = vmatprep.mubr.f32.mxu1 %v21780_v22  ;;  %vm13819_vm3 = vcmask 588800  }
 0xc40   :  { %17723 = vmatprep.subr.bf16.mxu1 %v18412_v48 }
 0xc42   :  { %15761 = vmatmul.mubr.msk.f32.vlgmr.msra.gmra.mrb[36].mxu1 %vm8083_vm1, %v14825_v41  ;;  %vm13892_vm1 = vcmask 0  }
 0xc43   :  { %17725 = vmatpush1.bf16.msra.mxu1 %v21145_v54  ;;  %v12757_v54 = vld [vmem:[%s21489_s7 + $0x70] sm:$0xff] }
 0xc44   :  { %17726 = vmatprep.subr.bf16.mxu1 %v18412_v48  ;;  %v17649_v20 = vpack.c.bf16 %v12758_v4, %v12757_v54 }
 0xc46   :  { %17650 = vmatpush1.bf16.msra.mxu0 %v17649_v20 }
 0xc47   :  { %17728 = vmatpush1.bf16.msra.mxu1 %v21168_v26  ;;  %17651 = vmatprep.subr.bf16.mxu0 %v18412_v48  ;;  %v12761_v26 = vld [vmem:[%s21489_s7 + $0x90] sm:$0xff] }
 0xc48   :  { %17729 = vmatprep.subr.bf16.mxu1 %v18412_v48  ;;  %v17655_v47 = vpack.c.bf16 %v12762_v15, %v12761_v26 }
 0xc4a   :  { %17653 = vmatpush1.bf16.msra.mxu0 %v17652_v3 }
 0xc4b   :  { %17731 = vmatpush1.bf16.msra.mxu1 %v21195_v63  ;;  %17654 = vmatprep.subr.bf16.mxu0 %v18412_v48  ;;  %v17658_v63 = vpack.c.bf16 %v12764_v39, %v12763_v16 }
 0xc4c   :  { %17732 = vmatprep.subr.bf16.mxu1 %v18412_v48 }
 0xc4e   :  { %17656 = vmatpush1.bf16.msra.mxu0 %v17655_v47 }
 0xc4f   :  { %17734 = vmatpush1.bf16.msra.mxu1 %v21226_v44  ;;  %17657 = vmatprep.subr.bf16.mxu0 %v18412_v48 }
 0xc50   :  { %17735 = vmatprep.subr.bf16.mxu1 %v18412_v48 }
 0xc52   :  { %17659 = vmatpush1.bf16.msra.mxu0 %v17658_v63 }
 0xc53   :  { %17737 = vmatpush1.bf16.msra.mxu1 %v17640_v62  ;;  %17660 = vmatprep.subr.bf16.mxu0 %v18412_v48 }
 0xc54   :  { %17738 = vmatprep.subr.bf16.mxu1 %v18412_v48 }
 0xc56   :  { %17662 = vmatpush1.bf16.msra.mxu0 %v17661_v52 }
 0xc57   :  { %17740 = vmatpush1.bf16.msra.mxu1 %v17643_v56  ;;  %13870 = vmatprep.subr.mxu0 %v21780_v22 }
 0xc58   :  { %17741 = vmatprep.subr.bf16.mxu1 %v18412_v48 }
 0xc5a   :  { %13871 = vmatpush1.msra.mxu0 %v12767_v29 }
 0xc5b   :  { %17743 = vmatpush1.bf16.msra.mxu1 %v17646_v33 }
 0xc5c   :  { %17744 = vmatprep.subr.bf16.mxu1 %v18412_v48 }
 0xc5f   :  { %17746 = vmatpush1.bf16.msra.mxu1 %v17649_v20 }
 0xc60   :  { %17747 = vmatprep.subr.bf16.mxu1 %v18412_v48 }
 0xc63   :  { %17749 = vmatpush1.bf16.msra.mxu1 %v17652_v3 }
 0xc64   :  { %17750 = vmatprep.subr.bf16.mxu1 %v18412_v48 }
 0xc67   :  { %17752 = vmatpush1.bf16.msra.mxu1 %v17655_v47 }
 0xc68   :  { %17753 = vmatprep.subr.bf16.mxu1 %v18412_v48 }
 0xc6b   :  { %17755 = vmatpush1.bf16.msra.mxu1 %v17658_v63 }
 0xc6c   :  { %17756 = vmatprep.subr.bf16.mxu1 %v18412_v48  ;;  %v12857_v48 = vunpack.c.l.s4 %v18413_v6 }
 0xc6e   :  { %v12858_v44 = vunpack.c.0.s8 %v12857_v48 }
 0xc6f   :  { %17758 = vmatpush1.bf16.msra.mxu1 %v17661_v52 }
 0xc70   :  { %14985 = vmatprep.subr.mxu1 %v21780_v22  ;;  %v21416_v32 = vsub.s32 %v12858_v44, %v21787_v2 }
 0xc73   :  { %14986 = vmatpush1.msra.mxu1 %v12767_v29 }
 0xcdb   :  { %v12848_v14 = vpop.f32.mrb[18].mxu0 }
 0xcdc   :  { %v12850_v46 = vpop.f32.mrb[19].mxu0 }
 0xcdd   :  { %v12855_v22 = vcombine.low %v12848_v14, %v12850_v46  ;;  %v12952_v59 = vpop.f32.mrb[8].mxu1 }
 0xcde   :  { %v12954_v12 = vpop.f32.mrb[9].mxu1 }
 0xcdf   :  { %v12862_v49 = vrot.slane %v12855_v22, %v21416_v32  ;;  %v12959_v57 = vcombine.low %v12952_v59, %v12954_v12  ;;  %v13056_v30 = vpop.f32.mrb[20].mxu0  ;;  %v13816_v12 = vsub.s32 1, %v21787_v2 }
 0xce0   :  { %v13058_v11 = vpop.f32.mrb[21].mxu0 }
 0xce1   :  { %v12869_v61 = vrot.slane %v12862_v49, %v21416_v32  ;;  %v12966_v7 = vrot.slane %v12959_v57, %v21416_v32  ;;  %v13063_v53 = vcombine.low %v13056_v30, %v13058_v11  ;;  %v13160_v38 = vpop.f32.mrb[10].mxu1  ;;  %v13812_v49 = vsub.s32 0, %v21787_v2 }
 0xce2   :  { %v13162_v42 = vpop.f32.mrb[11].mxu1 }
 0xce3   :  { %v12871_v25 = vadd.f32 %v12869_v61, %v21422_v58  ;;  %v12973_v34 = vrot.slane %v12966_v7, %v21416_v32  ;;  %v13070_v13 = vrot.slane %v13063_v53, %v21416_v32  ;;  %v13167_v1 = vcombine.low %v13160_v38, %v13162_v42  ;;  %v13264_v8 = vpop.f32.mrb[22].mxu0 }
 0xce4   :  { %v13266_v18 = vpop.f32.mrb[23].mxu0 }
 0xce5   :  { %v12975_v45 = vadd.f32 %v12973_v34, %v12871_v25  ;;  %v13077_v28 = vrot.slane %v13070_v13, %v21416_v32  ;;  %v13174_v60 = vrot.slane %v13167_v1, %v21416_v32  ;;  %v13271_v37 = vcombine.low %v13264_v8, %v13266_v18  ;;  %v13368_v9 = vpop.f32.mrb[12].mxu1 }
 0xce6   :  { %v13370_v36 = vpop.f32.mrb[13].mxu1 }
 0xce7   :  { %v13079_v51 = vadd.f32 %v13077_v28, %v12975_v45  ;;  %v13181_v50 = vrot.slane %v13174_v60, %v21416_v32  ;;  %v13278_v17 = vrot.slane %v13271_v37, %v21416_v32  ;;  %v13375_v21 = vcombine.low %v13368_v9, %v13370_v36  ;;  %v13472_v0 = vpop.f32.mrb[24].mxu0 }
 0xce8   :  { %v13474_v41 = vpop.f32.mrb[25].mxu0 }
 0xce9   :  { %v13183_v23 = vadd.f32 %v13181_v50, %v13079_v51  ;;  %v13285_v10 = vrot.slane %v13278_v17, %v21416_v32  ;;  %v13382_v62 = vrot.slane %v13375_v21, %v21416_v32  ;;  %v13479_v40 = vcombine.low %v13472_v0, %v13474_v41  ;;  %v13576_v55 = vpop.f32.mrb[14].mxu1 }
 0xcea   :  { %v13578_v56 = vpop.f32.mrb[15].mxu1 }
 0xceb   :  { %v13287_v27 = vadd.f32 %v13285_v10, %v13183_v23  ;;  %v13389_v35 = vrot.slane %v13382_v62, %v21416_v32  ;;  %v13486_v33 = vrot.slane %v13479_v40, %v21416_v32  ;;  %v13583_v54 = vcombine.low %v13576_v55, %v13578_v56  ;;  %v13680_v4 = vpop.f32.mrb[26].mxu0 }
 0xcec   :  { %v13682_v20 = vpop.f32.mrb[27].mxu0 }
 0xced   :  { %v13391_v31 = vadd.f32 %v13389_v35, %v13287_v27  ;;  %v13493_v24 = vrot.slane %v13486_v33, %v21416_v32  ;;  %v13590_v3 = vrot.slane %v13583_v54, %v21416_v32  ;;  %v13687_v26 = vcombine.low %v13680_v4, %v13682_v20  ;;  %v13784_v15 = vpop.f32.mrb[16].mxu1 }
 0xcee   :  { %v13786_v47 = vpop.f32.mrb[17].mxu1 }
 0xcef   :  { %v13495_v16 = vadd.f32 %v13493_v24, %v13391_v31  ;;  %v13597_v39 = vrot.slane %v13590_v3, %v21416_v32  ;;  %v13694_v63 = vrot.slane %v13687_v26, %v21416_v32  ;;  %v13791_v19 = vcombine.low %v13784_v15, %v13786_v47 }
 0xcf1   :  { %v13599_v43 = vadd.f32 %v13597_v39, %v13495_v16  ;;  %v13701_v52 = vrot.slane %v13694_v63, %v21416_v32  ;;  %v13798_v29 = vrot.slane %v13791_v19, %v21416_v32  ;;  %v13973_v5 = vpop.f32.mrb[18].mxu1 }
 0xcf2   :  { %v13975_v6 = vpop.f32.mrb[19].mxu1 }
 0xcf3   :  { %v13703_v48 = vadd.f32 %v13701_v52, %v13599_v43  ;;  %v13805_v44 = vrot.slane %v13798_v29, %v21416_v32  ;;  %v13980_v14 = vcombine.low %v13973_v5, %v13975_v6 }
 0xcf5   :  { %v13807_v46 = vadd.f32 %v13805_v44, %v13703_v48  ;;  %v13987_v22 = vrot.slane %v13980_v14, %v21416_v32  ;;  %v14076_v59 = vpop.f32.mrb[20].mxu1 }
 0xcf6   :  { %v14078_v57 = vpop.f32.mrb[21].mxu1 }
 0xcf7   :  { %v13808_v30 = vmax.f32 %v13807_v46, 0.0  ;;  %v13994_v11 = vrot.slane %v13987_v22, %v21416_v32  ;;  %v14083_v61 = vcombine.low %v14076_v59, %v14078_v57 }
 0xcf9   :  { %v14090_v7 = vrot.slane %v14083_v61, %v21416_v32  ;;  %v14179_v53 = vpop.f32.mrb[22].mxu1  ;;  %v13817_v38 = vrot.slane %v13808_v30, %v13816_v12  ;;  %v13813_v42 = vrot.slane %v13808_v30, %v13812_v49  ;;  %v13996_v34 = vadd.f32 %v13994_v11, %v21422_v58  ;;  %v12768_v30 = vld [vmem:[#allocation2] sm:$0x1] }
 0xcfa   :  { %v14181_v25 = vpop.f32.mrb[23].mxu1 }
 0xcfb   :  { %v14097_v13 = vrot.slane %v14090_v7, %v21416_v32  ;;  %v14186_v1 = vcombine.low %v14179_v53, %v14181_v25  ;;  %15695 = vmatprep.mubr.msk.f32.mxu0 %vm13819_vm3, %v13817_v38 }
 0xcfc   :  { %13887 = vmatmul.mubr.f32.vlgmr.msra.gmra.mrb[28].mxu0 %v13813_v42 }
 0xcfd   :  { %v14099_v8 = vadd.f32 %v14097_v13, %v13996_v34  ;;  %v14193_v18 = vrot.slane %v14186_v1, %v21416_v32  ;;  %v14282_v45 = vpop.f32.mrb[24].mxu1 }
 0xcfe   :  { %v14284_v28 = vpop.f32.mrb[25].mxu1 }
 0xcff   :  { %v14200_v60 = vrot.slane %v14193_v18, %v21416_v32  ;;  %v14289_v37 = vcombine.low %v14282_v45, %v14284_v28 }
 0xd01   :  { %v14202_v9 = vadd.f32 %v14200_v60, %v14099_v8  ;;  %v14296_v36 = vrot.slane %v14289_v37, %v21416_v32  ;;  %v14385_v51 = vpop.f32.mrb[26].mxu1 }
 0xd02   :  { %v14387_v50 = vpop.f32.mrb[27].mxu1 }
 0xd03   :  { %v14303_v58 = vrot.slane %v14296_v36, %v21416_v32  ;;  %v14392_v17 = vcombine.low %v14385_v51, %v14387_v50 }
 0xd05   :  { %v14305_v21 = vadd.f32 %v14303_v58, %v14202_v9  ;;  %v14399_v0 = vrot.slane %v14392_v17, %v21416_v32  ;;  %v14488_v41 = vpop.f32.mrb[28].mxu1 }
 0xd06   :  { %v14490_v23 = vpop.f32.mrb[29].mxu1 }
 0xd07   :  { %v14406_v10 = vrot.slane %v14399_v0, %v21416_v32  ;;  %v14495_v62 = vcombine.low %v14488_v41, %v14490_v23 }
 0xd09   :  { %v14408_v40 = vadd.f32 %v14406_v10, %v14305_v21  ;;  %v14502_v55 = vrot.slane %v14495_v62, %v21416_v32  ;;  %v14591_v56 = vpop.f32.mrb[30].mxu1 }
 0xd0a   :  { %v14593_v27 = vpop.f32.mrb[31].mxu1 }
 0xd0b   :  { %v14509_v35 = vrot.slane %v14502_v55, %v21416_v32  ;;  %v14598_v33 = vcombine.low %v14591_v56, %v14593_v27 }
 0xd0d   :  { %v14511_v54 = vadd.f32 %v14509_v35, %v14408_v40  ;;  %v14605_v4 = vrot.slane %v14598_v33, %v21416_v32  ;;  %v14694_v20 = vpop.f32.mrb[32].mxu1 }
 0xd0e   :  { %v14696_v31 = vpop.f32.mrb[33].mxu1 }
 0xd0f   :  { %v14612_v24 = vrot.slane %v14605_v4, %v21416_v32  ;;  %v14701_v3 = vcombine.low %v14694_v20, %v14696_v31 }
 0xd11   :  { %v14614_v26 = vadd.f32 %v14612_v24, %v14511_v54  ;;  %v14708_v15 = vrot.slane %v14701_v3, %v21416_v32  ;;  %v14797_v47 = vpop.f32.mrb[34].mxu1 }
 0xd12   :  { %v14799_v16 = vpop.f32.mrb[35].mxu1 }
 0xd13   :  { %v14715_v39 = vrot.slane %v14708_v15, %v21416_v32  ;;  %v14804_v63 = vcombine.low %v14797_v47, %v14799_v16 }
 0xd15   :  { %v14717_v19 = vadd.f32 %v14715_v39, %v14614_v26  ;;  %v14811_v43 = vrot.slane %v14804_v63, %v21416_v32  ;;  %v14900_v52 = vpop.f32.mrb[36].mxu1 }
 0xd16   :  { %v14902_v29 = vpop.f32.mrb[37].mxu1 }
 0xd17   :  { %v14818_v5 = vrot.slane %v14811_v43, %v21416_v32  ;;  %v14907_v6 = vcombine.low %v14900_v52, %v14902_v29 }
 0xd19   :  { %v14820_v48 = vadd.f32 %v14818_v5, %v14717_v19  ;;  %v14914_v44 = vrot.slane %v14907_v6, %v21416_v32 }
 0xd1b   :  { %v14921_v14 = vrot.slane %v14914_v44, %v21416_v32 }
 0xd1d   :  { %v14923_v46 = vadd.f32 %v14921_v14, %v14820_v48 }
 0xd1f   :  { %v14924_v22 = vmax.f32 %v14923_v46, 0.0 }
 0xd21   :  { %v14933_v59 = vrot.slane %v14924_v22, %v13816_v12  ;;  %v14929_v57 = vrot.slane %v14924_v22, %v13812_v49 }
 0xd23   :  { %15762 = vmatprep.mubr.msk.f32.mxu1 %vm13819_vm3, %v14933_v59 }
 0xd24   :  { %15002 = vmatmul.mubr.f32.vlgmr.msra.gmra.mrb[38].mxu1 %v14929_v57 }
 0xdcf   :  { %v13888_v11 = vpop.f32.mrb[28].mxu0 }
 0xdd0   :  { %v13889_v61 = vadd.f32 %v13888_v11, %v12768_v30  ;;  %v13890_v7 = vpop.f32.mrb[29].mxu0 }
 0xdd2   :  { %13893 = vst.msk [vmem:[%s21492_s9] sm:$0x1] %vm13892_vm1, %v13889_v61 }
 0xdf7   :  { %v15003_v32 = vpop.f32.mrb[38].mxu1 }
 0xdf8   :  { %v15004_v53 = vadd.f32 %v15003_v32, %v12768_v30  ;;  %v15005_v38 = vpop.f32.mrb[39].mxu1 }
 0xdfa   :  { %15007 = vst.msk [vmem:[%s21492_s9 + $0x1] sm:$0x1] %vm13892_vm1, %v15004_v53 }

</bundles_post_ra>
